<compile_context>
chip_gen: v7x
topology: tpu7x:2x2x1
jax: 0.10.0
libtpu: 0.0.40
codegen_flags: <defaults>
</compile_context>

<pallas_src>
import jax
import jax.numpy as jnp
from jax.experimental import pallas as pl
from jax.experimental.pallas import tpu as pltpu


# ----------------------------------------------------------------------------
# conv_block = Conv2d(3x3, pad=1) + BatchNorm2d (eval, folded) + ReLU + MaxPool2d(2)
# (traced helper, inlined into the fused kernel for each of the 4 layers)
# ----------------------------------------------------------------------------
def _conv_block(act, pad_ref, w, scale, bias):
    """act: (N,H,W,Cin) f32 value resident in VMEM.
    pad_ref: (N,H+2,W+2,Cin) f32 VMEM scratch for the zero-padded image.
    w: (9*Cin, Cout) bf16 value, im2col layout (ky,kx,cin) x cout.
    scale/bias: (1, Cout) f32 folded eval-mode BatchNorm.
    returns (N, H//2, W//2, Cout) f32."""
    N, H, W, Cin = act.shape
    Cout = w.shape[-1]
    Ho, Wo = H // 2, W // 2
    M = N * H * W

    # padding=1 done entirely in VMEM (never an HBM round trip).
    pad_ref[...] = jnp.zeros(pad_ref.shape, pad_ref.dtype)
    pad_ref[:, 1:H + 1, 1:W + 1, :] = act
    xp = pad_ref[...]

    # 9 shifted taps of the padded image; batch folded into the matmul M dim.
    taps = [xp[:, ky:ky + H, kx:kx + W, :].reshape(M, Cin)
            for ky in range(3) for kx in range(3)]

    if Cin % 8 == 0:
        # im2col: concatenate taps along K -> a single bf16 MXU matmul, K = 9*Cin.
        patches = jnp.concatenate(taps, axis=1).astype(jnp.bfloat16)
        acc = jnp.dot(patches, w, preferred_element_type=jnp.float32)
    else:
        # First layer (Cin=3): keep 9 accumulated K=Cin matmuls; M=N*H*W still
        # feeds the MXU and this layer is <10% of total FLOPs.
        acc = jnp.zeros((M, Cout), jnp.float32)
        for t, tap in enumerate(taps):
            acc = acc + jnp.dot(tap.astype(jnp.bfloat16),
                                w[t * Cin:(t + 1) * Cin, :],
                                preferred_element_type=jnp.float32)

    y = acc * scale + bias                                   # folded BatchNorm (f32)
    y = jnp.maximum(y, 0.0)                                  # ReLU

    # 2x2 max pool on the row-major (n, h, w) flattened layout.
    y = jnp.max(y.reshape(N * H * Wo, 2, Cout), axis=1)      # pool along W
    y = jnp.max(y.reshape(N * Ho, 2, Wo, Cout), axis=1)      # pool along H
    return y.reshape(N, Ho, Wo, Cout)


# ----------------------------------------------------------------------------
# Fused ConvNet4 forward kernel: encoder (4 conv_blocks) + channel attention
# ----------------------------------------------------------------------------
def convnet4_kernel(x_ref, w1_ref, w234_ref, scales_ref, biases_ref,
                    ca_w1_ref, ca_b1_ref, ca_w2_ref, ca_b2_ref,
                    o_ref, pad1, pad2, pad3, pad4):
    pads = (pad1, pad2, pad3, pad4)

    # ---- encoder: 4 fused conv_blocks, activations never leave VMEM ----
    a = x_ref[...]
    for l in range(4):
        w = w1_ref[...] if l == 0 else w234_ref[l - 1]
        a = _conv_block(a, pads[l], w, scales_ref[l], biases_ref[l])

    # ---- channel attention, fused into the same kernel ----
    # TODO(synk): original ChannelAttn source not provided; SE-style assumed
    # (GAP -> 1x1 reduce -> ReLU -> 1x1 expand -> sigmoid -> rescale, r=16).
    N, Ho, Wo, C = a.shape
    gap = jnp.sum(a.reshape(N, Ho * Wo, C), axis=1) * (1.0 / (Ho * Wo))   # (N, C)
    h = jnp.dot(gap.astype(jnp.bfloat16), ca_w1_ref[...],
                preferred_element_type=jnp.float32) + ca_b1_ref[...]
    h = jnp.maximum(h, 0.0)
    z = jnp.dot(h.astype(jnp.bfloat16), ca_w2_ref[...],
                preferred_element_type=jnp.float32) + ca_b2_ref[...]
    # sigmoid = 1/(1+exp(-z)): exp + approx reciprocal both run on the EUP slot.
    gate = pl.reciprocal(1.0 + jnp.exp(-z), approx=True)                   # (N, C)
    o_ref[...] = (a * gate.reshape(N, 1, 1, C)).astype(o_ref.dtype)


def convnet4_forward(x_nchw, params):
    """ConvNet4.forward: encoder (4 conv_blocks) then channel attention.

    x_nchw: (N, C, H, W) like PyTorch; returns (N, z_dim, H/16, W/16) NCHW.
    The module's SpatialAttn is constructed but never used in forward(), so it
    is omitted here as well.
    """
    x = jnp.transpose(x_nchw, (0, 2, 3, 1)).astype(jnp.float32)   # NCHW -> NHWC
    N, H, W, C0 = x.shape
    blocks = params["blocks"]
    ca = params["ca"]

    # im2col weight layout (9*Cin, Cout); bf16 MXU operands, f32 BN params.
    w1 = blocks[0]["w"].reshape(-1, blocks[0]["w"].shape[-1]).astype(jnp.bfloat16)
    w234 = jnp.stack(
        [b["w"].reshape(-1, b["w"].shape[-1]) for b in blocks[1:]]
    ).astype(jnp.bfloat16)                                        # (3, 9*hid, Cout)
    scales = jnp.stack([b["scale"] for b in blocks])              # (4, 1, Cout)
    biases = jnp.stack([b["bias"] for b in blocks])               # (4, 1, Cout)

    # Per-layer zero-padded-activation VMEM scratch (padding done in-kernel).
    # TODO(synk): at 16x16 whole images trivially fit VMEM on v5e/v6e/v7x; for
    # large spatial inputs add H-tiling with a 1-row halo + vmem_limit_bytes.
    pads, h, w_, c = [], H, W, C0
    for b in blocks:
        pads.append(pltpu.VMEM((N, h + 2, w_ + 2, c), jnp.float32))
        h, w_, c = h // 2, w_ // 2, b["w"].shape[-1]
    Ho, Wo, Cz = h, w_, c

    vmem = pl.BlockSpec(memory_space=pltpu.MemorySpace.VMEM)
    out_nhwc = pl.pallas_call(
        convnet4_kernel,
        out_shape=jax.ShapeDtypeStruct((N, Ho, Wo, Cz), jnp.float32),
        in_specs=[vmem] * 9,
        out_specs=vmem,
        scratch_shapes=pads,
    )(x, w1, w234, scales, biases,
      ca["w1"].astype(jnp.bfloat16), ca["b1"],
      ca["w2"].astype(jnp.bfloat16), ca["b2"])
    return jnp.transpose(out_nhwc, (0, 3, 1, 2))                  # NHWC -> NCHW


# ----------------------------------------------------------------------------
# Parameter init (deterministic, synthetic) and a pure-JAX f32 reference
# ----------------------------------------------------------------------------
def init_params(key, x_dim=3, hid_dim=64, z_dim=64, reduction=16):
    dims = [(x_dim, hid_dim), (hid_dim, hid_dim), (hid_dim, hid_dim), (hid_dim, z_dim)]
    eps = 1e-5
    blocks = []
    for cin, cout in dims:
        key, kw, kg, kb, km, kv = jax.random.split(key, 6)
        w = jax.random.normal(kw, (3, 3, cin, cout), jnp.float32) * (2.0 / (9 * cin)) ** 0.5
        gamma = jax.random.uniform(kg, (1, cout), jnp.float32, 0.5, 1.5)
        beta = jax.random.normal(kb, (1, cout), jnp.float32) * 0.1
        mean = jax.random.normal(km, (1, cout), jnp.float32) * 0.1
        var = jax.random.uniform(kv, (1, cout), jnp.float32, 0.5, 1.5)
        scale = gamma / jnp.sqrt(var + eps)                  # fold eval-mode BatchNorm
        bias = beta - mean * scale
        blocks.append({"w": w, "scale": scale, "bias": bias})
    c, cr = z_dim, z_dim // reduction
    key, k1, k2, k3, k4 = jax.random.split(key, 5)
    ca = {
        "w1": jax.random.normal(k1, (c, cr), jnp.float32) * (2.0 / c) ** 0.5,
        "b1": jax.random.normal(k2, (1, cr), jnp.float32) * 0.1,
        "w2": jax.random.normal(k3, (cr, c), jnp.float32) * (2.0 / cr) ** 0.5,
        "b2": jax.random.normal(k4, (1, c), jnp.float32) * 0.1,
    }
    return {"blocks": blocks, "ca": ca}


def convnet4_reference(x_nchw, params):
    """Plain-XLA f32 reference (lax.conv + reduce-style pooling + exact sigmoid)."""
    x = jnp.transpose(x_nchw, (0, 2, 3, 1)).astype(jnp.float32)
    for blk in params["blocks"]:
        y = jax.lax.conv_general_dilated(
            x, blk["w"], window_strides=(1, 1), padding=((1, 1), (1, 1)),
            dimension_numbers=("NHWC", "HWIO", "NHWC"))
        y = y * blk["scale"].reshape(1, 1, 1, -1) + blk["bias"].reshape(1, 1, 1, -1)
        y = jnp.maximum(y, 0.0)
        N, H, W, Cout = y.shape
        y = jnp.max(y.reshape(N, H, W // 2, 2, Cout), axis=3)
        y = jnp.max(y.reshape(N, H // 2, 2, W // 2, Cout), axis=2)
        x = y
    N, Ho, Wo, C = x.shape
    ca = params["ca"]
    gap = jnp.mean(x.reshape(N, Ho * Wo, C), axis=1)
    h = jnp.maximum(gap @ ca["w1"] + ca["b1"], 0.0)
    z = h @ ca["w2"] + ca["b2"]
    gate = jax.nn.sigmoid(z)
    out = x * gate.reshape(N, 1, 1, C)
    return jnp.transpose(out, (0, 3, 1, 2))


if __name__ == "__main__":
    key = jax.random.PRNGKey(0)
    pkey, xkey = jax.random.split(key)
    params = init_params(pkey)                               # x_dim=3, hid=z=64 (defaults)
    x = jax.random.normal(xkey, (2, 3, 16, 16), jnp.float32)  # small NCHW input

    out = jax.jit(convnet4_forward)(x, params)
    out = jax.block_until_ready(out)
    ref = convnet4_reference(x, params)

    assert out.shape == (2, 64, 1, 1), out.shape             # 16 -> 8 -> 4 -> 2 -> 1 spatial
    assert bool(jnp.all(jnp.isfinite(out)))
    assert bool(jnp.allclose(out, ref, rtol=5e-2, atol=5e-2)), \
        float(jnp.max(jnp.abs(out - ref)))                   # bf16-MXU vs f32 reference
    print("KERNEL_OK")
</pallas_src>

<mosaic_0001>
module attributes {stable_mosaic.version = 11 : i64} {
  func.func @convnet4_kernel(%arg0: memref<2x16x16x3xf32, #tpu.memory_space<vmem>>, %arg1: memref<27x64xbf16, #tpu.memory_space<vmem>>, %arg2: memref<3x576x64xbf16, #tpu.memory_space<vmem>>, %arg3: memref<4x1x64xf32, #tpu.memory_space<vmem>>, %arg4: memref<4x1x64xf32, #tpu.memory_space<vmem>>, %arg5: memref<64x4xbf16, #tpu.memory_space<vmem>>, %arg6: memref<1x4xf32, #tpu.memory_space<vmem>>, %arg7: memref<4x64xbf16, #tpu.memory_space<vmem>>, %arg8: memref<1x64xf32, #tpu.memory_space<vmem>>, %arg9: memref<2x1x1x64xf32, #tpu.memory_space<vmem>>, %arg10: memref<2x18x18x3xf32, #tpu.memory_space<vmem>>, %arg11: memref<2x10x10x64xf32, #tpu.memory_space<vmem>>, %arg12: memref<2x6x6x64xf32, #tpu.memory_space<vmem>>, %arg13: memref<2x4x4x64xf32, #tpu.memory_space<vmem>>) attributes {dimension_semantics = [], scalar_prefetch = 0 : i64, scratch_operands = 4 : i64, tpu.core_type = #tpu.core_type<tc>} {
    %c0 = arith.constant 0 : index
    %c0_0 = arith.constant 0 : index
    %c0_1 = arith.constant 0 : index
    %c0_2 = arith.constant 0 : index
    %0 = vector.load %arg0[%c0, %c0_0, %c0_1, %c0_2] : memref<2x16x16x3xf32, #tpu.memory_space<vmem>>, vector<2x16x16x3xf32>
    %c0_3 = arith.constant 0 : index
    %c0_4 = arith.constant 0 : index
    %1 = vector.load %arg1[%c0_3, %c0_4] : memref<27x64xbf16, #tpu.memory_space<vmem>>, vector<27x64xbf16>
    %c0_5 = arith.constant 0 : index
    %c0_6 = arith.constant 0 : index
    %c0_7 = arith.constant 0 : index
    %2 = vector.load %arg3[%c0_5, %c0_6, %c0_7] : memref<4x1x64xf32, #tpu.memory_space<vmem>>, vector<1x1x64xf32>
    %3 = vector.shape_cast %2 : vector<1x1x64xf32> to vector<1x64xf32>
    %c0_8 = arith.constant 0 : index
    %c0_9 = arith.constant 0 : index
    %c0_10 = arith.constant 0 : index
    %4 = vector.load %arg4[%c0_8, %c0_9, %c0_10] : memref<4x1x64xf32, #tpu.memory_space<vmem>>, vector<1x1x64xf32>
    %5 = vector.shape_cast %4 : vector<1x1x64xf32> to vector<1x64xf32>
    %cst = arith.constant 0.000000e+00 : f32
    %6 = vector.broadcast %cst : f32 to vector<2x18x18x3xf32>
    %c0_11 = arith.constant 0 : index
    %c0_12 = arith.constant 0 : index
    %c0_13 = arith.constant 0 : index
    %c0_14 = arith.constant 0 : index
    %7 = vector.load %arg10[%c0_11, %c0_12, %c0_13, %c0_14] : memref<2x18x18x3xf32, #tpu.memory_space<vmem>>, vector<2x18x18x3xf32>
    tpu.vector_store %arg10[%c0_11, %c0_12, %c0_13, %c0_14], %6 {strides = array<i32>} : memref<2x18x18x3xf32, #tpu.memory_space<vmem>>, vector<2x18x18x3xf32>,
    %c0_15 = arith.constant 0 : index
    %c1 = arith.constant 1 : index
    %c1_16 = arith.constant 1 : index
    %c0_17 = arith.constant 0 : index
    %8 = vector.load %arg10[%c0_15, %c1, %c1_16, %c0_17] : memref<2x18x18x3xf32, #tpu.memory_space<vmem>>, vector<2x16x16x3xf32>
    tpu.vector_store %arg10[%c0_15, %c1, %c1_16, %c0_17], %0 {strides = array<i32>} : memref<2x18x18x3xf32, #tpu.memory_space<vmem>>, vector<2x16x16x3xf32>,
    %c0_18 = arith.constant 0 : index
    %c0_19 = arith.constant 0 : index
    %c0_20 = arith.constant 0 : index
    %c0_21 = arith.constant 0 : index
    %9 = vector.load %arg10[%c0_18, %c0_19, %c0_20, %c0_21] : memref<2x18x18x3xf32, #tpu.memory_space<vmem>>, vector<2x18x18x3xf32>
    %10 = vector.extract_strided_slice %9 {offsets = [0, 0, 0, 0], sizes = [2, 16, 16, 3], strides = [1, 1, 1, 1]} : vector<2x18x18x3xf32> to vector<2x16x16x3xf32>
    %11 = vector.shape_cast %10 : vector<2x16x16x3xf32> to vector<512x3xf32>
    %12 = vector.extract_strided_slice %9 {offsets = [0, 0, 1, 0], sizes = [2, 16, 16, 3], strides = [1, 1, 1, 1]} : vector<2x18x18x3xf32> to vector<2x16x16x3xf32>
    %13 = vector.shape_cast %12 : vector<2x16x16x3xf32> to vector<512x3xf32>
    %14 = vector.extract_strided_slice %9 {offsets = [0, 0, 2, 0], sizes = [2, 16, 16, 3], strides = [1, 1, 1, 1]} : vector<2x18x18x3xf32> to vector<2x16x16x3xf32>
    %15 = vector.shape_cast %14 : vector<2x16x16x3xf32> to vector<512x3xf32>
    %16 = vector.extract_strided_slice %9 {offsets = [0, 1, 0, 0], sizes = [2, 16, 16, 3], strides = [1, 1, 1, 1]} : vector<2x18x18x3xf32> to vector<2x16x16x3xf32>
    %17 = vector.shape_cast %16 : vector<2x16x16x3xf32> to vector<512x3xf32>
    %18 = vector.extract_strided_slice %9 {offsets = [0, 1, 1, 0], sizes = [2, 16, 16, 3], strides = [1, 1, 1, 1]} : vector<2x18x18x3xf32> to vector<2x16x16x3xf32>
    %19 = vector.shape_cast %18 : vector<2x16x16x3xf32> to vector<512x3xf32>
    %20 = vector.extract_strided_slice %9 {offsets = [0, 1, 2, 0], sizes = [2, 16, 16, 3], strides = [1, 1, 1, 1]} : vector<2x18x18x3xf32> to vector<2x16x16x3xf32>
    %21 = vector.shape_cast %20 : vector<2x16x16x3xf32> to vector<512x3xf32>
    %22 = vector.extract_strided_slice %9 {offsets = [0, 2, 0, 0], sizes = [2, 16, 16, 3], strides = [1, 1, 1, 1]} : vector<2x18x18x3xf32> to vector<2x16x16x3xf32>
    %23 = vector.shape_cast %22 : vector<2x16x16x3xf32> to vector<512x3xf32>
    %24 = vector.extract_strided_slice %9 {offsets = [0, 2, 1, 0], sizes = [2, 16, 16, 3], strides = [1, 1, 1, 1]} : vector<2x18x18x3xf32> to vector<2x16x16x3xf32>
    %25 = vector.shape_cast %24 : vector<2x16x16x3xf32> to vector<512x3xf32>
    %26 = vector.extract_strided_slice %9 {offsets = [0, 2, 2, 0], sizes = [2, 16, 16, 3], strides = [1, 1, 1, 1]} : vector<2x18x18x3xf32> to vector<2x16x16x3xf32>
    %27 = vector.shape_cast %26 : vector<2x16x16x3xf32> to vector<512x3xf32>
    %cst_22 = arith.constant 0.000000e+00 : f32
    %28 = vector.broadcast %cst_22 : f32 to vector<512x64xf32>
    %29 = arith.truncf %11 : vector<512x3xf32> to vector<512x3xbf16>
    %30 = vector.extract_strided_slice %1 {offsets = [0, 0], sizes = [3, 64], strides = [1, 1]} : vector<27x64xbf16> to vector<3x64xbf16>
    %cst_23 = arith.constant dense<0.000000e+00> : vector<512x64xf32>
    %31 = tpu.matmul %29, %30, %cst_23 {dimension_numbers = #tpu.dot_dimension_numbers<[1], [0], [0], [1], [0, 0, 1, 1], [], []>} : vector<512x3xbf16>, vector<3x64xbf16>, vector<512x64xf32> -> vector<512x64xf32>
    %32 = arith.addf %28, %31 : vector<512x64xf32>
    %33 = arith.truncf %13 : vector<512x3xf32> to vector<512x3xbf16>
    %34 = vector.extract_strided_slice %1 {offsets = [3, 0], sizes = [3, 64], strides = [1, 1]} : vector<27x64xbf16> to vector<3x64xbf16>
    %cst_24 = arith.constant dense<0.000000e+00> : vector<512x64xf32>
    %35 = tpu.matmul %33, %34, %cst_24 {dimension_numbers = #tpu.dot_dimension_numbers<[1], [0], [0], [1], [0, 0, 1, 1], [], []>} : vector<512x3xbf16>, vector<3x64xbf16>, vector<512x64xf32> -> vector<512x64xf32>
    %36 = arith.addf %32, %35 : vector<512x64xf32>
    %37 = arith.truncf %15 : vector<512x3xf32> to vector<512x3xbf16>
    %38 = vector.extract_strided_slice %1 {offsets = [6, 0], sizes = [3, 64], strides = [1, 1]} : vector<27x64xbf16> to vector<3x64xbf16>
    %cst_25 = arith.constant dense<0.000000e+00> : vector<512x64xf32>
    %39 = tpu.matmul %37, %38, %cst_25 {dimension_numbers = #tpu.dot_dimension_numbers<[1], [0], [0], [1], [0, 0, 1, 1], [], []>} : vector<512x3xbf16>, vector<3x64xbf16>, vector<512x64xf32> -> vector<512x64xf32>
    %40 = arith.addf %36, %39 : vector<512x64xf32>
    %41 = arith.truncf %17 : vector<512x3xf32> to vector<512x3xbf16>
    %42 = vector.extract_strided_slice %1 {offsets = [9, 0], sizes = [3, 64], strides = [1, 1]} : vector<27x64xbf16> to vector<3x64xbf16>
    %cst_26 = arith.constant dense<0.000000e+00> : vector<512x64xf32>
    %43 = tpu.matmul %41, %42, %cst_26 {dimension_numbers = #tpu.dot_dimension_numbers<[1], [0], [0], [1], [0, 0, 1, 1], [], []>} : vector<512x3xbf16>, vector<3x64xbf16>, vector<512x64xf32> -> vector<512x64xf32>
    %44 = arith.addf %40, %43 : vector<512x64xf32>
    %45 = arith.truncf %19 : vector<512x3xf32> to vector<512x3xbf16>
    %46 = vector.extract_strided_slice %1 {offsets = [12, 0], sizes = [3, 64], strides = [1, 1]} : vector<27x64xbf16> to vector<3x64xbf16>
    %cst_27 = arith.constant dense<0.000000e+00> : vector<512x64xf32>
    %47 = tpu.matmul %45, %46, %cst_27 {dimension_numbers = #tpu.dot_dimension_numbers<[1], [0], [0], [1], [0, 0, 1, 1], [], []>} : vector<512x3xbf16>, vector<3x64xbf16>, vector<512x64xf32> -> vector<512x64xf32>
    %48 = arith.addf %44, %47 : vector<512x64xf32>
    %49 = arith.truncf %21 : vector<512x3xf32> to vector<512x3xbf16>
    %50 = vector.extract_strided_slice %1 {offsets = [15, 0], sizes = [3, 64], strides = [1, 1]} : vector<27x64xbf16> to vector<3x64xbf16>
    %cst_28 = arith.constant dense<0.000000e+00> : vector<512x64xf32>
    %51 = tpu.matmul %49, %50, %cst_28 {dimension_numbers = #tpu.dot_dimension_numbers<[1], [0], [0], [1], [0, 0, 1, 1], [], []>} : vector<512x3xbf16>, vector<3x64xbf16>, vector<512x64xf32> -> vector<512x64xf32>
    %52 = arith.addf %48, %51 : vector<512x64xf32>
    %53 = arith.truncf %23 : vector<512x3xf32> to vector<512x3xbf16>
    %54 = vector.extract_strided_slice %1 {offsets = [18, 0], sizes = [3, 64], strides = [1, 1]} : vector<27x64xbf16> to vector<3x64xbf16>
    %cst_29 = arith.constant dense<0.000000e+00> : vector<512x64xf32>
    %55 = tpu.matmul %53, %54, %cst_29 {dimension_numbers = #tpu.dot_dimension_numbers<[1], [0], [0], [1], [0, 0, 1, 1], [], []>} : vector<512x3xbf16>, vector<3x64xbf16>, vector<512x64xf32> -> vector<512x64xf32>
    %56 = arith.addf %52, %55 : vector<512x64xf32>
    %57 = arith.truncf %25 : vector<512x3xf32> to vector<512x3xbf16>
    %58 = vector.extract_strided_slice %1 {offsets = [21, 0], sizes = [3, 64], strides = [1, 1]} : vector<27x64xbf16> to vector<3x64xbf16>
    %cst_30 = arith.constant dense<0.000000e+00> : vector<512x64xf32>
    %59 = tpu.matmul %57, %58, %cst_30 {dimension_numbers = #tpu.dot_dimension_numbers<[1], [0], [0], [1], [0, 0, 1, 1], [], []>} : vector<512x3xbf16>, vector<3x64xbf16>, vector<512x64xf32> -> vector<512x64xf32>
    %60 = arith.addf %56, %59 : vector<512x64xf32>
    %61 = arith.truncf %27 : vector<512x3xf32> to vector<512x3xbf16>
    %62 = vector.extract_strided_slice %1 {offsets = [24, 0], sizes = [3, 64], strides = [1, 1]} : vector<27x64xbf16> to vector<3x64xbf16>
    %cst_31 = arith.constant dense<0.000000e+00> : vector<512x64xf32>
    %63 = tpu.matmul %61, %62, %cst_31 {dimension_numbers = #tpu.dot_dimension_numbers<[1], [0], [0], [1], [0, 0, 1, 1], [], []>} : vector<512x3xbf16>, vector<3x64xbf16>, vector<512x64xf32> -> vector<512x64xf32>
    %64 = arith.addf %60, %63 : vector<512x64xf32>
    %65 = vector.broadcast %3 : vector<1x64xf32> to vector<512x64xf32>
    %66 = arith.mulf %64, %65 : vector<512x64xf32>
    %67 = vector.broadcast %5 : vector<1x64xf32> to vector<512x64xf32>
    %68 = arith.addf %66, %67 : vector<512x64xf32>
    %cst_32 = arith.constant 0.000000e+00 : f32
    %69 = vector.broadcast %cst_32 : f32 to vector<512x64xf32>
    %70 = arith.maximumf %68, %69 : vector<512x64xf32>
    %71 = vector.shape_cast %70 : vector<512x64xf32> to vector<256x2x64xf32>
    %cst_33 = arith.constant dense<0xFF800000> : vector<256x64xf32>
    %72 = vector.multi_reduction <maximumf>, %71, %cst_33 [1] : vector<256x2x64xf32> to vector<256x64xf32>
    %73 = vector.shape_cast %72 : vector<256x64xf32> to vector<16x2x8x64xf32>
    %cst_34 = arith.constant dense<0xFF800000> : vector<16x8x64xf32>
    %74 = vector.multi_reduction <maximumf>, %73, %cst_34 [1] : vector<16x2x8x64xf32> to vector<16x8x64xf32>
    %75 = vector.shape_cast %74 : vector<16x8x64xf32> to vector<2x8x8x64xf32>
    %c0_35 = arith.constant 0 : index
    %c0_36 = arith.constant 0 : index
    %c0_37 = arith.constant 0 : index
    %76 = vector.load %arg2[%c0_35, %c0_36, %c0_37] : memref<3x576x64xbf16, #tpu.memory_space<vmem>>, vector<1x576x64xbf16>
    %77 = vector.shape_cast %76 : vector<1x576x64xbf16> to vector<576x64xbf16>
    %c1_38 = arith.constant 1 : index
    %c0_39 = arith.constant 0 : index
    %c0_40 = arith.constant 0 : index
    %78 = vector.load %arg3[%c1_38, %c0_39, %c0_40] : memref<4x1x64xf32, #tpu.memory_space<vmem>>, vector<1x1x64xf32>
    %79 = vector.shape_cast %78 : vector<1x1x64xf32> to vector<1x64xf32>
    %c1_41 = arith.constant 1 : index
    %c0_42 = arith.constant 0 : index
    %c0_43 = arith.constant 0 : index
    %80 = vector.load %arg4[%c1_41, %c0_42, %c0_43] : memref<4x1x64xf32, #tpu.memory_space<vmem>>, vector<1x1x64xf32>
    %81 = vector.shape_cast %80 : vector<1x1x64xf32> to vector<1x64xf32>
    %cst_44 = arith.constant 0.000000e+00 : f32
    %82 = vector.broadcast %cst_44 : f32 to vector<2x10x10x64xf32>
    %c0_45 = arith.constant 0 : index
    %c0_46 = arith.constant 0 : index
    %c0_47 = arith.constant 0 : index
    %c0_48 = arith.constant 0 : index
    %83 = vector.load %arg11[%c0_45, %c0_46, %c0_47, %c0_48] : memref<2x10x10x64xf32, #tpu.memory_space<vmem>>, vector<2x10x10x64xf32>
    tpu.vector_store %arg11[%c0_45, %c0_46, %c0_47, %c0_48], %82 {strides = array<i32>} : memref<2x10x10x64xf32, #tpu.memory_space<vmem>>, vector<2x10x10x64xf32>,
    %c0_49 = arith.constant 0 : index
    %c1_50 = arith.constant 1 : index
    %c1_51 = arith.constant 1 : index
    %c0_52 = arith.constant 0 : index
    %84 = vector.load %arg11[%c0_49, %c1_50, %c1_51, %c0_52] : memref<2x10x10x64xf32, #tpu.memory_space<vmem>>, vector<2x8x8x64xf32>
    tpu.vector_store %arg11[%c0_49, %c1_50, %c1_51, %c0_52], %75 {strides = array<i32>} : memref<2x10x10x64xf32, #tpu.memory_space<vmem>>, vector<2x8x8x64xf32>,
    %c0_53 = arith.constant 0 : index
    %c0_54 = arith.constant 0 : index
    %c0_55 = arith.constant 0 : index
    %c0_56 = arith.constant 0 : index
    %85 = vector.load %arg11[%c0_53, %c0_54, %c0_55, %c0_56] : memref<2x10x10x64xf32, #tpu.memory_space<vmem>>, vector<2x10x10x64xf32>
    %86 = vector.extract_strided_slice %85 {offsets = [0, 0, 0, 0], sizes = [2, 8, 8, 64], strides = [1, 1, 1, 1]} : vector<2x10x10x64xf32> to vector<2x8x8x64xf32>
    %87 = vector.shape_cast %86 : vector<2x8x8x64xf32> to vector<128x64xf32>
    %88 = vector.extract_strided_slice %85 {offsets = [0, 0, 1, 0], sizes = [2, 8, 8, 64], strides = [1, 1, 1, 1]} : vector<2x10x10x64xf32> to vector<2x8x8x64xf32>
    %89 = vector.shape_cast %88 : vector<2x8x8x64xf32> to vector<128x64xf32>
    %90 = vector.extract_strided_slice %85 {offsets = [0, 0, 2, 0], sizes = [2, 8, 8, 64], strides = [1, 1, 1, 1]} : vector<2x10x10x64xf32> to vector<2x8x8x64xf32>
    %91 = vector.shape_cast %90 : vector<2x8x8x64xf32> to vector<128x64xf32>
    %92 = vector.extract_strided_slice %85 {offsets = [0, 1, 0, 0], sizes = [2, 8, 8, 64], strides = [1, 1, 1, 1]} : vector<2x10x10x64xf32> to vector<2x8x8x64xf32>
    %93 = vector.shape_cast %92 : vector<2x8x8x64xf32> to vector<128x64xf32>
    %94 = vector.extract_strided_slice %85 {offsets = [0, 1, 1, 0], sizes = [2, 8, 8, 64], strides = [1, 1, 1, 1]} : vector<2x10x10x64xf32> to vector<2x8x8x64xf32>
    %95 = vector.shape_cast %94 : vector<2x8x8x64xf32> to vector<128x64xf32>
    %96 = vector.extract_strided_slice %85 {offsets = [0, 1, 2, 0], sizes = [2, 8, 8, 64], strides = [1, 1, 1, 1]} : vector<2x10x10x64xf32> to vector<2x8x8x64xf32>
    %97 = vector.shape_cast %96 : vector<2x8x8x64xf32> to vector<128x64xf32>
    %98 = vector.extract_strided_slice %85 {offsets = [0, 2, 0, 0], sizes = [2, 8, 8, 64], strides = [1, 1, 1, 1]} : vector<2x10x10x64xf32> to vector<2x8x8x64xf32>
    %99 = vector.shape_cast %98 : vector<2x8x8x64xf32> to vector<128x64xf32>
    %100 = vector.extract_strided_slice %85 {offsets = [0, 2, 1, 0], sizes = [2, 8, 8, 64], strides = [1, 1, 1, 1]} : vector<2x10x10x64xf32> to vector<2x8x8x64xf32>
    %101 = vector.shape_cast %100 : vector<2x8x8x64xf32> to vector<128x64xf32>
    %102 = vector.extract_strided_slice %85 {offsets = [0, 2, 2, 0], sizes = [2, 8, 8, 64], strides = [1, 1, 1, 1]} : vector<2x10x10x64xf32> to vector<2x8x8x64xf32>
    %103 = vector.shape_cast %102 : vector<2x8x8x64xf32> to vector<128x64xf32>
    %104 = tpu.concatenate %87, %89, %91, %93, %95, %97, %99, %101, %103 in 1 : vector<128x64xf32>, vector<128x64xf32>, vector<128x64xf32>, vector<128x64xf32>, vector<128x64xf32>, vector<128x64xf32>, vector<128x64xf32>, vector<128x64xf32>, vector<128x64xf32> -> vector<128x576xf32>
    %105 = arith.truncf %104 : vector<128x576xf32> to vector<128x576xbf16>
    %cst_57 = arith.constant dense<0.000000e+00> : vector<128x64xf32>
    %106 = tpu.matmul %105, %77, %cst_57 {dimension_numbers = #tpu.dot_dimension_numbers<[1], [0], [0], [1], [0, 0, 1, 1], [], []>} : vector<128x576xbf16>, vector<576x64xbf16>, vector<128x64xf32> -> vector<128x64xf32>
    %107 = vector.broadcast %79 : vector<1x64xf32> to vector<128x64xf32>
    %108 = arith.mulf %106, %107 : vector<128x64xf32>
    %109 = vector.broadcast %81 : vector<1x64xf32> to vector<128x64xf32>
    %110 = arith.addf %108, %109 : vector<128x64xf32>
    %cst_58 = arith.constant 0.000000e+00 : f32
    %111 = vector.broadcast %cst_58 : f32 to vector<128x64xf32>
    %112 = arith.maximumf %110, %111 : vector<128x64xf32>
    %113 = vector.shape_cast %112 : vector<128x64xf32> to vector<64x2x64xf32>
    %cst_59 = arith.constant dense<0xFF800000> : vector<64x64xf32>
    %114 = vector.multi_reduction <maximumf>, %113, %cst_59 [1] : vector<64x2x64xf32> to vector<64x64xf32>
    %115 = vector.shape_cast %114 : vector<64x64xf32> to vector<8x2x4x64xf32>
    %cst_60 = arith.constant dense<0xFF800000> : vector<8x4x64xf32>
    %116 = vector.multi_reduction <maximumf>, %115, %cst_60 [1] : vector<8x2x4x64xf32> to vector<8x4x64xf32>
    %117 = vector.shape_cast %116 : vector<8x4x64xf32> to vector<2x4x4x64xf32>
    %c1_61 = arith.constant 1 : index
    %c0_62 = arith.constant 0 : index
    %c0_63 = arith.constant 0 : index
    %118 = vector.load %arg2[%c1_61, %c0_62, %c0_63] : memref<3x576x64xbf16, #tpu.memory_space<vmem>>, vector<1x576x64xbf16>
    %119 = vector.shape_cast %118 : vector<1x576x64xbf16> to vector<576x64xbf16>
    %c2 = arith.constant 2 : index
    %c0_64 = arith.constant 0 : index
    %c0_65 = arith.constant 0 : index
    %120 = vector.load %arg3[%c2, %c0_64, %c0_65] : memref<4x1x64xf32, #tpu.memory_space<vmem>>, vector<1x1x64xf32>
    %121 = vector.shape_cast %120 : vector<1x1x64xf32> to vector<1x64xf32>
    %c2_66 = arith.constant 2 : index
    %c0_67 = arith.constant 0 : index
    %c0_68 = arith.constant 0 : index
    %122 = vector.load %arg4[%c2_66, %c0_67, %c0_68] : memref<4x1x64xf32, #tpu.memory_space<vmem>>, vector<1x1x64xf32>
    %123 = vector.shape_cast %122 : vector<1x1x64xf32> to vector<1x64xf32>
    %cst_69 = arith.constant 0.000000e+00 : f32
    %124 = vector.broadcast %cst_69 : f32 to vector<2x6x6x64xf32>
    %c0_70 = arith.constant 0 : index
    %c0_71 = arith.constant 0 : index
    %c0_72 = arith.constant 0 : index
    %c0_73 = arith.constant 0 : index
    %125 = vector.load %arg12[%c0_70, %c0_71, %c0_72, %c0_73] : memref<2x6x6x64xf32, #tpu.memory_space<vmem>>, vector<2x6x6x64xf32>
    tpu.vector_store %arg12[%c0_70, %c0_71, %c0_72, %c0_73], %124 {strides = array<i32>} : memref<2x6x6x64xf32, #tpu.memory_space<vmem>>, vector<2x6x6x64xf32>,
    %c0_74 = arith.constant 0 : index
    %c1_75 = arith.constant 1 : index
    %c1_76 = arith.constant 1 : index
    %c0_77 = arith.constant 0 : index
    %126 = vector.load %arg12[%c0_74, %c1_75, %c1_76, %c0_77] : memref<2x6x6x64xf32, #tpu.memory_space<vmem>>, vector<2x4x4x64xf32>
    tpu.vector_store %arg12[%c0_74, %c1_75, %c1_76, %c0_77], %117 {strides = array<i32>} : memref<2x6x6x64xf32, #tpu.memory_space<vmem>>, vector<2x4x4x64xf32>,
    %c0_78 = arith.constant 0 : index
    %c0_79 = arith.constant 0 : index
    %c0_80 = arith.constant 0 : index
    %c0_81 = arith.constant 0 : index
    %127 = vector.load %arg12[%c0_78, %c0_79, %c0_80, %c0_81] : memref<2x6x6x64xf32, #tpu.memory_space<vmem>>, vector<2x6x6x64xf32>
    %128 = vector.extract_strided_slice %127 {offsets = [0, 0, 0, 0], sizes = [2, 4, 4, 64], strides = [1, 1, 1, 1]} : vector<2x6x6x64xf32> to vector<2x4x4x64xf32>
    %129 = vector.shape_cast %128 : vector<2x4x4x64xf32> to vector<32x64xf32>
    %130 = vector.extract_strided_slice %127 {offsets = [0, 0, 1, 0], sizes = [2, 4, 4, 64], strides = [1, 1, 1, 1]} : vector<2x6x6x64xf32> to vector<2x4x4x64xf32>
    %131 = vector.shape_cast %130 : vector<2x4x4x64xf32> to vector<32x64xf32>
    %132 = vector.extract_strided_slice %127 {offsets = [0, 0, 2, 0], sizes = [2, 4, 4, 64], strides = [1, 1, 1, 1]} : vector<2x6x6x64xf32> to vector<2x4x4x64xf32>
    %133 = vector.shape_cast %132 : vector<2x4x4x64xf32> to vector<32x64xf32>
    %134 = vector.extract_strided_slice %127 {offsets = [0, 1, 0, 0], sizes = [2, 4, 4, 64], strides = [1, 1, 1, 1]} : vector<2x6x6x64xf32> to vector<2x4x4x64xf32>
    %135 = vector.shape_cast %134 : vector<2x4x4x64xf32> to vector<32x64xf32>
    %136 = vector.extract_strided_slice %127 {offsets = [0, 1, 1, 0], sizes = [2, 4, 4, 64], strides = [1, 1, 1, 1]} : vector<2x6x6x64xf32> to vector<2x4x4x64xf32>
    %137 = vector.shape_cast %136 : vector<2x4x4x64xf32> to vector<32x64xf32>
    %138 = vector.extract_strided_slice %127 {offsets = [0, 1, 2, 0], sizes = [2, 4, 4, 64], strides = [1, 1, 1, 1]} : vector<2x6x6x64xf32> to vector<2x4x4x64xf32>
    %139 = vector.shape_cast %138 : vector<2x4x4x64xf32> to vector<32x64xf32>
    %140 = vector.extract_strided_slice %127 {offsets = [0, 2, 0, 0], sizes = [2, 4, 4, 64], strides = [1, 1, 1, 1]} : vector<2x6x6x64xf32> to vector<2x4x4x64xf32>
    %141 = vector.shape_cast %140 : vector<2x4x4x64xf32> to vector<32x64xf32>
    %142 = vector.extract_strided_slice %127 {offsets = [0, 2, 1, 0], sizes = [2, 4, 4, 64], strides = [1, 1, 1, 1]} : vector<2x6x6x64xf32> to vector<2x4x4x64xf32>
    %143 = vector.shape_cast %142 : vector<2x4x4x64xf32> to vector<32x64xf32>
    %144 = vector.extract_strided_slice %127 {offsets = [0, 2, 2, 0], sizes = [2, 4, 4, 64], strides = [1, 1, 1, 1]} : vector<2x6x6x64xf32> to vector<2x4x4x64xf32>
    %145 = vector.shape_cast %144 : vector<2x4x4x64xf32> to vector<32x64xf32>
    %146 = tpu.concatenate %129, %131, %133, %135, %137, %139, %141, %143, %145 in 1 : vector<32x64xf32>, vector<32x64xf32>, vector<32x64xf32>, vector<32x64xf32>, vector<32x64xf32>, vector<32x64xf32>, vector<32x64xf32>, vector<32x64xf32>, vector<32x64xf32> -> vector<32x576xf32>
    %147 = arith.truncf %146 : vector<32x576xf32> to vector<32x576xbf16>
    %cst_82 = arith.constant dense<0.000000e+00> : vector<32x64xf32>
    %148 = tpu.matmul %147, %119, %cst_82 {dimension_numbers = #tpu.dot_dimension_numbers<[1], [0], [0], [1], [0, 0, 1, 1], [], []>} : vector<32x576xbf16>, vector<576x64xbf16>, vector<32x64xf32> -> vector<32x64xf32>
    %149 = vector.broadcast %121 : vector<1x64xf32> to vector<32x64xf32>
    %150 = arith.mulf %148, %149 : vector<32x64xf32>
    %151 = vector.broadcast %123 : vector<1x64xf32> to vector<32x64xf32>
    %152 = arith.addf %150, %151 : vector<32x64xf32>
    %cst_83 = arith.constant 0.000000e+00 : f32
    %153 = vector.broadcast %cst_83 : f32 to vector<32x64xf32>
    %154 = arith.maximumf %152, %153 : vector<32x64xf32>
    %155 = vector.shape_cast %154 : vector<32x64xf32> to vector<16x2x64xf32>
    %cst_84 = arith.constant dense<0xFF800000> : vector<16x64xf32>
    %156 = vector.multi_reduction <maximumf>, %155, %cst_84 [1] : vector<16x2x64xf32> to vector<16x64xf32>
    %157 = vector.shape_cast %156 : vector<16x64xf32> to vector<4x2x2x64xf32>
    %cst_85 = arith.constant dense<0xFF800000> : vector<4x2x64xf32>
    %158 = vector.multi_reduction <maximumf>, %157, %cst_85 [1] : vector<4x2x2x64xf32> to vector<4x2x64xf32>
    %159 = vector.shape_cast %158 : vector<4x2x64xf32> to vector<2x2x2x64xf32>
    %c2_86 = arith.constant 2 : index
    %c0_87 = arith.constant 0 : index
    %c0_88 = arith.constant 0 : index
    %160 = vector.load %arg2[%c2_86, %c0_87, %c0_88] : memref<3x576x64xbf16, #tpu.memory_space<vmem>>, vector<1x576x64xbf16>
    %161 = vector.shape_cast %160 : vector<1x576x64xbf16> to vector<576x64xbf16>
    %c3 = arith.constant 3 : index
    %c0_89 = arith.constant 0 : index
    %c0_90 = arith.constant 0 : index
    %162 = vector.load %arg3[%c3, %c0_89, %c0_90] : memref<4x1x64xf32, #tpu.memory_space<vmem>>, vector<1x1x64xf32>
    %163 = vector.shape_cast %162 : vector<1x1x64xf32> to vector<1x64xf32>
    %c3_91 = arith.constant 3 : index
    %c0_92 = arith.constant 0 : index
    %c0_93 = arith.constant 0 : index
    %164 = vector.load %arg4[%c3_91, %c0_92, %c0_93] : memref<4x1x64xf32, #tpu.memory_space<vmem>>, vector<1x1x64xf32>
    %165 = vector.shape_cast %164 : vector<1x1x64xf32> to vector<1x64xf32>
    %cst_94 = arith.constant 0.000000e+00 : f32
    %166 = vector.broadcast %cst_94 : f32 to vector<2x4x4x64xf32>
    %c0_95 = arith.constant 0 : index
    %c0_96 = arith.constant 0 : index
    %c0_97 = arith.constant 0 : index
    %c0_98 = arith.constant 0 : index
    %167 = vector.load %arg13[%c0_95, %c0_96, %c0_97, %c0_98] : memref<2x4x4x64xf32, #tpu.memory_space<vmem>>, vector<2x4x4x64xf32>
    tpu.vector_store %arg13[%c0_95, %c0_96, %c0_97, %c0_98], %166 {strides = array<i32>} : memref<2x4x4x64xf32, #tpu.memory_space<vmem>>, vector<2x4x4x64xf32>,
    %c0_99 = arith.constant 0 : index
    %c1_100 = arith.constant 1 : index
    %c1_101 = arith.constant 1 : index
    %c0_102 = arith.constant 0 : index
    %168 = vector.load %arg13[%c0_99, %c1_100, %c1_101, %c0_102] : memref<2x4x4x64xf32, #tpu.memory_space<vmem>>, vector<2x2x2x64xf32>
    tpu.vector_store %arg13[%c0_99, %c1_100, %c1_101, %c0_102], %159 {strides = array<i32>} : memref<2x4x4x64xf32, #tpu.memory_space<vmem>>, vector<2x2x2x64xf32>,
    %c0_103 = arith.constant 0 : index
    %c0_104 = arith.constant 0 : index
    %c0_105 = arith.constant 0 : index
    %c0_106 = arith.constant 0 : index
    %169 = vector.load %arg13[%c0_103, %c0_104, %c0_105, %c0_106] : memref<2x4x4x64xf32, #tpu.memory_space<vmem>>, vector<2x4x4x64xf32>
    %170 = vector.extract_strided_slice %169 {offsets = [0, 0, 0, 0], sizes = [2, 2, 2, 64], strides = [1, 1, 1, 1]} : vector<2x4x4x64xf32> to vector<2x2x2x64xf32>
    %171 = vector.shape_cast %170 : vector<2x2x2x64xf32> to vector<8x64xf32>
    %172 = vector.extract_strided_slice %169 {offsets = [0, 0, 1, 0], sizes = [2, 2, 2, 64], strides = [1, 1, 1, 1]} : vector<2x4x4x64xf32> to vector<2x2x2x64xf32>
    %173 = vector.shape_cast %172 : vector<2x2x2x64xf32> to vector<8x64xf32>
    %174 = vector.extract_strided_slice %169 {offsets = [0, 0, 2, 0], sizes = [2, 2, 2, 64], strides = [1, 1, 1, 1]} : vector<2x4x4x64xf32> to vector<2x2x2x64xf32>
    %175 = vector.shape_cast %174 : vector<2x2x2x64xf32> to vector<8x64xf32>
    %176 = vector.extract_strided_slice %169 {offsets = [0, 1, 0, 0], sizes = [2, 2, 2, 64], strides = [1, 1, 1, 1]} : vector<2x4x4x64xf32> to vector<2x2x2x64xf32>
    %177 = vector.shape_cast %176 : vector<2x2x2x64xf32> to vector<8x64xf32>
    %178 = vector.extract_strided_slice %169 {offsets = [0, 1, 1, 0], sizes = [2, 2, 2, 64], strides = [1, 1, 1, 1]} : vector<2x4x4x64xf32> to vector<2x2x2x64xf32>
    %179 = vector.shape_cast %178 : vector<2x2x2x64xf32> to vector<8x64xf32>
    %180 = vector.extract_strided_slice %169 {offsets = [0, 1, 2, 0], sizes = [2, 2, 2, 64], strides = [1, 1, 1, 1]} : vector<2x4x4x64xf32> to vector<2x2x2x64xf32>
    %181 = vector.shape_cast %180 : vector<2x2x2x64xf32> to vector<8x64xf32>
    %182 = vector.extract_strided_slice %169 {offsets = [0, 2, 0, 0], sizes = [2, 2, 2, 64], strides = [1, 1, 1, 1]} : vector<2x4x4x64xf32> to vector<2x2x2x64xf32>
    %183 = vector.shape_cast %182 : vector<2x2x2x64xf32> to vector<8x64xf32>
    %184 = vector.extract_strided_slice %169 {offsets = [0, 2, 1, 0], sizes = [2, 2, 2, 64], strides = [1, 1, 1, 1]} : vector<2x4x4x64xf32> to vector<2x2x2x64xf32>
    %185 = vector.shape_cast %184 : vector<2x2x2x64xf32> to vector<8x64xf32>
    %186 = vector.extract_strided_slice %169 {offsets = [0, 2, 2, 0], sizes = [2, 2, 2, 64], strides = [1, 1, 1, 1]} : vector<2x4x4x64xf32> to vector<2x2x2x64xf32>
    %187 = vector.shape_cast %186 : vector<2x2x2x64xf32> to vector<8x64xf32>
    %188 = tpu.concatenate %171, %173, %175, %177, %179, %181, %183, %185, %187 in 1 : vector<8x64xf32>, vector<8x64xf32>, vector<8x64xf32>, vector<8x64xf32>, vector<8x64xf32>, vector<8x64xf32>, vector<8x64xf32>, vector<8x64xf32>, vector<8x64xf32> -> vector<8x576xf32>
    %189 = arith.truncf %188 : vector<8x576xf32> to vector<8x576xbf16>
    %cst_107 = arith.constant dense<0.000000e+00> : vector<8x64xf32>
    %190 = tpu.matmul %189, %161, %cst_107 {dimension_numbers = #tpu.dot_dimension_numbers<[1], [0], [0], [1], [0, 0, 1, 1], [], []>} : vector<8x576xbf16>, vector<576x64xbf16>, vector<8x64xf32> -> vector<8x64xf32>
    %191 = vector.broadcast %163 : vector<1x64xf32> to vector<8x64xf32>
    %192 = arith.mulf %190, %191 : vector<8x64xf32>
    %193 = vector.broadcast %165 : vector<1x64xf32> to vector<8x64xf32>
    %194 = arith.addf %192, %193 : vector<8x64xf32>
    %cst_108 = arith.constant 0.000000e+00 : f32
    %195 = vector.broadcast %cst_108 : f32 to vector<8x64xf32>
    %196 = arith.maximumf %194, %195 : vector<8x64xf32>
    %197 = vector.shape_cast %196 : vector<8x64xf32> to vector<4x2x64xf32>
    %cst_109 = arith.constant dense<0xFF800000> : vector<4x64xf32>
    %198 = vector.multi_reduction <maximumf>, %197, %cst_109 [1] : vector<4x2x64xf32> to vector<4x64xf32>
    %199 = vector.shape_cast %198 : vector<4x64xf32> to vector<2x2x1x64xf32>
    %cst_110 = arith.constant dense<0xFF800000> : vector<2x1x64xf32>
    %200 = vector.multi_reduction <maximumf>, %199, %cst_110 [1] : vector<2x2x1x64xf32> to vector<2x1x64xf32>
    %201 = vector.shape_cast %200 : vector<2x1x64xf32> to vector<2x1x1x64xf32>
    %202 = vector.shape_cast %201 : vector<2x1x1x64xf32> to vector<2x1x64xf32>
    %cst_111 = arith.constant dense<0.000000e+00> : vector<2x64xf32>
    %203 = vector.multi_reduction <add>, %202, %cst_111 [1] : vector<2x1x64xf32> to vector<2x64xf32>
    %cst_112 = arith.constant 1.000000e+00 : f32
    %204 = vector.broadcast %cst_112 : f32 to vector<2x64xf32>
    %205 = arith.mulf %203, %204 : vector<2x64xf32>
    %206 = arith.truncf %205 : vector<2x64xf32> to vector<2x64xbf16>
    %c0_113 = arith.constant 0 : index
    %c0_114 = arith.constant 0 : index
    %207 = vector.load %arg5[%c0_113, %c0_114] : memref<64x4xbf16, #tpu.memory_space<vmem>>, vector<64x4xbf16>
    %cst_115 = arith.constant dense<0.000000e+00> : vector<2x4xf32>
    %208 = tpu.matmul %206, %207, %cst_115 {dimension_numbers = #tpu.dot_dimension_numbers<[1], [0], [0], [1], [0, 0, 1, 1], [], []>} : vector<2x64xbf16>, vector<64x4xbf16>, vector<2x4xf32> -> vector<2x4xf32>
    %c0_116 = arith.constant 0 : index
    %c0_117 = arith.constant 0 : index
    %209 = vector.load %arg6[%c0_116, %c0_117] : memref<1x4xf32, #tpu.memory_space<vmem>>, vector<1x4xf32>
    %210 = vector.broadcast %209 : vector<1x4xf32> to vector<2x4xf32>
    %211 = arith.addf %208, %210 : vector<2x4xf32>
    %cst_118 = arith.constant 0.000000e+00 : f32
    %212 = vector.broadcast %cst_118 : f32 to vector<2x4xf32>
    %213 = arith.maximumf %211, %212 : vector<2x4xf32>
    %214 = arith.truncf %213 : vector<2x4xf32> to vector<2x4xbf16>
    %c0_119 = arith.constant 0 : index
    %c0_120 = arith.constant 0 : index
    %215 = vector.load %arg7[%c0_119, %c0_120] : memref<4x64xbf16, #tpu.memory_space<vmem>>, vector<4x64xbf16>
    %cst_121 = arith.constant dense<0.000000e+00> : vector<2x64xf32>
    %216 = tpu.matmul %214, %215, %cst_121 {dimension_numbers = #tpu.dot_dimension_numbers<[1], [0], [0], [1], [0, 0, 1, 1], [], []>} : vector<2x4xbf16>, vector<4x64xbf16>, vector<2x64xf32> -> vector<2x64xf32>
    %c0_122 = arith.constant 0 : index
    %c0_123 = arith.constant 0 : index
    %217 = vector.load %arg8[%c0_122, %c0_123] : memref<1x64xf32, #tpu.memory_space<vmem>>, vector<1x64xf32>
    %218 = vector.broadcast %217 : vector<1x64xf32> to vector<2x64xf32>
    %219 = arith.addf %216, %218 : vector<2x64xf32>
    %cst_124 = arith.constant 0.000000e+00 : f32
    %220 = vector.broadcast %cst_124 : f32 to vector<2x64xf32>
    %221 = arith.subf %220, %219 : vector<2x64xf32>
    %222 = math.exp %221 : vector<2x64xf32>
    %cst_125 = arith.constant 1.000000e+00 : f32
    %223 = vector.broadcast %cst_125 : f32 to vector<2x64xf32>
    %224 = arith.addf %223, %222 : vector<2x64xf32>
    %225 = tpu.reciprocal %224 {approx = true} : vector<2x64xf32> -> vector<2x64xf32>
    %226 = vector.shape_cast %225 : vector<2x64xf32> to vector<2x1x1x64xf32>
    %227 = arith.mulf %201, %226 : vector<2x1x1x64xf32>
    %c0_126 = arith.constant 0 : index
    %c0_127 = arith.constant 0 : index
    %c0_128 = arith.constant 0 : index
    %c0_129 = arith.constant 0 : index
    %228 = vector.load %arg9[%c0_126, %c0_127, %c0_128, %c0_129] : memref<2x1x1x64xf32, #tpu.memory_space<vmem>>, vector<2x1x1x64xf32>
    tpu.vector_store %arg9[%c0_126, %c0_127, %c0_128, %c0_129], %227 {strides = array<i32>} : memref<2x1x1x64xf32, #tpu.memory_space<vmem>>, vector<2x1x1x64xf32>,
    return
  }
}

</mosaic_0001>

<bundles_post_ra>
// kernel: convnet4_forward.1
= control target key start
LH: loop header
LB: loop body
LE: loop exit
PB: predicated region body
PF: predicated region fallthrough
CT: control target
= control target key end

     0   :  { %vm1172_vm0 = vcmask 1040384   ;;  %vm104_vm1 = vcmask 23552   ;;  %vm1173_vm2 = vcmask 1041408   ;;  %vm107_vm3 = vcmask 17408   ;;  %s21286_s0 = inlined_call_operand.vmem [shape: f32[2,16,16,3], index: 0, kind: input, shape index: {}]   ;;  %s21287_s1 = inlined_call_operand.vmem [shape: bf16[27,64], index: 1, kind: input, shape index: {}]   ;;  %s21288_s2 = inlined_call_operand.vmem [shape: bf16[3,576,64], index: 2, kind: input, shape index: {}]   ;;  %s21289_s3 = inlined_call_operand.vmem [shape: f32[4,1,64], index: 3, kind: input, shape index: {}]   ;;  %s21290_s4 = inlined_call_operand.vmem [shape: f32[4,1,64], index: 4, kind: input, shape index: {}]   ;;  %s21291_s5 = inlined_call_operand.vmem [shape: bf16[64,4], index: 5, kind: input, shape index: {}]   ;;  %s21292_s6 = inlined_call_operand.vmem [shape: f32[1,4], index: 6, kind: input, shape index: {}]   ;;  %s21293_s7 = inlined_call_operand.vmem [shape: bf16[4,64], index: 7, kind: input, shape index: {}]   ;;  %s21294_s8 = inlined_call_operand.vmem [shape: f32[1,64], index: 8, kind: input, shape index: {}]   ;;  %s21295_s9 = inlined_call_operand.hbm [shape: f32[2,1,1,64], index: 9, kind: output, shape index: {}]  }
   0x1   :  { %v15593_v0 = vld [vmem:[%s21287_s1 + $0x4] sm:$0xf]  ;;  %v15607_v3 = vld [vmem:[%s21286_s0 + $0x8] sm:$0xff]  ;;  %v21296_v4 = vmov 0.0   ;;  %v36_v5 = vld [vmem:[%s21286_s0 + $0x10] sm:$0xff]  ;;  %v15532_v8 = vmov 65535  }
   0x2   :  { %v15597_v1 = vcombine.low %v15593_v0, %v15593_v0  ;;  %v15602_v2 = vld [vmem:[%s21286_s0] sm:$0xff]  ;;  %109 = vst.msk [vmem:[#allocation2 + $0x18] sm:$0xff] %vm104_vm1, %v21296_v4  ;;  %110 = vst.msk [vmem:[#allocation2 + $0x20] sm:$0xff] %vm104_vm1, %v21296_v4  ;;  %v37_v6 = vld [vmem:[%s21286_s0 + $0x18] sm:$0xff]  ;;  %v1174_v9 = vsel %vm1172_vm0, 4294967295, %v15532_v8  ;;  %vm708_vm4 = vcmask 1045504  }
   0x3   :  { %105 = vst.msk [vmem:[#allocation2] sm:$0xff] %vm104_vm1, %v21296_v4  ;;  %106 = vst.msk [vmem:[#allocation2 + $0x8] sm:$0xff] %vm104_vm1, %v21296_v4  ;;  %v38_v7 = vld [vmem:[%s21286_s0 + $0x20] sm:$0xff]  ;;  %v39_v12 = vld [vmem:[%s21286_s0 + $0x28] sm:$0xff]  ;;  %v15879_v23 = vsel %vm1173_vm2, %v1174_v9, 0  ;;  %vm483_vm5 = vcmask 1046528  }
   0x4   :  { %112 = vst.msk [vmem:[#allocation2 + $0x30] sm:$0xff] %vm104_vm1, %v21296_v4  ;;  %113 = vst.msk [vmem:[#allocation2 + $0x38] sm:$0xff] %vm104_vm1, %v21296_v4  ;;  %v2348_v10 = vshrl.u32 %v15597_v1, 16  ;;  %v2350_v11 = vshll.u32 %v15597_v1, 16  ;;  %v40_v13 = vld [vmem:[%s21286_s0 + $0x30] sm:$0xff]  ;;  %v41_v14 = vld [vmem:[%s21286_s0 + $0x38] sm:$0xff] }
   0x5   :  { %115 = vst.msk [vmem:[#allocation2 + $0x48] sm:$0xff] %vm104_vm1, %v21296_v4  ;;  %116 = vst.msk [vmem:[#allocation2 + $0x50] sm:$0xff] %vm104_vm1, %v21296_v4  ;;  %v42_v15 = vld [vmem:[%s21286_s0 + $0x40] sm:$0xff]  ;;  %v43_v16 = vld [vmem:[%s21286_s0 + $0x48] sm:$0xff]  ;;  %v2718_v19 = vrot.slane %v15597_v1, 2 }
   0x6   :  { %118 = vst.msk [vmem:[#allocation2 + $0x60] sm:$0xff] %vm104_vm1, %v21296_v4  ;;  %119 = vst.msk [vmem:[#allocation2 + $0x68] sm:$0xff] %vm104_vm1, %v21296_v4  ;;  %v44_v17 = vld [vmem:[%s21286_s0 + $0x50] sm:$0xff]  ;;  %v2352_v18 = vrot.slane %v2350_v11, 1  ;;  %v45_v20 = vld [vmem:[%s21286_s0 + $0x58] sm:$0xff] }
   0x7   :  { %121 = vst.msk [vmem:[#allocation2 + $0x78] sm:$0xff] %vm104_vm1, %v21296_v4  ;;  %122 = vst.msk [vmem:[#allocation2 + $0x80] sm:$0xff] %vm104_vm1, %v21296_v4  ;;  %v46_v21 = vld [vmem:[%s21286_s0 + $0x60] sm:$0xff]  ;;  %v47_v22 = vld [vmem:[%s21286_s0 + $0x68] sm:$0xff]  ;;  %v2726_v34 = vand.u32 %v2718_v19, %v15879_v23 }
   0x8   :  { %124 = vst.msk [vmem:[#allocation2 + $0x90] sm:$0xff] %vm104_vm1, %v21296_v4  ;;  %125 = vst.msk [vmem:[#allocation2 + $0x98] sm:$0xff] %vm104_vm1, %v21296_v4  ;;  %v48_v24 = vld [vmem:[%s21286_s0 + $0x70] sm:$0xff]  ;;  %v49_v25 = vld [vmem:[%s21286_s0 + $0x78] sm:$0xff]  ;;  %v2353_v26 = vor.u32 %v2352_v18, %v2348_v10 }
   0x9   :  { %127 = vst.msk [vmem:[#allocation2 + $0xa8] sm:$0xff] %vm104_vm1, %v21296_v4  ;;  %128 = vst.msk [vmem:[#allocation2 + $0xb0] sm:$0xff] %vm104_vm1, %v21296_v4  ;;  %v50_v27 = vld [vmem:[%s21286_s0 + $0x80] sm:$0xff]  ;;  %v51_v28 = vld [vmem:[%s21286_s0 + $0x88] sm:$0xff] }
   0xa   :  { %130 = vst.msk [vmem:[#allocation2 + $0xc0] sm:$0xff] %vm104_vm1, %v21296_v4  ;;  %131 = vst.msk [vmem:[#allocation2 + $0xc8] sm:$0xff] %vm104_vm1, %v21296_v4  ;;  %v52_v29 = vld [vmem:[%s21286_s0 + $0x90] sm:$0xff]  ;;  %v53_v30 = vld [vmem:[%s21286_s0 + $0x98] sm:$0xff]  ;;  %v15916_v33 = vand.u32 %v2353_v26, %v15879_v23 }
   0xb   :  { %133 = vst.msk [vmem:[#allocation2 + $0xd8] sm:$0xff] %vm104_vm1, %v21296_v4  ;;  %134 = vst.msk [vmem:[#allocation2 + $0xe0] sm:$0xff] %vm104_vm1, %v21296_v4  ;;  %v54_v31 = vld [vmem:[%s21286_s0 + $0xa0] sm:$0xff]  ;;  %v55_v32 = vld [vmem:[%s21286_s0 + $0xa8] sm:$0xff] }
   0xc   :  { %136 = vst.msk [vmem:[#allocation2 + $0xf0] sm:$0xff] %vm104_vm1, %v21296_v4  ;;  %137 = vst.msk [vmem:[#allocation2 + $0xf8] sm:$0xff] %vm104_vm1, %v21296_v4  ;;  %v56_v35 = vld [vmem:[%s21286_s0 + $0xb0] sm:$0xff]  ;;  %v15932_v38 = vld [vmem:[%s21287_s1] sm:$0xf]  ;;  %14118 = vmatprep.subr.bf16.mxu0 %v15916_v33 }
   0xd   :  { %139 = vst.msk [vmem:[#allocation2 + $0x108] sm:$0xff] %vm104_vm1, %v21296_v4  ;;  %140 = vst.msk [vmem:[#allocation2 + $0x110] sm:$0xff] %vm104_vm1, %v21296_v4  ;;  %14119 = vmatpush3.bf16.msra.mxu0 %v15916_v33  ;;  %v12749_v47 = vcombine.low %v15932_v38, %v15932_v38  ;;  %v279_v50 = vld [vmem:[#allocation2] sm:$0xff]  ;;  %v280_v51 = vld [vmem:[#allocation2 + $0x8] sm:$0xff] }
   0xe   :  { %142 = vst.msk [vmem:[#allocation2 + $0x120] sm:$0xff] %vm104_vm1, %v21296_v4  ;;  %143 = vst.msk [vmem:[#allocation2 + $0x128] sm:$0xff] %vm104_vm1, %v21296_v4  ;;  %14184 = vmatprep.subr.bf16.mxu0 %v2726_v34  ;;  %v484_v58 = vrot.slane %v279_v50, 1  ;;  %v485_v59 = vrot.slane %v280_v51, 1  ;;  %v60_v18 = vld [vmem:[%s21286_s0 + $0xd0] sm:$0xff]  ;;  %v61_v19 = vld [vmem:[%s21286_s0 + $0xd8] sm:$0xff] }
   0xf   :  { %145 = vst.msk [vmem:[#allocation2 + $0x138] sm:$0xff] %vm104_vm1, %v21296_v4  ;;  %146 = vst.msk [vmem:[#allocation2 + $0x140] sm:$0xff] %vm104_vm1, %v21296_v4  ;;  %v1069_v56 = vshrl.u32 %v12749_v47, 16  ;;  %v1072_v57 = vshll.u32 %v12749_v47, 16  ;;  %v67_v50 = vld [vmem:[%s21286_s0 + $0x108] sm:$0xff]  ;;  %v68_v51 = vld [vmem:[%s21286_s0 + $0x110] sm:$0xff] }
  0x10   :  { %148 = vst.msk [vmem:[#allocation2 + $0x150] sm:$0xff] %vm104_vm1, %v21296_v4  ;;  %149 = vst.msk [vmem:[#allocation2 + $0x158] sm:$0xff] %vm104_vm1, %v21296_v4  ;;  %v486_v10 = vsel %vm483_vm5, %v484_v58, %v485_v59 }
  0x11   :  { %151 = vst.msk [vmem:[#allocation2 + $0x168] sm:$0xff] %vm104_vm1, %v21296_v4  ;;  %152 = vst.msk [vmem:[#allocation2 + $0x170] sm:$0xff] %vm104_vm1, %v21296_v4 }
  0x12   :  { %154 = vst.msk [vmem:[#allocation2 + $0x180] sm:$0xff] %vm104_vm1, %v21296_v4  ;;  %155 = vst.msk [vmem:[#allocation2 + $0x188] sm:$0xff] %vm104_vm1, %v21296_v4 }
  0x13   :  { %157 = vst.msk [vmem:[#allocation2 + $0x198] sm:$0xff] %vm104_vm1, %v21296_v4  ;;  %158 = vst.msk [vmem:[#allocation2 + $0x1a0] sm:$0xff] %vm104_vm1, %v21296_v4 }
  0x14   :  { %160 = vst.msk [vmem:[#allocation2 + $0x1b0] sm:$0xff] %vm104_vm1, %v21296_v4  ;;  %161 = vst.msk [vmem:[#allocation2 + $0x1b8] sm:$0xff] %vm104_vm1, %v21296_v4 }
  0x15   :  { %163 = vst.msk [vmem:[#allocation2 + $0x1c8] sm:$0xff] %vm104_vm1, %v21296_v4  ;;  %164 = vst.msk [vmem:[#allocation2 + $0x1d0] sm:$0xff] %vm104_vm1, %v21296_v4 }
  0x16   :  { %166 = vst.msk [vmem:[#allocation2 + $0x1e0] sm:$0xff] %vm104_vm1, %v21296_v4  ;;  %167 = vst.msk [vmem:[#allocation2 + $0x1e8] sm:$0xff] %vm104_vm1, %v21296_v4 }
  0x17   :  { %169 = vst.msk [vmem:[#allocation2 + $0x1f8] sm:$0xff] %vm104_vm1, %v21296_v4  ;;  %170 = vst.msk [vmem:[#allocation2 + $0x200] sm:$0xff] %vm104_vm1, %v21296_v4 }
  0x18   :  { %172 = vst.msk [vmem:[#allocation2 + $0x210] sm:$0xff] %vm104_vm1, %v21296_v4  ;;  %173 = vst.msk [vmem:[#allocation2 + $0x218] sm:$0xff] %vm104_vm1, %v21296_v4 }
  0x19   :  { %175 = vst.msk [vmem:[#allocation2 + $0x228] sm:$0xff] %vm104_vm1, %v21296_v4  ;;  %176 = vst.msk [vmem:[#allocation2 + $0x230] sm:$0xff] %vm104_vm1, %v21296_v4 }
  0x1a   :  { %178 = vst.msk [vmem:[#allocation2 + $0x240] sm:$0xff] %vm104_vm1, %v21296_v4  ;;  %179 = vst.msk [vmem:[#allocation2 + $0x248] sm:$0xff] %vm104_vm1, %v21296_v4 }
  0x1b   :  { %181 = vst.msk [vmem:[#allocation2 + $0x258] sm:$0xff] %vm104_vm1, %v21296_v4  ;;  %182 = vst.msk [vmem:[#allocation2 + $0x260] sm:$0xff] %vm104_vm1, %v21296_v4 }
  0x1c   :  { %184 = vst.msk [vmem:[#allocation2 + $0x270] sm:$0xff] %vm104_vm1, %v21296_v4  ;;  %185 = vst.msk [vmem:[#allocation2 + $0x278] sm:$0xff] %vm104_vm1, %v21296_v4 }
  0x1d   :  { %187 = vst.msk [vmem:[#allocation2 + $0x288] sm:$0xff] %vm104_vm1, %v21296_v4  ;;  %188 = vst.msk [vmem:[#allocation2 + $0x290] sm:$0xff] %vm104_vm1, %v21296_v4 }
  0x1e   :  { %190 = vst.msk [vmem:[#allocation2 + $0x2a0] sm:$0xff] %vm104_vm1, %v21296_v4  ;;  %191 = vst.msk [vmem:[#allocation2 + $0x2a8] sm:$0xff] %vm104_vm1, %v21296_v4 }
  0x1f   :  { %193 = vst.msk [vmem:[#allocation2 + $0x2b8] sm:$0xff] %vm104_vm1, %v21296_v4  ;;  %194 = vst.msk [vmem:[#allocation2 + $0x2c0] sm:$0xff] %vm104_vm1, %v21296_v4 }
  0x20   :  { %196 = vst.msk [vmem:[#allocation2 + $0x2d0] sm:$0xff] %vm104_vm1, %v21296_v4  ;;  %197 = vst.msk [vmem:[#allocation2 + $0x2d8] sm:$0xff] %vm104_vm1, %v21296_v4 }
  0x21   :  { %199 = vst.msk [vmem:[#allocation2 + $0x2e8] sm:$0xff] %vm104_vm1, %v21296_v4  ;;  %200 = vst.msk [vmem:[#allocation2 + $0x2f0] sm:$0xff] %vm104_vm1, %v21296_v4 }
  0x22   :  { %202 = vst.msk [vmem:[#allocation2 + $0x300] sm:$0xff] %vm104_vm1, %v21296_v4  ;;  %203 = vst.msk [vmem:[#allocation2 + $0x308] sm:$0xff] %vm104_vm1, %v21296_v4 }
  0x23   :  { %205 = vst.msk [vmem:[#allocation2 + $0x318] sm:$0xff] %vm104_vm1, %v21296_v4  ;;  %206 = vst.msk [vmem:[#allocation2 + $0x320] sm:$0xff] %vm104_vm1, %v21296_v4 }
  0x24   :  { %208 = vst.msk [vmem:[#allocation2 + $0x330] sm:$0xff] %vm104_vm1, %v21296_v4  ;;  %209 = vst.msk [vmem:[#allocation2 + $0x338] sm:$0xff] %vm104_vm1, %v21296_v4 }
  0x25   :  { %211 = vst.msk [vmem:[#allocation2 + $0x348] sm:$0xff] %vm104_vm1, %v21296_v4  ;;  %212 = vst.msk [vmem:[#allocation2 + $0x350] sm:$0xff] %vm104_vm1, %v21296_v4 }
  0x26   :  { %111 = vst.msk [vmem:[#allocation2 + $0x28] sm:$0x3] %vm107_vm3, %v21296_v4  ;;  %108 = vst.msk [vmem:[#allocation2 + $0x10] sm:$0x3] %vm107_vm3, %v21296_v4 }
  0x27   :  { %215 = vst.msk [vmem:[#allocation2 + $0x19] sm:$0xff] %vm104_vm1, %v15602_v2  ;;  %217 = vst.msk [vmem:[#allocation2 + $0x31] sm:$0xff] %vm104_vm1, %v36_v5  ;;  %v1071_v5 = vrot.slane %v1069_v56, 1 }
  0x28   :  { %114 = vst.msk [vmem:[#allocation2 + $0x40] sm:$0x3] %vm107_vm3, %v21296_v4  ;;  %117 = vst.msk [vmem:[#allocation2 + $0x58] sm:$0x3] %vm107_vm3, %v21296_v4 }
  0x29   :  { %120 = vst.msk [vmem:[#allocation2 + $0x70] sm:$0x3] %vm107_vm3, %v21296_v4  ;;  %123 = vst.msk [vmem:[#allocation2 + $0x88] sm:$0x3] %vm107_vm3, %v21296_v4 }
  0x2a   :  { %126 = vst.msk [vmem:[#allocation2 + $0xa0] sm:$0x3] %vm107_vm3, %v21296_v4  ;;  %129 = vst.msk [vmem:[#allocation2 + $0xb8] sm:$0x3] %vm107_vm3, %v21296_v4 }
  0x2b   :  { %132 = vst.msk [vmem:[#allocation2 + $0xd0] sm:$0x3] %vm107_vm3, %v21296_v4  ;;  %135 = vst.msk [vmem:[#allocation2 + $0xe8] sm:$0x3] %vm107_vm3, %v21296_v4 }
  0x2c   :  { %138 = vst.msk [vmem:[#allocation2 + $0x100] sm:$0x3] %vm107_vm3, %v21296_v4  ;;  %141 = vst.msk [vmem:[#allocation2 + $0x118] sm:$0x3] %vm107_vm3, %v21296_v4 }
  0x2d   :  { %144 = vst.msk [vmem:[#allocation2 + $0x130] sm:$0x3] %vm107_vm3, %v21296_v4  ;;  %147 = vst.msk [vmem:[#allocation2 + $0x148] sm:$0x3] %vm107_vm3, %v21296_v4  ;;  %v281_v61 = vld [vmem:[#allocation2 + $0x10] sm:$0x3] }
  0x2e   :  { %150 = vst.msk [vmem:[#allocation2 + $0x160] sm:$0x3] %vm107_vm3, %v21296_v4  ;;  %153 = vst.msk [vmem:[#allocation2 + $0x178] sm:$0x3] %vm107_vm3, %v21296_v4  ;;  %v15925_v36 = vld [vmem:[#allocation2 + $0x18] sm:$0xff]  ;;  %v15927_v37 = vld [vmem:[#allocation2 + $0x30] sm:$0xff] }
  0x2f   :  { %156 = vst.msk [vmem:[#allocation2 + $0x190] sm:$0x3] %vm107_vm3, %v21296_v4  ;;  %159 = vst.msk [vmem:[#allocation2 + $0x1a8] sm:$0x3] %vm107_vm3, %v21296_v4  ;;  %v719_v41 = vrot.slane %v15927_v37, 2  ;;  %v489_v62 = vrot.slane %v15925_v36, 1 }
  0x30   :  { %162 = vst.msk [vmem:[#allocation2 + $0x1c0] sm:$0x3] %vm107_vm3, %v21296_v4  ;;  %165 = vst.msk [vmem:[#allocation2 + $0x1d8] sm:$0x3] %vm107_vm3, %v21296_v4  ;;  %v487_v11 = vrot.slane %v281_v61, 1  ;;  %v69_v61 = vld [vmem:[%s21286_s0 + $0x118] sm:$0xff] }
  0x31   :  { %168 = vst.msk [vmem:[#allocation2 + $0x1f0] sm:$0x3] %vm107_vm3, %v21296_v4  ;;  %171 = vst.msk [vmem:[#allocation2 + $0x208] sm:$0x3] %vm107_vm3, %v21296_v4 }
  0x32   :  { %174 = vst.msk [vmem:[#allocation2 + $0x220] sm:$0x3] %vm107_vm3, %v21296_v4  ;;  %177 = vst.msk [vmem:[#allocation2 + $0x238] sm:$0x3] %vm107_vm3, %v21296_v4 }
  0x33   :  { %180 = vst.msk [vmem:[#allocation2 + $0x250] sm:$0x3] %vm107_vm3, %v21296_v4  ;;  %183 = vst.msk [vmem:[#allocation2 + $0x268] sm:$0x3] %vm107_vm3, %v21296_v4 }
  0x34   :  { %186 = vst.msk [vmem:[#allocation2 + $0x280] sm:$0x3] %vm107_vm3, %v21296_v4  ;;  %189 = vst.msk [vmem:[#allocation2 + $0x298] sm:$0x3] %vm107_vm3, %v21296_v4 }
  0x35   :  { %192 = vst.msk [vmem:[#allocation2 + $0x2b0] sm:$0x3] %vm107_vm3, %v21296_v4  ;;  %195 = vst.msk [vmem:[#allocation2 + $0x2c8] sm:$0x3] %vm107_vm3, %v21296_v4 }
  0x36   :  { %198 = vst.msk [vmem:[#allocation2 + $0x2e0] sm:$0x3] %vm107_vm3, %v21296_v4  ;;  %201 = vst.msk [vmem:[#allocation2 + $0x2f8] sm:$0x3] %vm107_vm3, %v21296_v4 }
  0x37   :  { %204 = vst.msk [vmem:[#allocation2 + $0x310] sm:$0x3] %vm107_vm3, %v21296_v4  ;;  %207 = vst.msk [vmem:[#allocation2 + $0x328] sm:$0x3] %vm107_vm3, %v21296_v4 }
  0x38   :  { %210 = vst.msk [vmem:[#allocation2 + $0x340] sm:$0x3] %vm107_vm3, %v21296_v4  ;;  %213 = vst.msk [vmem:[#allocation2 + $0x358] sm:$0x3] %vm107_vm3, %v21296_v4 }
  0x39   :  { %219 = vst.msk [vmem:[#allocation2 + $0x49] sm:$0xff] %vm104_vm1, %v38_v7  ;;  %216 = vst.msk [vmem:[#allocation2 + $0x21] sm:$0xff] %vm104_vm1, %v15607_v3  ;;  %v57_v3 = vld [vmem:[%s21286_s0 + $0xb8] sm:$0xff]  ;;  %v58_v7 = vld [vmem:[%s21286_s0 + $0xc0] sm:$0xff] }
  0x3a   :  { %218 = vst.msk [vmem:[#allocation2 + $0x39] sm:$0xff] %vm104_vm1, %v37_v6  ;;  %220 = vst.msk [vmem:[#allocation2 + $0x51] sm:$0xff] %vm104_vm1, %v39_v12  ;;  %v1074_v6 = vrot.slane %v1072_v57, 2  ;;  %v59_v12 = vld [vmem:[%s21286_s0 + $0xc8] sm:$0xff] }
  0x3b   :  { %221 = vst.msk [vmem:[#allocation2 + $0x61] sm:$0xff] %vm104_vm1, %v40_v13  ;;  %222 = vst.msk [vmem:[#allocation2 + $0x69] sm:$0xff] %vm104_vm1, %v41_v14  ;;  %v494_v13 = vrot.slane %v15927_v37, 1 }
  0x3c   :  { %223 = vst.msk [vmem:[#allocation2 + $0x79] sm:$0xff] %vm104_vm1, %v42_v15  ;;  %224 = vst.msk [vmem:[#allocation2 + $0x81] sm:$0xff] %vm104_vm1, %v43_v16  ;;  %v1075_v16 = vor.u32 %v1074_v6, %v1071_v5  ;;  %v71_v6 = vld [vmem:[%s21286_s0 + $0x128] sm:$0xff] }
  0x3d   :  { %225 = vst.msk [vmem:[#allocation2 + $0x91] sm:$0xff] %vm104_vm1, %v44_v17  ;;  %226 = vst.msk [vmem:[#allocation2 + $0x99] sm:$0xff] %vm104_vm1, %v45_v20  ;;  %v62_v20 = vld [vmem:[%s21286_s0 + $0xe0] sm:$0xff] }
  0x3e   :  { %227 = vst.msk [vmem:[#allocation2 + $0xa9] sm:$0xff] %vm104_vm1, %v46_v21  ;;  %228 = vst.msk [vmem:[#allocation2 + $0xb1] sm:$0xff] %vm104_vm1, %v47_v22  ;;  %v488_v22 = vsel %vm483_vm5, %v485_v59, %v487_v11 }
  0x3f   :  { %229 = vst.msk [vmem:[#allocation2 + $0xc1] sm:$0xff] %vm104_vm1, %v48_v24  ;;  %230 = vst.msk [vmem:[#allocation2 + $0xc9] sm:$0xff] %vm104_vm1, %v49_v25 }
  0x40   :  { %231 = vst.msk [vmem:[#allocation2 + $0xd9] sm:$0xff] %vm104_vm1, %v50_v27  ;;  %232 = vst.msk [vmem:[#allocation2 + $0xe1] sm:$0xff] %vm104_vm1, %v51_v28  ;;  %v15936_v39 = vld [vmem:[#allocation2 + $0x20] sm:$0xff]  ;;  %v15941_v42 = vld [vmem:[#allocation2 + $0x48] sm:$0xff]  ;;  %v1177_v27 = vand.u32 %v15879_v23, %v1075_v16  ;;  %v1033_v28 = vpack.c.bf16 %v488_v22, %v486_v10 }
  0x41   :  { %233 = vst.msk [vmem:[#allocation2 + $0xf1] sm:$0xff] %vm104_vm1, %v52_v29  ;;  %21454 = vst [vmem:[#allocation9_spill] sm:$0xff] %v15916_v33  ;;  %v15938_v40 = vld [vmem:[#allocation2 + $0x38] sm:$0xff]  ;;  %v15946_v43 = vpack.c.bf16 %v15936_v39, %v15925_v36  ;;  %v15948_v44 = vld [vmem:[#allocation2 + $0x50] sm:$0xff]  ;;  %v490_v63 = vrot.slane %v15936_v39, 1  ;;  %v499_v56 = vrot.slane %v15941_v42, 1 }
  0x42   :  { %234 = vst.msk [vmem:[#allocation2 + $0xf9] sm:$0xff] %vm104_vm1, %v53_v30  ;;  %235 = vst.msk [vmem:[#allocation2 + $0x109] sm:$0xff] %vm104_vm1, %v54_v31  ;;  %v21298_v45 = vrot.slane %v15938_v40, 2  ;;  %v15953_v46 = vpack.c.bf16 %v15938_v40, %v15927_v37  ;;  %v15961_v48 = vpack.c.bf16 %v15948_v44, %v15941_v42  ;;  %v15972_v52 = vld [vmem:[#allocation2 + $0x60] sm:$0xff]  ;;  %v15974_v53 = vld [vmem:[#allocation2 + $0x68] sm:$0xff]  ;;  %v495_v14 = vrot.slane %v15938_v40, 1  ;;  %13920 = vmatprep.subr.bf16.mxu1 %v1177_v27 }
  0x43   :  { %236 = vst.msk [vmem:[#allocation2 + $0x111] sm:$0xff] %vm104_vm1, %v55_v32  ;;  %237 = vst.msk [vmem:[#allocation2 + $0x121] sm:$0xff] %vm104_vm1, %v56_v35  ;;  %14120 = vmatprep.mubr.msk.bf16.mxu0 %vm104_vm1, %v15946_v43  ;;  %v15976_v54 = vld [vmem:[#allocation2 + $0x78] sm:$0xff]  ;;  %v15978_v55 = vld [vmem:[#allocation2 + $0x80] sm:$0xff]  ;;  %v15982_v60 = vpack.c.bf16 %v15974_v53, %v15972_v52  ;;  %v491_v24 = vsel %vm483_vm5, %v489_v62, %v490_v63  ;;  %13922 = vmatprep.mubr.msk.bf16.mxu1 %vm104_vm1, %v1033_v28  ;;  %v500_v57 = vrot.slane %v15948_v44, 1 }
  0x44   :  { %21455 = vst [vmem:[#allocation10_spill] sm:$0xff] %v15946_v43  ;;  %21456 = vst [vmem:[#allocation11_spill] sm:$0xff] %v15953_v46  ;;  %v15966_v49 = vsel %vm708_vm4, %v719_v41, %v21298_v45  ;;  %14121 = vmatmul.mubr.msk.bf16.vlgmr.msra.gmra.mrb[0].mxu0 %vm104_vm1, %v15953_v46  ;;  %v15988_v1 = vpack.c.bf16 %v15978_v55, %v15976_v54  ;;  %v284_v2 = vld [vmem:[#allocation2 + $0x28] sm:$0x3]  ;;  %v15997_v8 = vld [vmem:[#allocation2 + $0x90] sm:$0xff]  ;;  %v496_v41 = vsel %vm483_vm5, %v494_v13, %v495_v14 }
  0x45   :  { %21457 = vst [vmem:[#allocation12_spill] sm:$0xff] %v15961_v48  ;;  %14185 = vmatpush3.bf16.msra.mxu0 %v2726_v34  ;;  %14124 = vmatprep.mubr.msk.bf16.mxu0 %vm104_vm1, %v15961_v48  ;;  %21458 = vst [vmem:[#allocation13_spill] sm:$0xff] %v15976_v54  ;;  %v15999_v9 = vld [vmem:[#allocation2 + $0x98] sm:$0xff]  ;;  %v16010_v15 = vld [vmem:[#allocation2 + $0xa8] sm:$0xff]  ;;  %v492_v17 = vrot.slane %v284_v2, 1  ;;  %v505_v2 = vrot.slane %v15974_v53, 1  ;;  %v501_v13 = vsel %vm483_vm5, %v499_v56, %v500_v57 }
  0x46   :  { %21459 = vst [vmem:[#allocation14_spill] sm:$0xff] %v15978_v55  ;;  %21460 = vst [vmem:[#allocation15_spill] sm:$0xff] %v15982_v60  ;;  %v16024_v21 = vld [vmem:[#allocation2 + $0xb0] sm:$0xff]  ;;  %v16028_v25 = vld [vmem:[#allocation2 + $0x40] sm:$0x3]  ;;  %v16052_v35 = vpack.c.bf16 %v15999_v9, %v15997_v8  ;;  %13921 = vmatpush3.bf16.msra.mxu1 %v1177_v27  ;;  %v509_v28 = vrot.slane %v15976_v54, 1 }
  0x47   :  { %21461 = vst [vmem:[#allocation16_spill] sm:$0xff] %v15988_v1  ;;  %238 = vst.msk [vmem:[#allocation2 + $0x129] sm:$0xff] %vm104_vm1, %v57_v3  ;;  %v290_v26 = vld [vmem:[#allocation2 + $0x58] sm:$0x3]  ;;  %v493_v29 = vsel %vm483_vm5, %v490_v63, %v492_v17  ;;  %v63_v30 = vld [vmem:[%s21286_s0 + $0xe8] sm:$0xff]  ;;  %v497_v47 = vrot.slane %v16028_v25, 1  ;;  %v16070_v58 = vpack.c.bf16 %v16024_v21, %v16010_v15 }
  0x48   :  { %21462 = vst [vmem:[#allocation17_spill] sm:$0xff] %v15997_v8  ;;  %21463 = vst [vmem:[#allocation18_spill] sm:$0xff] %v15999_v9  ;;  %v64_v31 = vld [vmem:[%s21286_s0 + $0xf0] sm:$0xff]  ;;  %v65_v32 = vld [vmem:[%s21286_s0 + $0xf8] sm:$0xff]  ;;  %v16055_v37 = vpack.c.bf16 %v493_v29, %v491_v24  ;;  %v502_v59 = vrot.slane %v290_v26, 1  ;;  %v504_v63 = vrot.slane %v15972_v52, 1 }
  0x49   :  { %239 = vst.msk [vmem:[#allocation2 + $0x139] sm:$0xff] %vm104_vm1, %v58_v7  ;;  %21464 = vst [vmem:[#allocation19_spill] sm:$0xff] %v16010_v15  ;;  %v66_v34 = vld [vmem:[%s21286_s0 + $0x100] sm:$0xff]  ;;  %v498_v3 = vsel %vm483_vm5, %v495_v14, %v497_v47  ;;  %v16083_v5 = vld [vmem:[#allocation2 + $0x70] sm:$0x3]  ;;  %v515_v56 = vrot.slane %v15999_v9, 1 }
  0x4a   :  { %240 = vst.msk [vmem:[#allocation2 + $0x141] sm:$0xff] %vm104_vm1, %v59_v12  ;;  %21465 = vst [vmem:[#allocation20_spill] sm:$0xff] %v16024_v21  ;;  %v70_v62 = vld [vmem:[%s21286_s0 + $0x120] sm:$0xff]  ;;  %v16090_v7 = vpack.c.bf16 %v498_v3, %v496_v41  ;;  %v72_v10 = vld [vmem:[%s21286_s0 + $0x130] sm:$0xff]  ;;  %13923 = vmatmul.mubr.msk.bf16.vlgmr.msra.gmra.mrb[0].mxu1 %vm104_vm1, %v16055_v37  ;;  %v503_v14 = vsel %vm483_vm5, %v500_v57, %v502_v59  ;;  %v507_v16 = vrot.slane %v16083_v5, 1 }
  0x4b   :  { %241 = vst.msk [vmem:[#allocation2 + $0x151] sm:$0xff] %vm104_vm1, %v60_v18  ;;  %242 = vst.msk [vmem:[#allocation2 + $0x159] sm:$0xff] %vm104_vm1, %v61_v19  ;;  %v16098_v11 = vld [vmem:[#allocation2 + $0xc0] sm:$0xff]  ;;  %v16105_v12 = vld [vmem:[#allocation2 + $0xc8] sm:$0xff]  ;;  %v506_v22 = vsel %vm483_vm5, %v504_v63, %v505_v2 }
  0x4c   :  { %14125 = vmatmul.mubr.msk.bf16.gmra.mrb[4].mxu0 %vm104_vm1, %v15982_v60  ;;  %243 = vst.msk [vmem:[#allocation2 + $0x169] sm:$0xff] %vm104_vm1, %v62_v20  ;;  %244 = vst.msk [vmem:[#allocation2 + $0x171] sm:$0xff] %vm104_vm1, %v63_v30  ;;  %13926 = vmatprep.mubr.msk.bf16.mxu1 %vm104_vm1, %v16090_v7  ;;  %v73_v17 = vld [vmem:[%s21286_s0 + $0x138] sm:$0xff]  ;;  %v74_v18 = vld [vmem:[%s21286_s0 + $0x140] sm:$0xff]  ;;  %v508_v26 = vsel %vm483_vm5, %v505_v2, %v507_v16  ;;  %v16129_v29 = vpack.c.bf16 %v16105_v12, %v16098_v11 }
  0x4d   :  { %14128 = vmatprep.mubr.msk.bf16.mxu0 %vm104_vm1, %v15988_v1  ;;  %245 = vst.msk [vmem:[#allocation2 + $0x181] sm:$0xff] %vm104_vm1, %v64_v31  ;;  %246 = vst.msk [vmem:[#allocation2 + $0x189] sm:$0xff] %vm104_vm1, %v65_v32  ;;  %v16118_v19 = vld [vmem:[#allocation2 + $0xd8] sm:$0xff]  ;;  %v16120_v20 = vld [vmem:[#allocation2 + $0xe0] sm:$0xff]  ;;  %v16131_v30 = vpack.c.bf16 %v503_v14, %v501_v13  ;;  %v510_v32 = vrot.slane %v15978_v55, 1  ;;  %v16141_v41 = vpack.c.bf16 %v508_v26, %v506_v22 }
  0x4e   :  { %21466 = vst [vmem:[#allocation21_spill] sm:$0xff] %v16052_v35  ;;  %247 = vst.msk [vmem:[#allocation2 + $0x1c9] sm:$0xff] %vm104_vm1, %v66_v34  ;;  %v296_v24 = vld [vmem:[#allocation2 + $0x88] sm:$0x3]  ;;  %v299_v27 = vld [vmem:[#allocation2 + $0xa0] sm:$0x3]  ;;  %v16139_v34 = vpack.c.bf16 %v16120_v20, %v16118_v19 }
  0x4f   :  { %21467 = vst [vmem:[#allocation22_spill] sm:$0xff] %v16070_v58  ;;  %248 = vst.msk [vmem:[#allocation2 + $0x1d1] sm:$0xff] %vm104_vm1, %v67_v50  ;;  %v75_v31 = vld [vmem:[%s21286_s0 + $0x148] sm:$0xff]  ;;  %v512_v47 = vrot.slane %v296_v24, 1  ;;  %v76_v50 = vld [vmem:[%s21286_s0 + $0x150] sm:$0xff]  ;;  %v517_v57 = vrot.slane %v299_v27, 1  ;;  %v511_v13 = vsel %vm483_vm5, %v509_v28, %v510_v32 }
  0x50   :  { %249 = vst.msk [vmem:[#allocation2 + $0x1e1] sm:$0xff] %vm104_vm1, %v68_v51  ;;  %21468 = vst [vmem:[#allocation23_spill] sm:$0xff] %v16083_v5  ;;  %v514_v51 = vrot.slane %v15997_v8, 1  ;;  %v77_v59 = vld [vmem:[%s21286_s0 + $0x158] sm:$0xff]  ;;  %v80_v63 = vld [vmem:[%s21286_s0 + $0x170] sm:$0xff]  ;;  %v519_v27 = vrot.slane %v16010_v15, 1 }
  0x51   :  { %250 = vst.msk [vmem:[#allocation2 + $0x1e9] sm:$0xff] %vm104_vm1, %v69_v61  ;;  %251 = vst.msk [vmem:[#allocation2 + $0x1f9] sm:$0xff] %vm104_vm1, %v70_v62  ;;  %v78_v61 = vld [vmem:[%s21286_s0 + $0x160] sm:$0xff]  ;;  %v79_v62 = vld [vmem:[%s21286_s0 + $0x168] sm:$0xff]  ;;  %v513_v14 = vsel %vm483_vm5, %v510_v32, %v512_v47  ;;  %v520_v32 = vrot.slane %v16024_v21, 1 }
  0x52   :  { %21469 = vst [vmem:[#allocation24_spill] sm:$0xff] %v16090_v7  ;;  %252 = vst.msk [vmem:[#allocation2 + $0x201] sm:$0xff] %vm104_vm1, %v71_v6  ;;  %13927 = vmatmul.mubr.msk.bf16.gmra.mrb[4].mxu1 %vm104_vm1, %v16131_v30  ;;  %v81_v2 = vld [vmem:[%s21286_s0 + $0x178] sm:$0xff]  ;;  %v16174_v3 = vld [vmem:[#allocation2 + $0xf0] sm:$0xff] }
  0x53   :  { %21470 = vst [vmem:[#allocation25_spill] sm:$0xff] %v16098_v11  ;;  %253 = vst.msk [vmem:[#allocation2 + $0x211] sm:$0xff] %vm104_vm1, %v72_v10  ;;  %v16176_v6 = vld [vmem:[#allocation2 + $0xf8] sm:$0xff]  ;;  %v16178_v10 = vld [vmem:[#allocation2 + $0x108] sm:$0xff]  ;;  %13930 = vmatprep.mubr.msk.bf16.mxu1 %vm104_vm1, %v16141_v41 }
  0x54   :  { %14129 = vmatmul.mubr.msk.bf16.gmra.mrb[8].mxu0 %vm104_vm1, %v16052_v35  ;;  %21471 = vst [vmem:[#allocation26_spill] sm:$0xff] %v16105_v12  ;;  %21472 = vst [vmem:[#allocation27_spill] sm:$0xff] %v16118_v19  ;;  %v16186_v16 = vld [vmem:[#allocation2 + $0x110] sm:$0xff]  ;;  %v302_v22 = vld [vmem:[#allocation2 + $0xb8] sm:$0x3]  ;;  %v16197_v28 = vpack.c.bf16 %v16176_v6, %v16174_v3 }
  0x55   :  { %14132 = vmatprep.mubr.msk.bf16.mxu0 %vm104_vm1, %v16070_v58  ;;  %21473 = vst [vmem:[#allocation28_spill] sm:$0xff] %v16120_v20  ;;  %254 = vst.msk [vmem:[#allocation2 + $0x219] sm:$0xff] %vm104_vm1, %v73_v17  ;;  %v516_v17 = vsel %vm483_vm5, %v514_v51, %v515_v56  ;;  %v82_v24 = vld [vmem:[%s21286_s0 + $0x180] sm:$0xff]  ;;  %v305_v26 = vld [vmem:[#allocation2 + $0xd0] sm:$0x3]  ;;  %v16204_v47 = vpack.c.bf16 %v16186_v16, %v16178_v10  ;;  %v522_v51 = vrot.slane %v302_v22, 1 }
  0x56   :  { %255 = vst.msk [vmem:[#allocation2 + $0x229] sm:$0xff] %vm104_vm1, %v74_v18  ;;  %21474 = vst [vmem:[#allocation29_spill] sm:$0xff] %v16129_v29  ;;  %v518_v18 = vsel %vm483_vm5, %v515_v56, %v517_v57  ;;  %v83_v56 = vld [vmem:[%s21286_s0 + $0x188] sm:$0xff]  ;;  %v524_v57 = vrot.slane %v16098_v11, 1  ;;  %v16223_v22 = vld [vmem:[#allocation2 + $0x120] sm:$0xff] }
  0x57   :  { %21475 = vst [vmem:[#allocation30_spill] sm:$0xff] %v16131_v30  ;;  %21476 = vst [vmem:[#allocation31_spill] sm:$0xff] %v16139_v34  ;;  %v16233_v4 = vld [vmem:[#allocation2 + $0x128] sm:$0xff]  ;;  %v16377_v43 = vld [vmem:[#allocation2 + $0x180] sm:$0xff] }
  0x58   :  { %21477 = vst [vmem:[#allocation32_spill] sm:$0xff] %v16141_v41  ;;  %256 = vst.msk [vmem:[#allocation2 + $0x231] sm:$0xff] %vm104_vm1, %v75_v31  ;;  %v16199_v31 = vpack.c.bf16 %v513_v14, %v511_v13  ;;  %v521_v14 = vsel %vm483_vm5, %v519_v27, %v520_v32  ;;  %v16245_v13 = vld [vmem:[#allocation2 + $0x140] sm:$0xff]  ;;  %v85_v27 = vld [vmem:[%s21286_s0 + $0x198] sm:$0xff] }
  0x59   :  { %257 = vst.msk [vmem:[#allocation2 + $0x241] sm:$0xff] %vm104_vm1, %v76_v50  ;;  %258 = vst.msk [vmem:[#allocation2 + $0x249] sm:$0xff] %vm104_vm1, %v77_v59  ;;  %v16206_v50 = vpack.c.bf16 %v518_v18, %v516_v17  ;;  %v525_v59 = vrot.slane %v16105_v12, 1  ;;  %v16235_v18 = vld [vmem:[#allocation2 + $0x138] sm:$0xff]  ;;  %v523_v17 = vsel %vm483_vm5, %v520_v32, %v522_v51  ;;  %v529_v51 = vrot.slane %v16118_v19, 1  ;;  %v16341_v58 = vld [vmem:[#allocation2 + $0x168] sm:$0xff] }
  0x5a   :  { %259 = vst.msk [vmem:[#allocation2 + $0x259] sm:$0xff] %vm104_vm1, %v78_v61  ;;  %260 = vst.msk [vmem:[#allocation2 + $0x261] sm:$0xff] %vm104_vm1, %v79_v62  ;;  %v527_v61 = vrot.slane %v305_v26, 1  ;;  %13931 = vmatmul.mubr.msk.bf16.gmra.mrb[8].mxu1 %vm104_vm1, %v16199_v31  ;;  %v89_v32 = vld [vmem:[%s21286_s0 + $0x1b8] sm:$0xff]  ;;  %v90_v26 = vld [vmem:[%s21286_s0 + $0x1c0] sm:$0xff] }
  0x5b   :  { %21478 = vst [vmem:[#allocation33_spill] sm:$0xff] %v16174_v3  ;;  %21479 = vst [vmem:[#allocation34_spill] sm:$0xff] %v16176_v6  ;;  %13934 = vmatprep.mubr.msk.bf16.mxu1 %vm104_vm1, %v16206_v50  ;;  %v526_v45 = vsel %vm483_vm5, %v524_v57, %v525_v59  ;;  %v86_v57 = vld [vmem:[%s21286_s0 + $0x1a0] sm:$0xff]  ;;  %v16350_v1 = vld [vmem:[%s21287_s1 + $0x8] sm:$0xf] }
  0x5c   :  { %14133 = vmatmul.mubr.msk.bf16.gmra.mrb[12].mxu0 %vm104_vm1, %v16129_v29  ;;  %21480 = vst [vmem:[#allocation35_spill] sm:$0xff] %v16178_v10  ;;  %261 = vst.msk [vmem:[#allocation2 + $0x271] sm:$0xff] %vm104_vm1, %v80_v63  ;;  %v528_v62 = vsel %vm483_vm5, %v525_v59, %v527_v61  ;;  %v84_v63 = vld [vmem:[%s21286_s0 + $0x190] sm:$0xff]  ;;  %v87_v59 = vld [vmem:[%s21286_s0 + $0x1a8] sm:$0xff]  ;;  %v539_v29 = vrot.slane %v16178_v10, 1 }
  0x5d   :  { %14136 = vmatprep.mubr.msk.bf16.mxu0 %vm104_vm1, %v16139_v34  ;;  %262 = vst.msk [vmem:[#allocation2 + $0x279] sm:$0xff] %vm104_vm1, %v81_v2  ;;  %21481 = vst [vmem:[#allocation36_spill] sm:$0xff] %v16186_v16  ;;  %v16241_v2 = vld [vmem:[#allocation2 + $0x100] sm:$0x3]  ;;  %v88_v61 = vld [vmem:[%s21286_s0 + $0x1b0] sm:$0xff] }
  0x5e   :  { %263 = vst.msk [vmem:[#allocation2 + $0x289] sm:$0xff] %vm104_vm1, %v82_v24  ;;  %21482 = vst [vmem:[#allocation37_spill] sm:$0xff] %v16197_v28  ;;  %v16227_v24 = vld [vmem:[#allocation2 + $0xe8] sm:$0x3]  ;;  %v16402_v10 = vld [vmem:[#allocation2 + $0x1e0] sm:$0xff] }
  0x5f   :  { %21483 = vst [vmem:[#allocation38_spill] sm:$0xff] %v16199_v31  ;;  %21484 = vst [vmem:[#allocation39_spill] sm:$0xff] %v16204_v47  ;;  %v95_v34 = vld [vmem:[%s21286_s0 + $0x1e8] sm:$0xff]  ;;  %v16440_v19 = vld [vmem:[#allocation2 + $0x230] sm:$0xff] }
  0x60   :  { %21485 = vst [vmem:[#allocation40_spill] sm:$0xff] %v16206_v50  ;;  %264 = vst.msk [vmem:[#allocation2 + $0x291] sm:$0xff] %vm104_vm1, %v83_v56  ;;  %v530_v56 = vrot.slane %v16120_v20, 1  ;;  %v16459_v11 = vld [vmem:[#allocation2 + $0x1c0] sm:$0x3] }
  0x61   :  { %21486 = vst [vmem:[#allocation41_spill] sm:$0xff] %v16223_v22  ;;  %21487 = vst [vmem:[#allocation42_spill] sm:$0xff] %v16233_v4  ;;  %v16453_v20 = vld [vmem:[#allocation2 + $0x258] sm:$0xff]  ;;  %v16480_v21 = vld [vmem:[#allocation2 + $0x1f0] sm:$0x3]  ;;  %v567_v5 = vrot.slane %v16459_v11, 1 }
  0x62   :  { %21488 = vst [vmem:[#allocation43_spill] sm:$0xff] %v16235_v18  ;;  %21489 = vst [vmem:[#allocation44_spill] sm:$0xff] %v16245_v13  ;;  %v21518_v11 = vrot.slane %v16377_v43, 1 }
  0x63   :  { %265 = vst.msk [vmem:[#allocation2 + $0x2a1] sm:$0xff] %vm104_vm1, %v84_v63  ;;  %266 = vst.msk [vmem:[#allocation2 + $0x2a9] sm:$0xff] %vm104_vm1, %v85_v27  ;;  %v16273_v63 = vpack.c.bf16 %v16233_v4, %v16223_v22  ;;  %v16275_v27 = vpack.c.bf16 %v523_v17, %v521_v14  ;;  %v16289_v14 = vpack.c.bf16 %v16245_v13, %v16235_v18  ;;  %v16476_v15 = vld [vmem:[#allocation2 + $0x270] sm:$0xff] }
  0x64   :  { %14137 = vmatmul.mubr.msk.bf16.gmra.mrb[16].mxu0 %vm104_vm1, %v16197_v28  ;;  %267 = vst.msk [vmem:[#allocation2 + $0x2b9] sm:$0xff] %vm104_vm1, %v86_v57  ;;  %268 = vst.msk [vmem:[#allocation2 + $0x2c1] sm:$0xff] %vm104_vm1, %v87_v59  ;;  %v16291_v17 = vpack.c.bf16 %v528_v62, %v526_v45  ;;  %v532_v57 = vrot.slane %v16227_v24, 1  ;;  %v91_v59 = vld [vmem:[%s21286_s0 + $0x1c8] sm:$0xff]  ;;  %v537_v28 = vrot.slane %v16241_v2, 1  ;;  %v92_v45 = vld [vmem:[%s21286_s0 + $0x1d0] sm:$0xff] }
  0x65   :  { %14140 = vmatprep.mubr.msk.bf16.mxu0 %vm104_vm1, %v16204_v47  ;;  %21490 = vst [vmem:[#allocation45_spill] sm:$0xff] %v16273_v63  ;;  %21491 = vst [vmem:[#allocation46_spill] sm:$0xff] %v16275_v27  ;;  %v535_v47 = vrot.slane %v16176_v6, 1  ;;  %v93_v62 = vld [vmem:[%s21286_s0 + $0x1d8] sm:$0xff]  ;;  %v94_v24 = vld [vmem:[%s21286_s0 + $0x1e0] sm:$0xff]  ;;  %13935 = vmatmul.mubr.msk.bf16.gmra.mrb[12].mxu1 %vm104_vm1, %v16275_v27 }
  0x66   :  { %269 = vst.msk [vmem:[#allocation2 + $0x2d1] sm:$0xff] %vm104_vm1, %v88_v61  ;;  %21492 = vst [vmem:[#allocation47_spill] sm:$0xff] %v16289_v14  ;;  %v534_v61 = vrot.slane %v16174_v3, 1  ;;  %v314_v2 = vld [vmem:[#allocation2 + $0x118] sm:$0x3]  ;;  %13938 = vmatprep.mubr.msk.bf16.mxu1 %vm104_vm1, %v16291_v17  ;;  %v16474_v27 = vld [vmem:[#allocation2 + $0x260] sm:$0xff] }
  0x67   :  { %21493 = vst [vmem:[#allocation48_spill] sm:$0xff] %v16291_v17  ;;  %270 = vst.msk [vmem:[#allocation2 + $0x2d9] sm:$0xff] %vm104_vm1, %v89_v32  ;;  %v16325_v32 = vld [vmem:[#allocation2 + $0x150] sm:$0xff]  ;;  %v16457_v17 = vld [vmem:[#allocation2 + $0x1b8] sm:$0xff] }
  0x68   :  { %271 = vst.msk [vmem:[#allocation2 + $0x2e9] sm:$0xff] %vm104_vm1, %v90_v26  ;;  %272 = vst.msk [vmem:[#allocation2 + $0x2f1] sm:$0xff] %vm104_vm1, %v91_v59  ;;  %v533_v26 = vsel %vm483_vm5, %v530_v56, %v532_v57  ;;  %v536_v35 = vsel %vm483_vm5, %v534_v61, %v535_v47  ;;  %v542_v57 = vrot.slane %v314_v2, 1  ;;  %v12912_v59 = vcombine.low %v15593_v0, %v16350_v1  ;;  %v16386_v2 = vld [vmem:[#allocation2 + $0x1d0] sm:$0xff]  ;;  %v320_v0 = vld [vmem:[#allocation2 + $0x148] sm:$0x3] }
  0x69   :  { %273 = vst.msk [vmem:[#allocation2 + $0x301] sm:$0xff] %vm104_vm1, %v92_v45  ;;  %274 = vst.msk [vmem:[#allocation2 + $0x309] sm:$0xff] %vm104_vm1, %v93_v62  ;;  %v540_v45 = vrot.slane %v16186_v16, 1  ;;  %v16333_v62 = vld [vmem:[#allocation2 + $0x158] sm:$0xff]  ;;  %v16404_v16 = vld [vmem:[#allocation2 + $0x1e8] sm:$0xff]  ;;  %v21508_v6 = vrot.slane %v16325_v32, 1 }
  0x6a   :  { %275 = vst.msk [vmem:[#allocation2 + $0x319] sm:$0xff] %vm104_vm1, %v94_v24  ;;  %21494 = vst [vmem:[#allocation49_spill] sm:$0xff] %v16325_v32  ;;  %v531_v24 = vsel %vm483_vm5, %v529_v51, %v530_v56  ;;  %v544_v51 = vrot.slane %v16223_v22, 1  ;;  %v545_v56 = vrot.slane %v16233_v4, 1  ;;  %v555_v22 = vrot.slane %v16333_v62, 1  ;;  %v16520_v54 = vld [vmem:[#allocation2 + $0x288] sm:$0xff] }
  0x6b   :  { %276 = vst.msk [vmem:[#allocation2 + $0x321] sm:$0xff] %vm104_vm1, %v95_v34  ;;  %v16343_v34 = vld [vmem:[#allocation2 + $0x170] sm:$0xff]  ;;  %v3087_v33 = vshrl.u32 %v12912_v59, 16  ;;  %v3090_v4 = vshll.u32 %v12912_v59, 16  ;;  %v543_v59 = vsel %vm483_vm5, %v540_v45, %v542_v57  ;;  %21510 = vst [vmem:[#allocation61_spill] sm:$0xff] %v16480_v21  ;;  %v565_v41 = vrot.slane %v16457_v17, 1 }
  0x6c   :  { %14141 = vmatmul.mubr.msk.bf16.gmra.mrb[20].mxu0 %vm104_vm1, %v16273_v63  ;;  %v16356_v63 = vld [vmem:[#allocation2 + $0x130] sm:$0x3]  ;;  %v16368_v60 = vpack.c.bf16 %v16343_v34, %v16341_v58  ;;  %v546_v3 = vsel %vm483_vm5, %v544_v51, %v545_v56  ;;  %v16422_v51 = vld [vmem:[#allocation2 + $0x200] sm:$0xff] }
  0x6d   :  { %14144 = vmatprep.mubr.msk.bf16.mxu0 %vm104_vm1, %v16289_v14  ;;  %v538_v14 = vsel %vm483_vm5, %v535_v47, %v537_v28  ;;  %21495 = vst [vmem:[#allocation50_spill] sm:$0xff] %v16356_v63  ;;  %v16362_v28 = vpack.c.bf16 %v16333_v62, %v16325_v32  ;;  %v16364_v47 = vpack.c.bf16 %v533_v26, %v531_v24  ;;  %v16379_v26 = vld [vmem:[#allocation2 + $0x188] sm:$0xff]  ;;  %v547_v24 = vrot.slane %v16356_v63, 1  ;;  %v323_v62 = vld [vmem:[#allocation2 + $0x160] sm:$0x3]  ;;  %v16522_v55 = vld [vmem:[#allocation2 + $0x290] sm:$0xff] }
  0x6e   :  { %21498 = vst [vmem:[#allocation53_spill] sm:$0xff] %v16368_v60  ;;  %v16370_v48 = vpack.c.bf16 %v538_v14, %v536_v35  ;;  %v16384_v14 = vld [vmem:[#allocation2 + $0x1c8] sm:$0xff]  ;;  %v541_v35 = vsel %vm483_vm5, %v539_v29, %v540_v45  ;;  %v3089_v63 = vrot.slane %v3087_v33, 3  ;;  %v16414_v33 = vld [vmem:[#allocation2 + $0x1f8] sm:$0xff]  ;;  %v557_v46 = vrot.slane %v323_v62, 1 }
  0x6f   :  { %21496 = vst [vmem:[#allocation51_spill] sm:$0xff] %v16362_v28  ;;  %21497 = vst [vmem:[#allocation52_spill] sm:$0xff] %v16364_v47  ;;  %13939 = vmatmul.mubr.msk.bf16.gmra.mrb[16].mxu1 %vm104_vm1, %v16364_v47  ;;  %v16418_v57 = vpack.c.bf16 %v16386_v2, %v16384_v14  ;;  %v16420_v61 = vpack.c.bf16 %v543_v59, %v541_v35  ;;  %v16438_v59 = vld [vmem:[#allocation2 + $0x228] sm:$0xff]  ;;  %v21506_v29 = vrot.slane %v16235_v18, 1  ;;  %v16455_v35 = vld [vmem:[#allocation2 + $0x1b0] sm:$0xff]  ;;  %v21517_v17 = vrot.slane %v16379_v26, 1 }
  0x70   :  { %21499 = vst [vmem:[#allocation54_spill] sm:$0xff] %v16370_v48  ;;  %13942 = vmatprep.mubr.msk.bf16.mxu1 %vm104_vm1, %v16370_v48  ;;  %v16410_v48 = vpack.c.bf16 %v16379_v26, %v16377_v43  ;;  %v16444_v62 = vld [vmem:[#allocation2 + $0x248] sm:$0xff]  ;;  %v556_v18 = vsel %vm483_vm5, %v21508_v6, %v555_v22  ;;  %v558_v12 = vsel %vm483_vm5, %v555_v22, %v557_v46  ;;  %v16496_v32 = vld [vmem:[#allocation2 + $0x238] sm:$0x3]  ;;  %v564_v22 = vrot.slane %v16455_v35, 1 }
  0x71   :  { %21501 = vst [vmem:[#allocation56_spill] sm:$0xff] %v16418_v57  ;;  %21502 = vst [vmem:[#allocation57_spill] sm:$0xff] %v16420_v61  ;;  %v16510_v6 = vld [vmem:[#allocation2 + $0x268] sm:$0x3]  ;;  %v16516_v8 = vpack.c.bf16 %v558_v12, %v556_v18  ;;  %v16530_v12 = vld [vmem:[#allocation2 + $0x190] sm:$0x3]  ;;  %v1565_v35 = vand.u32 %v15879_v23, %v15932_v38  ;;  %v16582_v38 = vpack.c.bf16 %v16440_v19, %v16438_v59 }
  0x72   :  { %21500 = vst [vmem:[#allocation55_spill] sm:$0xff] %v16410_v48  ;;  %v566_v43 = vsel %vm483_vm5, %v564_v22, %v565_v41 }
  0x73   :  { %21514 = vst [vmem:[#allocation65_spill] sm:$0xff] %v16516_v8  ;;  %13986 = vmatprep.subr.bf16.mxu1 %v1565_v35  ;;  %21524 = vst [vmem:[#allocation69_spill] sm:$0xff] %v16582_v38 }
  0x74   :  { %14145 = vmatmul.mubr.msk.bf16.gmra.mrb[24].mxu0 %vm104_vm1, %v16362_v28  ;;  %v3092_v28 = vrot.slane %v3090_v4, 4  ;;  %v16428_v4 = vld [vmem:[#allocation2 + $0x218] sm:$0xff]  ;;  %13987 = vmatpush3.bf16.msra.mxu1 %v1565_v35  ;;  %v21528_v35 = vrot.slane %v16404_v16, 1 }
  0x75   :  { %14148 = vmatprep.mubr.msk.bf16.mxu0 %vm104_vm1, %v16368_v60  ;;  %v548_v60 = vsel %vm483_vm5, %v545_v56, %v547_v24  ;;  %v16424_v56 = vld [vmem:[#allocation2 + $0x210] sm:$0xff]  ;;  %v552_v24 = vrot.slane %v320_v0, 1  ;;  %v16442_v0 = vld [vmem:[#allocation2 + $0x240] sm:$0xff] }
  0x76   :  { %v3093_v45 = vor.u32 %v3092_v28, %v3089_v63  ;;  %v16430_v47 = vpack.c.bf16 %v548_v60, %v546_v3  ;;  %v16432_v63 = vld [vmem:[#allocation2 + $0x178] sm:$0x3]  ;;  %v21505_v3 = vrot.slane %v16245_v13, 1  ;;  %v16484_v60 = vld [vmem:[#allocation2 + $0x220] sm:$0x3] }
  0x77   :  { %21504 = vst [vmem:[#allocation59_spill] sm:$0xff] %v16432_v63  ;;  %13943 = vmatmul.mubr.msk.bf16.gmra.mrb[20].mxu1 %vm104_vm1, %v16420_v61  ;;  %v16482_v61 = vld [vmem:[#allocation2 + $0x208] sm:$0x3]  ;;  %v16498_v13 = vld [vmem:[#allocation2 + $0x250] sm:$0x3]  ;;  %v562_v46 = vrot.slane %v16432_v63, 1 }
  0x78   :  { %21503 = vst [vmem:[#allocation58_spill] sm:$0xff] %v16430_v47  ;;  %v16435_v28 = vand.u32 %v3093_v45, %v15879_v23  ;;  %v551_v45 = vsel %vm483_vm5, %v21506_v29, %v21505_v3  ;;  %v21507_v29 = vmov %v21505_v3  ;;  %21511 = vst [vmem:[#allocation62_spill] sm:$0xff] %v16482_v61  ;;  %13946 = vmatprep.mubr.msk.bf16.mxu1 %vm104_vm1, %v16430_v47  ;;  %v582_v31 = vrot.slane %v16482_v61, 1 }
  0x79   :  { %v553_v3 = vsel %vm483_vm5, %v21507_v29, %v552_v24  ;;  %v16494_v29 = vld [vmem:[#allocation2 + $0x278] sm:$0xff]  ;;  %v16506_v47 = vpack.c.bf16 %v16422_v51, %v16414_v33  ;;  %v16512_v24 = vld [vmem:[#allocation2 + $0x280] sm:$0x3]  ;;  %v21516_v61 = vrot.slane %v16341_v58, 1  ;;  %v942_v63 = vrot.slane %v16530_v12, 1 }
  0x7a   :  { %14250 = vmatprep.subr.bf16.mxu0 %v16435_v28  ;;  %v16514_v50 = vpack.c.bf16 %v553_v3, %v551_v45  ;;  %v16528_v45 = vld [vmem:[#allocation2 + $0x298] sm:$0x3]  ;;  %v577_v3 = vrot.slane %v16480_v21, 1  ;;  %v21515_v21 = vrot.slane %v16343_v34, 1  ;;  %v16574_v34 = vpack.c.bf16 %v16428_v4, %v16424_v56 }
  0x7b   :  { %21512 = vst [vmem:[#allocation63_spill] sm:$0xff] %v16506_v47 }
  0x7c   :  { %14149 = vmatmul.mubr.msk.bf16.gmra.mrb[28].mxu0 %vm104_vm1, %v16410_v48  ;;  %v16478_v48 = vld [vmem:[#allocation2 + $0x1d8] sm:$0x3]  ;;  %21513 = vst [vmem:[#allocation64_spill] sm:$0xff] %v16514_v50  ;;  %v561_v9 = vsel %vm483_vm5, %v21516_v61, %v21515_v21  ;;  %v21519_v58 = vmov %v21515_v21  ;;  %21521 = vst [vmem:[#allocation66_spill] sm:$0xff] %v16574_v34  ;;  %v21539_v61 = vrot.slane %v16428_v4, 1  ;;  %v21548_v4 = vrot.slane %v15925_v36, 2 }
  0x7d   :  { %21509 = vst [vmem:[#allocation60_spill] sm:$0xff] %v16478_v48  ;;  %14152 = vmatprep.mubr.msk.bf16.mxu0 %vm104_vm1, %v16418_v57  ;;  %v16502_v57 = vpack.c.bf16 %v16404_v16, %v16402_v10  ;;  %v572_v18 = vrot.slane %v16478_v48, 1  ;;  %v941_v48 = vsel %vm483_vm5, %v21518_v11, %v21517_v17  ;;  %v563_v21 = vsel %vm483_vm5, %v21519_v58, %v562_v46 }
  0x7e   :  { %v568_v17 = vsel %vm483_vm5, %v565_v41, %v567_v5  ;;  %v21520_v11 = vrot.slane %v16379_v26, 1  ;;  %v16576_v46 = vpack.c.bf16 %v563_v21, %v561_v9  ;;  %v16584_v5 = vld [vmem:[#allocation2 + $0x2a0] sm:$0xff]  ;;  %v16586_v41 = vld [vmem:[#allocation2 + $0x2a8] sm:$0xff]  ;;  %v21526_v9 = vrot.slane %v16384_v14, 1 }
  0x7f   :  { %13947 = vmatmul.mubr.msk.bf16.gmra.mrb[24].mxu1 %vm104_vm1, %v16514_v50  ;;  %v1049_v22 = vpack.c.bf16 %v568_v17, %v566_v43  ;;  %v21529_v21 = vrot.slane %v16402_v10, 1  ;;  %v21530_v17 = vmov %v21528_v35  ;;  %v16623_v10 = vpack.c.bf16 %v16444_v62, %v16442_v0 }
  0x80   :  { %13950 = vmatprep.mubr.msk.bf16.mxu1 %vm104_vm1, %v16516_v8  ;;  %21522 = vst [vmem:[#allocation67_spill] sm:$0xff] %v16576_v46 }
  0x81   :  { %v576_v43 = vsel %vm483_vm5, %v21529_v21, %v21528_v35  ;;  %21531 = vst [vmem:[#allocation70_spill] sm:$0xff] %v16623_v10  ;;  %v16637_v35 = vld [vmem:[#allocation2 + $0x2c0] sm:$0xff]  ;;  %v16639_v21 = vld [vmem:[#allocation2 + $0x2c8] sm:$0x3] }
  0x84   :  { %14153 = vmatmul.mubr.msk.bf16.gmra.mrb[32].mxu0 %vm104_vm1, %v16502_v57 }
  0x85   :  { %14156 = vmatprep.mubr.msk.bf16.mxu0 %vm104_vm1, %v16506_v47  ;;  %v943_v47 = vsel %vm483_vm5, %v21520_v11, %v942_v63  ;;  %v578_v11 = vsel %vm483_vm5, %v21530_v17, %v577_v3  ;;  %v16629_v3 = vpack.c.bf16 %v16474_v27, %v16453_v20  ;;  %v16641_v17 = vld [vmem:[#allocation2 + $0x2d0] sm:$0xff] }
  0x86   :  { %v16578_v58 = vpack.c.bf16 %v943_v47, %v941_v48  ;;  %v21525_v48 = vrot.slane %v16386_v2, 1  ;;  %v96_v2 = vld [vmem:[%s21286_s0 + $0x1f0] sm:$0xff]  ;;  %21534 = vst [vmem:[#allocation73_spill] sm:$0xff] %v16641_v17 }
  0x87   :  { %13951 = vmatmul.mubr.msk.bf16.gmra.mrb[28].mxu1 %vm104_vm1, %v16576_v46  ;;  %277 = vst.msk [vmem:[#allocation2 + $0x331] sm:$0xff] %vm104_vm1, %v96_v2  ;;  %21532 = vst [vmem:[#allocation71_spill] sm:$0xff] %v16629_v3  ;;  %v16643_v2 = vld [vmem:[#allocation2 + $0x2d8] sm:$0xff] }
  0x88   :  { %21523 = vst [vmem:[#allocation68_spill] sm:$0xff] %v16578_v58  ;;  %13954 = vmatprep.mubr.msk.bf16.mxu1 %vm104_vm1, %v1049_v22  ;;  %v571_v47 = vsel %vm483_vm5, %v21526_v9, %v21525_v48  ;;  %v21527_v26 = vmov %v21525_v48  ;;  %v16631_v48 = vpack.c.bf16 %v578_v11, %v576_v43  ;;  %v16633_v9 = vld [vmem:[#allocation2 + $0x2b0] sm:$0x3]  ;;  %v21536_v43 = vrot.slane %v16422_v51, 1 }
  0x89   :  { %v573_v63 = vsel %vm483_vm5, %v21527_v26, %v572_v18  ;;  %v97_v18 = vld [vmem:[%s21286_s0 + $0x1f8] sm:$0xff]  ;;  %v21537_v11 = vrot.slane %v16414_v33, 1  ;;  %v21541_v33 = vrot.slane %v16484_v60, 1 }
  0x8a   :  { %278 = vst.msk [vmem:[#allocation2 + $0x339] sm:$0xff] %vm104_vm1, %v97_v18  ;;  %v16625_v16 = vpack.c.bf16 %v573_v63, %v571_v47  ;;  %21533 = vst [vmem:[#allocation72_spill] sm:$0xff] %v16631_v48  ;;  %v16635_v26 = vld [vmem:[#allocation2 + $0x2b8] sm:$0xff]  ;;  %v16645_v47 = vld [vmem:[#allocation2 + $0x2e0] sm:$0x3]  ;;  %v21538_v22 = vmov %v21536_v43 }
  0x8b   :  { %v16647_v63 = vld [vmem:[#allocation2 + $0x2e8] sm:$0xff]  ;;  %v581_v18 = vsel %vm483_vm5, %v21537_v11, %v21536_v43  ;;  %v583_v14 = vsel %vm483_vm5, %v21538_v22, %v582_v31  ;;  %v21542_v43 = vmov %v21539_v61  ;;  %v21547_v22 = vrot.slane %v15936_v39, 2 }
  0x8c   :  { %14157 = vmatmul.mubr.msk.bf16.gmra.mrb[36].mxu0 %vm104_vm1, %v16574_v34  ;;  %21535 = vst [vmem:[#allocation74_spill] sm:$0xff] %v16647_v63  ;;  %v588_v11 = vsel %vm483_vm5, %v21542_v43, %v21541_v33  ;;  %v16687_v33 = vpack.c.bf16 %v16494_v29, %v16476_v15  ;;  %v16689_v43 = vpack.c.bf16 %v583_v14, %v581_v18  ;;  %v15419_v31 = vld [vmem:[#allocation2 + $0x28] sm:$0x3]  ;;  %v21550_v14 = vrot.slane %v16438_v59, 1 }
  0x8d   :  { %14160 = vmatprep.mubr.msk.bf16.mxu0 %vm104_vm1, %v16582_v38  ;;  %v717_v51 = vrot.slane %v15419_v31, 2  ;;  %v21553_v31 = vrot.slane %v16028_v25, 2 }
  0x8e   :  { %21544 = vst [vmem:[#allocation76_spill] sm:$0xff] %v16687_v33  ;;  %21545 = vst [vmem:[#allocation77_spill] sm:$0xff] %v16689_v43 }
  0x8f   :  { %13955 = vmatmul.mubr.msk.bf16.gmra.mrb[32].mxu1 %vm104_vm1, %v16625_v16 }
  0x90   :  { %13958 = vmatprep.mubr.msk.bf16.mxu1 %vm104_vm1, %v16631_v48 }
  0x94   :  { %14161 = vmatmul.mubr.msk.bf16.gmra.mrb[40].mxu0 %vm104_vm1, %v16623_v10  ;;  %v21540_v10 = vrot.slane %v16424_v56, 1  ;;  %v716_v56 = vsel %vm708_vm4, %v21548_v4, %v21547_v22  ;;  %v21554_v4 = vrot.slane %v15938_v40, 2 }
  0x95   :  { %14164 = vmatprep.mubr.msk.bf16.mxu0 %vm104_vm1, %v16629_v3 }
  0x96   :  { %v586_v38 = vsel %vm483_vm5, %v21540_v10, %v21539_v61  ;;  %v16682_v10 = vld [vmem:[#allocation2 + $0x2f0] sm:$0xff]  ;;  %v21555_v61 = vrot.slane %v15936_v39, 2 }
  0x97   :  { %21543 = vst [vmem:[#allocation75_spill] sm:$0xff] %v16682_v10  ;;  %v16691_v34 = vpack.c.bf16 %v588_v11, %v586_v38  ;;  %13959 = vmatmul.mubr.msk.bf16.gmra.mrb[36].mxu1 %vm104_vm1, %v16689_v43  ;;  %v21549_v38 = vrot.slane %v16440_v19, 1  ;;  %v21551_v11 = vrot.slane %v16496_v32, 1 }
  0x98   :  { %v718_v3 = vsel %vm708_vm4, %v21555_v61, %v717_v51  ;;  %v16742_v51 = vld [vmem:[#allocation2 + $0x2f8] sm:$0x3] }
  0x99   :  { %21546 = vst [vmem:[#allocation78_spill] sm:$0xff] %v16691_v34  ;;  %13962 = vmatprep.mubr.msk.bf16.mxu1 %vm104_vm1, %v16691_v34  ;;  %v591_v18 = vsel %vm483_vm5, %v21550_v14, %v21549_v38  ;;  %v21552_v36 = vmov %v21549_v38  ;;  %v21556_v38 = vrot.slane %v16444_v62, 1  ;;  %v21557_v14 = vrot.slane %v16442_v0, 1  ;;  %21561 = vst [vmem:[#allocation80_spill] sm:$0xff] %v16742_v51 }
  0x9a   :  { %v593_v22 = vsel %vm483_vm5, %v21552_v36, %v21551_v11  ;;  %v21558_v11 = vrot.slane %v16498_v13, 1  ;;  %v16738_v36 = vpack.c.bf16 %v718_v3, %v716_v56  ;;  %v21563_v0 = vrot.slane %v16474_v27, 1 }
  0x9b   :  { %v596_v19 = vsel %vm483_vm5, %v21557_v14, %v21556_v38  ;;  %v21559_v25 = vmov %v21556_v38  ;;  %v16740_v39 = vpack.c.bf16 %v593_v22, %v591_v18  ;;  %v21564_v62 = vrot.slane %v16453_v20, 1 }
  0x9c   :  { %14165 = vmatmul.mubr.msk.bf16.gmra.mrb[44].mxu0 %vm104_vm1, %v16687_v33  ;;  %v598_v40 = vsel %vm483_vm5, %v21559_v25, %v21558_v11  ;;  %v21565_v3 = vrot.slane %v16510_v6, 1  ;;  %v21566_v56 = vmov %v21563_v0  ;;  %v16762_v22 = vcombine.low %v16350_v1, %v16350_v1 }
  0x9d   :  { %14186 = vmatprep.mubr.msk.bf16.mxu0 %vm104_vm1, %v16055_v37  ;;  %v723_v37 = vsel %vm708_vm4, %v21554_v4, %v21553_v31  ;;  %21560 = vst [vmem:[#allocation79_spill] sm:$0xff] %v16740_v39  ;;  %v601_v61 = vsel %vm483_vm5, %v21564_v62, %v21563_v0  ;;  %v21567_v31 = vrot.slane %v15948_v44, 2  ;;  %v21568_v20 = vrot.slane %v15941_v42, 2  ;;  %v21583_v44 = vld [vmem:[#allocation32_spill] sm:$0xff] }
  0x9e   :  { %v16726_v59 = vpack.c.bf16 %v723_v37, %v15966_v49  ;;  %v16744_v49 = vpack.c.bf16 %v598_v40, %v596_v19  ;;  %v603_v18 = vsel %vm483_vm5, %v21566_v56, %v21565_v3  ;;  %v15420_v37 = vld [vmem:[#allocation2 + $0x58] sm:$0x3]  ;;  %v21569_v27 = vrot.slane %v15974_v53, 2  ;;  %v16792_v56 = vld [vmem:[#allocation2 + $0x300] sm:$0xff] }
  0x9f   :  { %13963 = vmatmul.mubr.msk.bf16.gmra.mrb[40].mxu1 %vm104_vm1, %v16740_v39  ;;  %v726_v4 = vsel %vm708_vm4, %v21568_v20, %v21567_v31  ;;  %v727_v38 = vrot.slane %v15420_v37, 2  ;;  %v21570_v14 = vrot.slane %v15972_v52, 2  ;;  %v21571_v19 = vld [vmem:[#allocation23_spill] sm:$0xff]  ;;  %v21573_v25 = vrot.slane %v16476_v15, 1 }
  0xa0   :  { %21562 = vst [vmem:[#allocation81_spill] sm:$0xff] %v16744_v49  ;;  %v732_v11 = vrot.slane %v21571_v19, 2  ;;  %13966 = vmatprep.mubr.msk.bf16.mxu1 %vm104_vm1, %v16744_v49  ;;  %v21574_v40 = vrot.slane %v16512_v24, 1  ;;  %v3459_v3 = vrot.slane %v16762_v22, 1  ;;  %21576 = vst [vmem:[#allocation23_spill] sm:$0xff] %v16792_v56  ;;  %v21577_v15 = vmov %v21569_v27  ;;  %v16802_v24 = vld [vmem:[#allocation2 + $0x308] sm:$0xff] }
  0xa1   :  { %v731_v1 = vsel %vm708_vm4, %v21570_v14, %v21569_v27  ;;  %v728_v20 = vsel %vm708_vm4, %v21567_v31, %v727_v38  ;;  %v16800_v27 = vpack.c.bf16 %v603_v18, %v601_v61  ;;  %21579 = vst [vmem:[#allocation83_spill] sm:$0xff] %v16802_v24  ;;  %v21584_v53 = vrot.slane %v16522_v55, 1  ;;  %v21586_v38 = vld [vmem:[#allocation14_spill] sm:$0xff] }
  0xa2   :  { %v733_v37 = vsel %vm708_vm4, %v21577_v15, %v732_v11  ;;  %v16807_v14 = vpack.c.bf16 %v728_v20, %v726_v4  ;;  %v21585_v61 = vrot.slane %v16520_v54, 1  ;;  %v634_v4 = vrot.slane %v16792_v56, 1  ;;  %v21588_v11 = vld [vmem:[#allocation13_spill] sm:$0xff]  ;;  %v21593_v15 = vld [vmem:[#allocation18_spill] sm:$0xff] }
  0xa3   :  { %21578 = vst [vmem:[#allocation82_spill] sm:$0xff] %v16800_v27  ;;  %v16809_v19 = vpack.c.bf16 %v733_v37, %v731_v1  ;;  %v21587_v1 = vrot.slane %v21586_v38, 2  ;;  %v21591_v54 = vrot.slane %v16528_v45, 1  ;;  %v635_v20 = vrot.slane %v16802_v24, 1  ;;  %v16915_v56 = vld [vmem:[#allocation2 + $0x320] sm:$0xff] }
  0xa4   :  { %14187 = vmatmul.mubr.msk.bf16.vlgmr.msra.gmra.mrb[0].mxu0 %vm104_vm1, %v16090_v7  ;;  %21580 = vst [vmem:[#allocation84_spill] sm:$0xff] %v16807_v14  ;;  %v611_v18 = vsel %vm483_vm5, %v21585_v61, %v21584_v53  ;;  %v21594_v37 = vrot.slane %v21593_v15, 2  ;;  %v21598_v52 = vrot.slane %v16584_v5, 1  ;;  %v21599_v55 = vrot.slane %v16633_v9, 1 }
  0xa5   :  { %14251 = vmatpush3.bf16.msra.mxu0 %v16435_v28  ;;  %14190 = vmatprep.mubr.msk.bf16.mxu0 %vm104_vm1, %v16131_v30  ;;  %v21572_v28 = vrot.slane %v16494_v29, 1  ;;  %v16805_v29 = vand.u32 %v3459_v3, %v15879_v23  ;;  %21581 = vst [vmem:[#allocation85_spill] sm:$0xff] %v16809_v19  ;;  %v21592_v3 = vmov %v21584_v53  ;;  %v21595_v53 = vld [vmem:[#allocation17_spill] sm:$0xff]  ;;  %v21625_v24 = vrot.slane %v16645_v47, 1 }
  0xa6   :  { %v613_v31 = vsel %vm483_vm5, %v21592_v3, %v21591_v54  ;;  %v21596_v61 = vrot.slane %v21595_v53, 2 }
  0xa7   :  { %v606_v42 = vsel %vm483_vm5, %v21573_v25, %v21572_v28  ;;  %v21575_v0 = vmov %v21572_v28  ;;  %14316 = vmatprep.subr.bf16.mxu0 %v16805_v29  ;;  %13967 = vmatmul.mubr.msk.bf16.gmra.mrb[44].mxu1 %vm104_vm1, %v16800_v27  ;;  %v21589_v25 = vrot.slane %v21588_v11, 2  ;;  %v15422_v11 = vld [vmem:[#allocation2 + $0xa0] sm:$0x3]  ;;  %v16864_v30 = vpack.c.bf16 %v613_v31, %v611_v18 }
  0xa8   :  { %v608_v62 = vsel %vm483_vm5, %v21575_v0, %v21574_v40  ;;  %v15421_v40 = vld [vmem:[#allocation2 + $0x88] sm:$0x3] }
  0xa9   :  { %v16811_v28 = vpack.c.bf16 %v608_v62, %v606_v42  ;;  %v736_v42 = vsel %vm708_vm4, %v21589_v25, %v21587_v1  ;;  %v737_v0 = vrot.slane %v15421_v40, 2  ;;  %v21590_v62 = vld [vmem:[#allocation38_spill] sm:$0xff]  ;;  %v741_v1 = vsel %vm708_vm4, %v21596_v61, %v21594_v37  ;;  %21605 = vst [vmem:[#allocation18_spill] sm:$0xff] %v16864_v30 }
  0xaa   :  { %v742_v25 = vrot.slane %v15422_v11, 2  ;;  %v21597_v40 = vrot.slane %v16586_v41, 1  ;;  %v21604_v61 = vrot.slane %v21593_v15, 2  ;;  %v21614_v15 = vld [vmem:[#allocation19_spill] sm:$0xff] }
  0xab   :  { %21582 = vst [vmem:[#allocation86_spill] sm:$0xff] %v16811_v28  ;;  %13970 = vmatprep.mubr.msk.bf16.mxu1 %vm104_vm1, %v16811_v28 }
  0xac   :  { %14191 = vmatmul.mubr.msk.bf16.gmra.mrb[4].mxu0 %vm104_vm1, %v21583_v44  ;;  %v616_v45 = vsel %vm483_vm5, %v21598_v52, %v21597_v40  ;;  %v21600_v54 = vmov %v21597_v40  ;;  %v16857_v44 = vld [vmem:[#allocation2 + $0x310] sm:$0x3]  ;;  %v743_v11 = vsel %vm708_vm4, %v21604_v61, %v742_v25  ;;  %v16866_v52 = vld [vmem:[#allocation2 + $0x318] sm:$0xff] }
  0xad   :  { %14194 = vmatprep.mubr.msk.bf16.mxu0 %vm104_vm1, %v21590_v62  ;;  %v618_v3 = vsel %vm483_vm5, %v21600_v54, %v21599_v55  ;;  %v21601_v62 = vrot.slane %v21586_v38, 2  ;;  %21602 = vst [vmem:[#allocation14_spill] sm:$0xff] %v16857_v44  ;;  %21606 = vst [vmem:[#allocation17_spill] sm:$0xff] %v16866_v52  ;;  %v16868_v9 = vpack.c.bf16 %v743_v11, %v741_v1  ;;  %v21609_v55 = vld [vmem:[#allocation40_spill] sm:$0xff]  ;;  %v21610_v38 = vrot.slane %v16637_v35, 1 }
  0xae   :  { %v16870_v40 = vpack.c.bf16 %v618_v3, %v616_v45  ;;  %v637_v18 = vrot.slane %v16857_v44, 1  ;;  %v21615_v1 = vrot.slane %v21614_v15, 2  ;;  %v15423_v45 = vld [vmem:[#allocation2 + $0xb8] sm:$0x3]  ;;  %v21616_v3 = vld [vmem:[#allocation46_spill] sm:$0xff]  ;;  %v21624_v44 = vrot.slane %v16641_v17, 1 }
  0xaf   :  { %v738_v53 = vsel %vm708_vm4, %v21601_v62, %v737_v0  ;;  %21607 = vst [vmem:[#allocation87_spill] sm:$0xff] %v16868_v9  ;;  %13971 = vmatmul.mubr.msk.bf16.gmra.mrb[48].mxu1 %vm104_vm1, %v16864_v30  ;;  %v21612_v62 = vld [vmem:[#allocation20_spill] sm:$0xff]  ;;  %v747_v54 = vrot.slane %v15423_v45, 2  ;;  %v21618_v61 = vmov %v21610_v38  ;;  %v15424_v45 = vld [vmem:[#allocation2 + $0xd0] sm:$0x3] }
  0xb0   :  { %v16859_v37 = vpack.c.bf16 %v738_v53, %v736_v42  ;;  %21608 = vst [vmem:[#allocation88_spill] sm:$0xff] %v16870_v40  ;;  %v21611_v42 = vrot.slane %v16635_v26, 1  ;;  %v21613_v31 = vrot.slane %v21612_v62, 2  ;;  %13974 = vmatprep.mubr.msk.bf16.mxu1 %vm104_vm1, %v16870_v40  ;;  %v21617_v53 = vrot.slane %v16639_v21, 1  ;;  %21628 = vst [vmem:[#allocation20_spill] sm:$0xff] %v16915_v56 }
  0xb1   :  { %v752_v7 = vrot.slane %v15424_v45, 2 }
  0xb2   :  { %21603 = vst [vmem:[#allocation13_spill] sm:$0xff] %v16859_v37  ;;  %v621_v0 = vsel %vm483_vm5, %v21611_v42, %v21610_v38  ;;  %v746_v25 = vsel %vm708_vm4, %v21615_v1, %v21613_v31  ;;  %v623_v11 = vsel %vm483_vm5, %v21618_v61, %v21617_v53  ;;  %v639_v38 = vrot.slane %v16866_v52, 1  ;;  %v21619_v42 = vld [vmem:[#allocation26_spill] sm:$0xff] }
  0xb3   :  { %v21620_v15 = vrot.slane %v21619_v42, 2  ;;  %v21627_v52 = vrot.slane %v21612_v62, 2  ;;  %v16922_v17 = vpack.c.bf16 %v623_v11, %v621_v0  ;;  %v21637_v62 = vrot.slane %v16647_v63, 1  ;;  %v21640_v11 = vld [vmem:[#allocation27_spill] sm:$0xff] }
  0xb4   :  { %14195 = vmatmul.mubr.msk.bf16.gmra.mrb[8].mxu0 %vm104_vm1, %v21609_v55  ;;  %v21621_v55 = vld [vmem:[#allocation25_spill] sm:$0xff]  ;;  %v640_v0 = vrot.slane %v16915_v56, 1  ;;  %v638_v63 = vsel %vm483_vm5, %v635_v20, %v637_v18 }
  0xb5   :  { %14198 = vmatprep.mubr.msk.bf16.mxu0 %vm104_vm1, %v21616_v3  ;;  %v21622_v31 = vrot.slane %v21621_v55, 2  ;;  %v21623_v3 = vrot.slane %v16643_v2, 1  ;;  %v748_v55 = vsel %vm708_vm4, %v21627_v52, %v747_v54  ;;  %21631 = vst [vmem:[#allocation26_spill] sm:$0xff] %v16922_v17  ;;  %v21636_v52 = vrot.slane %v16682_v10, 1 }
  0xb7   :  { %v751_v1 = vsel %vm708_vm4, %v21622_v31, %v21620_v15  ;;  %v626_v21 = vsel %vm483_vm5, %v21624_v44, %v21623_v3  ;;  %v21626_v53 = vmov %v21623_v3  ;;  %v16917_v15 = vpack.c.bf16 %v748_v55, %v746_v25  ;;  %v16924_v44 = vld [vmem:[#allocation2 + $0x328] sm:$0x3]  ;;  %13975 = vmatmul.mubr.msk.bf16.gmra.mrb[52].mxu1 %vm104_vm1, %v16922_v17  ;;  %v21638_v25 = vld [vmem:[#allocation28_spill] sm:$0xff] }
  0xb8   :  { %v628_v61 = vsel %vm483_vm5, %v21626_v53, %v21625_v24  ;;  %v21630_v31 = vrot.slane %v21619_v42, 2  ;;  %21632 = vst [vmem:[#allocation25_spill] sm:$0xff] %v16924_v44  ;;  %v21635_v24 = vld [vmem:[#allocation48_spill] sm:$0xff]  ;;  %v21639_v54 = vrot.slane %v21638_v25, 2  ;;  %v21641_v42 = vrot.slane %v21640_v11, 2 }
  0xb9   :  { %21629 = vst [vmem:[#allocation19_spill] sm:$0xff] %v16917_v15  ;;  %v16928_v3 = vpack.c.bf16 %v628_v61, %v626_v21  ;;  %v15425_v21 = vld [vmem:[#allocation2 + $0xe8] sm:$0x3]  ;;  %v21642_v61 = vld [vmem:[#allocation52_spill] sm:$0xff]  ;;  %v21643_v55 = vrot.slane %v16742_v51, 1  ;;  %v21649_v51 = vrot.slane %v21638_v25, 2 }
  0xba   :  { %v753_v45 = vsel %vm708_vm4, %v21630_v31, %v752_v7  ;;  %v631_v7 = vsel %vm483_vm5, %v21637_v62, %v21636_v52  ;;  %v757_v53 = vrot.slane %v15425_v21, 2  ;;  %v21644_v31 = vmov %v21636_v52  ;;  %v21645_v62 = vld [vmem:[#allocation34_spill] sm:$0xff]  ;;  %v15426_v21 = vld [vmem:[#allocation2 + $0x100] sm:$0x3] }
  0xbb   :  { %v16926_v47 = vpack.c.bf16 %v753_v45, %v751_v1  ;;  %21634 = vst [vmem:[#allocation90_spill] sm:$0xff] %v16928_v3  ;;  %v756_v1 = vsel %vm708_vm4, %v21641_v42, %v21639_v54  ;;  %13978 = vmatprep.mubr.msk.bf16.mxu1 %vm104_vm1, %v16928_v3  ;;  %v633_v45 = vsel %vm483_vm5, %v21644_v31, %v21643_v55  ;;  %v642_v52 = vrot.slane %v16924_v44, 1 }
  0xbc   :  { %14199 = vmatmul.mubr.msk.bf16.gmra.mrb[12].mxu0 %vm104_vm1, %v21635_v24  ;;  %v21646_v11 = vrot.slane %v21645_v62, 2  ;;  %v21647_v24 = vld [vmem:[#allocation33_spill] sm:$0xff]  ;;  %v762_v56 = vrot.slane %v15426_v21, 2  ;;  %v758_v10 = vsel %vm708_vm4, %v21649_v51, %v757_v53  ;;  %v16970_v44 = vpack.c.bf16 %v633_v45, %v631_v7  ;;  %v21655_v21 = vld [vmem:[#allocation54_spill] sm:$0xff]  ;;  %v15428_v7 = vld [vmem:[#allocation2 + $0x118] sm:$0x3] }
  0xbd   :  { %21633 = vst [vmem:[#allocation89_spill] sm:$0xff] %v16926_v47  ;;  %14202 = vmatprep.mubr.msk.bf16.mxu0 %vm104_vm1, %v21642_v61  ;;  %v21648_v54 = vrot.slane %v21647_v24, 2  ;;  %v636_v61 = vsel %vm483_vm5, %v634_v4, %v635_v20  ;;  %v16965_v47 = vpack.c.bf16 %v758_v10, %v756_v1  ;;  %v21656_v10 = vld [vmem:[#allocation36_spill] sm:$0xff]  ;;  %v21658_v20 = vld [vmem:[#allocation35_spill] sm:$0xff]  ;;  %v767_v25 = vrot.slane %v15428_v7, 2  ;;  %v21660_v1 = vld [vmem:[#allocation57_spill] sm:$0xff] }
  0xbe   :  { %v21651_v55 = vmov %v21646_v11  ;;  %21652 = vst [vmem:[#allocation27_spill] sm:$0xff] %v16970_v44  ;;  %v21657_v51 = vrot.slane %v21656_v10, 2  ;;  %v21659_v18 = vrot.slane %v21658_v20, 2  ;;  %v643_v53 = vsel %vm483_vm5, %v640_v0, %v642_v52  ;;  %v21663_v62 = vld [vmem:[#allocation41_spill] sm:$0xff] }
  0xbf   :  { %v761_v42 = vsel %vm708_vm4, %v21648_v54, %v21646_v11  ;;  %21650 = vst [vmem:[#allocation28_spill] sm:$0xff] %v16965_v47  ;;  %v763_v31 = vsel %vm708_vm4, %v21651_v55, %v762_v56  ;;  %v16974_v11 = vpack.c.bf16 %v638_v63, %v636_v61  ;;  %v15427_v54 = vld [vmem:[#allocation2 + $0x158] sm:$0xff]  ;;  %13979 = vmatmul.mubr.msk.bf16.gmra.mrb[56].mxu1 %vm104_vm1, %v16970_v44  ;;  %v21661_v61 = vld [vmem:[#allocation42_spill] sm:$0xff]  ;;  %v17009_v52 = vld [vmem:[#allocation2] sm:$0xff] }
  0xc0   :  { %v16972_v24 = vpack.c.bf16 %v763_v31, %v761_v42  ;;  %v780_v4 = vrot.slane %v15427_v54, 2  ;;  %v766_v56 = vsel %vm708_vm4, %v21659_v18, %v21657_v51  ;;  %v641_v63 = vsel %vm483_vm5, %v639_v38, %v640_v0  ;;  %v21665_v31 = vld [vmem:[#allocation50_spill] sm:$0xff] }
  0xc1   :  { %21654 = vst [vmem:[#allocation33_spill] sm:$0xff] %v16974_v11  ;;  %13982 = vmatprep.mubr.msk.bf16.mxu1 %vm104_vm1, %v16974_v11  ;;  %v21662_v45 = vrot.slane %v21661_v61, 2  ;;  %v21664_v42 = vrot.slane %v21663_v62, 2  ;;  %v772_v54 = vrot.slane %v21665_v31, 2  ;;  %v768_v20 = vsel %vm708_vm4, %v21657_v51, %v767_v25  ;;  %v17011_v62 = vld [vmem:[#allocation2 + $0x8] sm:$0xff] }
  0xc2   :  { %21653 = vst [vmem:[#allocation34_spill] sm:$0xff] %v16972_v24  ;;  %v17000_v18 = vpack.c.bf16 %v768_v20, %v766_v56 }
  0xc3   :  { %v771_v55 = vsel %vm708_vm4, %v21664_v42, %v21662_v45  ;;  %v21667_v7 = vmov %v21662_v45  ;;  %v1001_v45 = vpack.c.bf16 %v17011_v62, %v17009_v52 }
  0xc4   :  { %14203 = vmatmul.mubr.msk.bf16.gmra.mrb[16].mxu0 %vm104_vm1, %v21655_v21  ;;  %21666 = vst [vmem:[#allocation36_spill] sm:$0xff] %v17000_v18  ;;  %v773_v38 = vsel %vm708_vm4, %v21667_v7, %v772_v54 }
  0xc5   :  { %14206 = vmatprep.mubr.msk.bf16.mxu0 %vm104_vm1, %v21660_v1  ;;  %v17005_v1 = vpack.c.bf16 %v643_v53, %v641_v63  ;;  %v17007_v0 = vpack.c.bf16 %v773_v38, %v771_v55 }
  0xc7   :  { %21668 = vst [vmem:[#allocation35_spill] sm:$0xff] %v17005_v1  ;;  %21669 = vst [vmem:[#allocation42_spill] sm:$0xff] %v17007_v0 }
  0xc8   :  { %14 = vsyncpa [#allocation7], 0  ;;  %v21670_v10 = vld [vmem:[#allocation58_spill] sm:$0xff]  ;;  %13983 = vmatmul.mubr.msk.bf16.gmra.mrb[60].mxu1 %vm104_vm1, %v17005_v1  ;;  %v21671_v56 = vld [vmem:[#allocation44_spill] sm:$0xff]  ;;  %vm6170_vm6 = vcmask 517120   ;;  %vm7963_vm7 = vcmask 523264  }
  0xc9   :  { %v21672_v25 = vrot.slane %v21671_v56, 2  ;;  %v21673_v63 = vld [vmem:[#allocation43_spill] sm:$0xff]  ;;  %v15431_v42 = vld [vmem:[#allocation2 + $0x148] sm:$0x3]  ;;  %13988 = vmatprep.mubr.msk.bf16.mxu1 %vm104_vm1, %v1001_v45  ;;  %v15432_v20 = vld [vmem:[#allocation2 + $0x160] sm:$0x3] }
  0xca   :  { %v21674_v53 = vrot.slane %v21673_v63, 2  ;;  %v777_v55 = vrot.slane %v15431_v42, 2  ;;  %v21675_v31 = vld [vmem:[#allocation49_spill] sm:$0xff]  ;;  %v782_v7 = vrot.slane %v15432_v20, 2  ;;  %v15434_v21 = vld [vmem:[#allocation2 + $0x170] sm:$0xff]  ;;  %vm8592_vm8 = vcmask 1041409  }
  0xcb   :  { %v21676_v54 = vrot.slane %v21675_v31, 2  ;;  %v21677_v38 = vmov %v21672_v25  ;;  %v15435_v45 = vld [vmem:[#allocation2 + $0x180] sm:$0xff]  ;;  %v15436_v18 = vld [vmem:[#allocation2 + $0x188] sm:$0xff]  ;;  %vm8594_vm9 = vcmask 1042434   ;;  %vm8596_vm10 = vcmask 1043459   ;;  %s15534_s12 = smov 64  }
  0xcc   :  { %14207 = vmatmul.mubr.msk.bf16.gmra.mrb[20].mxu0 %vm104_vm1, %v21670_v10  ;;  %v776_v61 = vsel %vm708_vm4, %v21674_v53, %v21672_v25  ;;  %v778_v10 = vsel %vm708_vm4, %v21677_v38, %v777_v55  ;;  %v783_v25 = vsel %vm708_vm4, %v780_v4, %v782_v7  ;;  %v15433_v53 = vld [vmem:[#allocation2 + $0x168] sm:$0xff]  ;;  %v953_v31 = vrot.slane %v15435_v45, 2  ;;  %v15437_v38 = vld [vmem:[%s21287_s1 + $0x4] sm:$0xf] }
  0xcd   :  { %14210 = vmatprep.mubr.msk.bf16.mxu0 %vm104_vm1, %v16514_v50  ;;  %v781_v51 = vsel %vm708_vm4, %v21676_v54, %v780_v4  ;;  %v17033_v63 = vpack.c.bf16 %v778_v10, %v776_v61  ;;  %v784_v42 = vrot.slane %v15433_v53, 2  ;;  %v785_v50 = vrot.slane %v15434_v21, 2  ;;  %v21678_v56 = vld [vmem:[#allocation10_spill] sm:$0xff]  ;;  %v21679_v61 = vld [vmem:[#allocation59_spill] sm:$0xff] }
  0xce   :  { %v17036_v0 = vpack.c.bf16 %v783_v25, %v781_v51  ;;  %v954_v54 = vrot.slane %v15436_v18, 2  ;;  %v787_v4 = vrot.slane %v21679_v61, 2  ;;  %v21680_v21 = vld [vmem:[#allocation11_spill] sm:$0xff]  ;;  %v956_v18 = vrot.slane %v16530_v12, 2  ;;  %v15438_v25 = vld [vmem:[%s21287_s1] sm:$0xf] }
  0xcf   :  { %v786_v10 = vsel %vm708_vm4, %v784_v42, %v785_v50  ;;  %v12814_v53 = vcombine.low %v15438_v25, %v15437_v38  ;;  %v15439_v42 = vld [vmem:[#allocation2 + $0x1c8] sm:$0xff]  ;;  %v21683_v25 = vld [vmem:[#allocation60_spill] sm:$0xff]  ;;  %vm8598_vm11 = vcmask 1044484   ;;  %vm8600_vm12 = vcmask 1045509  }
  0xd0   :  { %13989 = vmatmul.mubr.msk.bf16.vlgmr.msra.gmra.mrb[0].mxu1 %vm104_vm1, %v21678_v56  ;;  %v955_v55 = vsel %vm708_vm4, %v953_v31, %v954_v54  ;;  %v788_v51 = vsel %vm708_vm4, %v785_v50, %v787_v4  ;;  %v957_v7 = vsel %vm708_vm4, %v954_v54, %v956_v18  ;;  %v794_v45 = vrot.slane %v15439_v42, 2  ;;  %v15440_v31 = vld [vmem:[#allocation2 + $0x1d0] sm:$0xff]  ;;  %v15441_v50 = vld [vmem:[#allocation2 + $0x1e0] sm:$0xff]  ;;  %v15442_v61 = vld [vmem:[#allocation2 + $0x1e8] sm:$0xff] }
  0xd1   :  { %13992 = vmatprep.mubr.msk.bf16.mxu1 %vm104_vm1, %v21680_v21  ;;  %v17051_v20 = vpack.c.bf16 %v788_v51, %v786_v10  ;;  %v795_v56 = vrot.slane %v15440_v31, 2  ;;  %v17060_v12 = vpack.c.bf16 %v957_v7, %v955_v55  ;;  %v799_v10 = vrot.slane %v15441_v50, 2  ;;  %v21682_v51 = vld [vmem:[#allocation12_spill] sm:$0xff]  ;;  %v21684_v55 = vld [vmem:[#allocation15_spill] sm:$0xff] }
  0xd2   :  { %v800_v4 = vrot.slane %v15442_v61, 2  ;;  %v1891_v54 = vrot.slane %v12814_v53, 3  ;;  %v797_v42 = vrot.slane %v21683_v25, 2  ;;  %v21685_v53 = vld [vmem:[#allocation61_spill] sm:$0xff]  ;;  %vm8602_vm13 = vcmask 1046534  }
  0xd3   :  { %21681 = vst [vmem:[#allocation41_spill] sm:$0xff] %v17060_v12  ;;  %v796_v38 = vsel %vm708_vm4, %v794_v45, %v795_v56  ;;  %v802_v31 = vrot.slane %v21685_v53, 2  ;;  %vm8604_vm14 = vcmask 1047559   ;;  %vm10786_vm15 = vcmask 521216  }
  0xd4   :  { %14211 = vmatmul.mubr.msk.bf16.gmra.mrb[24].mxu0 %vm104_vm1, %v16516_v8  ;;  %v1989_v18 = vand.u32 %v1891_v54, %v15879_v23  ;;  %v801_v7 = vsel %vm708_vm4, %v799_v10, %v800_v4  ;;  %v798_v50 = vsel %vm708_vm4, %v795_v56, %v797_v42  ;;  %v15443_v54 = vld [vmem:[#allocation2 + $0x1f8] sm:$0xff]  ;;  %v21686_v8 = vld [vmem:[#allocation9_spill] sm:$0xff]  ;;  %vm10936_vm3 = vcmask 1045508  }
  0xd5   :  { %14214 = vmatprep.mubr.msk.bf16.mxu0 %vm104_vm1, %v16576_v46  ;;  %v17076_v61 = vpack.c.bf16 %v798_v50, %v796_v38  ;;  %v803_v45 = vsel %vm708_vm4, %v800_v4, %v802_v31  ;;  %v804_v25 = vrot.slane %v15443_v54, 2  ;;  %v21687_v56 = vld [vmem:[#allocation16_spill] sm:$0xff]  ;;  %v15447_v50 = vld [vmem:[#allocation2 + $0x228] sm:$0xff]  ;;  %v15448_v54 = vld [vmem:[#allocation2 + $0x230] sm:$0xff] }
  0xd6   :  { %14052 = vmatprep.subr.bf16.mxu1 %v1989_v18 }
  0xd7   :  { %14053 = vmatpush3.bf16.msra.mxu1 %v1989_v18  ;;  %v21688_v18 = vld [vmem:[#allocation62_spill] sm:$0xff] }
  0xd8   :  { %13993 = vmatmul.mubr.msk.bf16.gmra.mrb[4].mxu1 %vm104_vm1, %v21682_v51  ;;  %14580 = vmatprep.subr.bf16.mxu1 %v21686_v8  ;;  %v15446_v51 = vld [vmem:[#allocation2 + $0x218] sm:$0xff]  ;;  %v807_v38 = vrot.slane %v21688_v18, 2 }
  0xd9   :  { %13996 = vmatprep.mubr.msk.bf16.mxu1 %vm104_vm1, %v21684_v55  ;;  %v15445_v55 = vld [vmem:[#allocation2 + $0x210] sm:$0xff]  ;;  %v810_v53 = vrot.slane %v15446_v51, 2  ;;  %v812_v51 = vrot.slane %v16484_v60, 2 }
  0xda   :  { %v809_v10 = vrot.slane %v15445_v55, 2  ;;  %v21690_v60 = vld [vmem:[#allocation22_spill] sm:$0xff] }
  0xdb   :  { %v813_v31 = vsel %vm708_vm4, %v810_v53, %v812_v51  ;;  %v15451_v51 = vld [vmem:[#allocation2 + $0x258] sm:$0xff] }
  0xdc   :  { %14215 = vmatmul.mubr.msk.bf16.gmra.mrb[28].mxu0 %vm104_vm1, %v16578_v58  ;;  %v15444_v58 = vld [vmem:[#allocation2 + $0x200] sm:$0xff]  ;;  %v811_v42 = vsel %vm708_vm4, %v809_v10, %v810_v53  ;;  %v817_v10 = vrot.slane %v16496_v32, 2 }
  0xdd   :  { %14218 = vmatprep.mubr.msk.bf16.mxu0 %vm104_vm1, %v16625_v16  ;;  %v805_v46 = vrot.slane %v15444_v58, 2  ;;  %v17079_v16 = vpack.c.bf16 %v803_v45, %v801_v7  ;;  %v21689_v58 = vld [vmem:[#allocation21_spill] sm:$0xff]  ;;  %v814_v45 = vrot.slane %v15447_v50, 2  ;;  %v17098_v18 = vpack.c.bf16 %v813_v31, %v811_v42 }
  0xde   :  { %v21691_v53 = vld [vmem:[#allocation29_spill] sm:$0xff] }
  0xdf   :  { %v806_v4 = vsel %vm708_vm4, %v804_v25, %v805_v46  ;;  %v808_v55 = vsel %vm708_vm4, %v805_v46, %v807_v38  ;;  %v815_v25 = vrot.slane %v15448_v54, 2  ;;  %v15452_v31 = vld [vmem:[#allocation2 + $0x260] sm:$0xff] }
  0xe0   :  { %13997 = vmatmul.mubr.msk.bf16.gmra.mrb[8].mxu1 %vm104_vm1, %v21687_v56  ;;  %v17095_v7 = vpack.c.bf16 %v808_v55, %v806_v4  ;;  %v15450_v56 = vld [vmem:[#allocation2 + $0x248] sm:$0xff]  ;;  %v824_v55 = vrot.slane %v15451_v51, 2  ;;  %v825_v32 = vrot.slane %v15452_v31, 2  ;;  %v17151_v31 = vld [vmem:[#allocation2 + $0x1b0] sm:$0xff] }
  0xe1   :  { %14000 = vmatprep.mubr.msk.bf16.mxu1 %vm104_vm1, %v21689_v58  ;;  %v820_v58 = vrot.slane %v15450_v56, 2  ;;  %v816_v46 = vsel %vm708_vm4, %v814_v45, %v815_v25  ;;  %v822_v56 = vrot.slane %v16498_v13, 2  ;;  %v818_v4 = vsel %vm708_vm4, %v815_v25, %v817_v10  ;;  %v15453_v45 = vld [vmem:[#allocation2 + $0x270] sm:$0xff]  ;;  %v21693_v25 = vld [vmem:[#allocation37_spill] sm:$0xff]  ;;  %v15455_v10 = vld [vmem:[#allocation2 + $0x280] sm:$0x3] }
  0xe2   :  { %v17113_v38 = vpack.c.bf16 %v818_v4, %v816_v46  ;;  %v829_v54 = vrot.slane %v15453_v45, 2  ;;  %v21692_v13 = vld [vmem:[#allocation31_spill] sm:$0xff]  ;;  %v21695_v51 = vld [vmem:[#allocation45_spill] sm:$0xff] }
  0xe3   :  { %v823_v42 = vsel %vm708_vm4, %v820_v58, %v822_v56 }
  0xe4   :  { %14219 = vmatmul.mubr.msk.bf16.gmra.mrb[32].mxu0 %vm104_vm1, %v16631_v48 }
  0xe5   :  { %14222 = vmatprep.mubr.msk.bf16.mxu0 %vm104_vm1, %v16689_v43  ;;  %v15449_v43 = vld [vmem:[#allocation2 + $0x240] sm:$0xff] }
  0xe6   :  { %v819_v48 = vrot.slane %v15449_v43, 2 }
  0xe8   :  { %14001 = vmatmul.mubr.msk.bf16.gmra.mrb[12].mxu1 %vm104_vm1, %v21690_v60  ;;  %v821_v43 = vsel %vm708_vm4, %v819_v48, %v820_v58  ;;  %v826_v48 = vsel %vm708_vm4, %v824_v55, %v825_v32  ;;  %v827_v58 = vrot.slane %v16510_v6, 2  ;;  %v21694_v6 = vld [vmem:[#allocation39_spill] sm:$0xff] }
  0xe9   :  { %14004 = vmatprep.mubr.msk.bf16.mxu1 %vm104_vm1, %v21691_v53  ;;  %v17116_v50 = vpack.c.bf16 %v823_v42, %v821_v43  ;;  %v21696_v55 = vld [vmem:[#allocation47_spill] sm:$0xff] }
  0xea   :  { %v828_v43 = vsel %vm708_vm4, %v825_v32, %v827_v58  ;;  %v17153_v32 = vld [vmem:[#allocation2 + $0x1b8] sm:$0xff] }
  0xeb   :  { %v17130_v56 = vpack.c.bf16 %v828_v43, %v826_v48  ;;  %v1017_v45 = vpack.c.bf16 %v17153_v32, %v17151_v31  ;;  %v17164_v48 = vld [vmem:[#allocation2 + $0x330] sm:$0xff]  ;;  %v17166_v58 = vld [vmem:[#allocation2 + $0x338] sm:$0xff] }
  0xec   :  { %14223 = vmatmul.mubr.msk.bf16.gmra.mrb[36].mxu0 %vm104_vm1, %v16691_v34 }
  0xed   :  { %14226 = vmatprep.mubr.msk.bf16.mxu0 %vm104_vm1, %v16740_v39  ;;  %v15454_v39 = vld [vmem:[#allocation2 + $0x278] sm:$0xff] }
  0xee   :  { %v830_v34 = vrot.slane %v15454_v39, 2  ;;  %v832_v39 = vrot.slane %v15455_v10, 2  ;;  %v944_v10 = vrot.slane %v17164_v48, 1 }
  0xf0   :  { %14005 = vmatmul.mubr.msk.bf16.gmra.mrb[16].mxu1 %vm104_vm1, %v21692_v13  ;;  %v831_v46 = vsel %vm708_vm4, %v829_v54, %v830_v34  ;;  %v833_v4 = vsel %vm708_vm4, %v830_v34, %v832_v39  ;;  %v21697_v34 = vld [vmem:[#allocation51_spill] sm:$0xff]  ;;  %v21698_v54 = vld [vmem:[#allocation53_spill] sm:$0xff]  ;;  %v945_v39 = vrot.slane %v17166_v58, 1 }
  0xf1   :  { %14008 = vmatprep.mubr.msk.bf16.mxu1 %vm104_vm1, %v21693_v25  ;;  %v17133_v42 = vpack.c.bf16 %v833_v4, %v831_v46  ;;  %v17168_v46 = vld [vmem:[#allocation2 + $0x340] sm:$0x3] }
  0xf2   :  { %v947_v43 = vrot.slane %v17168_v46, 1  ;;  %v21699_v4 = vld [vmem:[#allocation56_spill] sm:$0xff] }
  0xf4   :  { %14227 = vmatmul.mubr.msk.bf16.gmra.mrb[40].mxu0 %vm104_vm1, %v16744_v49  ;;  %v15460_v49 = vld [vmem:[#allocation2 + $0x10] sm:$0x3] }
  0xf5   :  { %14230 = vmatprep.mubr.msk.bf16.mxu0 %vm104_vm1, %v16800_v27  ;;  %v710_v27 = vrot.slane %v17011_v62, 2  ;;  %v21714_v62 = vld [vmem:[#allocation20_spill] sm:$0xff] }
  0xf8   :  { %14009 = vmatmul.mubr.msk.bf16.gmra.mrb[20].mxu1 %vm104_vm1, %v21694_v6 }
  0xf9   :  { %14012 = vmatprep.mubr.msk.bf16.mxu1 %vm104_vm1, %v21695_v51 }
  0xfc   :  { %14231 = vmatmul.mubr.msk.bf16.gmra.mrb[44].mxu0 %vm104_vm1, %v16811_v28  ;;  %v21711_v28 = vld [vmem:[#allocation83_spill] sm:$0xff] }
  0xfd   :  { %14234 = vmatprep.mubr.msk.bf16.mxu0 %vm104_vm1, %v16864_v30  ;;  %v21709_v30 = vld [vmem:[#allocation75_spill] sm:$0xff] }
 0x100   :  { %14013 = vmatmul.mubr.msk.bf16.gmra.mrb[24].mxu1 %vm104_vm1, %v21696_v55 }
 0x101   :  { %14016 = vmatprep.mubr.msk.bf16.mxu1 %vm104_vm1, %v21697_v34 }
 0x104   :  { %14235 = vmatmul.mubr.msk.bf16.gmra.mrb[48].mxu0 %vm104_vm1, %v16870_v40  ;;  %v21705_v40 = vld [vmem:[#allocation71_spill] sm:$0xff] }
 0x105   :  { %14238 = vmatprep.mubr.msk.bf16.mxu0 %vm104_vm1, %v16922_v17  ;;  %v21701_v17 = vld [vmem:[#allocation63_spill] sm:$0xff] }
 0x108   :  { %14017 = vmatmul.mubr.msk.bf16.gmra.mrb[28].mxu1 %vm104_vm1, %v21698_v54 }
 0x109   :  { %14020 = vmatprep.mubr.msk.bf16.mxu1 %vm104_vm1, %v1017_v45  ;;  %v946_v45 = vsel %vm483_vm5, %v944_v10, %v945_v39  ;;  %v21703_v10 = vld [vmem:[#allocation69_spill] sm:$0xff] }
 0x10c   :  { %14239 = vmatmul.mubr.msk.bf16.gmra.mrb[52].mxu0 %vm104_vm1, %v16928_v3 }
 0x10d   :  { %14242 = vmatprep.mubr.msk.bf16.mxu0 %vm104_vm1, %v16970_v44  ;;  %v948_v44 = vsel %vm483_vm5, %v945_v39, %v947_v43  ;;  %v3828_v39 = vshll.u32 %v16762_v22, 16  ;;  %v21704_v43 = vld [vmem:[#allocation70_spill] sm:$0xff] }
 0x10e   :  { %v17183_v3 = vpack.c.bf16 %v948_v44, %v946_v45  ;;  %v3825_v44 = vshrl.u32 %v16762_v22, 16  ;;  %v15458_v22 = vld [vmem:[#allocation2 + $0x288] sm:$0xff] }
 0x110   :  { %14021 = vmatmul.mubr.msk.bf16.gmra.mrb[32].mxu1 %vm104_vm1, %v21699_v4  ;;  %21700 = vst [vmem:[#allocation50_spill] sm:$0xff] %v17183_v3  ;;  %v21702_v4 = vld [vmem:[#allocation66_spill] sm:$0xff]  ;;  %v3827_v45 = vrot.slane %v3825_v44, 2  ;;  %v17232_v44 = vpack.c.bf16 %v16637_v35, %v16635_v26  ;;  %v21710_v35 = vld [vmem:[#allocation23_spill] sm:$0xff] }
 0x111   :  { %14024 = vmatprep.mubr.msk.bf16.mxu1 %vm104_vm1, %v16502_v57 }
 0x114   :  { %14243 = vmatmul.mubr.msk.bf16.gmra.mrb[56].mxu0 %vm104_vm1, %v16974_v11 }
 0x115   :  { %14246 = vmatprep.mubr.msk.bf16.mxu0 %vm104_vm1, %v17005_v1 }
 0x118   :  { %14025 = vmatmul.mubr.msk.bf16.gmra.mrb[36].mxu1 %vm104_vm1, %v21701_v17 }
 0x119   :  { %14028 = vmatprep.mubr.msk.bf16.mxu1 %vm104_vm1, %v21702_v4  ;;  %v21715_v4 = vld [vmem:[#allocation42_spill] sm:$0xff] }
 0x11c   :  { %14247 = vmatmul.mubr.msk.bf16.gmra.mrb[60].mxu0 %vm104_vm1, %v17183_v3  ;;  %v3830_v3 = vrot.slane %v3828_v39, 3  ;;  %v21706_v39 = vld [vmem:[#allocation73_spill] sm:$0xff] }
 0x11d   :  { %14252 = vmatprep.mubr.msk.bf16.mxu0 %vm104_vm1, %v16738_v36 }
 0x11e   :  { %v3831_v1 = vor.u32 %v3830_v3, %v3827_v45  ;;  %v21708_v45 = vld [vmem:[#allocation74_spill] sm:$0xff] }
 0x11f   :  { %v17248_v26 = vpack.c.bf16 %v21709_v30, %v21708_v45 }
 0x120   :  { %14029 = vmatmul.mubr.msk.bf16.gmra.mrb[40].mxu1 %vm104_vm1, %v21703_v10  ;;  %v17205_v11 = vand.u32 %v3831_v1, %v15879_v23  ;;  %v17220_v1 = vpack.c.bf16 %v16586_v41, %v16584_v5  ;;  %v17236_v5 = vpack.c.bf16 %v16643_v2, %v21706_v39  ;;  %v21707_v41 = vld [vmem:[#allocation89_spill] sm:$0xff]  ;;  %v17252_v2 = vpack.c.bf16 %v21711_v28, %v21710_v35 }
 0x121   :  { %14032 = vmatprep.mubr.msk.bf16.mxu1 %vm104_vm1, %v21704_v43  ;;  %v709_v39 = vrot.slane %v17009_v52, 2  ;;  %v21713_v43 = vld [vmem:[#allocation17_spill] sm:$0xff] }
 0x122   :  { %v17268_v10 = vpack.c.bf16 %v21714_v62, %v21713_v43 }
 0x123   :  { %v711_v45 = vsel %vm708_vm4, %v709_v39, %v710_v27 }
 0x124   :  { %14253 = vmatmul.mubr.msk.bf16.vlgmr.msra.gmra.mrb[0].mxu0 %vm104_vm1, %v16726_v59 }
 0x125   :  { %14317 = vmatpush3.bf16.msra.mxu0 %v16805_v29  ;;  %14256 = vmatprep.mubr.msk.bf16.mxu0 %vm104_vm1, %v16807_v14  ;;  %v15459_v29 = vld [vmem:[#allocation2 + $0x290] sm:$0xff] }
 0x126   :  { %14382 = vmatprep.subr.bf16.mxu0 %v17205_v11  ;;  %v17216_v3 = vpack.c.bf16 %v15459_v29, %v15458_v22 }
 0x128   :  { %14033 = vmatmul.mubr.msk.bf16.gmra.mrb[44].mxu1 %vm104_vm1, %v21705_v40  ;;  %v21712_v40 = vld [vmem:[#allocation36_spill] sm:$0xff] }
 0x129   :  { %14036 = vmatprep.mubr.msk.bf16.mxu1 %vm104_vm1, %v16687_v33  ;;  %v712_v33 = vrot.slane %v15460_v49, 2 }
 0x12b   :  { %v713_v52 = vsel %vm708_vm4, %v710_v27, %v712_v33  ;;  %v835_v33 = vrot.slane %v15459_v29, 2  ;;  %v15462_v29 = vld [vmem:[#allocation2 + $0x2a0] sm:$0xff] }
 0x12c   :  { %14257 = vmatmul.mubr.msk.bf16.gmra.mrb[4].mxu0 %vm104_vm1, %v16809_v19  ;;  %v1856_v49 = vpack.c.bf16 %v713_v52, %v711_v45  ;;  %v839_v52 = vrot.slane %v15462_v29, 2 }
 0x12d   :  { %14260 = vmatprep.mubr.msk.bf16.mxu0 %vm104_vm1, %v16859_v37 }
 0x130   :  { %14037 = vmatmul.mubr.msk.bf16.gmra.mrb[48].mxu1 %vm104_vm1, %v17216_v3 }
 0x131   :  { %14040 = vmatprep.mubr.msk.bf16.mxu1 %vm104_vm1, %v17220_v1 }
 0x134   :  { %14261 = vmatmul.mubr.msk.bf16.gmra.mrb[8].mxu0 %vm104_vm1, %v16868_v9 }
 0x135   :  { %14264 = vmatprep.mubr.msk.bf16.mxu0 %vm104_vm1, %v16917_v15 }
 0x138   :  { %14041 = vmatmul.mubr.msk.bf16.gmra.mrb[52].mxu1 %vm104_vm1, %v17232_v44 }
 0x139   :  { %14044 = vmatprep.mubr.msk.bf16.mxu1 %vm104_vm1, %v17236_v5 }
 0x13c   :  { %14265 = vmatmul.mubr.msk.bf16.gmra.mrb[12].mxu0 %vm104_vm1, %v21707_v41 }
 0x13d   :  { %14268 = vmatprep.mubr.msk.bf16.mxu0 %vm104_vm1, %v16965_v47 }
 0x140   :  { %14045 = vmatmul.mubr.msk.bf16.gmra.mrb[56].mxu1 %vm104_vm1, %v17248_v26 }
 0x141   :  { %14048 = vmatprep.mubr.msk.bf16.mxu1 %vm104_vm1, %v17252_v2 }
 0x144   :  { %14269 = vmatmul.mubr.msk.bf16.gmra.mrb[16].mxu0 %vm104_vm1, %v16972_v24 }
 0x145   :  { %14272 = vmatprep.mubr.msk.bf16.mxu0 %vm104_vm1, %v21712_v40 }
 0x148   :  { %14049 = vmatmul.mubr.msk.bf16.gmra.mrb[60].mxu1 %vm104_vm1, %v17268_v10 }
 0x149   :  { %14054 = vmatprep.mubr.msk.bf16.mxu1 %vm104_vm1, %v1856_v49  ;;  %v15463_v49 = vld [vmem:[#allocation2 + $0x2a8] sm:$0xff] }
 0x14c   :  { %14273 = vmatmul.mubr.msk.bf16.gmra.mrb[20].mxu0 %vm104_vm1, %v21715_v4 }
 0x14d   :  { %14276 = vmatprep.mubr.msk.bf16.mxu0 %vm104_vm1, %v17033_v63 }
 0x150   :  { %14055 = vmatmul.mubr.msk.bf16.vlgmr.msra.gmra.mrb[0].mxu1 %vm104_vm1, %v16738_v36  ;;  %v15461_v36 = vld [vmem:[#allocation2 + $0x298] sm:$0x3] }
 0x151   :  { %14058 = vmatprep.mubr.msk.bf16.mxu1 %vm104_vm1, %v16726_v59  ;;  %14581 = vmatpush3.bf16.msra.mxu1 %v21686_v8  ;;  %v834_v8 = vrot.slane %v15458_v22, 2  ;;  %v837_v27 = vrot.slane %v15461_v36, 2  ;;  %v840_v36 = vrot.slane %v15463_v49, 2  ;;  %v15470_v49 = vld [vmem:[#allocation2 + $0x2e0] sm:$0x3] }
 0x153   :  { %v836_v39 = vsel %vm708_vm4, %v834_v8, %v835_v33  ;;  %v838_v45 = vsel %vm708_vm4, %v835_v33, %v837_v27  ;;  %v841_v8 = vsel %vm708_vm4, %v839_v52, %v840_v36  ;;  %v15471_v52 = vld [vmem:[#allocation2 + $0x2e8] sm:$0xff] }
 0x154   :  { %14277 = vmatmul.mubr.msk.bf16.gmra.mrb[24].mxu0 %vm104_vm1, %v17036_v0  ;;  %v17320_v22 = vpack.c.bf16 %v838_v45, %v836_v39  ;;  %v15469_v39 = vld [vmem:[#allocation2 + $0x2d8] sm:$0xff] }
 0x155   :  { %14280 = vmatprep.mubr.msk.bf16.mxu0 %vm104_vm1, %v17051_v20  ;;  %v850_v45 = vrot.slane %v15469_v39, 2  ;;  %v859_v39 = vrot.slane %v21710_v35, 2 }
 0x158   :  { %14059 = vmatmul.mubr.msk.bf16.gmra.mrb[4].mxu1 %vm104_vm1, %v16807_v14 }
 0x159   :  { %14062 = vmatprep.mubr.msk.bf16.mxu1 %vm104_vm1, %v16809_v19  ;;  %v15467_v19 = vld [vmem:[#allocation2 + $0x2c8] sm:$0x3] }
 0x15a   :  { %v847_v14 = vrot.slane %v15467_v19, 2 }
 0x15c   :  { %14281 = vmatmul.mubr.msk.bf16.gmra.mrb[28].mxu0 %vm104_vm1, %v17060_v12  ;;  %v15464_v12 = vld [vmem:[#allocation2 + $0x2b0] sm:$0x3] }
 0x15d   :  { %14284 = vmatprep.mubr.msk.bf16.mxu0 %vm104_vm1, %v17076_v61 }
 0x160   :  { %14063 = vmatmul.mubr.msk.bf16.gmra.mrb[8].mxu1 %vm104_vm1, %v16859_v37 }
 0x161   :  { %14066 = vmatprep.mubr.msk.bf16.mxu1 %vm104_vm1, %v16868_v9  ;;  %v15466_v9 = vld [vmem:[#allocation2 + $0x2c0] sm:$0xff] }
 0x162   :  { %v845_v37 = vrot.slane %v15466_v9, 2 }
 0x164   :  { %14285 = vmatmul.mubr.msk.bf16.gmra.mrb[32].mxu0 %vm104_vm1, %v17079_v16  ;;  %v848_v19 = vsel %vm708_vm4, %v845_v37, %v847_v14  ;;  %v790_v14 = vrot.slane %v17153_v32, 2 }
 0x165   :  { %14288 = vmatprep.mubr.msk.bf16.mxu0 %vm104_vm1, %v17095_v7 }
 0x168   :  { %14067 = vmatmul.mubr.msk.bf16.gmra.mrb[12].mxu1 %vm104_vm1, %v16917_v15  ;;  %v15465_v15 = vld [vmem:[#allocation2 + $0x2b8] sm:$0xff] }
 0x169   :  { %14070 = vmatprep.mubr.msk.bf16.mxu1 %vm104_vm1, %v21707_v41  ;;  %v842_v41 = vrot.slane %v15464_v12, 2  ;;  %v15468_v12 = vld [vmem:[#allocation2 + $0x2d0] sm:$0xff] }
 0x16a   :  { %v849_v27 = vrot.slane %v15468_v12, 2 }
 0x16b   :  { %v843_v33 = vsel %vm708_vm4, %v840_v36, %v842_v41  ;;  %v855_v41 = vrot.slane %v21709_v30, 2  ;;  %v21716_v36 = vld [vmem:[#allocation80_spill] sm:$0xff] }
 0x16c   :  { %14289 = vmatmul.mubr.msk.bf16.gmra.mrb[36].mxu0 %vm104_vm1, %v17098_v18 }
 0x16d   :  { %14292 = vmatprep.mubr.msk.bf16.mxu0 %vm104_vm1, %v17113_v38 }
 0x170   :  { %14071 = vmatmul.mubr.msk.bf16.gmra.mrb[16].mxu1 %vm104_vm1, %v16965_v47  ;;  %v844_v47 = vrot.slane %v15465_v15, 2  ;;  %v17334_v15 = vpack.c.bf16 %v843_v33, %v841_v8  ;;  %v851_v33 = vsel %vm708_vm4, %v849_v27, %v850_v45  ;;  %v860_v27 = vrot.slane %v21711_v28, 2 }
 0x171   :  { %14074 = vmatprep.mubr.msk.bf16.mxu1 %vm104_vm1, %v16972_v24  ;;  %v854_v24 = vrot.slane %v15471_v52, 2 }
 0x172   :  { %v846_v9 = vsel %vm708_vm4, %v844_v47, %v845_v37  ;;  %v789_v47 = vrot.slane %v17151_v31, 2  ;;  %v15472_v37 = vld [vmem:[#allocation2 + $0x1c0] sm:$0x3]  ;;  %v861_v28 = vsel %vm708_vm4, %v859_v39, %v860_v27  ;;  %v21722_v39 = vld [vmem:[#allocation21_spill] sm:$0xff] }
 0x173   :  { %v17336_v29 = vpack.c.bf16 %v848_v19, %v846_v9  ;;  %v792_v8 = vrot.slane %v15472_v37, 2  ;;  %v856_v31 = vsel %vm708_vm4, %v854_v24, %v855_v41  ;;  %v865_v24 = vrot.slane %v21714_v62, 2 }
 0x174   :  { %14293 = vmatmul.mubr.msk.bf16.gmra.mrb[40].mxu0 %vm104_vm1, %v17116_v50  ;;  %v791_v9 = vsel %vm708_vm4, %v789_v47, %v790_v14  ;;  %v958_v37 = vrot.slane %v17164_v48, 2 }
 0x175   :  { %14296 = vmatprep.mubr.msk.bf16.mxu0 %vm104_vm1, %v17130_v56  ;;  %v793_v19 = vsel %vm708_vm4, %v790_v14, %v792_v8  ;;  %v959_v8 = vrot.slane %v17166_v58, 2 }
 0x176   :  { %v1872_v52 = vpack.c.bf16 %v793_v19, %v791_v9  ;;  %v21720_v9 = vld [vmem:[#allocation15_spill] sm:$0xff]  ;;  %v21721_v19 = vld [vmem:[#allocation16_spill] sm:$0xff] }
 0x178   :  { %14075 = vmatmul.mubr.msk.bf16.gmra.mrb[20].mxu1 %vm104_vm1, %v21712_v40  ;;  %v852_v40 = vrot.slane %v15470_v49, 2 }
 0x179   :  { %14078 = vmatprep.mubr.msk.bf16.mxu1 %vm104_vm1, %v21715_v4  ;;  %v857_v4 = vrot.slane %v21716_v36, 2  ;;  %v864_v36 = vrot.slane %v21713_v43, 2 }
 0x17a   :  { %v853_v30 = vsel %vm708_vm4, %v850_v45, %v852_v40  ;;  %v21717_v40 = vld [vmem:[#allocation14_spill] sm:$0xff] }
 0x17b   :  { %v858_v32 = vsel %vm708_vm4, %v855_v41, %v857_v4  ;;  %v17356_v12 = vpack.c.bf16 %v853_v30, %v851_v33  ;;  %v862_v45 = vrot.slane %v21717_v40, 2  ;;  %v21718_v4 = vld [vmem:[#allocation25_spill] sm:$0xff]  ;;  %v866_v43 = vsel %vm708_vm4, %v864_v36, %v865_v24 }
 0x17c   :  { %14297 = vmatmul.mubr.msk.bf16.gmra.mrb[44].mxu0 %vm104_vm1, %v17133_v42  ;;  %v17359_v49 = vpack.c.bf16 %v858_v32, %v856_v31  ;;  %v867_v41 = vrot.slane %v21718_v4, 2  ;;  %v961_v33 = vrot.slane %v17168_v46, 2  ;;  %v960_v30 = vsel %vm708_vm4, %v958_v37, %v959_v8  ;;  %v101_v46 = vld [vmem:[%s21287_s1 + $0xc] sm:$0x3] }
 0x17d   :  { %14300 = vmatprep.mubr.msk.bf16.mxu0 %vm104_vm1, %v17320_v22  ;;  %v863_v35 = vsel %vm708_vm4, %v860_v27, %v862_v45  ;;  %v21724_v27 = vld [vmem:[#allocation66_spill] sm:$0xff]  ;;  %v2345_v40 = vpack.c.bf16 %v17166_v58, %v17164_v48  ;;  %v21725_v45 = vld [vmem:[#allocation69_spill] sm:$0xff] }
 0x17e   :  { %v868_v62 = vsel %vm708_vm4, %v865_v24, %v867_v41  ;;  %v17377_v47 = vpack.c.bf16 %v863_v35, %v861_v28  ;;  %v962_v31 = vsel %vm708_vm4, %v959_v8, %v961_v33  ;;  %v17525_v48 = vld [vmem:[#allocation2 + $0x348] sm:$0xff]  ;;  %v17527_v58 = vld [vmem:[#allocation2 + $0x350] sm:$0xff]  ;;  %v21731_v41 = vld [vmem:[#allocation32_spill] sm:$0xff] }
 0x17f   :  { %v17379_v14 = vpack.c.bf16 %v868_v62, %v866_v43  ;;  %v17394_v32 = vpack.c.bf16 %v962_v31, %v960_v30  ;;  %v21730_v4 = vld [vmem:[#allocation30_spill] sm:$0xff]  ;;  %v21733_v8 = vld [vmem:[#allocation40_spill] sm:$0xff] }
 0x180   :  { %14079 = vmatmul.mubr.msk.bf16.gmra.mrb[24].mxu1 %vm104_vm1, %v17033_v63  ;;  %v21732_v37 = vld [vmem:[#allocation38_spill] sm:$0xff] }
 0x181   :  { %14082 = vmatprep.mubr.msk.bf16.mxu1 %vm104_vm1, %v17036_v0  ;;  %v21757_v24 = vld [vmem:[#allocation78_spill] sm:$0xff] }
 0x184   :  { %14301 = vmatmul.mubr.msk.bf16.gmra.mrb[48].mxu0 %vm104_vm1, %v17334_v15 }
 0x185   :  { %14304 = vmatprep.mubr.msk.bf16.mxu0 %vm104_vm1, %v17336_v29 }
 0x188   :  { %14083 = vmatmul.mubr.msk.bf16.gmra.mrb[28].mxu1 %vm104_vm1, %v17051_v20 }
 0x189   :  { %14086 = vmatprep.mubr.msk.bf16.mxu1 %vm104_vm1, %v1872_v52  ;;  %v21728_v52 = vld [vmem:[#allocation76_spill] sm:$0xff] }
 0x18c   :  { %14305 = vmatmul.mubr.msk.bf16.gmra.mrb[52].mxu0 %vm104_vm1, %v17356_v12 }
 0x18d   :  { %14308 = vmatprep.mubr.msk.bf16.mxu0 %vm104_vm1, %v17359_v49 }
 0x190   :  { %14087 = vmatmul.mubr.msk.bf16.gmra.mrb[32].mxu1 %vm104_vm1, %v17076_v61  ;;  %v21719_v61 = vld [vmem:[#allocation12_spill] sm:$0xff] }
 0x191   :  { %14090 = vmatprep.mubr.msk.bf16.mxu1 %vm104_vm1, %v17079_v16 }
 0x194   :  { %14309 = vmatmul.mubr.msk.bf16.gmra.mrb[56].mxu0 %vm104_vm1, %v17377_v47 }
 0x195   :  { %14312 = vmatprep.mubr.msk.bf16.mxu0 %vm104_vm1, %v17379_v14 }
 0x198   :  { %14091 = vmatmul.mubr.msk.bf16.gmra.mrb[36].mxu1 %vm104_vm1, %v17095_v7 }
 0x199   :  { %14094 = vmatprep.mubr.msk.bf16.mxu1 %vm104_vm1, %v17098_v18 }
 0x19c   :  { %14313 = vmatmul.mubr.msk.bf16.gmra.mrb[60].mxu0 %vm104_vm1, %v17394_v32 }
 0x19d   :  { %14318 = vmatprep.mubr.msk.bf16.mxu0 %vm104_vm1, %v21680_v21  ;;  %v17415_v21 = vand.u32 %v15879_v23, %v101_v46  ;;  %v17460_v23 = vld [vmem:[#allocation2 + $0x198] sm:$0xff]  ;;  %v21734_v46 = vld [vmem:[#allocation46_spill] sm:$0xff] }
 0x1a0   :  { %14095 = vmatmul.mubr.msk.bf16.gmra.mrb[40].mxu1 %vm104_vm1, %v17113_v38 }
 0x1a1   :  { %14098 = vmatprep.mubr.msk.bf16.mxu1 %vm104_vm1, %v17116_v50 }
 0x1a4   :  { %14319 = vmatmul.mubr.msk.bf16.vlgmr.msra.gmra.mrb[0].mxu0 %vm104_vm1, %v21719_v61 }
 0x1a5   :  { %14383 = vmatpush3.bf16.msra.mxu0 %v17205_v11  ;;  %14322 = vmatprep.mubr.msk.bf16.mxu0 %vm104_vm1, %v21720_v9  ;;  %v17462_v11 = vld [vmem:[#allocation2 + $0x1a0] sm:$0xff] }
 0x1a6   :  { %14448 = vmatprep.subr.bf16.mxu0 %v17415_v21  ;;  %v21735_v9 = vld [vmem:[#allocation48_spill] sm:$0xff] }
 0x1a8   :  { %14099 = vmatmul.mubr.msk.bf16.gmra.mrb[44].mxu1 %vm104_vm1, %v17130_v56 }
 0x1a9   :  { %14102 = vmatprep.mubr.msk.bf16.mxu1 %vm104_vm1, %v17133_v42 }
 0x1ac   :  { %14323 = vmatmul.mubr.msk.bf16.gmra.mrb[4].mxu0 %vm104_vm1, %v21721_v19 }
 0x1ad   :  { %14326 = vmatprep.mubr.msk.bf16.mxu0 %vm104_vm1, %v21722_v39 }
 0x1b0   :  { %14103 = vmatmul.mubr.msk.bf16.gmra.mrb[48].mxu1 %vm104_vm1, %v17320_v22 }
 0x1b1   :  { %14106 = vmatprep.mubr.msk.bf16.mxu1 %vm104_vm1, %v17334_v15 }
 0x1b4   :  { %14327 = vmatmul.mubr.msk.bf16.gmra.mrb[8].mxu0 %vm104_vm1, %v21690_v60  ;;  %v973_v60 = vrot.slane %v17460_v23, 1 }
 0x1b5   :  { %14330 = vmatprep.mubr.msk.bf16.mxu0 %vm104_vm1, %v21691_v53  ;;  %v974_v53 = vrot.slane %v17462_v11, 1 }
 0x1b8   :  { %14107 = vmatmul.mubr.msk.bf16.gmra.mrb[52].mxu1 %vm104_vm1, %v17336_v29 }
 0x1b9   :  { %14110 = vmatprep.mubr.msk.bf16.mxu1 %vm104_vm1, %v17356_v12 }
 0x1bc   :  { %14331 = vmatmul.mubr.msk.bf16.gmra.mrb[12].mxu0 %vm104_vm1, %v21692_v13  ;;  %v21723_v13 = vld [vmem:[#allocation55_spill] sm:$0xff] }
 0x1bd   :  { %14334 = vmatprep.mubr.msk.bf16.mxu0 %vm104_vm1, %v21693_v25  ;;  %v17474_v25 = vld [vmem:[#allocation2 + $0x1a8] sm:$0x3] }
 0x1c0   :  { %14111 = vmatmul.mubr.msk.bf16.gmra.mrb[56].mxu1 %vm104_vm1, %v17359_v49 }
 0x1c1   :  { %14114 = vmatprep.mubr.msk.bf16.mxu1 %vm104_vm1, %v17377_v47 }
 0x1c4   :  { %14335 = vmatmul.mubr.msk.bf16.gmra.mrb[16].mxu0 %vm104_vm1, %v21694_v6  ;;  %v17477_v6 = vsel %vm483_vm5, %v973_v60, %v974_v53 }
 0x1c5   :  { %14338 = vmatprep.mubr.msk.bf16.mxu0 %vm104_vm1, %v21695_v51  ;;  %v976_v51 = vrot.slane %v17474_v25, 1 }
 0x1c8   :  { %14115 = vmatmul.mubr.msk.bf16.gmra.mrb[60].mxu1 %vm104_vm1, %v17379_v14 }
 0x1c9   :  { %14168 = vmatprep.mubr.msk.bf16.mxu1 %vm104_vm1, %v17216_v3 }
 0x1cc   :  { %14339 = vmatmul.mubr.msk.bf16.gmra.mrb[20].mxu0 %vm104_vm1, %v21696_v55  ;;  %v3456_v55 = vpack.c.bf16 %v17462_v11, %v17460_v23 }
 0x1cd   :  { %14342 = vmatprep.mubr.msk.bf16.mxu0 %vm104_vm1, %v21697_v34  ;;  %v17483_v34 = vsel %vm483_vm5, %v974_v53, %v976_v51  ;;  %v21736_v53 = vld [vmem:[#allocation52_spill] sm:$0xff] }
 0x1d0   :  { %14169 = vmatmul.mubr.msk.bf16.vlgmr.msra.gmra.mrb[48].mxu1 %vm104_vm1, %v17220_v1 }
 0x1d1   :  { %14172 = vmatprep.mubr.msk.bf16.mxu1 %vm104_vm1, %v17232_v44 }
 0x1d4   :  { %14343 = vmatmul.mubr.msk.bf16.gmra.mrb[24].mxu0 %vm104_vm1, %v21698_v54  ;;  %v3822_v54 = vpack.c.bf16 %v17483_v34, %v17477_v6 }
 0x1d5   :  { %14346 = vmatprep.mubr.msk.bf16.mxu0 %vm104_vm1, %v21723_v13  ;;  %v21737_v13 = vld [vmem:[#allocation54_spill] sm:$0xff] }
 0x1d8   :  { %14173 = vmatmul.mubr.msk.bf16.gmra.mrb[52].mxu1 %vm104_vm1, %v17236_v5 }
 0x1d9   :  { %14176 = vmatprep.mubr.msk.bf16.mxu1 %vm104_vm1, %v17248_v26 }
 0x1dc   :  { %14347 = vmatmul.mubr.msk.bf16.gmra.mrb[28].mxu0 %vm104_vm1, %v3456_v55 }
 0x1dd   :  { %14350 = vmatprep.mubr.msk.bf16.mxu0 %vm104_vm1, %v16502_v57  ;;  %v21726_v57 = vld [vmem:[#allocation70_spill] sm:$0xff] }
 0x1e0   :  { %14177 = vmatmul.mubr.msk.bf16.gmra.mrb[56].mxu1 %vm104_vm1, %v17252_v2 }
 0x1e1   :  { %14180 = vmatprep.mubr.msk.bf16.mxu1 %vm104_vm1, %v17268_v10 }
 0x1e4   :  { %14351 = vmatmul.mubr.msk.bf16.gmra.mrb[32].mxu0 %vm104_vm1, %v21701_v17  ;;  %v21727_v17 = vld [vmem:[#allocation71_spill] sm:$0xff] }
 0x1e5   :  { %14354 = vmatprep.mubr.msk.bf16.mxu0 %vm104_vm1, %v21724_v27 }
 0x1e8   :  { %14181 = vmatmul.mubr.msk.bf16.gmra.mrb[60].mxu1 %vm104_vm1, %v2345_v40 }
 0x1ec   :  { %14355 = vmatmul.mubr.msk.bf16.gmra.mrb[36].mxu0 %vm104_vm1, %v21725_v45  ;;  %v21738_v45 = vld [vmem:[#allocation57_spill] sm:$0xff] }
 0x1ed   :  { %14358 = vmatprep.mubr.msk.bf16.mxu0 %vm104_vm1, %v21726_v57  ;;  %v21739_v57 = vld [vmem:[#allocation58_spill] sm:$0xff] }
 0x1f4   :  { %14359 = vmatmul.mubr.msk.bf16.gmra.mrb[40].mxu0 %vm104_vm1, %v21727_v17 }
 0x1f5   :  { %14362 = vmatprep.mubr.msk.bf16.mxu0 %vm104_vm1, %v21728_v52 }
 0x1fc   :  { %14363 = vmatmul.mubr.msk.bf16.gmra.mrb[44].mxu0 %vm104_vm1, %v17216_v3  ;;  %v978_v3 = vrot.slane %v17525_v48, 1 }
 0x1fd   :  { %14366 = vmatprep.mubr.msk.bf16.mxu0 %vm104_vm1, %v17220_v1  ;;  %v979_v1 = vrot.slane %v17527_v58, 1 }
 0x204   :  { %14367 = vmatmul.mubr.msk.bf16.gmra.mrb[48].mxu0 %vm104_vm1, %v17232_v44  ;;  %v17534_v44 = vld [vmem:[#allocation2 + $0x358] sm:$0x3] }
 0x205   :  { %14370 = vmatprep.mubr.msk.bf16.mxu0 %vm104_vm1, %v17236_v5  ;;  %v17537_v5 = vsel %vm483_vm5, %v978_v3, %v979_v1 }
 0x20c   :  { %14371 = vmatmul.mubr.msk.bf16.gmra.mrb[52].mxu0 %vm104_vm1, %v17248_v26  ;;  %v981_v26 = vrot.slane %v17534_v44, 1 }
 0x20d   :  { %14374 = vmatprep.mubr.msk.bf16.mxu0 %vm104_vm1, %v17252_v2  ;;  %v3457_v2 = vpack.c.bf16 %v17527_v58, %v17525_v48 }
 0x20e   :  { %v17543_v36 = vsel %vm483_vm5, %v979_v1, %v981_v26  ;;  %v21740_v26 = vld [vmem:[#allocation64_spill] sm:$0xff] }
 0x214   :  { %14375 = vmatmul.mubr.msk.bf16.gmra.mrb[56].mxu0 %vm104_vm1, %v17268_v10  ;;  %v21729_v10 = vld [vmem:[#allocation24_spill] sm:$0xff] }
 0x215   :  { %14378 = vmatprep.mubr.msk.bf16.mxu0 %vm104_vm1, %v2345_v40 }
 0x21c   :  { %14379 = vmatmul.mubr.msk.bf16.gmra.mrb[60].mxu0 %vm104_vm1, %v3457_v2  ;;  %v21741_v2 = vld [vmem:[#allocation65_spill] sm:$0xff] }
 0x21d   :  { %14384 = vmatprep.mubr.msk.bf16.mxu0 %vm104_vm1, %v21729_v10 }
 0x223   :  { %v17555_v28 = vpop.f32.mrb[0].mxu1 }
 0x224   :  { %14385 = vmatmul.mubr.msk.bf16.vlgmr.msra.gmra.mrb[0].mxu0 %vm104_vm1, %v21730_v4  ;;  %v17557_v35 = vpop.f32.mrb[1].mxu1 }
 0x225   :  { %14449 = vmatpush3.bf16.msra.mxu0 %v17415_v21  ;;  %14388 = vmatprep.mubr.msk.bf16.mxu0 %vm104_vm1, %v21731_v41  ;;  %v17559_v43 = vpop.f32.mrb[2].mxu1  ;;  %v987_v41 = vrot.slane %v17460_v23, 2 }
 0x226   :  { %v17561_v62 = vpop.f32.mrb[3].mxu1 }
 0x22b   :  { %v17567_v33 = vpop.f32.mrb[4].mxu1 }
 0x22c   :  { %14389 = vmatmul.mubr.msk.bf16.gmra.mrb[4].mxu0 %vm104_vm1, %v21732_v37  ;;  %v17569_v30 = vpop.f32.mrb[5].mxu1  ;;  %v988_v37 = vrot.slane %v17462_v11, 2 }
 0x22d   :  { %14392 = vmatprep.mubr.msk.bf16.mxu0 %vm104_vm1, %v21733_v8  ;;  %v17571_v31 = vpop.f32.mrb[6].mxu1 }
 0x22e   :  { %v17573_v61 = vpop.f32.mrb[7].mxu1 }
 0x233   :  { %v17579_v21 = vpop.f32.mrb[8].mxu1 }
 0x234   :  { %14393 = vmatmul.mubr.msk.bf16.gmra.mrb[8].mxu0 %vm104_vm1, %v21734_v46  ;;  %v17581_v19 = vpop.f32.mrb[9].mxu1 }
 0x235   :  { %14396 = vmatprep.mubr.msk.bf16.mxu0 %vm104_vm1, %v21735_v9  ;;  %v17583_v39 = vpop.f32.mrb[10].mxu1  ;;  %v21745_v9 = vld [vmem:[#allocation67_spill] sm:$0xff] }
 0x236   :  { %v17585_v60 = vpop.f32.mrb[11].mxu1 }
 0x23b   :  { %v17591_v51 = vpop.f32.mrb[12].mxu1 }
 0x23c   :  { %14397 = vmatmul.mubr.msk.bf16.gmra.mrb[12].mxu0 %vm104_vm1, %v21736_v53  ;;  %v17593_v55 = vpop.f32.mrb[13].mxu1  ;;  %v21746_v53 = vld [vmem:[#allocation68_spill] sm:$0xff] }
 0x23d   :  { %14400 = vmatprep.mubr.msk.bf16.mxu0 %vm104_vm1, %v21737_v13  ;;  %v17595_v27 = vpop.f32.mrb[14].mxu1  ;;  %v17630_v13 = vsel %vm708_vm4, %v987_v41, %v988_v37 }
 0x23e   :  { %v17597_v40 = vpop.f32.mrb[15].mxu1 }
 0x243   :  { %v17603_v17 = vpop.f32.mrb[16].mxu1 }
 0x244   :  { %14401 = vmatmul.mubr.msk.bf16.gmra.mrb[16].mxu0 %vm104_vm1, %v21738_v45  ;;  %v17605_v52 = vpop.f32.mrb[17].mxu1  ;;  %v990_v45 = vrot.slane %v17474_v25, 2  ;;  %v21751_v25 = vld [vmem:[#allocation72_spill] sm:$0xff] }
 0x245   :  { %14404 = vmatprep.mubr.msk.bf16.mxu0 %vm104_vm1, %v21739_v57  ;;  %v17607_v3 = vpop.f32.mrb[18].mxu1 }
 0x246   :  { %v17609_v1 = vpop.f32.mrb[19].mxu1  ;;  %v17636_v23 = vsel %vm708_vm4, %v988_v37, %v990_v45 }
 0x24b   :  { %v17615_v10 = vpop.f32.mrb[20].mxu1 }
 0x24c   :  { %14405 = vmatmul.mubr.msk.bf16.gmra.mrb[20].mxu0 %vm104_vm1, %v21740_v26  ;;  %v17617_v4 = vpop.f32.mrb[21].mxu1  ;;  %v21756_v26 = vld [vmem:[#allocation77_spill] sm:$0xff] }
 0x24d   :  { %14408 = vmatprep.mubr.msk.bf16.mxu0 %vm104_vm1, %v21741_v2  ;;  %21742 = vst [vmem:[#allocation44_spill] sm:$0xff] %v17617_v4  ;;  %v17621_v8 = vpop.f32.mrb[22].mxu1 }
 0x24e   :  { %21743 = vst [vmem:[#allocation43_spill] sm:$0xff] %v17621_v8  ;;  %v17623_v46 = vpop.f32.mrb[23].mxu1 }
 0x24f   :  { %21744 = vst [vmem:[#allocation49_spill] sm:$0xff] %v17623_v46 }
 0x253   :  { %v17633_v57 = vpop.f32.mrb[24].mxu1 }
 0x254   :  { %14409 = vmatmul.mubr.msk.bf16.gmra.mrb[24].mxu0 %vm104_vm1, %v21745_v9  ;;  %21747 = vst [vmem:[#allocation10_spill] sm:$0xff] %v17633_v57  ;;  %v17638_v11 = vpop.f32.mrb[25].mxu1 }
 0x255   :  { %14412 = vmatprep.mubr.msk.bf16.mxu0 %vm104_vm1, %v21746_v53  ;;  %21748 = vst [vmem:[#allocation59_spill] sm:$0xff] %v17638_v11  ;;  %v17642_v2 = vpop.f32.mrb[26].mxu1 }
 0x256   :  { %21749 = vst [vmem:[#allocation11_spill] sm:$0xff] %v17642_v2  ;;  %v17644_v9 = vpop.f32.mrb[27].mxu1 }
 0x257   :  { %21750 = vst [vmem:[#allocation60_spill] sm:$0xff] %v17644_v9 }
 0x25b   :  { %v17652_v41 = vpop.f32.mrb[28].mxu1 }
 0x25c   :  { %14413 = vmatmul.mubr.msk.bf16.gmra.mrb[28].mxu0 %vm104_vm1, %v3822_v54  ;;  %21752 = vst [vmem:[#allocation61_spill] sm:$0xff] %v17652_v41  ;;  %v17654_v37 = vpop.f32.mrb[29].mxu1  ;;  %v21762_v41 = vld [vmem:[#allocation79_spill] sm:$0xff] }
 0x25d   :  { %14416 = vmatprep.mubr.msk.bf16.mxu0 %vm104_vm1, %v21751_v25  ;;  %21753 = vst [vmem:[#allocation9_spill] sm:$0xff] %v17654_v37  ;;  %v17656_v53 = vpop.f32.mrb[30].mxu1 }
 0x25e   :  { %21754 = vst [vmem:[#allocation62_spill] sm:$0xff] %v17656_v53  ;;  %v17658_v45 = vpop.f32.mrb[31].mxu1  ;;  %v21763_v53 = vld [vmem:[#allocation81_spill] sm:$0xff] }
 0x25f   :  { %21755 = vst [vmem:[#allocation22_spill] sm:$0xff] %v17658_v45 }
 0x263   :  { %v17664_v6 = vpop.f32.mrb[32].mxu1 }
 0x264   :  { %14417 = vmatmul.mubr.msk.bf16.gmra.mrb[32].mxu0 %vm104_vm1, %v21756_v26  ;;  %21758 = vst [vmem:[#allocation29_spill] sm:$0xff] %v17664_v6  ;;  %v17666_v34 = vpop.f32.mrb[33].mxu1  ;;  %v21768_v6 = vld [vmem:[#allocation82_spill] sm:$0xff] }
 0x265   :  { %14420 = vmatprep.mubr.msk.bf16.mxu0 %vm104_vm1, %v21757_v24  ;;  %21759 = vst [vmem:[#allocation31_spill] sm:$0xff] %v17666_v34  ;;  %v17668_v54 = vpop.f32.mrb[34].mxu1 }
 0x266   :  { %21760 = vst [vmem:[#allocation37_spill] sm:$0xff] %v17668_v54  ;;  %v17670_v25 = vpop.f32.mrb[35].mxu1  ;;  %v21769_v54 = vld [vmem:[#allocation86_spill] sm:$0xff] }
 0x267   :  { %21761 = vst [vmem:[#allocation39_spill] sm:$0xff] %v17670_v25 }
 0x26b   :  { %v17676_v45 = vpop.f32.mrb[36].mxu1 }
 0x26c   :  { %14421 = vmatmul.mubr.msk.bf16.gmra.mrb[36].mxu0 %vm104_vm1, %v21762_v41  ;;  %21764 = vst [vmem:[#allocation45_spill] sm:$0xff] %v17676_v45  ;;  %v17678_v26 = vpop.f32.mrb[37].mxu1  ;;  %v21774_v45 = vld [vmem:[#allocation18_spill] sm:$0xff] }
 0x26d   :  { %14424 = vmatprep.mubr.msk.bf16.mxu0 %vm104_vm1, %v21763_v53  ;;  %21765 = vst [vmem:[#allocation47_spill] sm:$0xff] %v17678_v26  ;;  %v17680_v37 = vpop.f32.mrb[38].mxu1 }
 0x26e   :  { %21766 = vst [vmem:[#allocation51_spill] sm:$0xff] %v17680_v37  ;;  %v17682_v24 = vpop.f32.mrb[39].mxu1  ;;  %v21775_v37 = vld [vmem:[#allocation88_spill] sm:$0xff] }
 0x26f   :  { %21767 = vst [vmem:[#allocation53_spill] sm:$0xff] %v17682_v24 }
 0x273   :  { %v17688_v25 = vpop.f32.mrb[40].mxu1 }
 0x274   :  { %14425 = vmatmul.mubr.msk.bf16.gmra.mrb[40].mxu0 %vm104_vm1, %v21768_v6  ;;  %21770 = vst [vmem:[#allocation56_spill] sm:$0xff] %v17688_v25  ;;  %v17690_v41 = vpop.f32.mrb[41].mxu1  ;;  %v21780_v25 = vld [vmem:[#allocation26_spill] sm:$0xff] }
 0x275   :  { %14428 = vmatprep.mubr.msk.bf16.mxu0 %vm104_vm1, %v21769_v54  ;;  %21771 = vst [vmem:[#allocation63_spill] sm:$0xff] %v17690_v41  ;;  %v17692_v34 = vpop.f32.mrb[42].mxu1 }
 0x276   :  { %21772 = vst [vmem:[#allocation73_spill] sm:$0xff] %v17692_v34  ;;  %v17694_v53 = vpop.f32.mrb[43].mxu1  ;;  %v21781_v34 = vld [vmem:[#allocation90_spill] sm:$0xff] }
 0x277   :  { %21773 = vst [vmem:[#allocation74_spill] sm:$0xff] %v17694_v53  ;;  %v21782_v53 = vld [vmem:[#allocation27_spill] sm:$0xff] }
 0x27b   :  { %v17700_v24 = vpop.f32.mrb[44].mxu1 }
 0x27c   :  { %14429 = vmatmul.mubr.msk.bf16.gmra.mrb[44].mxu0 %vm104_vm1, %v21774_v45  ;;  %21776 = vst [vmem:[#allocation75_spill] sm:$0xff] %v17700_v24  ;;  %v17702_v6 = vpop.f32.mrb[45].mxu1  ;;  %v21783_v45 = vld [vmem:[#allocation33_spill] sm:$0xff]  ;;  %v21784_v24 = vld [vmem:[#allocation35_spill] sm:$0xff] }
 0x27d   :  { %14432 = vmatprep.mubr.msk.bf16.mxu0 %vm104_vm1, %v21775_v37  ;;  %21777 = vst [vmem:[#allocation23_spill] sm:$0xff] %v17702_v6  ;;  %v17704_v26 = vpop.f32.mrb[46].mxu1  ;;  %v992_v37 = vrot.slane %v17525_v48, 2  ;;  %v993_v6 = vrot.slane %v17527_v58, 2  ;;  %v21786_v48 = vpack.c.bf16 %v17543_v36, %v17537_v5  ;;  %v21787_v58 = vld [vmem:[#allocation84_spill] sm:$0xff]  ;;  %v21793_v5 = vld [vmem:[#allocation13_spill] sm:$0xff] }
 0x27e   :  { %21778 = vst [vmem:[#allocation83_spill] sm:$0xff] %v17704_v26  ;;  %v17706_v54 = vpop.f32.mrb[47].mxu1  ;;  %v21794_v36 = vld [vmem:[#allocation87_spill] sm:$0xff] }
 0x27f   :  { %21779 = vst [vmem:[#allocation17_spill] sm:$0xff] %v17706_v54  ;;  %v21785_v54 = vld [vmem:[#allocation50_spill] sm:$0xff] }
 0x284   :  { %14433 = vmatmul.mubr.msk.bf16.gmra.mrb[48].mxu0 %vm104_vm1, %v21780_v25  ;;  %v17723_v25 = vsel %vm708_vm4, %v992_v37, %v993_v6 }
 0x285   :  { %14436 = vmatprep.mubr.msk.bf16.mxu0 %vm104_vm1, %v21781_v34  ;;  %v995_v34 = vrot.slane %v17534_v44, 2 }
 0x28c   :  { %14437 = vmatmul.mubr.msk.bf16.gmra.mrb[52].mxu0 %vm104_vm1, %v21782_v53  ;;  %v17727_v53 = vsel %vm708_vm4, %v993_v6, %v995_v34 }
 0x28d   :  { %14440 = vmatprep.mubr.msk.bf16.mxu0 %vm104_vm1, %v21783_v45  ;;  %v21800_v45 = vld [vmem:[#allocation89_spill] sm:$0xff] }
 0x294   :  { %14441 = vmatmul.mubr.msk.bf16.gmra.mrb[56].mxu0 %vm104_vm1, %v21784_v24  ;;  %v21788_v24 = vld [vmem:[#allocation85_spill] sm:$0xff] }
 0x295   :  { %14444 = vmatprep.mubr.msk.bf16.mxu0 %vm104_vm1, %v21785_v54 }
 0x29c   :  { %14445 = vmatmul.mubr.msk.bf16.gmra.mrb[60].mxu0 %vm104_vm1, %v21786_v48 }
 0x29d   :  { %14450 = vmatprep.mubr.msk.bf16.mxu0 %vm104_vm1, %v16726_v59 }
 0x2a3   :  { %v17741_v44 = vpop.f32.mrb[48].mxu1 }
 0x2a4   :  { %14451 = vmatmul.mubr.msk.bf16.vlgmr.msra.gmra.mrb[0].mxu0 %vm104_vm1, %v21787_v58  ;;  %21789 = vst [vmem:[#allocation20_spill] sm:$0xff] %v17741_v44  ;;  %v17743_v6 = vpop.f32.mrb[49].mxu1 }
 0x2a5   :  { %14454 = vmatprep.mubr.msk.bf16.mxu0 %vm104_vm1, %v21788_v24  ;;  %21790 = vst [vmem:[#allocation80_spill] sm:$0xff] %v17743_v6  ;;  %v17745_v54 = vpop.f32.mrb[50].mxu1  ;;  %v21799_v24 = vld [vmem:[#allocation19_spill] sm:$0xff] }
 0x2a6   :  { %21791 = vst [vmem:[#allocation14_spill] sm:$0xff] %v17745_v54  ;;  %v17747_v37 = vpop.f32.mrb[51].mxu1 }
 0x2a7   :  { %21792 = vst [vmem:[#allocation25_spill] sm:$0xff] %v17747_v37 }
 0x2ab   :  { %v17753_v59 = vpop.f32.mrb[52].mxu1 }
 0x2ac   :  { %14455 = vmatmul.mubr.msk.bf16.gmra.mrb[4].mxu0 %vm104_vm1, %v21793_v5  ;;  %21795 = vst [vmem:[#allocation12_spill] sm:$0xff] %v17753_v59  ;;  %v17755_v34 = vpop.f32.mrb[53].mxu1  ;;  %v21805_v59 = vld [vmem:[#allocation28_spill] sm:$0xff] }
 0x2ad   :  { %14458 = vmatprep.mubr.msk.bf16.mxu0 %vm104_vm1, %v21794_v36  ;;  %21796 = vst [vmem:[#allocation15_spill] sm:$0xff] %v17755_v34  ;;  %v17757_v48 = vpop.f32.mrb[54].mxu1 }
 0x2ae   :  { %21797 = vst [vmem:[#allocation16_spill] sm:$0xff] %v17757_v48  ;;  %v17759_v58 = vpop.f32.mrb[55].mxu1  ;;  %v21806_v48 = vld [vmem:[#allocation34_spill] sm:$0xff] }
 0x2af   :  { %21798 = vst [vmem:[#allocation21_spill] sm:$0xff] %v17759_v58 }
 0x2b3   :  { %v17765_v37 = vpop.f32.mrb[56].mxu1 }
 0x2b4   :  { %14459 = vmatmul.mubr.msk.bf16.gmra.mrb[8].mxu0 %vm104_vm1, %v21799_v24  ;;  %21801 = vst [vmem:[#allocation55_spill] sm:$0xff] %v17765_v37  ;;  %v17767_v5 = vpop.f32.mrb[57].mxu1  ;;  %v21811_v37 = vld [vmem:[#allocation36_spill] sm:$0xff] }
 0x2b5   :  { %14462 = vmatprep.mubr.msk.bf16.mxu0 %vm104_vm1, %v21800_v45  ;;  %21802 = vst [vmem:[#allocation66_spill] sm:$0xff] %v17767_v5  ;;  %v17769_v54 = vpop.f32.mrb[58].mxu1 }
 0x2b6   :  { %21803 = vst [vmem:[#allocation69_spill] sm:$0xff] %v17769_v54  ;;  %v17771_v36 = vpop.f32.mrb[59].mxu1  ;;  %v21812_v54 = vld [vmem:[#allocation42_spill] sm:$0xff] }
 0x2b7   :  { %21804 = vst [vmem:[#allocation70_spill] sm:$0xff] %v17771_v36 }
 0x2bb   :  { %v17777_v58 = vpop.f32.mrb[60].mxu1 }
 0x2bc   :  { %14463 = vmatmul.mubr.msk.bf16.gmra.mrb[12].mxu0 %vm104_vm1, %v21805_v59  ;;  %21807 = vst [vmem:[#allocation71_spill] sm:$0xff] %v17777_v58  ;;  %v17779_v24 = vpop.f32.mrb[61].mxu1  ;;  %v21813_v59 = vld [vmem:[#allocation41_spill] sm:$0xff] }
 0x2bd   :  { %14466 = vmatprep.mubr.msk.bf16.mxu0 %vm104_vm1, %v21806_v48  ;;  %21808 = vst [vmem:[#allocation76_spill] sm:$0xff] %v17779_v24  ;;  %v17781_v34 = vpop.f32.mrb[62].mxu1  ;;  %v21814_v48 = vpack.c.bf16 %v17636_v23, %v17630_v13 }
 0x2be   :  { %21809 = vst [vmem:[#allocation24_spill] sm:$0xff] %v17781_v34  ;;  %v17783_v45 = vpop.f32.mrb[63].mxu1 }
 0x2bf   :  { %21810 = vst [vmem:[#allocation30_spill] sm:$0xff] %v17783_v45 }
 0x2c4   :  { %14467 = vmatmul.mubr.msk.bf16.gmra.mrb[16].mxu0 %vm104_vm1, %v21811_v37 }
 0x2c5   :  { %14470 = vmatprep.mubr.msk.bf16.mxu0 %vm104_vm1, %v21812_v54 }
 0x2cc   :  { %14471 = vmatmul.mubr.msk.bf16.gmra.mrb[20].mxu0 %vm104_vm1, %v17033_v63  ;;  %v21816_v63 = vpack.c.bf16 %v17727_v53, %v17723_v25 }
 0x2cd   :  { %14474 = vmatprep.mubr.msk.bf16.mxu0 %vm104_vm1, %v17036_v0  ;;  %v21815_v0 = vmov 0.0  }
 0x2ce   :  { %8425 = vst.msk [vmem:[#allocation3 + $0x8] sm:$0x3] %vm6170_vm6, %v21815_v0  ;;  %8427 = vst.msk [vmem:[#allocation3 + $0x18] sm:$0x3] %vm6170_vm6, %v21815_v0 }
 0x2cf   :  { %8429 = vst.msk [vmem:[#allocation3 + $0x28] sm:$0x3] %vm6170_vm6, %v21815_v0  ;;  %8431 = vst.msk [vmem:[#allocation3 + $0x38] sm:$0x3] %vm6170_vm6, %v21815_v0 }
 0x2d0   :  { %8433 = vst.msk [vmem:[#allocation3 + $0x48] sm:$0x3] %vm6170_vm6, %v21815_v0  ;;  %8435 = vst.msk [vmem:[#allocation3 + $0x58] sm:$0x3] %vm6170_vm6, %v21815_v0 }
 0x2d1   :  { %8437 = vst.msk [vmem:[#allocation3 + $0x68] sm:$0x3] %vm6170_vm6, %v21815_v0  ;;  %8439 = vst.msk [vmem:[#allocation3 + $0x78] sm:$0x3] %vm6170_vm6, %v21815_v0 }
 0x2d2   :  { %8441 = vst.msk [vmem:[#allocation3 + $0x88] sm:$0x3] %vm6170_vm6, %v21815_v0  ;;  %8443 = vst.msk [vmem:[#allocation3 + $0x98] sm:$0x3] %vm6170_vm6, %v21815_v0 }
 0x2d3   :  { %8445 = vst.msk [vmem:[#allocation3 + $0xa8] sm:$0x3] %vm6170_vm6, %v21815_v0  ;;  %8447 = vst.msk [vmem:[#allocation3 + $0xb8] sm:$0x3] %vm6170_vm6, %v21815_v0 }
 0x2d4   :  { %14475 = vmatmul.mubr.msk.bf16.gmra.mrb[24].mxu0 %vm104_vm1, %v17051_v20  ;;  %8449 = vst.msk [vmem:[#allocation3 + $0xc8] sm:$0x3] %vm6170_vm6, %v21815_v0  ;;  %8451 = vst.msk [vmem:[#allocation3 + $0xd8] sm:$0x3] %vm6170_vm6, %v21815_v0  ;;  %v15533_v20 = vmov 1983009808  }
 0x2d5   :  { %14478 = vmatprep.mubr.msk.bf16.mxu0 %vm104_vm1, %v21813_v59  ;;  %8453 = vst.msk [vmem:[#allocation3 + $0xe8] sm:$0x3] %vm6170_vm6, %v21815_v0  ;;  %8455 = vst.msk [vmem:[#allocation3 + $0xf8] sm:$0x3] %vm6170_vm6, %v21815_v0 }
 0x2d6   :  { %8457 = vst.msk [vmem:[#allocation3 + $0x108] sm:$0x3] %vm6170_vm6, %v21815_v0  ;;  %8459 = vst.msk [vmem:[#allocation3 + $0x118] sm:$0x3] %vm6170_vm6, %v21815_v0 }
 0x2d7   :  { %8461 = vst.msk [vmem:[#allocation3 + $0x128] sm:$0x3] %vm6170_vm6, %v21815_v0  ;;  %8463 = vst.msk [vmem:[#allocation3 + $0x138] sm:$0x3] %vm6170_vm6, %v21815_v0 }
 0x2d8   :  { %8424 = vst.msk [vmem:[#allocation3] sm:$0xff] %vm7963_vm7, %v21815_v0  ;;  %8426 = vst.msk [vmem:[#allocation3 + $0x10] sm:$0xff] %vm7963_vm7, %v21815_v0 }
 0x2d9   :  { %8428 = vst.msk [vmem:[#allocation3 + $0x20] sm:$0xff] %vm7963_vm7, %v21815_v0  ;;  %8430 = vst.msk [vmem:[#allocation3 + $0x30] sm:$0xff] %vm7963_vm7, %v21815_v0 }
 0x2da   :  { %8432 = vst.msk [vmem:[#allocation3 + $0x40] sm:$0xff] %vm7963_vm7, %v21815_v0  ;;  %8434 = vst.msk [vmem:[#allocation3 + $0x50] sm:$0xff] %vm7963_vm7, %v21815_v0 }
 0x2db   :  { %8436 = vst.msk [vmem:[#allocation3 + $0x60] sm:$0xff] %vm7963_vm7, %v21815_v0  ;;  %8438 = vst.msk [vmem:[#allocation3 + $0x70] sm:$0xff] %vm7963_vm7, %v21815_v0 }
 0x2dc   :  { %14479 = vmatmul.mubr.msk.bf16.gmra.mrb[28].mxu0 %vm104_vm1, %v21814_v48  ;;  %8440 = vst.msk [vmem:[#allocation3 + $0x80] sm:$0xff] %vm7963_vm7, %v21815_v0  ;;  %8442 = vst.msk [vmem:[#allocation3 + $0x90] sm:$0xff] %vm7963_vm7, %v21815_v0 }
 0x2dd   :  { %14482 = vmatprep.mubr.msk.bf16.mxu0 %vm104_vm1, %v17079_v16  ;;  %8444 = vst.msk [vmem:[#allocation3 + $0xa0] sm:$0xff] %vm7963_vm7, %v21815_v0  ;;  %8446 = vst.msk [vmem:[#allocation3 + $0xb0] sm:$0xff] %vm7963_vm7, %v21815_v0  ;;  %v4828_v16 = vunpack.c.l.s4 %v15533_v20 }
 0x2de   :  { %8448 = vst.msk [vmem:[#allocation3 + $0xc0] sm:$0xff] %vm7963_vm7, %v21815_v0  ;;  %8450 = vst.msk [vmem:[#allocation3 + $0xd0] sm:$0xff] %vm7963_vm7, %v21815_v0 }
 0x2df   :  { %8452 = vst.msk [vmem:[#allocation3 + $0xe0] sm:$0xff] %vm7963_vm7, %v21815_v0  ;;  %8454 = vst.msk [vmem:[#allocation3 + $0xf0] sm:$0xff] %vm7963_vm7, %v21815_v0 }
 0x2e0   :  { %8456 = vst.msk [vmem:[#allocation3 + $0x100] sm:$0xff] %vm7963_vm7, %v21815_v0  ;;  %8458 = vst.msk [vmem:[#allocation3 + $0x110] sm:$0xff] %vm7963_vm7, %v21815_v0 }
 0x2e1   :  { %8460 = vst.msk [vmem:[#allocation3 + $0x120] sm:$0xff] %vm7963_vm7, %v21815_v0  ;;  %8462 = vst.msk [vmem:[#allocation3 + $0x130] sm:$0xff] %vm7963_vm7, %v21815_v0 }
 0x2e4   :  { %14483 = vmatmul.mubr.msk.bf16.gmra.mrb[32].mxu0 %vm104_vm1, %v17095_v7  ;;  %v4830_v7 = vlaneseq }
 0x2e5   :  { %14486 = vmatprep.mubr.msk.bf16.mxu0 %vm104_vm1, %v17098_v18  ;;  %v17918_v18 = vld [vmem:[%s21289_s3] ss:$0 sm:$0xff] }
 0x2ec   :  { %14487 = vmatmul.mubr.msk.bf16.gmra.mrb[36].mxu0 %vm104_vm1, %v17113_v38 }
 0x2ed   :  { %14490 = vmatprep.mubr.msk.bf16.mxu0 %vm104_vm1, %v17116_v50 }
 0x2f4   :  { %14491 = vmatmul.mubr.msk.bf16.gmra.mrb[40].mxu0 %vm104_vm1, %v17130_v56  ;;  %v4829_v56 = vunpack.c.0.s8 %v4828_v16 }
 0x2f5   :  { %14494 = vmatprep.mubr.msk.bf16.mxu0 %vm104_vm1, %v17133_v42  ;;  %v17921_v42 = vshrl.u32 %v4830_v7, 7 }
 0x2f7   :  { %21817 = vst [vmem:[#allocation32_spill] sm:$0xff] %v17921_v42  ;;  %v17935_v23 = vsub.s32 %v4829_v56, %v17921_v42 }
 0x2f9   :  { %21818 = vst [vmem:[#allocation38_spill] sm:$0xff] %v17935_v23 }
 0x2fc   :  { %14495 = vmatmul.mubr.msk.bf16.gmra.mrb[44].mxu0 %vm104_vm1, %v17320_v22 }
 0x2fd   :  { %14498 = vmatprep.mubr.msk.bf16.mxu0 %vm104_vm1, %v17334_v15  ;;  %v17926_v15 = vld [vmem:[%s21290_s4] ss:$0 sm:$0xff] }
 0x304   :  { %14499 = vmatmul.mubr.msk.bf16.gmra.mrb[48].mxu0 %vm104_vm1, %v17336_v29 }
 0x305   :  { %14502 = vmatprep.mubr.msk.bf16.mxu0 %vm104_vm1, %v17356_v12 }
 0x30c   :  { %14503 = vmatmul.mubr.msk.bf16.gmra.mrb[52].mxu0 %vm104_vm1, %v17359_v49 }
 0x30d   :  { %14506 = vmatprep.mubr.msk.bf16.mxu0 %vm104_vm1, %v17377_v47 }
 0x314   :  { %14507 = vmatmul.mubr.msk.bf16.gmra.mrb[56].mxu0 %vm104_vm1, %v17379_v14 }
 0x315   :  { %14510 = vmatprep.mubr.msk.bf16.mxu0 %vm104_vm1, %v17394_v32 }
 0x31c   :  { %14511 = vmatmul.mubr.msk.bf16.gmra.mrb[60].mxu0 %vm104_vm1, %v21816_v63  ;;  %vm10864_vm1 = vcmask 519168  }
 0x377   :  { %v14452_v38 = vpop.f32.mrb[0].mxu0 }
 0x378   :  { %v14582_v50 = vadd.f32 %v14452_v38, %v17555_v28  ;;  %v4239_v22 = vpop.f32.mrb[1].mxu0 }
 0x379   :  { %v14583_v29 = vadd.f32 %v4239_v22, %v17557_v35  ;;  %v14453_v12 = vpop.f32.mrb[2].mxu0 }
 0x37a   :  { %v4566_v49 = vmul.f32 %v14582_v50, %v17918_v18  ;;  %v14584_v47 = vadd.f32 %v14453_v12, %v17559_v43  ;;  %v4242_v14 = vpop.f32.mrb[3].mxu0 }
 0x37b   :  { %v4564_v32 = vmul.f32 %v14583_v29, %v17918_v18  ;;  %v14585_v28 = vadd.f32 %v4242_v14, %v17561_v62 }
 0x37c   :  { %v4636_v13 = vadd.f32 %v17926_v15, %v4566_v49  ;;  %v4567_v25 = vmul.f32 %v14584_v47, %v17918_v18 }
 0x37d   :  { %v4634_v53 = vadd.f32 %v17926_v15, %v4564_v32  ;;  %v4565_v35 = vmul.f32 %v14585_v28, %v17918_v18 }
 0x37e   :  { %v4700_v54 = vmax.f32 %v4636_v13, 0.0  ;;  %v4637_v37 = vadd.f32 %v17926_v15, %v4567_v25 }
 0x37f   :  { %v4698_v43 = vmax.f32 %v4634_v53, 0.0  ;;  %v4635_v59 = vadd.f32 %v17926_v15, %v4565_v35  ;;  %v14456_v48 = vpop.f32.mrb[4].mxu0 }
 0x380   :  { %v4860_v63 = vcombine.high %v4700_v54, %v4700_v54  ;;  %v4867_v62 = vrot.slane %v4700_v54, %v17935_v23  ;;  %v17943_v20 = vmax.f32 %v4637_v37, 0.0  ;;  %v17946_v16 = vadd.f32 %v14456_v48, %v17567_v33  ;;  %v4255_v7 = vpop.f32.mrb[5].mxu0 }
 0x381   :  { %v4826_v38 = vcombine.high %v4698_v43, %v4698_v43  ;;  %v4833_v50 = vrot.slane %v4698_v43, %v17935_v23  ;;  %v17949_v56 = vmax.f32 %v4635_v59, 0.0  ;;  %v17952_v22 = vadd.f32 %v4255_v7, %v17569_v30  ;;  %v17954_v29 = vpop.f32.mrb[6].mxu0 }
 0x382   :  { %v4874_v12 = vrot.slane %v4860_v63, %v17935_v23  ;;  %v4875_v49 = vcombine.high %v4867_v62, %v4867_v62  ;;  %v6227_v47 = vsel %vm6170_vm6, %v4867_v62, -inf  ;;  %v17960_v14 = vpop.f32.mrb[7].mxu0 }
 0x383   :  { %v6228_v32 = vrot.slane %v6227_v47, 4  ;;  %v4840_v28 = vrot.slane %v4826_v38, %v17935_v23  ;;  %v4841_v13 = vcombine.high %v4833_v50, %v4833_v50  ;;  %v6171_v25 = vsel %vm6170_vm6, %v4833_v50, -inf }
 0x384   :  { %v4876_v30 = vcombine.high %v4874_v12, %v4874_v12  ;;  %v6234_v53 = vsel %vm6170_vm6, %v4875_v49, -inf  ;;  %v6241_v35 = vsel %vm6170_vm6, %v4874_v12, -inf  ;;  %v6172_v54 = vrot.slane %v6171_v25, 4 }
 0x385   :  { %v6229_v37 = vmax.f32 %v6227_v47, %v6228_v32  ;;  %v6235_v43 = vrot.slane %v6234_v53, 4  ;;  %v6242_v59 = vrot.slane %v6241_v35, 4  ;;  %v4842_v48 = vcombine.high %v4840_v28, %v4840_v28 }
 0x386   :  { %v6248_v63 = vsel %vm6170_vm6, %v4876_v30, -inf  ;;  %v6173_v62 = vmax.f32 %v6171_v25, %v6172_v54  ;;  %v6178_v7 = vsel %vm6170_vm6, %v4841_v13, -inf  ;;  %v6185_v38 = vsel %vm6170_vm6, %v4840_v28, -inf }
 0x387   :  { %v6230_v33 = vrot.slane %v6229_v37, 2  ;;  %v6236_v42 = vmax.f32 %v6234_v53, %v6235_v43  ;;  %v6243_v50 = vmax.f32 %v6241_v35, %v6242_v59  ;;  %v6249_v0 = vrot.slane %v6248_v63, 4  ;;  %v17969_v45 = vpop.f32.mrb[8].mxu0 }
 0x388   :  { %v6174_v49 = vrot.slane %v6173_v62, 2  ;;  %v6179_v12 = vrot.slane %v6178_v7, 4  ;;  %v6186_v34 = vrot.slane %v6185_v38, 4  ;;  %v6192_v47 = vsel %vm6170_vm6, %v4842_v48, -inf  ;;  %v17972_v32 = vpop.f32.mrb[9].mxu0 }
 0x389   :  { %v6231_v24 = vmax.f32 %v6229_v37, %v6230_v33  ;;  %v6237_v30 = vrot.slane %v6236_v42, 2  ;;  %v6244_v25 = vrot.slane %v6243_v50, 2  ;;  %v6250_v54 = vmax.f32 %v6248_v63, %v6249_v0  ;;  %v17974_v13 = vpop.f32.mrb[10].mxu0 }
 0x38a   :  { %v6175_v28 = vmax.f32 %v6173_v62, %v6174_v49  ;;  %v6180_v58 = vmax.f32 %v6178_v7, %v6179_v12  ;;  %v6187_v53 = vmax.f32 %v6185_v38, %v6186_v34  ;;  %v6193_v35 = vrot.slane %v6192_v47, 4  ;;  %v17976_v43 = vpop.f32.mrb[11].mxu0 }
 0x38b   :  { %v6232_v59 = vrot.slane %v6231_v24, 1  ;;  %v6238_v36 = vmax.f32 %v6236_v42, %v6237_v30  ;;  %v6245_v5 = vmax.f32 %v6243_v50, %v6244_v25  ;;  %v6251_v6 = vrot.slane %v6250_v54, 2 }
 0x38c   :  { %v6176_v44 = vrot.slane %v6175_v28, 1  ;;  %v6181_v48 = vrot.slane %v6180_v58, 2  ;;  %v6188_v26 = vrot.slane %v6187_v53, 2  ;;  %v6194_v41 = vmax.f32 %v6192_v47, %v6193_v35 }
 0x38d   :  { %v6233_v33 = vmax.f32 %v6231_v24, %v6232_v59  ;;  %v6239_v37 = vrot.slane %v6238_v36, 1  ;;  %v6246_v0 = vrot.slane %v6245_v5, 1  ;;  %v6252_v63 = vmax.f32 %v6250_v54, %v6251_v6 }
 0x38e   :  { %v6177_v62 = vmax.f32 %v6175_v28, %v6176_v44  ;;  %v6182_v7 = vmax.f32 %v6180_v58, %v6181_v48  ;;  %v6189_v34 = vmax.f32 %v6187_v53, %v6188_v26  ;;  %v6195_v38 = vrot.slane %v6194_v41, 2 }
 0x38f   :  { %v6240_v49 = vmax.f32 %v6238_v36, %v6239_v37  ;;  %v6247_v12 = vmax.f32 %v6245_v5, %v6246_v0  ;;  %v6253_v9 = vrot.slane %v6252_v63, 1  ;;  %v7965_v42 = vsel %vm7963_vm7, %v6233_v33, -inf  ;;  %v17979_v50 = vpop.f32.mrb[12].mxu0 }
 0x390   :  { %v6183_v30 = vrot.slane %v6182_v7, 1  ;;  %v6190_v25 = vrot.slane %v6189_v34, 1  ;;  %v6196_v47 = vmax.f32 %v6194_v41, %v6195_v38  ;;  %v7964_v24 = vsel %vm7963_vm7, %v6177_v62, -inf  ;;  %v17982_v35 = vpop.f32.mrb[13].mxu0 }
 0x391   :  { %v6254_v6 = vmax.f32 %v6252_v63, %v6253_v9  ;;  %v7968_v44 = vsel %vm7963_vm7, %v6240_v49, -inf  ;;  %v7971_v26 = vsel %vm7963_vm7, %v6247_v12, -inf  ;;  %v7966_v58 = vmax.f32 %v7964_v24, %v7965_v42  ;;  %v17986_v36 = vpop.f32.mrb[14].mxu0 }
 0x392   :  { %v6184_v5 = vmax.f32 %v6182_v7, %v6183_v30  ;;  %v6191_v54 = vmax.f32 %v6189_v34, %v6190_v25  ;;  %v6197_v28 = vrot.slane %v6196_v47, 1  ;;  %v4884_v53 = vrot.slane %v17943_v20, %v17935_v23  ;;  %v17990_v59 = vpop.f32.mrb[15].mxu0 }
 0x393   :  { %v17993_v41 = vsel %vm7963_vm7, %v6254_v6, -inf  ;;  %v21819_v9 = vcombine.high %v17943_v20, %v17943_v20  ;;  %v4843_v33 = vcombine.high %v17949_v56, %v17949_v56  ;;  %v4850_v37 = vrot.slane %v17949_v56, %v17935_v23 }
 0x394   :  { %v6198_v0 = vmax.f32 %v6196_v47, %v6197_v28  ;;  %v7967_v63 = vsel %vm7963_vm7, %v6184_v5, -inf  ;;  %v7970_v62 = vsel %vm7963_vm7, %v6191_v54, -inf  ;;  %v4892_v7 = vcombine.high %v4884_v53, %v4884_v53 }
 0x395   :  { %v4891_v48 = vrot.slane %v21819_v9, %v17935_v23  ;;  %v7969_v34 = vmax.f32 %v7967_v63, %v7968_v44  ;;  %v7972_v38 = vmax.f32 %v7970_v62, %v7971_v26  ;;  %v6255_v12 = vsel %vm6170_vm6, %v4884_v53, -inf }
 0x396   :  { %v18007_v20 = vsel %vm7963_vm7, %v6198_v0, -inf  ;;  %v6256_v42 = vrot.slane %v6255_v12, 4  ;;  %v6262_v30 = vsel %vm6170_vm6, %v4892_v7, -inf  ;;  %v4857_v54 = vrot.slane %v4843_v33, %v17935_v23 }
 0x397   :  { %v4893_v49 = vcombine.high %v4891_v48, %v4891_v48  ;;  %v6269_v25 = vsel %vm6170_vm6, %v4891_v48, -inf  ;;  %v7975_v56 = vmax.f32 %v18007_v20, %v17993_v41  ;;  %v8593_v47 = vsel %vm8592_vm8, %v7969_v34, %v7966_v58 }
 0x398   :  { %v6263_v24 = vrot.slane %v6262_v30, 4  ;;  %v6270_v6 = vrot.slane %v6269_v25, 4  ;;  %v8595_v44 = vsel %vm8594_vm9, %v7972_v38, %v8593_v47  ;;  %v6257_v26 = vmax.f32 %v6255_v12, %v6256_v42 }
 0x399   :  { %v6276_v5 = vsel %vm6170_vm6, %v4893_v49, -inf  ;;  %v4858_v0 = vcombine.high %v4850_v37, %v4850_v37  ;;  %v4859_v63 = vcombine.high %v4857_v54, %v4857_v54  ;;  %v6199_v41 = vsel %vm6170_vm6, %v4850_v37, -inf }
 0x39a   :  { %v6264_v28 = vmax.f32 %v6262_v30, %v6263_v24  ;;  %v6271_v53 = vmax.f32 %v6269_v25, %v6270_v6  ;;  %v6277_v9 = vrot.slane %v6276_v5, 4  ;;  %v6258_v48 = vrot.slane %v6257_v26, 2  ;;  %v18021_v24 = vpop.f32.mrb[16].mxu0 }
 0x39b   :  { %v6213_v58 = vsel %vm6170_vm6, %v4857_v54, -inf  ;;  %v6200_v38 = vrot.slane %v6199_v41, 4  ;;  %v6206_v49 = vsel %vm6170_vm6, %v4858_v0, -inf  ;;  %v6220_v33 = vsel %vm6170_vm6, %v4859_v63, -inf }
 0x39c   :  { %v6265_v62 = vrot.slane %v6264_v28, 2  ;;  %v6272_v7 = vrot.slane %v6271_v53, 2  ;;  %v6278_v34 = vmax.f32 %v6276_v5, %v6277_v9  ;;  %v6259_v12 = vmax.f32 %v6257_v26, %v6258_v48 }
 0x39d   :  { %v6214_v20 = vrot.slane %v6213_v58, 4  ;;  %v6201_v47 = vmax.f32 %v6199_v41, %v6200_v38  ;;  %v6207_v37 = vrot.slane %v6206_v49, 4  ;;  %v6221_v54 = vrot.slane %v6220_v33, 4 }
 0x39e   :  { %v6266_v42 = vmax.f32 %v6264_v28, %v6265_v62  ;;  %v6273_v30 = vmax.f32 %v6271_v53, %v6272_v7  ;;  %v6279_v25 = vrot.slane %v6278_v34, 2  ;;  %v6260_v6 = vrot.slane %v6259_v12, 1 }
 0x39f   :  { %v6215_v2 = vmax.f32 %v6213_v58, %v6214_v20  ;;  %v6202_v9 = vrot.slane %v6201_v47, 2  ;;  %v6208_v0 = vmax.f32 %v6206_v49, %v6207_v37  ;;  %v6222_v46 = vmax.f32 %v6220_v33, %v6221_v54 }
 0x3a0   :  { %v6267_v11 = vrot.slane %v6266_v42, 1  ;;  %v6274_v57 = vrot.slane %v6273_v30, 1  ;;  %v6280_v5 = vmax.f32 %v6278_v34, %v6279_v25  ;;  %v6261_v26 = vmax.f32 %v6259_v12, %v6260_v6 }
 0x3a1   :  { %v6216_v48 = vrot.slane %v6215_v2, 2  ;;  %v6203_v62 = vmax.f32 %v6201_v47, %v6202_v9  ;;  %v6209_v7 = vrot.slane %v6208_v0, 2  ;;  %v6223_v8 = vrot.slane %v6222_v46, 2 }
 0x3a2   :  { %v6268_v63 = vmax.f32 %v6266_v42, %v6267_v11  ;;  %v6275_v28 = vmax.f32 %v6273_v30, %v6274_v57  ;;  %v6281_v53 = vrot.slane %v6280_v5, 1  ;;  %v7977_v41 = vsel %vm7963_vm7, %v6261_v26, -inf }
 0x3a3   :  { %v6217_v38 = vmax.f32 %v6215_v2, %v6216_v48  ;;  %v6204_v25 = vrot.slane %v6203_v62, 1  ;;  %v6210_v12 = vmax.f32 %v6208_v0, %v6209_v7  ;;  %v6224_v33 = vmax.f32 %v6222_v46, %v6223_v8 }
 0x3a4   :  { %v6282_v58 = vmax.f32 %v6280_v5, %v6281_v53  ;;  %v7980_v20 = vsel %vm7963_vm7, %v6268_v63, -inf  ;;  %v7983_v34 = vsel %vm7963_vm7, %v6275_v28, -inf  ;;  %v8597_v57 = vsel %vm8596_vm10, %v7975_v56, %v8595_v44 }
 0x3a5   :  { %v6218_v49 = vrot.slane %v6217_v38, 1  ;;  %v6205_v42 = vmax.f32 %v6203_v62, %v6204_v25  ;;  %v4570_v2 = vmul.f32 %v17946_v16, %v17918_v18  ;;  %v4568_v30 = vmul.f32 %v17952_v22, %v17918_v18 }
 0x3a6   :  { %v7986_v11 = vsel %vm7963_vm7, %v6282_v58, -inf  ;;  %v6211_v47 = vrot.slane %v6210_v12, 1  ;;  %v6225_v37 = vrot.slane %v6224_v33, 1  ;;  %v14588_v54 = vadd.f32 %v17954_v29, %v17571_v31  ;;  %v18041_v31 = vpop.f32.mrb[17].mxu0 }
 0x3a7   :  { %v6219_v6 = vmax.f32 %v6217_v38, %v6218_v49  ;;  %v7976_v8 = vsel %vm7963_vm7, %v6205_v42, -inf  ;;  %v4640_v46 = vadd.f32 %v17926_v15, %v4570_v2  ;;  %v4638_v56 = vadd.f32 %v17926_v15, %v4568_v30  ;;  %v18060_v30 = vpop.f32.mrb[18].mxu0 }
 0x3a8   :  { %v14589_v44 = vadd.f32 %v17960_v14, %v17573_v61  ;;  %v6212_v5 = vmax.f32 %v6210_v12, %v6211_v47  ;;  %v6226_v16 = vmax.f32 %v6224_v33, %v6225_v37  ;;  %v7978_v9 = vmax.f32 %v7976_v8, %v7977_v41 }
 0x3a9   :  { %v7982_v22 = vsel %vm7963_vm7, %v6219_v6, -inf  ;;  %v4704_v0 = vmax.f32 %v4640_v46, 0.0  ;;  %v4702_v48 = vmax.f32 %v4638_v56, 0.0  ;;  %v4571_v63 = vmul.f32 %v14588_v54, %v17918_v18 }
 0x3aa   :  { %v7984_v26 = vmax.f32 %v7982_v22, %v7983_v34  ;;  %v7979_v29 = vsel %vm7963_vm7, %v6212_v5, -inf  ;;  %v7985_v28 = vsel %vm7963_vm7, %v6226_v16, -inf  ;;  %v8599_v53 = vsel %vm8598_vm11, %v7978_v9, %v8597_v57 }
 0x3ab   :  { %v4569_v61 = vmul.f32 %v14589_v44, %v17918_v18  ;;  %v7981_v14 = vmax.f32 %v7979_v29, %v7980_v20  ;;  %v7987_v62 = vmax.f32 %v7985_v28, %v7986_v11  ;;  %v4928_v41 = vcombine.high %v4704_v0, %v4704_v0 }
 0x3ac   :  { %v4935_v7 = vrot.slane %v4704_v0, %v17935_v23  ;;  %v4894_v38 = vcombine.high %v4702_v48, %v4702_v48  ;;  %v4901_v58 = vrot.slane %v4702_v48, %v17935_v23  ;;  %v18050_v34 = vadd.f32 %v17926_v15, %v4571_v63 }
 0x3ad   :  { %v18053_v25 = vadd.f32 %v17926_v15, %v4569_v61  ;;  %v8601_v12 = vsel %vm8600_vm12, %v7981_v14, %v8599_v53  ;;  %v4942_v49 = vrot.slane %v4928_v41, %v17935_v23 }
 0x3ae   :  { %v4943_v33 = vcombine.high %v4935_v7, %v4935_v7  ;;  %v6339_v20 = vsel %vm6170_vm6, %v4935_v7, -inf  ;;  %v8603_v57 = vsel %vm8602_vm13, %v7984_v26, %v8601_v12  ;;  %v4908_v42 = vrot.slane %v4894_v38, %v17935_v23 }
 0x3af   :  { %v6340_v11 = vrot.slane %v6339_v20, 4  ;;  %v4909_v2 = vcombine.high %v4901_v58, %v4901_v58  ;;  %v8605_v47 = vsel %vm8604_vm14, %v7987_v62, %v8603_v57  ;;  %v4944_v6 = vcombine.high %v4942_v49, %v4942_v49 }
 0x3b0   :  { %v6346_v37 = vsel %vm6170_vm6, %v4943_v33, -inf  ;;  %v6353_v54 = vsel %vm6170_vm6, %v4942_v49, -inf  ;;  %8728 = vst.msk [vmem:[#allocation3 + $0x11] sm:$0xff] %vm7963_vm7, %v8605_v47  ;;  %v4910_v44 = vcombine.high %v4908_v42, %v4908_v42  ;;  %v6283_v16 = vsel %vm6170_vm6, %v4901_v58, -inf }
 0x3b1   :  { %v6341_v8 = vmax.f32 %v6339_v20, %v6340_v11  ;;  %v6347_v46 = vrot.slane %v6346_v37, 4  ;;  %v6354_v56 = vrot.slane %v6353_v54, 4  ;;  %v6360_v5 = vsel %vm6170_vm6, %v4944_v6, -inf }
 0x3b2   :  { %v6290_v9 = vsel %vm6170_vm6, %v4909_v2, -inf  ;;  %v6297_v22 = vsel %vm6170_vm6, %v4908_v42, -inf  ;;  %v6361_v63 = vrot.slane %v6360_v5, 4  ;;  %v6284_v29 = vrot.slane %v6283_v16, 4 }
 0x3b3   :  { %v6342_v26 = vrot.slane %v6341_v8, 2  ;;  %v6348_v0 = vmax.f32 %v6346_v37, %v6347_v46  ;;  %v6355_v48 = vmax.f32 %v6353_v54, %v6354_v56  ;;  %v6291_v28 = vrot.slane %v6290_v9, 4 }
 0x3b4   :  { %v6298_v53 = vrot.slane %v6297_v22, 4  ;;  %v6304_v61 = vsel %vm6170_vm6, %v4910_v44, -inf  ;;  %v6362_v7 = vmax.f32 %v6360_v5, %v6361_v63  ;;  %v6285_v38 = vmax.f32 %v6283_v16, %v6284_v29 }
 0x3b5   :  { %v6343_v14 = vmax.f32 %v6341_v8, %v6342_v26  ;;  %v6349_v62 = vrot.slane %v6348_v0, 2  ;;  %v6356_v41 = vrot.slane %v6355_v48, 2  ;;  %v6292_v12 = vmax.f32 %v6290_v9, %v6291_v28 }
 0x3b6   :  { %v6299_v58 = vmax.f32 %v6297_v22, %v6298_v53  ;;  %v6305_v49 = vrot.slane %v6304_v61, 4  ;;  %v6363_v11 = vrot.slane %v6362_v7, 2  ;;  %v6286_v42 = vrot.slane %v6285_v38, 2 }
 0x3b7   :  { %v6344_v33 = vrot.slane %v6343_v14, 1  ;;  %v6350_v20 = vmax.f32 %v6348_v0, %v6349_v62  ;;  %v6357_v57 = vmax.f32 %v6355_v48, %v6356_v41  ;;  %v6293_v2 = vrot.slane %v6292_v12, 2 }
 0x3b8   :  { %v6300_v47 = vrot.slane %v6299_v58, 2  ;;  %v6306_v6 = vmax.f32 %v6304_v61, %v6305_v49  ;;  %v6364_v56 = vmax.f32 %v6362_v7, %v6363_v11  ;;  %v6287_v8 = vmax.f32 %v6285_v38, %v6286_v42 }
 0x3b9   :  { %v6345_v37 = vmax.f32 %v6343_v14, %v6344_v33  ;;  %v6351_v54 = vrot.slane %v6350_v20, 1  ;;  %v6358_v46 = vrot.slane %v6357_v57, 1  ;;  %v6294_v44 = vmax.f32 %v6292_v12, %v6293_v2 }
 0x3ba   :  { %v6301_v26 = vmax.f32 %v6299_v58, %v6300_v47  ;;  %v6307_v5 = vrot.slane %v6306_v6, 2  ;;  %v6365_v22 = vrot.slane %v6364_v56, 1  ;;  %v6288_v0 = vrot.slane %v6287_v8, 1  ;;  %v18075_v58 = vpop.f32.mrb[19].mxu0 }
 0x3bb   :  { %v6352_v16 = vmax.f32 %v6350_v20, %v6351_v54  ;;  %v6359_v9 = vmax.f32 %v6357_v57, %v6358_v46  ;;  %v7989_v63 = vsel %vm7963_vm7, %v6345_v37, -inf  ;;  %v6295_v48 = vrot.slane %v6294_v44, 1 }
 0x3bc   :  { %v6302_v29 = vrot.slane %v6301_v26, 1  ;;  %v6308_v28 = vmax.f32 %v6306_v6, %v6307_v5  ;;  %v6366_v53 = vmax.f32 %v6364_v56, %v6365_v22  ;;  %v4705_v62 = vmax.f32 %v18050_v34, 0.0 }
 0x3bd   :  { %v7992_v61 = vsel %vm7963_vm7, %v6352_v16, -inf  ;;  %v7995_v14 = vsel %vm7963_vm7, %v6359_v9, -inf  ;;  %v6289_v41 = vmax.f32 %v6287_v8, %v6288_v0  ;;  %v6296_v7 = vmax.f32 %v6294_v44, %v6295_v48 }
 0x3be   :  { %v6303_v38 = vmax.f32 %v6301_v26, %v6302_v29  ;;  %v6309_v12 = vrot.slane %v6308_v28, 1  ;;  %v18078_v49 = vsel %vm7963_vm7, %v6366_v53, -inf  ;;  %v4945_v33 = vcombine.high %v4705_v62, %v4705_v62 }
 0x3bf   :  { %v4952_v20 = vrot.slane %v4705_v62, %v17935_v23  ;;  %v4703_v57 = vmax.f32 %v18053_v25, 0.0  ;;  %v7988_v42 = vsel %vm7963_vm7, %v6289_v41, -inf  ;;  %v7991_v2 = vsel %vm7963_vm7, %v6296_v7, -inf }
 0x3c0   :  { %v6310_v11 = vmax.f32 %v6308_v28, %v6309_v12  ;;  %v7994_v34 = vsel %vm7963_vm7, %v6303_v38, -inf  ;;  %v7990_v47 = vmax.f32 %v7988_v42, %v7989_v63  ;;  %v7993_v6 = vmax.f32 %v7991_v2, %v7992_v61 }
 0x3c1   :  { %v7996_v37 = vmax.f32 %v7994_v34, %v7995_v14  ;;  %v4959_v54 = vrot.slane %v4945_v33, %v17935_v23  ;;  %v4960_v56 = vcombine.high %v4952_v20, %v4952_v20  ;;  %v6367_v8 = vsel %vm6170_vm6, %v4952_v20, -inf }
 0x3c2   :  { %v18087_v46 = vsel %vm7963_vm7, %v6310_v11, -inf  ;;  %v4911_v44 = vcombine.high %v4703_v57, %v4703_v57  ;;  %v8606_v26 = vsel %vm8592_vm8, %v7993_v6, %v7990_v47  ;;  %v6368_v16 = vrot.slane %v6367_v8, 4  ;;  %v18102_v6 = vpop.f32.mrb[20].mxu0 }
 0x3c3   :  { %v7999_v25 = vmax.f32 %v18087_v46, %v18078_v49  ;;  %v4961_v5 = vcombine.high %v4959_v54, %v4959_v54  ;;  %v8607_v9 = vsel %vm8594_vm9, %v7996_v37, %v8606_v26  ;;  %v6374_v22 = vsel %vm6170_vm6, %v4960_v56, -inf }
 0x3c4   :  { %v6381_v63 = vsel %vm6170_vm6, %v4959_v54, -inf  ;;  %v4918_v0 = vrot.slane %v4703_v57, %v17935_v23  ;;  %v6369_v48 = vmax.f32 %v6367_v8, %v6368_v16  ;;  %v6375_v29 = vrot.slane %v6374_v22, 4 }
 0x3c5   :  { %v6382_v28 = vrot.slane %v6381_v63, 4  ;;  %v6388_v53 = vsel %vm6170_vm6, %v4961_v5, -inf  ;;  %v4925_v14 = vrot.slane %v4911_v44, %v17935_v23 }
 0x3c6   :  { %v6389_v61 = vrot.slane %v6388_v53, 4  ;;  %v4926_v62 = vcombine.high %v4918_v0, %v4918_v0  ;;  %v6311_v41 = vsel %vm6170_vm6, %v4918_v0, -inf  ;;  %v6370_v7 = vrot.slane %v6369_v48, 2 }
 0x3c7   :  { %v6376_v38 = vmax.f32 %v6374_v22, %v6375_v29  ;;  %v6383_v12 = vmax.f32 %v6381_v63, %v6382_v28  ;;  %v6312_v49 = vrot.slane %v6311_v41, 4  ;;  %v4927_v20 = vcombine.high %v4925_v14, %v4925_v14 }
 0x3c8   :  { %v6390_v33 = vmax.f32 %v6388_v53, %v6389_v61  ;;  %v6318_v11 = vsel %vm6170_vm6, %v4926_v62, -inf  ;;  %v6325_v57 = vsel %vm6170_vm6, %v4925_v14, -inf  ;;  %v6371_v42 = vmax.f32 %v6369_v48, %v6370_v7 }
 0x3c9   :  { %v6377_v2 = vrot.slane %v6376_v38, 2  ;;  %v6384_v34 = vrot.slane %v6383_v12, 2  ;;  %v6313_v47 = vmax.f32 %v6311_v41, %v6312_v49  ;;  %v6319_v54 = vrot.slane %v6318_v11, 4 }
 0x3ca   :  { %v6391_v37 = vrot.slane %v6390_v33, 2  ;;  %v6326_v46 = vrot.slane %v6325_v57, 4  ;;  %v6332_v56 = vsel %vm6170_vm6, %v4927_v20, -inf  ;;  %v6372_v8 = vrot.slane %v6371_v42, 1 }
 0x3cb   :  { %v6378_v44 = vmax.f32 %v6376_v38, %v6377_v2  ;;  %v6385_v26 = vmax.f32 %v6383_v12, %v6384_v34  ;;  %v6314_v5 = vrot.slane %v6313_v47, 2  ;;  %v6320_v22 = vmax.f32 %v6318_v11, %v6319_v54 }
 0x3cc   :  { %v6392_v16 = vmax.f32 %v6390_v33, %v6391_v37  ;;  %v6327_v63 = vmax.f32 %v6325_v57, %v6326_v46  ;;  %v6333_v0 = vrot.slane %v6332_v56, 4  ;;  %v6373_v29 = vmax.f32 %v6371_v42, %v6372_v8 }
 0x3cd   :  { %v6379_v48 = vrot.slane %v6378_v44, 1  ;;  %v6386_v28 = vrot.slane %v6385_v26, 1  ;;  %v6315_v53 = vmax.f32 %v6313_v47, %v6314_v5  ;;  %v6321_v14 = vrot.slane %v6320_v22, 2 }
 0x3ce   :  { %v6393_v61 = vrot.slane %v6392_v16, 1  ;;  %v6328_v62 = vrot.slane %v6327_v63, 2  ;;  %v6334_v41 = vmax.f32 %v6332_v56, %v6333_v0  ;;  %v8001_v20 = vsel %vm7963_vm7, %v6373_v29, -inf }
 0x3cf   :  { %v6380_v7 = vmax.f32 %v6378_v44, %v6379_v48  ;;  %v6387_v49 = vmax.f32 %v6385_v26, %v6386_v28  ;;  %v6316_v4 = vrot.slane %v6315_v53, 1  ;;  %v6322_v12 = vmax.f32 %v6320_v22, %v6321_v14 }
 0x3d0   :  { %v6394_v38 = vmax.f32 %v6392_v16, %v6393_v61  ;;  %v6329_v2 = vmax.f32 %v6327_v63, %v6328_v62  ;;  %v6335_v33 = vrot.slane %v6334_v41, 2  ;;  %v8608_v34 = vsel %vm8596_vm10, %v7999_v25, %v8607_v9 }
 0x3d1   :  { %v8004_v11 = vsel %vm7963_vm7, %v6380_v7, -inf  ;;  %v8007_v57 = vsel %vm7963_vm7, %v6387_v49, -inf  ;;  %v6317_v42 = vmax.f32 %v6315_v53, %v6316_v4  ;;  %v6323_v37 = vrot.slane %v6322_v12, 1 }
 0x3d2   :  { %v8010_v47 = vsel %vm7963_vm7, %v6394_v38, -inf  ;;  %v6330_v54 = vrot.slane %v6329_v2, 1  ;;  %v6336_v46 = vmax.f32 %v6334_v41, %v6335_v33  ;;  %v14590_v8 = vadd.f32 %v17969_v45, %v17579_v21 }
 0x3d3   :  { %v8000_v56 = vsel %vm7963_vm7, %v6317_v42, -inf  ;;  %v14591_v44 = vadd.f32 %v17972_v32, %v17581_v19  ;;  %v14592_v26 = vadd.f32 %v17974_v13, %v17583_v39  ;;  %v6324_v5 = vmax.f32 %v6322_v12, %v6323_v37 }
 0x3d4   :  { %v6331_v4 = vmax.f32 %v6329_v2, %v6330_v54  ;;  %v6337_v16 = vrot.slane %v6336_v46, 1  ;;  %v8002_v25 = vmax.f32 %v8000_v56, %v8001_v20  ;;  %v4574_v9 = vmul.f32 %v14590_v8, %v17918_v18 }
 0x3d5   :  { %v4572_v22 = vmul.f32 %v14591_v44, %v17918_v18  ;;  %v4575_v63 = vmul.f32 %v14592_v26, %v17918_v18  ;;  %v14593_v0 = vadd.f32 %v17976_v43, %v17585_v60  ;;  %v8003_v45 = vsel %vm7963_vm7, %v6324_v5, -inf  ;;  %v18132_v43 = vpop.f32.mrb[21].mxu0 }
 0x3d6   :  { %v6338_v21 = vmax.f32 %v6336_v46, %v6337_v16  ;;  %v8006_v19 = vsel %vm7963_vm7, %v6331_v4, -inf  ;;  %v8609_v39 = vsel %vm8598_vm11, %v8002_v25, %v8608_v34  ;;  %v8005_v32 = vmax.f32 %v8003_v45, %v8004_v11 }
 0x3d7   :  { %v8008_v13 = vmax.f32 %v8006_v19, %v8007_v57  ;;  %v4644_v29 = vadd.f32 %v17926_v15, %v4574_v9  ;;  %v4642_v48 = vadd.f32 %v17926_v15, %v4572_v22  ;;  %v4645_v53 = vadd.f32 %v17926_v15, %v4575_v63 }
 0x3d8   :  { %v8009_v28 = vsel %vm7963_vm7, %v6338_v21, -inf  ;;  %v4573_v61 = vmul.f32 %v14593_v0, %v17918_v18  ;;  %v14594_v60 = vadd.f32 %v17979_v50, %v17591_v51  ;;  %v8610_v62 = vsel %vm8600_vm12, %v8005_v32, %v8609_v39 }
 0x3d9   :  { %v8011_v14 = vmax.f32 %v8009_v28, %v8010_v47  ;;  %v4708_v41 = vmax.f32 %v4644_v29, 0.0  ;;  %v4706_v7 = vmax.f32 %v4642_v48, 0.0  ;;  %v8611_v49 = vsel %vm8602_vm13, %v8008_v13, %v8610_v62 }
 0x3da   :  { %v4709_v20 = vmax.f32 %v4645_v53, 0.0  ;;  %v4643_v38 = vadd.f32 %v17926_v15, %v4573_v61  ;;  %v18138_v12 = vmul.f32 %v14594_v60, %v17918_v18  ;;  %v18149_v15 = vpop.f32.mrb[22].mxu0 }
 0x3db   :  { %v8612_v2 = vsel %vm8604_vm14, %v8011_v14, %v8611_v49  ;;  %v4996_v33 = vcombine.high %v4708_v41, %v4708_v41  ;;  %v5003_v51 = vrot.slane %v4708_v41, %v17935_v23  ;;  %v4962_v50 = vcombine.high %v4706_v7, %v4706_v7 }
 0x3dc   :  { %8729 = vst.msk [vmem:[#allocation3 + $0x21] sm:$0xff] %vm7963_vm7, %v8612_v2  ;;  %v4969_v11 = vrot.slane %v4706_v7, %v17935_v23  ;;  %v5013_v57 = vcombine.high %v4709_v20, %v4709_v20  ;;  %v18145_v42 = vrot.slane %v4709_v20, %v17935_v23  ;;  %v18147_v34 = vmax.f32 %v4643_v38, 0.0 }
 0x3dd   :  { %v5010_v18 = vrot.slane %v4996_v33, %v17935_v23  ;;  %v5011_v47 = vcombine.high %v5003_v51, %v5003_v51  ;;  %v6451_v37 = vsel %vm6170_vm6, %v5003_v51, -inf  ;;  %v4976_v54 = vrot.slane %v4962_v50, %v17935_v23 }
 0x3de   :  { %v6452_v46 = vrot.slane %v6451_v37, 4  ;;  %v4977_v56 = vcombine.high %v4969_v11, %v4969_v11  ;;  %v6395_v8 = vsel %vm6170_vm6, %v4969_v11, -inf  ;;  %v18156_v44 = vrot.slane %v5013_v57, %v17935_v23 }
 0x3df   :  { %v5012_v26 = vcombine.high %v5010_v18, %v5010_v18  ;;  %v6458_v5 = vsel %vm6170_vm6, %v5011_v47, -inf  ;;  %v6465_v4 = vsel %vm6170_vm6, %v5010_v18, -inf  ;;  %v4978_v16 = vcombine.high %v4976_v54, %v4976_v54 }
 0x3e0   :  { %v6453_v25 = vmax.f32 %v6451_v37, %v6452_v46  ;;  %v6459_v9 = vrot.slane %v6458_v5, 4  ;;  %v6466_v22 = vrot.slane %v6465_v4, 4  ;;  %v6396_v63 = vrot.slane %v6395_v8, 4 }
 0x3e1   :  { %v6472_v0 = vsel %vm6170_vm6, %v5012_v26, -inf  ;;  %v6402_v21 = vsel %vm6170_vm6, %v4977_v56, -inf  ;;  %v6409_v45 = vsel %vm6170_vm6, %v4976_v54, -inf  ;;  %v6416_v19 = vsel %vm6170_vm6, %v4978_v16, -inf }
 0x3e2   :  { %v6454_v39 = vrot.slane %v6453_v25, 2  ;;  %v6460_v32 = vmax.f32 %v6458_v5, %v6459_v9  ;;  %v6467_v13 = vmax.f32 %v6465_v4, %v6466_v22  ;;  %v6473_v29 = vrot.slane %v6472_v0, 4 }
 0x3e3   :  { %v6397_v48 = vmax.f32 %v6395_v8, %v6396_v63  ;;  %v6403_v28 = vrot.slane %v6402_v21, 4  ;;  %v6410_v53 = vrot.slane %v6409_v45, 4  ;;  %v6417_v61 = vrot.slane %v6416_v19, 4  ;;  %v18165_v63 = vpop.f32.mrb[23].mxu0 }
 0x3e4   :  { %v6455_v60 = vmax.f32 %v6453_v25, %v6454_v39  ;;  %v6461_v14 = vrot.slane %v6460_v32, 2  ;;  %v6468_v62 = vrot.slane %v6467_v13, 2  ;;  %v6474_v41 = vmax.f32 %v6472_v0, %v6473_v29 }
 0x3e5   :  { %v6398_v7 = vrot.slane %v6397_v48, 2  ;;  %v6404_v49 = vmax.f32 %v6402_v21, %v6403_v28  ;;  %v6411_v20 = vmax.f32 %v6409_v45, %v6410_v53  ;;  %v6418_v38 = vmax.f32 %v6416_v19, %v6417_v61 }
 0x3e6   :  { %v6456_v2 = vrot.slane %v6455_v60, 1  ;;  %v6462_v33 = vmax.f32 %v6460_v32, %v6461_v14  ;;  %v6469_v51 = vmax.f32 %v6467_v13, %v6468_v62  ;;  %v6475_v50 = vrot.slane %v6474_v41, 2 }
 0x3e7   :  { %v6399_v11 = vmax.f32 %v6397_v48, %v6398_v7  ;;  %v6405_v57 = vrot.slane %v6404_v49, 2  ;;  %v6412_v18 = vrot.slane %v6411_v20, 2  ;;  %v6419_v47 = vrot.slane %v6418_v38, 2 }
 0x3e8   :  { %v6457_v37 = vmax.f32 %v6455_v60, %v6456_v2  ;;  %v6463_v54 = vrot.slane %v6462_v33, 1  ;;  %v6470_v46 = vrot.slane %v6469_v51, 1  ;;  %v6476_v56 = vmax.f32 %v6474_v41, %v6475_v50 }
 0x3e9   :  { %v6400_v8 = vrot.slane %v6399_v11, 1  ;;  %v6406_v26 = vmax.f32 %v6404_v49, %v6405_v57  ;;  %v6413_v5 = vmax.f32 %v6411_v20, %v6412_v18  ;;  %v6420_v4 = vmax.f32 %v6418_v38, %v6419_v47 }
 0x3ea   :  { %v6464_v16 = vmax.f32 %v6462_v33, %v6463_v54  ;;  %v6471_v25 = vmax.f32 %v6469_v51, %v6470_v46  ;;  %v6477_v9 = vrot.slane %v6476_v56, 1  ;;  %v8013_v22 = vsel %vm7963_vm7, %v6457_v37, -inf }
 0x3eb   :  { %v6401_v0 = vmax.f32 %v6399_v11, %v6400_v8  ;;  %v6407_v21 = vrot.slane %v6406_v26, 1  ;;  %v6414_v45 = vrot.slane %v6413_v5, 1  ;;  %v6421_v19 = vrot.slane %v6420_v4, 1 }
 0x3ec   :  { %v6478_v39 = vmax.f32 %v6476_v56, %v6477_v9  ;;  %v8016_v32 = vsel %vm7963_vm7, %v6464_v16, -inf  ;;  %v8019_v13 = vsel %vm7963_vm7, %v6471_v25, -inf  ;;  %v5028_v29 = vcombine.high %v18145_v42, %v18145_v42 }
 0x3ed   :  { %v6408_v48 = vmax.f32 %v6406_v26, %v6407_v21  ;;  %v6415_v28 = vmax.f32 %v6413_v5, %v6414_v45  ;;  %v6422_v53 = vmax.f32 %v6420_v4, %v6421_v19  ;;  %v8012_v61 = vsel %vm7963_vm7, %v6401_v0, -inf }
 0x3ee   :  { %v8022_v60 = vsel %vm7963_vm7, %v6478_v39, -inf  ;;  %v8014_v14 = vmax.f32 %v8012_v61, %v8013_v22  ;;  %v5029_v62 = vcombine.high %v18156_v44, %v18156_v44  ;;  %v6479_v41 = vsel %vm6170_vm6, %v18145_v42, -inf }
 0x3ef   :  { %v8015_v7 = vsel %vm7963_vm7, %v6408_v48, -inf  ;;  %v8018_v49 = vsel %vm7963_vm7, %v6415_v28, -inf  ;;  %v8021_v20 = vsel %vm7963_vm7, %v6422_v53, -inf  ;;  %v6480_v38 = vrot.slane %v6479_v41, 4  ;;  %v18197_v28 = vpop.f32.mrb[24].mxu0 }
 0x3f0   :  { %v8017_v2 = vmax.f32 %v8015_v7, %v8016_v32  ;;  %v8020_v33 = vmax.f32 %v8018_v49, %v8019_v13  ;;  %v8023_v51 = vmax.f32 %v8021_v20, %v8022_v60  ;;  %v6486_v50 = vsel %vm6170_vm6, %v5028_v29, -inf }
 0x3f1   :  { %v6481_v11 = vmax.f32 %v6479_v41, %v6480_v38  ;;  %v6487_v57 = vrot.slane %v6486_v50, 4  ;;  %v6493_v18 = vsel %vm6170_vm6, %v18156_v44, -inf  ;;  %v6500_v47 = vsel %vm6170_vm6, %v5029_v62, -inf }
 0x3f2   :  { %v8613_v42 = vsel %vm8592_vm8, %v8017_v2, %v8014_v14  ;;  %v6494_v37 = vrot.slane %v6493_v18, 4  ;;  %v6501_v54 = vrot.slane %v6500_v47, 4  ;;  %v4979_v46 = vcombine.high %v18147_v34, %v18147_v34 }
 0x3f3   :  { %v8614_v56 = vsel %vm8594_vm9, %v8020_v33, %v8613_v42  ;;  %v6482_v8 = vrot.slane %v6481_v11, 2  ;;  %v6488_v26 = vmax.f32 %v6486_v50, %v6487_v57  ;;  %v4986_v5 = vrot.slane %v18147_v34, %v17935_v23 }
 0x3f4   :  { %v6495_v4 = vmax.f32 %v6493_v18, %v6494_v37  ;;  %v6502_v16 = vmax.f32 %v6500_v47, %v6501_v54  ;;  %v4993_v44 = vrot.slane %v4979_v46, %v17935_v23  ;;  %v18192_v25 = vsel %vm8596_vm10, %v8023_v51, %v8614_v56 }
 0x3f5   :  { %v6483_v9 = vmax.f32 %v6481_v11, %v6482_v8  ;;  %v6489_v22 = vrot.slane %v6488_v26, 2  ;;  %v4994_v0 = vcombine.high %v4986_v5, %v4986_v5  ;;  %v6423_v21 = vsel %vm6170_vm6, %v4986_v5, -inf  ;;  %v18205_v8 = vld [vmem:[%s21290_s4] ss:$0 sm:$0xff] }
 0x3f6   :  { %v6496_v45 = vrot.slane %v6495_v4, 2  ;;  %v6503_v19 = vrot.slane %v6502_v16, 2  ;;  %v4995_v39 = vcombine.high %v4993_v44, %v4993_v44  ;;  %v6424_v32 = vrot.slane %v6423_v21, 4 }
 0x3f7   :  { %v6484_v13 = vrot.slane %v6483_v9, 1  ;;  %v6490_v29 = vmax.f32 %v6488_v26, %v6489_v22  ;;  %v6430_v34 = vsel %vm6170_vm6, %v4994_v0, -inf  ;;  %v6437_v48 = vsel %vm6170_vm6, %v4993_v44, -inf }
 0x3f8   :  { %v6497_v53 = vmax.f32 %v6495_v4, %v6496_v45  ;;  %v6504_v61 = vmax.f32 %v6502_v16, %v6503_v19  ;;  %v6425_v60 = vmax.f32 %v6423_v21, %v6424_v32  ;;  %v6431_v14 = vrot.slane %v6430_v34, 4 }
 0x3f9   :  { %v6485_v62 = vmax.f32 %v6483_v9, %v6484_v13  ;;  %v6491_v41 = vrot.slane %v6490_v29, 1  ;;  %v6438_v7 = vrot.slane %v6437_v48, 4  ;;  %v6444_v49 = vsel %vm6170_vm6, %v4995_v39, -inf }
 0x3fa   :  { %v6498_v20 = vrot.slane %v6497_v53, 1  ;;  %v6505_v38 = vrot.slane %v6504_v61, 1  ;;  %v6426_v2 = vrot.slane %v6425_v60, 2  ;;  %v6432_v33 = vmax.f32 %v6430_v34, %v6431_v14 }
 0x3fb   :  { %v6492_v51 = vmax.f32 %v6490_v29, %v6491_v41  ;;  %v8025_v50 = vsel %vm7963_vm7, %v6485_v62, -inf  ;;  %v6439_v11 = vmax.f32 %v6437_v48, %v6438_v7  ;;  %v6445_v57 = vrot.slane %v6444_v49, 4  ;;  %v18218_v48 = vpop.f32.mrb[25].mxu0 }
 0x3fc   :  { %v6499_v18 = vmax.f32 %v6497_v53, %v6498_v20  ;;  %v6506_v47 = vmax.f32 %v6504_v61, %v6505_v38  ;;  %v6427_v42 = vmax.f32 %v6425_v60, %v6426_v2  ;;  %v6433_v37 = vrot.slane %v6432_v33, 2 }
 0x3fd   :  { %v8028_v54 = vsel %vm7963_vm7, %v6492_v51, -inf  ;;  %v6440_v46 = vrot.slane %v6439_v11, 2  ;;  %v6446_v56 = vmax.f32 %v6444_v49, %v6445_v57  ;;  %v4648_v26 = vadd.f32 %v18205_v8, %v18138_v12 }
 0x3fe   :  { %v8031_v5 = vsel %vm7963_vm7, %v6499_v18, -inf  ;;  %v8034_v4 = vsel %vm7963_vm7, %v6506_v47, -inf  ;;  %v6428_v16 = vrot.slane %v6427_v42, 1  ;;  %v6434_v44 = vmax.f32 %v6432_v33, %v6433_v37 }
 0x3ff   :  { %v6441_v9 = vmax.f32 %v6439_v11, %v6440_v46  ;;  %v6447_v22 = vrot.slane %v6446_v56, 2  ;;  %v4712_v0 = vmax.f32 %v4648_v26, 0.0  ;;  %v14595_v21 = vadd.f32 %v17982_v35, %v17593_v55  ;;  %v18224_v55 = vld [vmem:[%s21289_s3] ss:$0 sm:$0xff] }
 0x400   :  { %v6429_v45 = vmax.f32 %v6427_v42, %v6428_v16  ;;  %v6435_v19 = vrot.slane %v6434_v44, 1  ;;  %v14596_v39 = vadd.f32 %v17986_v36, %v17595_v27  ;;  %v14597_v12 = vadd.f32 %v17990_v59, %v17597_v40 }
 0x401   :  { %v6442_v32 = vrot.slane %v6441_v9, 1  ;;  %v6448_v13 = vmax.f32 %v6446_v56, %v6447_v22  ;;  %v5064_v29 = vcombine.high %v4712_v0, %v4712_v0  ;;  %v5071_v34 = vrot.slane %v4712_v0, %v17935_v23 }
 0x402   :  { %v6436_v53 = vmax.f32 %v6434_v44, %v6435_v19  ;;  %v8024_v61 = vsel %vm7963_vm7, %v6429_v45, -inf  ;;  %v4576_v27 = vmul.f32 %v18224_v55, %v14595_v21  ;;  %v4579_v35 = vmul.f32 %v18224_v55, %v14596_v39 }
 0x403   :  { %v6443_v40 = vmax.f32 %v6441_v9, %v6442_v32  ;;  %v6449_v36 = vrot.slane %v6448_v13, 1  ;;  %v8026_v59 = vmax.f32 %v8024_v61, %v8025_v50  ;;  %v5078_v60 = vrot.slane %v5064_v29, %v17935_v23 }
 0x404   :  { %v8027_v14 = vsel %vm7963_vm7, %v6436_v53, -inf  ;;  %v5079_v62 = vcombine.high %v5071_v34, %v5071_v34  ;;  %v6563_v41 = vsel %vm6170_vm6, %v5071_v34, -inf  ;;  %v4646_v7 = vadd.f32 %v18205_v8, %v4576_v27  ;;  %v18246_v34 = vpop.f32.mrb[26].mxu0 }
 0x405   :  { %v6450_v49 = vmax.f32 %v6448_v13, %v6449_v36  ;;  %v8029_v20 = vmax.f32 %v8027_v14, %v8028_v54  ;;  %v8030_v38 = vsel %vm7963_vm7, %v6443_v40, -inf  ;;  %v8616_v2 = vsel %vm8598_vm11, %v8026_v59, %v18192_v25 }
 0x406   :  { %v8032_v33 = vmax.f32 %v8030_v38, %v8031_v5  ;;  %v5080_v51 = vcombine.high %v5078_v60, %v5078_v60  ;;  %v6564_v11 = vrot.slane %v6563_v41, 4  ;;  %v6570_v50 = vsel %vm6170_vm6, %v5079_v62, -inf }
 0x407   :  { %v8033_v57 = vsel %vm7963_vm7, %v6450_v49, -inf  ;;  %v8617_v18 = vsel %vm8600_vm12, %v8029_v20, %v8616_v2  ;;  %v6571_v47 = vrot.slane %v6570_v50, 4  ;;  %v6577_v42 = vsel %vm6170_vm6, %v5078_v60, -inf }
 0x408   :  { %v8035_v37 = vmax.f32 %v8033_v57, %v8034_v4  ;;  %v8618_v54 = vsel %vm8602_vm13, %v8032_v33, %v8617_v18  ;;  %v6565_v46 = vmax.f32 %v6563_v41, %v6564_v11  ;;  %v6578_v56 = vrot.slane %v6577_v42, 4 }
 0x409   :  { %v6572_v26 = vmax.f32 %v6570_v50, %v6571_v47  ;;  %v6584_v25 = vsel %vm6170_vm6, %v5080_v51, -inf  ;;  %v4710_v5 = vmax.f32 %v4646_v7, 0.0  ;;  %v4649_v16 = vadd.f32 %v18205_v8, %v4579_v35 }
 0x40a   :  { %v8619_v44 = vsel %vm8604_vm14, %v8035_v37, %v8618_v54  ;;  %v6566_v9 = vrot.slane %v6565_v46, 2  ;;  %v6579_v22 = vmax.f32 %v6577_v42, %v6578_v56  ;;  %v6585_v0 = vrot.slane %v6584_v25, 4 }
 0x40b   :  { %8730 = vst.msk [vmem:[#allocation3 + $0x31] sm:$0xff] %vm7963_vm7, %v8619_v44  ;;  %v6573_v21 = vrot.slane %v6572_v26, 2  ;;  %v5030_v45 = vcombine.high %v4710_v5, %v4710_v5  ;;  %v5037_v4 = vrot.slane %v4710_v5, %v17935_v23  ;;  %v4713_v19 = vmax.f32 %v4649_v16, 0.0  ;;  %v18256_v16 = vpop.f32.mrb[27].mxu0 }
 0x40c   :  { %v6567_v39 = vmax.f32 %v6565_v46, %v6566_v9  ;;  %v6580_v32 = vrot.slane %v6579_v22, 2  ;;  %v6586_v13 = vmax.f32 %v6584_v25, %v6585_v0  ;;  %v4577_v29 = vmul.f32 %v18224_v55, %v14597_v12 }
 0x40d   :  { %v6574_v53 = vmax.f32 %v6572_v26, %v6573_v21  ;;  %v5044_v61 = vrot.slane %v5030_v45, %v17935_v23  ;;  %v5045_v27 = vcombine.high %v5037_v4, %v5037_v4  ;;  %v6507_v35 = vsel %vm6170_vm6, %v5037_v4, -inf }
 0x40e   :  { %v6568_v40 = vrot.slane %v6567_v39, 1  ;;  %v6581_v36 = vmax.f32 %v6579_v22, %v6580_v32  ;;  %v6587_v59 = vrot.slane %v6586_v13, 2  ;;  %v6508_v60 = vrot.slane %v6507_v35, 4 }
 0x40f   :  { %v6575_v14 = vrot.slane %v6574_v53, 1  ;;  %v5046_v62 = vcombine.high %v5044_v61, %v5044_v61  ;;  %v6514_v41 = vsel %vm6170_vm6, %v5045_v27, -inf  ;;  %v6521_v7 = vsel %vm6170_vm6, %v5044_v61, -inf }
 0x410   :  { %v6569_v49 = vmax.f32 %v6567_v39, %v6568_v40  ;;  %v6582_v12 = vrot.slane %v6581_v36, 1  ;;  %v6588_v20 = vmax.f32 %v6586_v13, %v6587_v59  ;;  %v6509_v38 = vmax.f32 %v6507_v35, %v6508_v60 }
 0x411   :  { %v6576_v2 = vmax.f32 %v6574_v53, %v6575_v14  ;;  %v6515_v33 = vrot.slane %v6514_v41, 4  ;;  %v6522_v51 = vrot.slane %v6521_v7, 4  ;;  %v6528_v11 = vsel %vm6170_vm6, %v5046_v62, -inf }
 0x412   :  { %v6583_v50 = vmax.f32 %v6581_v36, %v6582_v12  ;;  %v6589_v57 = vrot.slane %v6588_v20, 1  ;;  %v8037_v18 = vsel %vm7963_vm7, %v6569_v49, -inf  ;;  %v6510_v47 = vrot.slane %v6509_v38, 2 }
 0x413   :  { %v8040_v42 = vsel %vm7963_vm7, %v6576_v2, -inf  ;;  %v6516_v37 = vmax.f32 %v6514_v41, %v6515_v33  ;;  %v6523_v54 = vmax.f32 %v6521_v7, %v6522_v51  ;;  %v6529_v46 = vrot.slane %v6528_v11, 4 }
 0x414   :  { %v6590_v56 = vmax.f32 %v6588_v20, %v6589_v57  ;;  %v8043_v26 = vsel %vm7963_vm7, %v6583_v50, -inf  ;;  %v6511_v25 = vmax.f32 %v6509_v38, %v6510_v47  ;;  %v5081_v5 = vcombine.high %v4713_v19, %v4713_v19 }
 0x415   :  { %v6517_v44 = vrot.slane %v6516_v37, 2  ;;  %v6524_v9 = vrot.slane %v6523_v54, 2  ;;  %v6530_v22 = vmax.f32 %v6528_v11, %v6529_v46  ;;  %v5088_v0 = vrot.slane %v4713_v19, %v17935_v23 }
 0x416   :  { %v8046_v21 = vsel %vm7963_vm7, %v6590_v56, -inf  ;;  %v6512_v45 = vrot.slane %v6511_v25, 1  ;;  %v5095_v4 = vrot.slane %v5081_v5, %v17935_v23  ;;  %v4647_v39 = vadd.f32 %v18205_v8, %v4577_v29 }
 0x417   :  { %v6518_v32 = vmax.f32 %v6516_v37, %v6517_v44  ;;  %v6525_v13 = vmax.f32 %v6523_v54, %v6524_v9  ;;  %v6531_v53 = vrot.slane %v6530_v22, 2  ;;  %v5096_v61 = vcombine.high %v5088_v0, %v5088_v0 }
 0x418   :  { %v6513_v27 = vmax.f32 %v6511_v25, %v6512_v45  ;;  %v5097_v35 = vcombine.high %v5095_v4, %v5095_v4  ;;  %v6591_v40 = vsel %vm6170_vm6, %v5088_v0, -inf  ;;  %v6605_v36 = vsel %vm6170_vm6, %v5095_v4, -inf }
 0x419   :  { %v6519_v59 = vrot.slane %v6518_v32, 1  ;;  %v6526_v60 = vrot.slane %v6525_v13, 1  ;;  %v6532_v19 = vmax.f32 %v6530_v22, %v6531_v53  ;;  %v6592_v14 = vrot.slane %v6591_v40, 4 }
 0x41a   :  { %v8036_v62 = vsel %vm7963_vm7, %v6513_v27, -inf  ;;  %v6598_v41 = vsel %vm6170_vm6, %v5096_v61, -inf  ;;  %v6606_v7 = vrot.slane %v6605_v36, 4  ;;  %v6612_v29 = vsel %vm6170_vm6, %v5097_v35, -inf }
 0x41b   :  { %v6520_v49 = vmax.f32 %v6518_v32, %v6519_v59  ;;  %v6527_v12 = vmax.f32 %v6525_v13, %v6526_v60  ;;  %v6533_v20 = vrot.slane %v6532_v19, 1  ;;  %v8038_v38 = vmax.f32 %v8036_v62, %v8037_v18 }
 0x41c   :  { %v6593_v2 = vmax.f32 %v6591_v40, %v6592_v14  ;;  %v6599_v33 = vrot.slane %v6598_v41, 4  ;;  %v6607_v51 = vmax.f32 %v6605_v36, %v6606_v7  ;;  %v6613_v11 = vrot.slane %v6612_v29, 4 }
 0x41d   :  { %v6534_v50 = vmax.f32 %v6532_v19, %v6533_v20  ;;  %v8039_v57 = vsel %vm7963_vm7, %v6520_v49, -inf  ;;  %v8042_v47 = vsel %vm7963_vm7, %v6527_v12, -inf  ;;  %v4711_v37 = vmax.f32 %v4647_v39, 0.0 }
 0x41e   :  { %v8041_v54 = vmax.f32 %v8039_v57, %v8040_v42  ;;  %v8044_v46 = vmax.f32 %v8042_v47, %v8043_v26  ;;  %v6594_v56 = vrot.slane %v6593_v2, 2  ;;  %v6600_v25 = vmax.f32 %v6598_v41, %v6599_v33 }
 0x41f   :  { %v8045_v5 = vsel %vm7963_vm7, %v6534_v50, -inf  ;;  %v6608_v44 = vrot.slane %v6607_v51, 2  ;;  %v6614_v9 = vmax.f32 %v6612_v29, %v6613_v11  ;;  %v5047_v22 = vcombine.high %v4711_v37, %v4711_v37 }
 0x420   :  { %v8047_v18 = vmax.f32 %v8045_v5, %v8046_v21  ;;  %v8620_v0 = vsel %vm8592_vm8, %v8041_v54, %v8038_v38  ;;  %v6595_v45 = vmax.f32 %v6593_v2, %v6594_v56  ;;  %v6601_v4 = vrot.slane %v6600_v25, 2 }
 0x421   :  { %v8621_v32 = vsel %vm8594_vm9, %v8044_v46, %v8620_v0  ;;  %v6609_v13 = vmax.f32 %v6607_v51, %v6608_v44  ;;  %v6615_v53 = vrot.slane %v6614_v9, 2  ;;  %v5054_v39 = vrot.slane %v4711_v37, %v17935_v23 }
 0x422   :  { %v6596_v42 = vrot.slane %v6595_v45, 1  ;;  %v6602_v26 = vmax.f32 %v6600_v25, %v6601_v4  ;;  %v5061_v61 = vrot.slane %v5047_v22, %v17935_v23  ;;  %v18275_v27 = vsel %vm8596_vm10, %v8047_v18, %v8621_v32 }
 0x423   :  { %v6610_v35 = vrot.slane %v6609_v13, 1  ;;  %v6616_v40 = vmax.f32 %v6614_v9, %v6615_v53  ;;  %v5062_v21 = vcombine.high %v5054_v39, %v5054_v39  ;;  %v6535_v36 = vsel %vm6170_vm6, %v5054_v39, -inf }
 0x424   :  { %v6597_v59 = vmax.f32 %v6595_v45, %v6596_v42  ;;  %v6603_v60 = vrot.slane %v6602_v26, 1  ;;  %v5063_v19 = vcombine.high %v5061_v61, %v5061_v61  ;;  %v6536_v14 = vrot.slane %v6535_v36, 4 }
 0x425   :  { %v6611_v62 = vmax.f32 %v6609_v13, %v6610_v35  ;;  %v6617_v41 = vrot.slane %v6616_v40, 1  ;;  %v6542_v7 = vsel %vm6170_vm6, %v5062_v21, -inf  ;;  %v6549_v29 = vsel %vm6170_vm6, %v5061_v61, -inf }
 0x426   :  { %v6604_v49 = vmax.f32 %v6602_v26, %v6603_v60  ;;  %v8049_v12 = vsel %vm7963_vm7, %v6597_v59, -inf  ;;  %v6537_v20 = vmax.f32 %v6535_v36, %v6536_v14  ;;  %v6543_v38 = vrot.slane %v6542_v7, 4 }
 0x427   :  { %v6618_v2 = vmax.f32 %v6616_v40, %v6617_v41  ;;  %v18282_v33 = vsel %vm7963_vm7, %v6611_v62, -inf  ;;  %v6550_v51 = vrot.slane %v6549_v29, 4  ;;  %v6556_v11 = vsel %vm6170_vm6, %v5063_v19, -inf  ;;  %v18305_v40 = vpop.f32.mrb[28].mxu0 }
 0x428   :  { %v8052_v50 = vsel %vm7963_vm7, %v6604_v49, -inf  ;;  %v6538_v57 = vrot.slane %v6537_v20, 2  ;;  %v6544_v47 = vmax.f32 %v6542_v7, %v6543_v38  ;;  %v6557_v37 = vrot.slane %v6556_v11, 4  ;;  %v18310_v19 = vpop.f32.mrb[29].mxu0 }
 0x429   :  { %v8058_v54 = vsel %vm7963_vm7, %v6618_v2, -inf  ;;  %v6551_v46 = vmax.f32 %v6549_v29, %v6550_v51  ;;  %v14598_v56 = vadd.f32 %v18021_v24, %v17603_v17  ;;  %v14599_v25 = vadd.f32 %v18041_v31, %v17605_v52 }
 0x42a   :  { %v6539_v5 = vmax.f32 %v6537_v20, %v6538_v57  ;;  %v6545_v44 = vrot.slane %v6544_v47, 2  ;;  %v6558_v9 = vmax.f32 %v6556_v11, %v6557_v37  ;;  %v14600_v22 = vadd.f32 %v18060_v30, %v17607_v3 }
 0x42b   :  { %v6552_v18 = vrot.slane %v6551_v46, 2  ;;  %v4582_v0 = vmul.f32 %v18224_v55, %v14598_v56  ;;  %v4580_v45 = vmul.f32 %v18224_v55, %v14599_v25  ;;  %v14601_v4 = vadd.f32 %v18075_v58, %v17609_v1 }
 0x42c   :  { %v6540_v32 = vrot.slane %v6539_v5, 1  ;;  %v6546_v13 = vmax.f32 %v6544_v47, %v6545_v44  ;;  %v6559_v17 = vrot.slane %v6558_v9, 2  ;;  %v4583_v24 = vmul.f32 %v18224_v55, %v14600_v22 }
 0x42d   :  { %v6553_v52 = vmax.f32 %v6551_v46, %v6552_v18  ;;  %v4652_v31 = vadd.f32 %v18205_v8, %v4582_v0  ;;  %v4650_v53 = vadd.f32 %v18205_v8, %v4580_v45  ;;  %v4581_v3 = vmul.f32 %v18224_v55, %v14601_v4  ;;  %v18328_v4 = vpop.f32.mrb[30].mxu0 }
 0x42e   :  { %v6541_v30 = vmax.f32 %v6539_v5, %v6540_v32  ;;  %v6547_v39 = vrot.slane %v6546_v13, 1  ;;  %v6560_v42 = vmax.f32 %v6558_v9, %v6559_v17  ;;  %v4653_v26 = vadd.f32 %v18205_v8, %v4583_v24 }
 0x42f   :  { %v6554_v61 = vrot.slane %v6553_v52, 1  ;;  %v4716_v35 = vmax.f32 %v4652_v31, 0.0  ;;  %v4714_v1 = vmax.f32 %v4650_v53, 0.0  ;;  %v18303_v58 = vadd.f32 %v18205_v8, %v4581_v3 }
 0x430   :  { %v6548_v21 = vmax.f32 %v6546_v13, %v6547_v39  ;;  %v6561_v36 = vrot.slane %v6560_v42, 1  ;;  %v8048_v59 = vsel %vm7963_vm7, %v6541_v30, -inf  ;;  %v18308_v60 = vmax.f32 %v4653_v26, 0.0 }
 0x431   :  { %v6555_v14 = vmax.f32 %v6553_v52, %v6554_v61  ;;  %v8050_v62 = vmax.f32 %v8048_v59, %v8049_v12  ;;  %v5132_v41 = vcombine.high %v4716_v35, %v4716_v35  ;;  %v5139_v7 = vrot.slane %v4716_v35, %v17935_v23 }
 0x432   :  { %v6562_v29 = vmax.f32 %v6560_v42, %v6561_v36  ;;  %v8051_v49 = vsel %vm7963_vm7, %v6548_v21, -inf  ;;  %v5098_v20 = vcombine.high %v4714_v1, %v4714_v1  ;;  %v5105_v38 = vrot.slane %v4714_v1, %v17935_v23 }
 0x433   :  { %v8053_v2 = vmax.f32 %v8051_v49, %v8052_v50  ;;  %v8054_v51 = vsel %vm7963_vm7, %v6555_v14, -inf  ;;  %v8623_v11 = vsel %vm8598_vm11, %v8050_v62, %v18275_v27  ;;  %v5146_v57 = vrot.slane %v5132_v41, %v17935_v23 }
 0x434   :  { %v8056_v47 = vmax.f32 %v8054_v51, %v18282_v33  ;;  %v8057_v12 = vsel %vm7963_vm7, %v6562_v29, -inf  ;;  %v5147_v37 = vcombine.high %v5139_v7, %v5139_v7  ;;  %v6675_v46 = vsel %vm6170_vm6, %v5139_v7, -inf }
 0x435   :  { %v8059_v56 = vmax.f32 %v8057_v12, %v8058_v54  ;;  %v8624_v25 = vsel %vm8600_vm12, %v8053_v2, %v8623_v11  ;;  %v5148_v5 = vcombine.high %v5146_v57, %v5146_v57  ;;  %v6676_v44 = vrot.slane %v6675_v46, 4 }
 0x436   :  { %v8625_v50 = vsel %vm8602_vm13, %v8056_v47, %v8624_v25  ;;  %v6682_v9 = vsel %vm6170_vm6, %v5147_v37, -inf  ;;  %v6689_v27 = vsel %vm6170_vm6, %v5146_v57, -inf  ;;  %v5112_v22 = vrot.slane %v5098_v20, %v17935_v23 }
 0x437   :  { %v8626_v33 = vsel %vm8604_vm14, %v8059_v56, %v8625_v50  ;;  %v6677_v18 = vmax.f32 %v6675_v46, %v6676_v44  ;;  %v6683_v0 = vrot.slane %v6682_v9, 4  ;;  %v6690_v45 = vrot.slane %v6689_v27, 4 }
 0x438   :  { %8731 = vst.msk [vmem:[#allocation3 + $0x41] sm:$0xff] %vm7963_vm7, %v8626_v33  ;;  %v6696_v54 = vsel %vm6170_vm6, %v5148_v5, -inf  ;;  %v5113_v32 = vcombine.high %v5105_v38, %v5105_v38  ;;  %v5114_v13 = vcombine.high %v5112_v22, %v5112_v22  ;;  %v6619_v17 = vsel %vm6170_vm6, %v5105_v38, -inf }
 0x439   :  { %v6678_v24 = vrot.slane %v6677_v18, 2  ;;  %v6684_v52 = vmax.f32 %v6682_v9, %v6683_v0  ;;  %v6691_v31 = vmax.f32 %v6689_v27, %v6690_v45  ;;  %v6697_v53 = vrot.slane %v6696_v54, 4 }
 0x43a   :  { %v6620_v3 = vrot.slane %v6619_v17, 4  ;;  %v6626_v30 = vsel %vm6170_vm6, %v5113_v32, -inf  ;;  %v6633_v39 = vsel %vm6170_vm6, %v5112_v22, -inf  ;;  %v6640_v42 = vsel %vm6170_vm6, %v5114_v13, -inf }
 0x43b   :  { %v6679_v26 = vmax.f32 %v6677_v18, %v6678_v24  ;;  %v6685_v61 = vrot.slane %v6684_v52, 2  ;;  %v6692_v35 = vrot.slane %v6691_v31, 2  ;;  %v6698_v1 = vmax.f32 %v6696_v54, %v6697_v53 }
 0x43c   :  { %v6621_v21 = vmax.f32 %v6619_v17, %v6620_v3  ;;  %v6627_v36 = vrot.slane %v6626_v30, 4  ;;  %v6634_v59 = vrot.slane %v6633_v39, 4  ;;  %v6641_v14 = vrot.slane %v6640_v42, 4 }
 0x43d   :  { %v6680_v62 = vrot.slane %v6679_v26, 1  ;;  %v6686_v41 = vmax.f32 %v6684_v52, %v6685_v61  ;;  %v6693_v7 = vmax.f32 %v6691_v31, %v6692_v35  ;;  %v6699_v29 = vrot.slane %v6698_v1, 2  ;;  %v18341_v52 = vpop.f32.mrb[31].mxu0 }
 0x43e   :  { %v6622_v49 = vrot.slane %v6621_v21, 2  ;;  %v6628_v20 = vmax.f32 %v6626_v30, %v6627_v36  ;;  %v6635_v38 = vmax.f32 %v6633_v39, %v6634_v59  ;;  %v6642_v2 = vmax.f32 %v6640_v42, %v6641_v14 }
 0x43f   :  { %v6681_v51 = vmax.f32 %v6679_v26, %v6680_v62  ;;  %v6687_v11 = vrot.slane %v6686_v41, 1  ;;  %v6694_v57 = vrot.slane %v6693_v7, 1  ;;  %v6700_v47 = vmax.f32 %v6698_v1, %v6699_v29 }
 0x440   :  { %v6623_v12 = vmax.f32 %v6621_v21, %v6622_v49  ;;  %v6629_v37 = vrot.slane %v6628_v20, 2  ;;  %v6636_v46 = vrot.slane %v6635_v38, 2  ;;  %v6643_v56 = vrot.slane %v6642_v2, 2 }
 0x441   :  { %v6688_v25 = vmax.f32 %v6686_v41, %v6687_v11  ;;  %v6695_v5 = vmax.f32 %v6693_v7, %v6694_v57  ;;  %v6701_v44 = vrot.slane %v6700_v47, 1  ;;  %v8061_v50 = vsel %vm7963_vm7, %v6681_v51, -inf }
 0x442   :  { %v6624_v9 = vrot.slane %v6623_v12, 1  ;;  %v6630_v27 = vmax.f32 %v6628_v20, %v6629_v37  ;;  %v6637_v22 = vmax.f32 %v6635_v38, %v6636_v46  ;;  %v6644_v33 = vmax.f32 %v6642_v2, %v6643_v56 }
 0x443   :  { %v6702_v18 = vmax.f32 %v6700_v47, %v6701_v44  ;;  %v8064_v0 = vsel %vm7963_vm7, %v6688_v25, -inf  ;;  %v8067_v45 = vsel %vm7963_vm7, %v6695_v5, -inf  ;;  %v5149_v54 = vcombine.high %v18308_v60, %v18308_v60 }
 0x444   :  { %v6625_v32 = vmax.f32 %v6623_v12, %v6624_v9  ;;  %v6631_v13 = vrot.slane %v6630_v27, 1  ;;  %v6638_v17 = vrot.slane %v6637_v22, 1  ;;  %v6645_v24 = vrot.slane %v6644_v33, 1 }
 0x445   :  { %v8070_v31 = vsel %vm7963_vm7, %v6702_v18, -inf  ;;  %v5156_v53 = vrot.slane %v18308_v60, %v17935_v23  ;;  %v5163_v3 = vrot.slane %v5149_v54, %v17935_v23  ;;  %v4715_v30 = vmax.f32 %v18303_v58, 0.0 }
 0x446   :  { %v6632_v39 = vmax.f32 %v6630_v27, %v6631_v13  ;;  %v6639_v42 = vmax.f32 %v6637_v22, %v6638_v17  ;;  %v6646_v26 = vmax.f32 %v6644_v33, %v6645_v24  ;;  %v8060_v61 = vsel %vm7963_vm7, %v6625_v32, -inf }
 0x447   :  { %v8062_v35 = vmax.f32 %v8060_v61, %v8061_v50  ;;  %v5164_v1 = vcombine.high %v5156_v53, %v5156_v53  ;;  %v5165_v21 = vcombine.high %v5163_v3, %v5163_v3  ;;  %v6703_v36 = vsel %vm6170_vm6, %v5156_v53, -inf }
 0x448   :  { %v8063_v59 = vsel %vm7963_vm7, %v6632_v39, -inf  ;;  %v8066_v14 = vsel %vm7963_vm7, %v6639_v42, -inf  ;;  %v8069_v60 = vsel %vm7963_vm7, %v6646_v26, -inf  ;;  %v6704_v62 = vrot.slane %v6703_v36, 4 }
 0x449   :  { %v8065_v41 = vmax.f32 %v8063_v59, %v8064_v0  ;;  %v8068_v7 = vmax.f32 %v8066_v14, %v8067_v45  ;;  %v8071_v58 = vmax.f32 %v8069_v60, %v8070_v31  ;;  %v6710_v29 = vsel %vm6170_vm6, %v5164_v1, -inf }
 0x44a   :  { %v6705_v49 = vmax.f32 %v6703_v36, %v6704_v62  ;;  %v6711_v20 = vrot.slane %v6710_v29, 4  ;;  %v6717_v38 = vsel %vm6170_vm6, %v5163_v3, -inf  ;;  %v6724_v2 = vsel %vm6170_vm6, %v5165_v21, -inf }
 0x44b   :  { %v8627_v51 = vsel %vm8592_vm8, %v8065_v41, %v8062_v35  ;;  %v6718_v11 = vrot.slane %v6717_v38, 4  ;;  %v6725_v57 = vrot.slane %v6724_v2, 4  ;;  %v5115_v47 = vcombine.high %v4715_v30, %v4715_v30 }
 0x44c   :  { %v8628_v12 = vsel %vm8594_vm9, %v8068_v7, %v8627_v51  ;;  %v6706_v37 = vrot.slane %v6705_v49, 2  ;;  %v6712_v46 = vmax.f32 %v6710_v29, %v6711_v20  ;;  %v5122_v56 = vrot.slane %v4715_v30, %v17935_v23 }
 0x44d   :  { %v6719_v25 = vmax.f32 %v6717_v38, %v6718_v11  ;;  %v6726_v5 = vmax.f32 %v6724_v2, %v6725_v57  ;;  %v5129_v44 = vrot.slane %v5115_v47, %v17935_v23  ;;  %v18361_v50 = vsel %vm8596_vm10, %v8071_v58, %v8628_v12 }
 0x44e   :  { %v6707_v9 = vmax.f32 %v6705_v49, %v6706_v37  ;;  %v6713_v27 = vrot.slane %v6712_v46, 2  ;;  %v5130_v22 = vcombine.high %v5122_v56, %v5122_v56  ;;  %v6647_v33 = vsel %vm6170_vm6, %v5122_v56, -inf  ;;  %v21820_v56 = vld [vmem:[#allocation44_spill] sm:$0xff] }
 0x44f   :  { %v6720_v18 = vrot.slane %v6719_v25, 2  ;;  %v6727_v0 = vrot.slane %v6726_v5, 2  ;;  %v5131_v45 = vcombine.high %v5129_v44, %v5129_v44  ;;  %v6648_v54 = vrot.slane %v6647_v33, 4 }
 0x450   :  { %v6708_v32 = vrot.slane %v6707_v9, 1  ;;  %v6714_v13 = vmax.f32 %v6712_v46, %v6713_v27  ;;  %v6654_v17 = vsel %vm6170_vm6, %v5130_v22, -inf  ;;  %v6661_v24 = vsel %vm6170_vm6, %v5129_v44, -inf  ;;  %v21822_v22 = vld [vmem:[#allocation49_spill] sm:$0xff] }
 0x451   :  { %v6721_v31 = vmax.f32 %v6719_v25, %v6720_v18  ;;  %v6728_v53 = vmax.f32 %v6726_v5, %v6727_v0  ;;  %v6649_v3 = vmax.f32 %v6647_v33, %v6648_v54  ;;  %v6655_v30 = vrot.slane %v6654_v17, 4 }
 0x452   :  { %v6709_v39 = vmax.f32 %v6707_v9, %v6708_v32  ;;  %v6715_v42 = vrot.slane %v6714_v13, 1  ;;  %v6662_v26 = vrot.slane %v6661_v24, 4  ;;  %v6668_v61 = vsel %vm6170_vm6, %v5131_v45, -inf  ;;  %v21821_v9 = vld [vmem:[#allocation43_spill] sm:$0xff] }
 0x453   :  { %v6722_v35 = vrot.slane %v6721_v31, 1  ;;  %v6729_v1 = vrot.slane %v6728_v53, 1  ;;  %v6650_v21 = vrot.slane %v6649_v3, 2  ;;  %v6656_v36 = vmax.f32 %v6654_v17, %v6655_v30 }
 0x454   :  { %v6716_v59 = vmax.f32 %v6714_v13, %v6715_v42  ;;  %v8073_v14 = vsel %vm7963_vm7, %v6709_v39, -inf  ;;  %v6663_v60 = vmax.f32 %v6661_v24, %v6662_v26  ;;  %v6669_v62 = vrot.slane %v6668_v61, 4 }
 0x455   :  { %v6723_v41 = vmax.f32 %v6721_v31, %v6722_v35  ;;  %v6730_v7 = vmax.f32 %v6728_v53, %v6729_v1  ;;  %v6651_v58 = vmax.f32 %v6649_v3, %v6650_v21  ;;  %v6657_v29 = vrot.slane %v6656_v36, 2 }
 0x456   :  { %v8076_v49 = vsel %vm7963_vm7, %v6716_v59, -inf  ;;  %v6664_v20 = vrot.slane %v6663_v60, 2  ;;  %v6670_v38 = vmax.f32 %v6668_v61, %v6669_v62  ;;  %v14602_v2 = vadd.f32 %v18102_v6, %v17615_v10 }
 0x457   :  { %v8079_v51 = vsel %vm7963_vm7, %v6723_v41, -inf  ;;  %v8082_v11 = vsel %vm7963_vm7, %v6730_v7, -inf  ;;  %v6652_v57 = vrot.slane %v6651_v58, 1  ;;  %v6658_v47 = vmax.f32 %v6656_v36, %v6657_v29 }
 0x458   :  { %v6665_v12 = vmax.f32 %v6663_v60, %v6664_v20  ;;  %v6671_v37 = vrot.slane %v6670_v38, 2  ;;  %v4586_v46 = vmul.f32 %v18224_v55, %v14602_v2  ;;  %v14603_v25 = vadd.f32 %v18132_v43, %v21820_v56 }
 0x459   :  { %v6653_v5 = vmax.f32 %v6651_v58, %v6652_v57  ;;  %v6659_v44 = vrot.slane %v6658_v47, 1  ;;  %v14604_v27 = vadd.f32 %v18149_v15, %v21821_v9  ;;  %v14605_v10 = vadd.f32 %v18165_v63, %v21822_v22 }
 0x45a   :  { %v6666_v6 = vrot.slane %v6665_v12, 1  ;;  %v6672_v33 = vmax.f32 %v6670_v38, %v6671_v37  ;;  %v4656_v18 = vadd.f32 %v18205_v8, %v4586_v46  ;;  %v4584_v0 = vmul.f32 %v18224_v55, %v14603_v25 }
 0x45b   :  { %v6660_v45 = vmax.f32 %v6658_v47, %v6659_v44  ;;  %v8072_v54 = vsel %vm7963_vm7, %v6653_v5, -inf  ;;  %v4587_v32 = vmul.f32 %v18224_v55, %v14604_v27  ;;  %v4585_v43 = vmul.f32 %v18224_v55, %v14605_v10 }
 0x45c   :  { %v6667_v13 = vmax.f32 %v6665_v12, %v6666_v6  ;;  %v6673_v17 = vrot.slane %v6672_v33, 1  ;;  %v8074_v24 = vmax.f32 %v8072_v54, %v8073_v14  ;;  %v4720_v15 = vmax.f32 %v4656_v18, 0.0 }
 0x45d   :  { %v8075_v31 = vsel %vm7963_vm7, %v6660_v45, -inf  ;;  %v4654_v63 = vadd.f32 %v18205_v8, %v4584_v0  ;;  %v4657_v53 = vadd.f32 %v18205_v8, %v4587_v32  ;;  %v4655_v3 = vadd.f32 %v18205_v8, %v4585_v43 }
 0x45e   :  { %v6674_v30 = vmax.f32 %v6672_v33, %v6673_v17  ;;  %v8077_v39 = vmax.f32 %v8075_v31, %v8076_v49  ;;  %v8078_v42 = vsel %vm7963_vm7, %v6667_v13, -inf  ;;  %v8630_v26 = vsel %vm8598_vm11, %v8074_v24, %v18361_v50 }
 0x45f   :  { %v8080_v61 = vmax.f32 %v8078_v42, %v8079_v51  ;;  %v5200_v35 = vcombine.high %v4720_v15, %v4720_v15  ;;  %v5207_v1 = vrot.slane %v4720_v15, %v17935_v23  ;;  %v4718_v21 = vmax.f32 %v4654_v63, 0.0  ;;  %v18415_v42 = vpop.f32.mrb[32].mxu0 }
 0x460   :  { %v8081_v36 = vsel %vm7963_vm7, %v6674_v30, -inf  ;;  %v8631_v59 = vsel %vm8600_vm12, %v8077_v39, %v8630_v26  ;;  %v18395_v14 = vmax.f32 %v4657_v53, 0.0  ;;  %v18397_v60 = vmax.f32 %v4655_v3, 0.0 }
 0x461   :  { %v8083_v8 = vmax.f32 %v8081_v36, %v8082_v11  ;;  %v8632_v62 = vsel %vm8602_vm13, %v8080_v61, %v8631_v59  ;;  %v5214_v41 = vrot.slane %v5200_v35, %v17935_v23  ;;  %v5215_v7 = vcombine.high %v5207_v1, %v5207_v1 }
 0x462   :  { %v6787_v50 = vsel %vm6170_vm6, %v5207_v1, -inf  ;;  %v5166_v58 = vcombine.high %v4718_v21, %v4718_v21  ;;  %v5173_v29 = vrot.slane %v4718_v21, %v17935_v23  ;;  %v5217_v49 = vcombine.high %v18395_v14, %v18395_v14 }
 0x463   :  { %v8633_v20 = vsel %vm8604_vm14, %v8083_v8, %v8632_v62  ;;  %v5216_v38 = vcombine.high %v5214_v41, %v5214_v41  ;;  %v6788_v2 = vrot.slane %v6787_v50, 4  ;;  %v6794_v51 = vsel %vm6170_vm6, %v5215_v7, -inf }
 0x464   :  { %8732 = vst.msk [vmem:[#allocation3 + $0x51] sm:$0xff] %vm7963_vm7, %v8633_v20  ;;  %v6795_v11 = vrot.slane %v6794_v51, 4  ;;  %v6801_v57 = vsel %vm6170_vm6, %v5214_v41, -inf  ;;  %v5180_v47 = vrot.slane %v5166_v58, %v17935_v23  ;;  %v5181_v12 = vcombine.high %v5173_v29, %v5173_v29 }
 0x465   :  { %v6789_v37 = vmax.f32 %v6787_v50, %v6788_v2  ;;  %v6802_v46 = vrot.slane %v6801_v57, 4  ;;  %v6808_v56 = vsel %vm6170_vm6, %v5216_v38, -inf  ;;  %v6731_v25 = vsel %vm6170_vm6, %v5173_v29, -inf }
 0x466   :  { %v6796_v5 = vmax.f32 %v6794_v51, %v6795_v11  ;;  %v6809_v44 = vrot.slane %v6808_v56, 4  ;;  %v5182_v9 = vcombine.high %v5180_v47, %v5180_v47  ;;  %v6732_v27 = vrot.slane %v6731_v25, 4 }
 0x467   :  { %v6790_v22 = vrot.slane %v6789_v37, 2  ;;  %v6803_v10 = vmax.f32 %v6801_v57, %v6802_v46  ;;  %v6738_v6 = vsel %vm6170_vm6, %v5181_v12, -inf  ;;  %v6745_v33 = vsel %vm6170_vm6, %v5180_v47, -inf }
 0x468   :  { %v6797_v18 = vrot.slane %v6796_v5, 2  ;;  %v6810_v0 = vmax.f32 %v6808_v56, %v6809_v44  ;;  %v6733_v45 = vmax.f32 %v6731_v25, %v6732_v27  ;;  %v6739_v54 = vrot.slane %v6738_v6, 4 }
 0x469   :  { %v6791_v32 = vmax.f32 %v6789_v37, %v6790_v22  ;;  %v6804_v43 = vrot.slane %v6803_v10, 2  ;;  %v6746_v13 = vrot.slane %v6745_v33, 4  ;;  %v6752_v17 = vsel %vm6170_vm6, %v5182_v9, -inf }
 0x46a   :  { %v6798_v24 = vmax.f32 %v6796_v5, %v6797_v18  ;;  %v6811_v15 = vrot.slane %v6810_v0, 2  ;;  %v6734_v31 = vrot.slane %v6733_v45, 2  ;;  %v6740_v63 = vmax.f32 %v6738_v6, %v6739_v54  ;;  %v18428_v6 = vpop.f32.mrb[33].mxu0 }
 0x46b   :  { %v6792_v53 = vrot.slane %v6791_v32, 1  ;;  %v6805_v3 = vmax.f32 %v6803_v10, %v6804_v43  ;;  %v6747_v30 = vmax.f32 %v6745_v33, %v6746_v13  ;;  %v6753_v39 = vrot.slane %v6752_v17, 4  ;;  %v18433_v54 = vpop.f32.mrb[34].mxu0 }
 0x46c   :  { %v6799_v26 = vrot.slane %v6798_v24, 1  ;;  %v6812_v61 = vmax.f32 %v6810_v0, %v6811_v15  ;;  %v6735_v35 = vmax.f32 %v6733_v45, %v6734_v31  ;;  %v6741_v1 = vrot.slane %v6740_v63, 2  ;;  %v18436_v13 = vpop.f32.mrb[35].mxu0 }
 0x46d   :  { %v6793_v21 = vmax.f32 %v6791_v32, %v6792_v53  ;;  %v6806_v36 = vrot.slane %v6805_v3, 1  ;;  %v6748_v59 = vrot.slane %v6747_v30, 2  ;;  %v6754_v8 = vmax.f32 %v6752_v17, %v6753_v39 }
 0x46e   :  { %v6800_v62 = vmax.f32 %v6798_v24, %v6799_v26  ;;  %v6813_v41 = vrot.slane %v6812_v61, 1  ;;  %v6736_v7 = vrot.slane %v6735_v35, 1  ;;  %v6742_v50 = vmax.f32 %v6740_v63, %v6741_v1 }
 0x46f   :  { %v6807_v58 = vmax.f32 %v6805_v3, %v6806_v36  ;;  %v8085_v29 = vsel %vm7963_vm7, %v6793_v21, -inf  ;;  %v6749_v20 = vmax.f32 %v6747_v30, %v6748_v59  ;;  %v6755_v38 = vrot.slane %v6754_v8, 2 }
 0x470   :  { %v6814_v2 = vmax.f32 %v6812_v61, %v6813_v41  ;;  %v8088_v51 = vsel %vm7963_vm7, %v6800_v62, -inf  ;;  %v6737_v11 = vmax.f32 %v6735_v35, %v6736_v7  ;;  %v6743_v57 = vrot.slane %v6742_v50, 1  ;;  %v21823_v7 = vld [vmem:[#allocation10_spill] sm:$0xff] }
 0x471   :  { %v8091_v47 = vsel %vm7963_vm7, %v6807_v58, -inf  ;;  %v6750_v12 = vrot.slane %v6749_v20, 1  ;;  %v6756_v37 = vmax.f32 %v6754_v8, %v6755_v38  ;;  %v5224_v46 = vrot.slane %v18395_v14, %v17935_v23 }
 0x472   :  { %v8094_v56 = vsel %vm7963_vm7, %v6814_v2, -inf  ;;  %v6744_v25 = vmax.f32 %v6742_v50, %v6743_v57  ;;  %v8084_v5 = vsel %vm7963_vm7, %v6737_v11, -inf  ;;  %v5231_v44 = vrot.slane %v5217_v49, %v17935_v23 }
 0x473   :  { %v6751_v9 = vmax.f32 %v6749_v20, %v6750_v12  ;;  %v6757_v27 = vrot.slane %v6756_v37, 1  ;;  %v8086_v22 = vmax.f32 %v8084_v5, %v8085_v29  ;;  %v5232_v10 = vcombine.high %v5224_v46, %v5224_v46 }
 0x474   :  { %v8087_v33 = vsel %vm7963_vm7, %v6744_v25, -inf  ;;  %v5233_v18 = vcombine.high %v5231_v44, %v5231_v44  ;;  %v6815_v0 = vsel %vm6170_vm6, %v5224_v46, -inf  ;;  %v6829_v45 = vsel %vm6170_vm6, %v5231_v44, -inf }
 0x475   :  { %v6758_v32 = vmax.f32 %v6756_v37, %v6757_v27  ;;  %v8089_v43 = vmax.f32 %v8087_v33, %v8088_v51  ;;  %v8090_v14 = vsel %vm7963_vm7, %v6751_v9, -inf  ;;  %v6816_v49 = vrot.slane %v6815_v0, 4 }
 0x476   :  { %v8092_v17 = vmax.f32 %v8090_v14, %v8091_v47  ;;  %v6822_v24 = vsel %vm6170_vm6, %v5232_v10, -inf  ;;  %v6830_v15 = vrot.slane %v6829_v45, 4  ;;  %v6836_v31 = vsel %vm6170_vm6, %v5233_v18, -inf }
 0x477   :  { %v8093_v63 = vsel %vm7963_vm7, %v6758_v32, -inf  ;;  %v8634_v53 = vsel %vm8592_vm8, %v8089_v43, %v8086_v22  ;;  %v6817_v3 = vmax.f32 %v6815_v0, %v6816_v49  ;;  %v6823_v30 = vrot.slane %v6822_v24, 4 }
 0x478   :  { %v8095_v39 = vmax.f32 %v8093_v63, %v8094_v56  ;;  %v8635_v26 = vsel %vm8594_vm9, %v8092_v17, %v8634_v53  ;;  %v6831_v61 = vmax.f32 %v6829_v45, %v6830_v15  ;;  %v6837_v35 = vrot.slane %v6836_v31, 4  ;;  %v18464_v63 = vld [vmem:[%s21290_s4] ss:$0 sm:$0xff] }
 0x479   :  { %v6818_v1 = vrot.slane %v6817_v3, 2  ;;  %v6824_v21 = vmax.f32 %v6822_v24, %v6823_v30  ;;  %v5183_v36 = vcombine.high %v18397_v60, %v18397_v60  ;;  %v5190_v59 = vrot.slane %v18397_v60, %v17935_v23 }
 0x47a   :  { %v6832_v8 = vrot.slane %v6831_v61, 2  ;;  %v6838_v62 = vmax.f32 %v6836_v31, %v6837_v35  ;;  %v18448_v41 = vsel %vm8596_vm10, %v8095_v39, %v8635_v26  ;;  %v14606_v50 = vadd.f32 %v18197_v28, %v21823_v7  ;;  %v21824_v26 = vld [vmem:[#allocation59_spill] sm:$0xff]  ;;  %v18475_v7 = vld [vmem:[%s21289_s3] ss:$0 sm:$0xff] }
 0x47b   :  { %v6819_v58 = vmax.f32 %v6817_v3, %v6818_v1  ;;  %v6825_v29 = vrot.slane %v6824_v21, 2  ;;  %v5197_v20 = vrot.slane %v5183_v36, %v17935_v23  ;;  %v5198_v38 = vcombine.high %v5190_v59, %v5190_v59  ;;  %v21825_v36 = vld [vmem:[#allocation11_spill] sm:$0xff] }
 0x47c   :  { %v6833_v2 = vmax.f32 %v6831_v61, %v6832_v8  ;;  %v6839_v51 = vrot.slane %v6838_v62, 2  ;;  %v6759_v11 = vsel %vm6170_vm6, %v5190_v59, -inf  ;;  %v4590_v57 = vmul.f32 %v18224_v55, %v14606_v50 }
 0x47d   :  { %v6820_v60 = vrot.slane %v6819_v58, 1  ;;  %v6826_v47 = vmax.f32 %v6824_v21, %v6825_v29  ;;  %v5199_v12 = vcombine.high %v5197_v20, %v5197_v20  ;;  %v6760_v37 = vrot.slane %v6759_v11, 4 }
 0x47e   :  { %v6834_v46 = vrot.slane %v6833_v2, 1  ;;  %v6840_v56 = vmax.f32 %v6838_v62, %v6839_v51  ;;  %v6766_v25 = vsel %vm6170_vm6, %v5198_v38, -inf  ;;  %v6773_v28 = vsel %vm6170_vm6, %v5197_v20, -inf }
 0x47f   :  { %v6821_v5 = vmax.f32 %v6819_v58, %v6820_v60  ;;  %v6827_v44 = vrot.slane %v6826_v47, 1  ;;  %v6761_v9 = vmax.f32 %v6759_v11, %v6760_v37  ;;  %v6767_v27 = vrot.slane %v6766_v25, 4  ;;  %v21826_v58 = vld [vmem:[#allocation60_spill] sm:$0xff] }
 0x480   :  { %v6835_v22 = vmax.f32 %v6833_v2, %v6834_v46  ;;  %v6841_v10 = vrot.slane %v6840_v56, 1  ;;  %v6774_v33 = vrot.slane %v6773_v28, 4  ;;  %v6780_v18 = vsel %vm6170_vm6, %v5199_v12, -inf }
 0x481   :  { %v6828_v55 = vmax.f32 %v6826_v47, %v6827_v44  ;;  %v8097_v0 = vsel %vm7963_vm7, %v6821_v5, -inf  ;;  %v6762_v45 = vrot.slane %v6761_v9, 2  ;;  %v6768_v32 = vmax.f32 %v6766_v25, %v6767_v27 }
 0x482   :  { %v6842_v43 = vmax.f32 %v6840_v56, %v6841_v10  ;;  %v8103_v14 = vsel %vm7963_vm7, %v6835_v22, -inf  ;;  %v6775_v49 = vmax.f32 %v6773_v28, %v6774_v33  ;;  %v6781_v17 = vrot.slane %v6780_v18, 4 }
 0x483   :  { %v8100_v24 = vsel %vm7963_vm7, %v6828_v55, -inf  ;;  %v6763_v15 = vmax.f32 %v6761_v9, %v6762_v45  ;;  %v6769_v31 = vrot.slane %v6768_v32, 2  ;;  %v4660_v53 = vadd.f32 %v18464_v63, %v4590_v57 }
 0x484   :  { %v8106_v3 = vsel %vm7963_vm7, %v6842_v43, -inf  ;;  %v6776_v30 = vrot.slane %v6775_v49, 2  ;;  %v6782_v39 = vmax.f32 %v6780_v18, %v6781_v17  ;;  %v14607_v61 = vadd.f32 %v18218_v48, %v21824_v26 }
 0x485   :  { %v6764_v35 = vrot.slane %v6763_v15, 1  ;;  %v6770_v1 = vmax.f32 %v6768_v32, %v6769_v31  ;;  %v4724_v21 = vmax.f32 %v4660_v53, 0.0  ;;  %v14608_v59 = vadd.f32 %v18246_v34, %v21825_v36 }
 0x486   :  { %v6777_v8 = vmax.f32 %v6775_v49, %v6776_v30  ;;  %v6783_v62 = vrot.slane %v6782_v39, 2  ;;  %v4588_v50 = vmul.f32 %v18475_v7, %v14607_v61  ;;  %v14609_v29 = vadd.f32 %v18256_v16, %v21826_v58 }
 0x487   :  { %v6765_v20 = vmax.f32 %v6763_v15, %v6764_v35  ;;  %v6771_v48 = vrot.slane %v6770_v1, 1  ;;  %v5268_v38 = vcombine.high %v4724_v21, %v4724_v21  ;;  %v5275_v2 = vrot.slane %v4724_v21, %v17935_v23  ;;  %v18495_v15 = vpop.f32.mrb[36].mxu0 }
 0x488   :  { %v6778_v51 = vrot.slane %v6777_v8, 1  ;;  %v6784_v11 = vmax.f32 %v6782_v39, %v6783_v62  ;;  %v4658_v34 = vadd.f32 %v18464_v63, %v4588_v50  ;;  %v4591_v57 = vmul.f32 %v18475_v7, %v14608_v59 }
 0x489   :  { %v6772_v60 = vmax.f32 %v6770_v1, %v6771_v48  ;;  %v8096_v47 = vsel %vm7963_vm7, %v6765_v20, -inf  ;;  %v5282_v12 = vrot.slane %v5268_v38, %v17935_v23  ;;  %v5283_v37 = vcombine.high %v5275_v2, %v5275_v2 }
 0x48a   :  { %v6779_v46 = vmax.f32 %v6777_v8, %v6778_v51  ;;  %v6785_v56 = vrot.slane %v6784_v11, 1  ;;  %v8098_v16 = vmax.f32 %v8096_v47, %v8097_v0  ;;  %v6899_v25 = vsel %vm6170_vm6, %v5275_v2, -inf }
 0x48b   :  { %v8099_v28 = vsel %vm7963_vm7, %v6772_v60, -inf  ;;  %v5284_v5 = vcombine.high %v5282_v12, %v5282_v12  ;;  %v6900_v44 = vrot.slane %v6899_v25, 4  ;;  %v6906_v9 = vsel %vm6170_vm6, %v5283_v37, -inf }
 0x48c   :  { %v6786_v27 = vmax.f32 %v6784_v11, %v6785_v56  ;;  %v8101_v22 = vmax.f32 %v8099_v28, %v8100_v24  ;;  %v8102_v10 = vsel %vm7963_vm7, %v6779_v46, -inf  ;;  %v8637_v33 = vsel %vm8598_vm11, %v8098_v16, %v18448_v41  ;;  %v18498_v41 = vpop.f32.mrb[37].mxu0 }
 0x48d   :  { %v8104_v18 = vmax.f32 %v8102_v10, %v8103_v14  ;;  %v6901_v55 = vmax.f32 %v6899_v25, %v6900_v44  ;;  %v6907_v45 = vrot.slane %v6906_v9, 4  ;;  %v6913_v0 = vsel %vm6170_vm6, %v5282_v12, -inf  ;;  %v18508_v38 = vpop.f32.mrb[38].mxu0 }
 0x48e   :  { %v8105_v32 = vsel %vm7963_vm7, %v6786_v27, -inf  ;;  %v8638_v43 = vsel %vm8600_vm12, %v8101_v22, %v8637_v33  ;;  %v6914_v49 = vrot.slane %v6913_v0, 4  ;;  %v6920_v17 = vsel %vm6170_vm6, %v5284_v5, -inf }
 0x48f   :  { %v8107_v24 = vmax.f32 %v8105_v32, %v8106_v3  ;;  %v8639_v31 = vsel %vm8602_vm13, %v8104_v18, %v8638_v43  ;;  %v6902_v53 = vrot.slane %v6901_v55, 2  ;;  %v6908_v30 = vmax.f32 %v6906_v9, %v6907_v45 }
 0x490   :  { %v6915_v14 = vmax.f32 %v6913_v0, %v6914_v49  ;;  %v6921_v39 = vrot.slane %v6920_v17, 4  ;;  %v4722_v26 = vmax.f32 %v4658_v34, 0.0  ;;  %v4661_v61 = vadd.f32 %v18464_v63, %v4591_v57 }
 0x491   :  { %v8640_v35 = vsel %vm8604_vm14, %v8107_v24, %v8639_v31  ;;  %v6903_v1 = vmax.f32 %v6901_v55, %v6902_v53  ;;  %v6909_v21 = vrot.slane %v6908_v30, 2  ;;  %v4589_v36 = vmul.f32 %v18475_v7, %v14609_v29 }
 0x492   :  { %8733 = vst.msk [vmem:[#allocation3 + $0x61] sm:$0xff] %vm7963_vm7, %v8640_v35  ;;  %v6916_v3 = vrot.slane %v6915_v14, 2  ;;  %v6922_v59 = vmax.f32 %v6920_v17, %v6921_v39  ;;  %v5234_v8 = vcombine.high %v4722_v26, %v4722_v26  ;;  %v5241_v62 = vrot.slane %v4722_v26, %v17935_v23 }
 0x493   :  { %v6904_v50 = vrot.slane %v6903_v1, 1  ;;  %v6910_v58 = vmax.f32 %v6908_v30, %v6909_v21  ;;  %v4725_v20 = vmax.f32 %v4661_v61, 0.0  ;;  %v18506_v48 = vadd.f32 %v18464_v63, %v4589_v36 }
 0x494   :  { %v6917_v2 = vmax.f32 %v6915_v14, %v6916_v3  ;;  %v6923_v51 = vrot.slane %v6922_v59, 2  ;;  %v5248_v11 = vrot.slane %v5234_v8, %v17935_v23  ;;  %v5249_v29 = vcombine.high %v5241_v62, %v5241_v62 }
 0x495   :  { %v6905_v34 = vmax.f32 %v6903_v1, %v6904_v50  ;;  %v6911_v57 = vrot.slane %v6910_v58, 1  ;;  %v6843_v60 = vsel %vm6170_vm6, %v5241_v62, -inf  ;;  %v5285_v47 = vcombine.high %v4725_v20, %v4725_v20 }
 0x496   :  { %v6918_v12 = vrot.slane %v6917_v2, 1  ;;  %v6924_v37 = vmax.f32 %v6922_v59, %v6923_v51  ;;  %v5250_v46 = vcombine.high %v5248_v11, %v5248_v11  ;;  %v6844_v56 = vrot.slane %v6843_v60, 4 }
 0x497   :  { %v6912_v16 = vmax.f32 %v6910_v58, %v6911_v57  ;;  %v18513_v25 = vsel %vm7963_vm7, %v6905_v34, -inf  ;;  %v6850_v28 = vsel %vm6170_vm6, %v5249_v29, -inf  ;;  %v6857_v5 = vsel %vm6170_vm6, %v5248_v11, -inf  ;;  %v18527_v29 = vpop.f32.mrb[39].mxu0 }
 0x498   :  { %v6919_v44 = vmax.f32 %v6917_v2, %v6918_v12  ;;  %v6925_v9 = vrot.slane %v6924_v37, 1  ;;  %v6845_v27 = vmax.f32 %v6843_v60, %v6844_v56  ;;  %v6851_v22 = vrot.slane %v6850_v28, 4 }
 0x499   :  { %v8112_v10 = vsel %vm7963_vm7, %v6912_v16, -inf  ;;  %v6858_v33 = vrot.slane %v6857_v5, 4  ;;  %v6864_v18 = vsel %vm6170_vm6, %v5250_v46, -inf  ;;  %v5292_v55 = vrot.slane %v4725_v20, %v17935_v23 }
 0x49a   :  { %v6926_v45 = vmax.f32 %v6924_v37, %v6925_v9  ;;  %v8115_v0 = vsel %vm7963_vm7, %v6919_v44, -inf  ;;  %v6846_v32 = vrot.slane %v6845_v27, 2  ;;  %v6852_v43 = vmax.f32 %v6850_v28, %v6851_v22 }
 0x49b   :  { %v6859_v49 = vmax.f32 %v6857_v5, %v6858_v33  ;;  %v6865_v17 = vrot.slane %v6864_v18, 4  ;;  %v5299_v24 = vrot.slane %v5285_v47, %v17935_v23  ;;  %v5300_v31 = vcombine.high %v5292_v55, %v5292_v55 }
 0x49c   :  { %v8118_v53 = vsel %vm7963_vm7, %v6926_v45, -inf  ;;  %v6847_v30 = vmax.f32 %v6845_v27, %v6846_v32  ;;  %v6853_v14 = vrot.slane %v6852_v43, 2  ;;  %v6927_v39 = vsel %vm6170_vm6, %v5292_v55, -inf }
 0x49d   :  { %v6860_v26 = vrot.slane %v6859_v49, 2  ;;  %v6866_v61 = vmax.f32 %v6864_v18, %v6865_v17  ;;  %v5301_v35 = vcombine.high %v5299_v24, %v5299_v24  ;;  %v6928_v1 = vrot.slane %v6927_v39, 4 }
 0x49e   :  { %v6848_v21 = vrot.slane %v6847_v30, 1  ;;  %v6854_v36 = vmax.f32 %v6852_v43, %v6853_v14  ;;  %v6934_v3 = vsel %vm6170_vm6, %v5300_v31, -inf  ;;  %v6941_v59 = vsel %vm6170_vm6, %v5299_v24, -inf }
 0x49f   :  { %v6861_v8 = vmax.f32 %v6859_v49, %v6860_v26  ;;  %v6867_v62 = vrot.slane %v6866_v61, 2  ;;  %v6929_v50 = vmax.f32 %v6927_v39, %v6928_v1  ;;  %v6935_v58 = vrot.slane %v6934_v3, 4  ;;  %v8748_v39 = vld [vmem:[#allocation3 + $0x20] sm:$0xff] }
 0x4a0   :  { %v6849_v20 = vmax.f32 %v6847_v30, %v6848_v21  ;;  %v6855_v2 = vrot.slane %v6854_v36, 1  ;;  %v6942_v51 = vrot.slane %v6941_v59, 4  ;;  %v6948_v11 = vsel %vm6170_vm6, %v5301_v35, -inf }
 0x4a1   :  { %v6862_v34 = vrot.slane %v6861_v8, 1  ;;  %v6868_v57 = vmax.f32 %v6866_v61, %v6867_v62  ;;  %v6930_v60 = vrot.slane %v6929_v50, 2  ;;  %v6936_v47 = vmax.f32 %v6934_v3, %v6935_v58 }
 0x4a2   :  { %v6856_v12 = vmax.f32 %v6854_v36, %v6855_v2  ;;  %v8108_v37 = vsel %vm7963_vm7, %v6849_v20, -inf  ;;  %v6943_v46 = vmax.f32 %v6941_v59, %v6942_v51  ;;  %v6949_v56 = vrot.slane %v6948_v11, 4  ;;  %v18538_v36 = vld [vmem:[#allocation3 + $0x10] sm:$0xff] }
 0x4a3   :  { %v6863_v16 = vmax.f32 %v6861_v8, %v6862_v34  ;;  %v6869_v28 = vrot.slane %v6868_v57, 1  ;;  %v8110_v5 = vmax.f32 %v8108_v37, %v18513_v25  ;;  %v6931_v44 = vmax.f32 %v6929_v50, %v6930_v60 }
 0x4a4   :  { %v8111_v9 = vsel %vm7963_vm7, %v6856_v12, -inf  ;;  %v6937_v27 = vrot.slane %v6936_v47, 2  ;;  %v6944_v22 = vrot.slane %v6943_v46, 2  ;;  %v6950_v33 = vmax.f32 %v6948_v11, %v6949_v56  ;;  %v21827_v56 = vld [vmem:[#allocation61_spill] sm:$0xff] }
 0x4a5   :  { %v6870_v18 = vmax.f32 %v6868_v57, %v6869_v28  ;;  %v8113_v55 = vmax.f32 %v8111_v9, %v8112_v10  ;;  %v8114_v45 = vsel %vm7963_vm7, %v6863_v16, -inf  ;;  %v6932_v32 = vrot.slane %v6931_v44, 1 }
 0x4a6   :  { %v8116_v43 = vmax.f32 %v8114_v45, %v8115_v0  ;;  %v6938_v49 = vmax.f32 %v6936_v47, %v6937_v27  ;;  %v6945_v17 = vmax.f32 %v6943_v46, %v6944_v22  ;;  %v6951_v24 = vrot.slane %v6950_v33, 2  ;;  %v21829_v27 = vld [vmem:[#allocation62_spill] sm:$0xff] }
 0x4a7   :  { %v8117_v31 = vsel %vm7963_vm7, %v6870_v18, -inf  ;;  %v8641_v30 = vsel %vm8592_vm8, %v8113_v55, %v8110_v5  ;;  %v6933_v25 = vmax.f32 %v6931_v44, %v6932_v32  ;;  %v4723_v14 = vmax.f32 %v18506_v48, 0.0  ;;  %v21828_v44 = vld [vmem:[#allocation9_spill] sm:$0xff] }
 0x4a8   :  { %v8119_v26 = vmax.f32 %v8117_v31, %v8118_v53  ;;  %v8642_v61 = vsel %vm8594_vm9, %v8116_v43, %v8641_v30  ;;  %v6939_v35 = vrot.slane %v6938_v49, 1  ;;  %v6946_v10 = vrot.slane %v6945_v17, 1 }
 0x4a9   :  { %v6952_v1 = vmax.f32 %v6950_v33, %v6951_v24  ;;  %v5251_v21 = vcombine.high %v4723_v14, %v4723_v14  ;;  %v5258_v0 = vrot.slane %v4723_v14, %v17935_v23  ;;  %v15103_v62 = vpack.i.bf16 %v8748_v39, %v18538_v36 }
 0x4aa   :  { %v6940_v3 = vmax.f32 %v6938_v49, %v6939_v35  ;;  %v6947_v59 = vmax.f32 %v6945_v17, %v6946_v10  ;;  %v18541_v8 = vsel %vm8596_vm10, %v8119_v26, %v8642_v61  ;;  %v18547_v20 = vsel %vm7963_vm7, %v6933_v25, -inf  ;;  %v21830_v49 = vld [vmem:[#allocation22_spill] sm:$0xff] }
 0x4ab   :  { %v6953_v48 = vrot.slane %v6952_v1, 1  ;;  %v5265_v53 = vrot.slane %v5251_v21, %v17935_v23  ;;  %v5266_v50 = vcombine.high %v5258_v0, %v5258_v0  ;;  %v6871_v58 = vsel %vm6170_vm6, %v5258_v0, -inf  ;;  %15104 = vrot.lane.b32.xlu0 %v15103_v62, %s15534_s12 }
 0x4ac   :  { %v18550_v2 = vsel %vm7963_vm7, %v6940_v3, -inf  ;;  %v18553_v51 = vsel %vm7963_vm7, %v6947_v59, -inf  ;;  %v6872_v11 = vrot.slane %v6871_v58, 4  ;;  %v14610_v16 = vadd.f32 %v18305_v40, %v21827_v56 }
 0x4ad   :  { %v6954_v34 = vmax.f32 %v6952_v1, %v6953_v48  ;;  %v5267_v57 = vcombine.high %v5265_v53, %v5265_v53  ;;  %v6878_v60 = vsel %vm6170_vm6, %v5266_v50, -inf  ;;  %v6885_v47 = vsel %vm6170_vm6, %v5265_v53, -inf }
 0x4ae   :  { %v6873_v12 = vmax.f32 %v6871_v58, %v6872_v11  ;;  %v6879_v37 = vrot.slane %v6878_v60, 4  ;;  %v6886_v46 = vrot.slane %v6885_v47, 4  ;;  %v14611_v9 = vadd.f32 %v18310_v19, %v21828_v44 }
 0x4af   :  { %v18561_v28 = vsel %vm7963_vm7, %v6954_v34, -inf  ;;  %v6892_v5 = vsel %vm6170_vm6, %v5267_v57, -inf  ;;  %v14612_v22 = vadd.f32 %v18328_v4, %v21829_v27  ;;  %v4594_v32 = vmul.f32 %v18475_v7, %v14610_v16 }
 0x4b0   :  { %v6874_v33 = vrot.slane %v6873_v12, 2  ;;  %v6880_v18 = vmax.f32 %v6878_v60, %v6879_v37  ;;  %v6887_v55 = vmax.f32 %v6885_v47, %v6886_v46  ;;  %v6893_v45 = vrot.slane %v6892_v5, 4 }
 0x4b1   :  { %v4592_v43 = vmul.f32 %v18475_v7, %v14611_v9  ;;  %v4595_v40 = vmul.f32 %v18475_v7, %v14612_v22  ;;  %v14613_v17 = vadd.f32 %v18341_v52, %v21830_v49  ;;  %v4664_v25 = vadd.f32 %v18464_v63, %v4594_v32 }
 0x4b2   :  { %v6875_v24 = vmax.f32 %v6873_v12, %v6874_v33  ;;  %v6881_v31 = vrot.slane %v6880_v18, 2  ;;  %v6888_v30 = vrot.slane %v6887_v55, 2  ;;  %v6894_v19 = vmax.f32 %v6892_v5, %v6893_v45 }
 0x4b3   :  { %v4662_v4 = vadd.f32 %v18464_v63, %v4592_v43  ;;  %v4665_v14 = vadd.f32 %v18464_v63, %v4595_v40  ;;  %v4593_v39 = vmul.f32 %v18475_v7, %v14613_v17  ;;  %v4728_v1 = vmax.f32 %v4664_v25, 0.0 }
 0x4b4   :  { %v6876_v26 = vrot.slane %v6875_v24, 1  ;;  %v6882_v61 = vmax.f32 %v6880_v18, %v6881_v31  ;;  %v6889_v35 = vmax.f32 %v6887_v55, %v6888_v30  ;;  %v6895_v10 = vrot.slane %v6894_v19, 2 }
 0x4b5   :  { %v4726_v21 = vmax.f32 %v4662_v4, 0.0  ;;  %v18577_v0 = vmax.f32 %v4665_v14, 0.0  ;;  %v18580_v52 = vadd.f32 %v18464_v63, %v4593_v39  ;;  %v5336_v53 = vcombine.high %v4728_v1, %v4728_v1 }
 0x4b6   :  { %v6877_v3 = vmax.f32 %v6875_v24, %v6876_v26  ;;  %v6883_v59 = vrot.slane %v6882_v61, 1  ;;  %v6890_v62 = vrot.slane %v6889_v35, 1  ;;  %v6896_v48 = vmax.f32 %v6894_v19, %v6895_v10 }
 0x4b7   :  { %v5343_v50 = vrot.slane %v4728_v1, %v17935_v23  ;;  %v5302_v58 = vcombine.high %v4726_v21, %v4726_v21  ;;  %v5309_v11 = vrot.slane %v4726_v21, %v17935_v23  ;;  %v5350_v37 = vrot.slane %v5336_v53, %v17935_v23 }
 0x4b8   :  { %v6884_v34 = vmax.f32 %v6882_v61, %v6883_v59  ;;  %v6891_v57 = vmax.f32 %v6889_v35, %v6890_v62  ;;  %v6897_v60 = vrot.slane %v6896_v48, 1  ;;  %v8120_v47 = vsel %vm7963_vm7, %v6877_v3, -inf }
 0x4b9   :  { %v8122_v12 = vmax.f32 %v8120_v47, %v18547_v20  ;;  %v5351_v46 = vcombine.high %v5343_v50, %v5343_v50  ;;  %v7011_v56 = vsel %vm6170_vm6, %v5343_v50, -inf  ;;  %v5352_v18 = vcombine.high %v5350_v37, %v5350_v37 }
 0x4ba   :  { %v6898_v16 = vmax.f32 %v6896_v48, %v6897_v60  ;;  %v8123_v5 = vsel %vm7963_vm7, %v6884_v34, -inf  ;;  %v8126_v44 = vsel %vm7963_vm7, %v6891_v57, -inf  ;;  %v7012_v9 = vrot.slane %v7011_v56, 4 }
 0x4bb   :  { %v8125_v27 = vmax.f32 %v8123_v5, %v18550_v2  ;;  %v8128_v22 = vmax.f32 %v8126_v44, %v18553_v51  ;;  %v8644_v33 = vsel %vm8598_vm11, %v8122_v12, %v18541_v8  ;;  %v7018_v45 = vsel %vm6170_vm6, %v5351_v46, -inf }
 0x4bc   :  { %v8129_v20 = vsel %vm7963_vm7, %v6898_v16, -inf  ;;  %v7013_v55 = vmax.f32 %v7011_v56, %v7012_v9  ;;  %v7025_v32 = vsel %vm6170_vm6, %v5350_v37, -inf  ;;  %v7019_v49 = vrot.slane %v7018_v45, 4 }
 0x4bd   :  { %v8131_v43 = vmax.f32 %v8129_v20, %v18561_v28  ;;  %v8645_v40 = vsel %vm8600_vm12, %v8125_v27, %v8644_v33  ;;  %v7026_v17 = vrot.slane %v7025_v32, 4  ;;  %v7032_v24 = vsel %vm6170_vm6, %v5352_v18, -inf }
 0x4be   :  { %v8646_v2 = vsel %vm8602_vm13, %v8128_v22, %v8645_v40  ;;  %v7014_v51 = vrot.slane %v7013_v55, 2  ;;  %v5316_v8 = vrot.slane %v5302_v58, %v17935_v23  ;;  %v7020_v30 = vmax.f32 %v7018_v45, %v7019_v49  ;;  %v18613_v49 = vpop.f32.mrb[40].mxu0 }
 0x4bf   :  { %v8647_v31 = vsel %vm8604_vm14, %v8131_v43, %v8646_v2  ;;  %v7027_v19 = vmax.f32 %v7025_v32, %v7026_v17  ;;  %v7033_v25 = vrot.slane %v7032_v24, 4  ;;  %v5317_v28 = vcombine.high %v5309_v11, %v5309_v11 }
 0x4c0   :  { %8734 = vst.msk [vmem:[#allocation3 + $0x71] sm:$0xff] %vm7963_vm7, %v8647_v31  ;;  %v7015_v4 = vmax.f32 %v7013_v55, %v7014_v51  ;;  %v5318_v14 = vcombine.high %v5316_v8, %v5316_v8  ;;  %v6955_v39 = vsel %vm6170_vm6, %v5309_v11, -inf  ;;  %v7021_v26 = vrot.slane %v7020_v30, 2 }
 0x4c1   :  { %v7028_v61 = vrot.slane %v7027_v19, 2  ;;  %v7034_v35 = vmax.f32 %v7032_v24, %v7033_v25  ;;  %v6956_v10 = vrot.slane %v6955_v39, 4  ;;  %v6962_v21 = vsel %vm6170_vm6, %v5317_v28, -inf }
 0x4c2   :  { %v7016_v1 = vrot.slane %v7015_v4, 1  ;;  %v6969_v3 = vsel %vm6170_vm6, %v5316_v8, -inf  ;;  %v6976_v59 = vsel %vm6170_vm6, %v5318_v14, -inf  ;;  %v7022_v62 = vmax.f32 %v7020_v30, %v7021_v26 }
 0x4c3   :  { %v7029_v48 = vmax.f32 %v7027_v19, %v7028_v61  ;;  %v7035_v53 = vrot.slane %v7034_v35, 2  ;;  %v6957_v50 = vmax.f32 %v6955_v39, %v6956_v10  ;;  %v6963_v34 = vrot.slane %v6962_v21, 4 }
 0x4c4   :  { %v7017_v58 = vmax.f32 %v7015_v4, %v7016_v1  ;;  %v6970_v57 = vrot.slane %v6969_v3, 4  ;;  %v6977_v60 = vrot.slane %v6976_v59, 4  ;;  %v7023_v11 = vrot.slane %v7022_v62, 1 }
 0x4c5   :  { %v7030_v47 = vrot.slane %v7029_v48, 1  ;;  %v7036_v12 = vmax.f32 %v7034_v35, %v7035_v53  ;;  %v6958_v37 = vrot.slane %v6957_v50, 2  ;;  %v6964_v56 = vmax.f32 %v6962_v21, %v6963_v34 }
 0x4c6   :  { %v8133_v46 = vsel %vm7963_vm7, %v7017_v58, -inf  ;;  %v6971_v16 = vmax.f32 %v6969_v3, %v6970_v57  ;;  %v6978_v5 = vmax.f32 %v6976_v59, %v6977_v60  ;;  %v7024_v44 = vmax.f32 %v7022_v62, %v7023_v11  ;;  %v18625_v3 = vpop.f32.mrb[41].mxu0 }
 0x4c7   :  { %v7031_v9 = vmax.f32 %v7029_v48, %v7030_v47  ;;  %v7037_v27 = vrot.slane %v7036_v12, 1  ;;  %v6959_v22 = vmax.f32 %v6957_v50, %v6958_v37  ;;  %v6965_v33 = vrot.slane %v6964_v56, 2  ;;  %v18629_v53 = vpop.f32.mrb[42].mxu0 }
 0x4c8   :  { %v6972_v18 = vrot.slane %v6971_v16, 2  ;;  %v6979_v20 = vrot.slane %v6978_v5, 2  ;;  %v5353_v55 = vcombine.high %v18577_v0, %v18577_v0  ;;  %v8136_v32 = vsel %vm7963_vm7, %v7024_v44, -inf }
 0x4c9   :  { %v7038_v45 = vmax.f32 %v7036_v12, %v7037_v27  ;;  %v8139_v43 = vsel %vm7963_vm7, %v7031_v9, -inf  ;;  %v6960_v40 = vrot.slane %v6959_v22, 1  ;;  %v6966_v17 = vmax.f32 %v6964_v56, %v6965_v33 }
 0x4ca   :  { %v6973_v2 = vmax.f32 %v6971_v16, %v6972_v18  ;;  %v6980_v51 = vmax.f32 %v6978_v5, %v6979_v20  ;;  %v5360_v24 = vrot.slane %v18577_v0, %v17935_v23  ;;  %v5367_v30 = vrot.slane %v5353_v55, %v17935_v23 }
 0x4cb   :  { %v18618_v8 = vsel %vm7963_vm7, %v7038_v45, -inf  ;;  %v6961_v31 = vmax.f32 %v6959_v22, %v6960_v40  ;;  %v4727_v19 = vmax.f32 %v18580_v52, 0.0  ;;  %v6967_v25 = vrot.slane %v6966_v17, 1 }
 0x4cc   :  { %v6974_v4 = vrot.slane %v6973_v2, 1  ;;  %v6981_v28 = vrot.slane %v6980_v51, 1  ;;  %v5368_v14 = vcombine.high %v5360_v24, %v5360_v24  ;;  %v5369_v26 = vcombine.high %v5367_v30, %v5367_v30 }
 0x4cd   :  { %v8132_v39 = vsel %vm7963_vm7, %v6961_v31, -inf  ;;  %v7039_v61 = vsel %vm6170_vm6, %v5360_v24, -inf  ;;  %v7053_v35 = vsel %vm6170_vm6, %v5367_v30, -inf  ;;  %v6968_v0 = vmax.f32 %v6966_v17, %v6967_v25 }
 0x4ce   :  { %v6975_v10 = vmax.f32 %v6973_v2, %v6974_v4  ;;  %v6982_v1 = vmax.f32 %v6980_v51, %v6981_v28  ;;  %v8134_v21 = vmax.f32 %v8132_v39, %v8133_v46  ;;  %v7040_v59 = vrot.slane %v7039_v61, 4  ;;  %v8744_v28 = vld [vmem:[#allocation3] sm:$0xff] }
 0x4cf   :  { %v7046_v52 = vsel %vm6170_vm6, %v5368_v14, -inf  ;;  %v7054_v62 = vrot.slane %v7053_v35, 4  ;;  %v7060_v48 = vsel %vm6170_vm6, %v5369_v26, -inf  ;;  %v8135_v50 = vsel %vm7963_vm7, %v6968_v0, -inf }
 0x4d0   :  { %v8138_v58 = vsel %vm7963_vm7, %v6975_v10, -inf  ;;  %v8141_v34 = vsel %vm7963_vm7, %v6982_v1, -inf  ;;  %v7047_v57 = vrot.slane %v7046_v52, 4  ;;  %v8137_v60 = vmax.f32 %v8135_v50, %v8136_v32 }
 0x4d1   :  { %v8140_v11 = vmax.f32 %v8138_v58, %v8139_v43  ;;  %v8143_v47 = vmax.f32 %v8141_v34, %v18618_v8  ;;  %v7041_v12 = vmax.f32 %v7039_v61, %v7040_v59  ;;  %v7055_v46 = vmax.f32 %v7053_v35, %v7054_v62  ;;  %v8745_v62 = vld [vmem:[#allocation3 + $0x8] sm:$0x3] }
 0x4d2   :  { %v7048_v37 = vmax.f32 %v7046_v52, %v7047_v57  ;;  %v7061_v56 = vrot.slane %v7060_v48, 4  ;;  %v5319_v16 = vcombine.high %v4727_v19, %v4727_v19  ;;  %v8648_v5 = vsel %vm8592_vm8, %v8137_v60, %v8134_v21  ;;  %v8747_v60 = vld [vmem:[#allocation3 + $0x18] sm:$0x3] }
 0x4d3   :  { %v7042_v44 = vrot.slane %v7041_v12, 2  ;;  %v5326_v9 = vrot.slane %v4727_v19, %v17935_v23  ;;  %v8649_v27 = vsel %vm8594_vm9, %v8140_v11, %v8648_v5  ;;  %v7056_v33 = vrot.slane %v7055_v46, 2 }
 0x4d4   :  { %v7049_v22 = vrot.slane %v7048_v37, 2  ;;  %v7062_v18 = vmax.f32 %v7060_v48, %v7061_v56  ;;  %v5333_v55 = vrot.slane %v5319_v16, %v17935_v23  ;;  %v8816_v48 = vrot.slane %v8744_v28, 1  ;;  %v21833_v28 = vld [vmem:[#allocation37_spill] sm:$0xff] }
 0x4d5   :  { %v7043_v20 = vmax.f32 %v7041_v12, %v7042_v44  ;;  %v5334_v45 = vcombine.high %v5326_v9, %v5326_v9  ;;  %v6983_v32 = vsel %vm6170_vm6, %v5326_v9, -inf  ;;  %v7057_v40 = vmax.f32 %v7055_v46, %v7056_v33 }
 0x4d6   :  { %v7050_v43 = vmax.f32 %v7048_v37, %v7049_v22  ;;  %v7063_v17 = vrot.slane %v7062_v18, 2  ;;  %v6984_v2 = vrot.slane %v6983_v32, 4  ;;  %v5335_v24 = vcombine.high %v5333_v55, %v5333_v55 }
 0x4d7   :  { %v7044_v51 = vrot.slane %v7043_v20, 1  ;;  %v6990_v8 = vsel %vm6170_vm6, %v5334_v45, -inf  ;;  %v6997_v31 = vsel %vm6170_vm6, %v5333_v55, -inf  ;;  %v7058_v19 = vrot.slane %v7057_v40, 1 }
 0x4d8   :  { %v7051_v30 = vrot.slane %v7050_v43, 1  ;;  %v7064_v25 = vmax.f32 %v7062_v18, %v7063_v17  ;;  %v6985_v4 = vmax.f32 %v6983_v32, %v6984_v2  ;;  %v6991_v39 = vrot.slane %v6990_v8, 4  ;;  %v21831_v32 = vld [vmem:[#allocation29_spill] sm:$0xff] }
 0x4d9   :  { %v7045_v14 = vmax.f32 %v7043_v20, %v7044_v51  ;;  %v6998_v26 = vrot.slane %v6997_v31, 4  ;;  %v7004_v61 = vsel %vm6170_vm6, %v5335_v24, -inf  ;;  %v7059_v0 = vmax.f32 %v7057_v40, %v7058_v19  ;;  %v21832_v24 = vld [vmem:[#allocation31_spill] sm:$0xff] }
 0x4da   :  { %v7052_v35 = vmax.f32 %v7050_v43, %v7051_v30  ;;  %v7065_v10 = vrot.slane %v7064_v25, 1  ;;  %v6986_v1 = vrot.slane %v6985_v4, 2  ;;  %v6992_v21 = vmax.f32 %v6990_v8, %v6991_v39  ;;  %v21834_v39 = vld [vmem:[#allocation39_spill] sm:$0xff] }
 0x4db   :  { %v6999_v59 = vmax.f32 %v6997_v31, %v6998_v26  ;;  %v7005_v52 = vrot.slane %v7004_v61, 4  ;;  %v8145_v58 = vsel %vm7963_vm7, %v7045_v14, -inf  ;;  %v8650_v46 = vsel %vm8596_vm10, %v8143_v47, %v8649_v27 }
 0x4dc   :  { %v7066_v50 = vmax.f32 %v7064_v25, %v7065_v10  ;;  %v8148_v34 = vsel %vm7963_vm7, %v7052_v35, -inf  ;;  %v6987_v57 = vmax.f32 %v6985_v4, %v6986_v1  ;;  %v6993_v11 = vrot.slane %v6992_v21, 2 }
 0x4dd   :  { %v7000_v12 = vrot.slane %v6999_v59, 2  ;;  %v7006_v37 = vmax.f32 %v7004_v61, %v7005_v52  ;;  %v8151_v56 = vsel %vm7963_vm7, %v7059_v0, -inf  ;;  %v8817_v5 = vrot.slane %v8745_v62, 1 }
 0x4de   :  { %v6988_v16 = vrot.slane %v6987_v57, 1  ;;  %v8819_v44 = vrot.slane %v18538_v36, 1  ;;  %v6994_v9 = vmax.f32 %v6992_v21, %v6993_v11  ;;  %v8820_v18 = vrot.slane %v8747_v60, 1 }
 0x4df   :  { %v7001_v22 = vmax.f32 %v6999_v59, %v7000_v12  ;;  %v7007_v33 = vrot.slane %v7006_v37, 2  ;;  %v8154_v20 = vsel %vm7963_vm7, %v7066_v50, -inf  ;;  %v8818_v45 = vsel %vm483_vm5, %v8816_v48, %v8817_v5 }
 0x4e0   :  { %v6989_v55 = vmax.f32 %v6987_v57, %v6988_v16  ;;  %v14614_v43 = vadd.f32 %v18415_v42, %v21831_v32  ;;  %v6995_v40 = vrot.slane %v6994_v9, 1  ;;  %v18653_v17 = vsel %vm483_vm5, %v8819_v44, %v8820_v18  ;;  %v18676_v57 = vpop.f32.mrb[43].mxu0 }
 0x4e1   :  { %v7002_v47 = vrot.slane %v7001_v22, 1  ;;  %v7008_v27 = vmax.f32 %v7006_v37, %v7007_v33  ;;  %v15108_v2 = vpack.i.bf16 %v18653_v17, %v8818_v45  ;;  %v14615_v8 = vadd.f32 %v18428_v6, %v21832_v24 }
 0x4e2   :  { %v8144_v36 = vsel %vm7963_vm7, %v6989_v55, -inf  ;;  %v4598_v51 = vmul.f32 %v18475_v7, %v14614_v43  ;;  %v6996_v31 = vmax.f32 %v6994_v9, %v6995_v40  ;;  %v14616_v14 = vadd.f32 %v18433_v54, %v21833_v28  ;;  %v18693_v43 = vpop.f32.mrb[44].mxu0 }
 0x4e3   :  { %v7003_v30 = vmax.f32 %v7001_v22, %v7002_v47  ;;  %v7009_v19 = vrot.slane %v7008_v27, 1  ;;  %v8146_v25 = vmax.f32 %v8144_v36, %v8145_v58  ;;  %15109 = vrot.lane.b32.xlu0 %v15108_v2, %s15534_s12  ;;  %v4596_v4 = vmul.f32 %v18475_v7, %v14615_v8  ;;  %v18699_v2 = vpop.f32.mrb[45].mxu0 }
 0x4e4   :  { %v4668_v42 = vadd.f32 %v18464_v63, %v4598_v51  ;;  %v14617_v26 = vadd.f32 %v18436_v13, %v21834_v39  ;;  %v8147_v35 = vsel %vm7963_vm7, %v6996_v31, -inf  ;;  %v4599_v62 = vmul.f32 %v18475_v7, %v14616_v14 }
 0x4e5   :  { %v7010_v61 = vmax.f32 %v7008_v27, %v7009_v19  ;;  %v8150_v6 = vsel %vm7963_vm7, %v7003_v30, -inf  ;;  %v8651_v0 = vsel %vm8598_vm11, %v8146_v25, %v8650_v46  ;;  %v8149_v10 = vmax.f32 %v8147_v35, %v8148_v34 }
 0x4e6   :  { %v8152_v1 = vmax.f32 %v8150_v6, %v8151_v56  ;;  %v4732_v21 = vmax.f32 %v4668_v42, 0.0  ;;  %v4666_v59 = vadd.f32 %v18464_v63, %v4596_v4  ;;  %v4597_v54 = vmul.f32 %v18475_v7, %v14617_v26 }
 0x4e7   :  { %v8153_v52 = vsel %vm7963_vm7, %v7010_v61, -inf  ;;  %v8652_v13 = vsel %vm8600_vm12, %v8149_v10, %v8651_v0  ;;  %v4669_v11 = vadd.f32 %v18464_v63, %v4599_v62 }
 0x4e8   :  { %v8155_v48 = vmax.f32 %v8153_v52, %v8154_v20  ;;  %v5404_v50 = vcombine.high %v4732_v21, %v4732_v21  ;;  %v5411_v58 = vrot.slane %v4732_v21, %v17935_v23  ;;  %v8653_v34 = vsel %vm8602_vm13, %v8152_v1, %v8652_v13 }
 0x4e9   :  { %v4730_v60 = vmax.f32 %v4666_v59, 0.0  ;;  %v4667_v12 = vadd.f32 %v18464_v63, %v4597_v54  ;;  %v18686_v9 = vmax.f32 %v4669_v11, 0.0  ;;  %v18704_v59 = vpop.f32.mrb[46].mxu0 }
 0x4ea   :  { %v8654_v37 = vsel %vm8604_vm14, %v8155_v48, %v8653_v34  ;;  %v5418_v46 = vrot.slane %v5404_v50, %v17935_v23  ;;  %v5419_v7 = vcombine.high %v5411_v58, %v5411_v58  ;;  %v7123_v56 = vsel %vm6170_vm6, %v5411_v58, -inf }
 0x4eb   :  { %8735 = vst.msk [vmem:[#allocation3 + $0x81] sm:$0xff] %vm7963_vm7, %v8654_v37  ;;  %v7124_v16 = vrot.slane %v7123_v56, 4  ;;  %v5370_v5 = vcombine.high %v4730_v60, %v4730_v60  ;;  %v5377_v44 = vrot.slane %v4730_v60, %v17935_v23  ;;  %v18690_v18 = vmax.f32 %v4667_v12, 0.0 }
 0x4ec   :  { %v5420_v22 = vcombine.high %v5418_v46, %v5418_v46  ;;  %v7130_v33 = vsel %vm6170_vm6, %v5419_v7, -inf  ;;  %v7137_v63 = vsel %vm6170_vm6, %v5418_v46, -inf  ;;  %v5421_v36 = vcombine.high %v18686_v9, %v18686_v9 }
 0x4ed   :  { %v7125_v20 = vmax.f32 %v7123_v56, %v7124_v16  ;;  %v7131_v55 = vrot.slane %v7130_v33, 4  ;;  %v7138_v45 = vrot.slane %v7137_v63, 4  ;;  %v5384_v32 = vrot.slane %v5370_v5, %v17935_v23 }
 0x4ee   :  { %v7144_v40 = vsel %vm6170_vm6, %v5420_v22, -inf  ;;  %v5385_v47 = vcombine.high %v5377_v44, %v5377_v44  ;;  %v7067_v27 = vsel %vm6170_vm6, %v5377_v44, -inf }
 0x4ef   :  { %v7126_v51 = vrot.slane %v7125_v20, 2  ;;  %v7132_v24 = vmax.f32 %v7130_v33, %v7131_v55  ;;  %v7139_v8 = vmax.f32 %v7137_v63, %v7138_v45  ;;  %v7145_v31 = vrot.slane %v7144_v40, 4 }
 0x4f0   :  { %v5386_v30 = vcombine.high %v5384_v32, %v5384_v32  ;;  %v7068_v19 = vrot.slane %v7067_v27, 4  ;;  %v7074_v25 = vsel %vm6170_vm6, %v5385_v47, -inf  ;;  %v7081_v42 = vsel %vm6170_vm6, %v5384_v32, -inf }
 0x4f1   :  { %v7127_v4 = vmax.f32 %v7125_v20, %v7126_v51  ;;  %v7133_v28 = vrot.slane %v7132_v24, 2  ;;  %v7140_v14 = vrot.slane %v7139_v8, 2  ;;  %v7146_v39 = vmax.f32 %v7144_v40, %v7145_v31  ;;  %v18711_v51 = vpop.f32.mrb[47].mxu0 }
 0x4f2   :  { %v7069_v26 = vmax.f32 %v7067_v27, %v7068_v19  ;;  %v7075_v61 = vrot.slane %v7074_v25, 4  ;;  %v7082_v35 = vrot.slane %v7081_v42, 4  ;;  %v7088_v6 = vsel %vm6170_vm6, %v5386_v30, -inf }
 0x4f3   :  { %v7128_v0 = vrot.slane %v7127_v4, 1  ;;  %v7134_v10 = vmax.f32 %v7132_v24, %v7133_v28  ;;  %v7141_v1 = vmax.f32 %v7139_v8, %v7140_v14  ;;  %v7147_v21 = vrot.slane %v7146_v39, 2 }
 0x4f4   :  { %v7070_v52 = vrot.slane %v7069_v26, 2  ;;  %v7076_v62 = vmax.f32 %v7074_v25, %v7075_v61  ;;  %v7083_v54 = vmax.f32 %v7081_v42, %v7082_v35  ;;  %v7089_v48 = vrot.slane %v7088_v6, 4 }
 0x4f5   :  { %v7129_v13 = vmax.f32 %v7127_v4, %v7128_v0  ;;  %v7135_v50 = vrot.slane %v7134_v10, 1  ;;  %v7142_v58 = vrot.slane %v7141_v1, 1  ;;  %v7148_v34 = vmax.f32 %v7146_v39, %v7147_v21 }
 0x4f6   :  { %v7071_v60 = vmax.f32 %v7069_v26, %v7070_v52  ;;  %v7077_v11 = vrot.slane %v7076_v62, 2  ;;  %v7084_v12 = vrot.slane %v7083_v54, 2  ;;  %v7090_v37 = vmax.f32 %v7088_v6, %v7089_v48 }
 0x4f7   :  { %v7136_v46 = vmax.f32 %v7134_v10, %v7135_v50  ;;  %v7143_v7 = vmax.f32 %v7141_v1, %v7142_v58  ;;  %v7149_v56 = vrot.slane %v7148_v34, 1  ;;  %v8157_v16 = vsel %vm7963_vm7, %v7129_v13, -inf }
 0x4f8   :  { %v7072_v5 = vrot.slane %v7071_v60, 1  ;;  %v7078_v44 = vmax.f32 %v7076_v62, %v7077_v11  ;;  %v7085_v22 = vmax.f32 %v7083_v54, %v7084_v12  ;;  %v7091_v33 = vrot.slane %v7090_v37, 2 }
 0x4f9   :  { %v7150_v63 = vmax.f32 %v7148_v34, %v7149_v56  ;;  %v8160_v20 = vsel %vm7963_vm7, %v7136_v46, -inf  ;;  %v8163_v55 = vsel %vm7963_vm7, %v7143_v7, -inf  ;;  %v5428_v45 = vrot.slane %v18686_v9, %v17935_v23  ;;  %v18724_v34 = vld [vmem:[#allocation3 + $0x40] sm:$0xff] }
 0x4fa   :  { %v7073_v32 = vmax.f32 %v7071_v60, %v7072_v5  ;;  %v7079_v40 = vrot.slane %v7078_v44, 1  ;;  %v7086_v47 = vrot.slane %v7085_v22, 1  ;;  %v7092_v27 = vmax.f32 %v7090_v37, %v7091_v33  ;;  %v18734_v5 = vld [vmem:[#allocation3 + $0x30] sm:$0xff] }
 0x4fb   :  { %v8166_v24 = vsel %vm7963_vm7, %v7150_v63, -inf  ;;  %v5435_v8 = vrot.slane %v5421_v36, %v17935_v23  ;;  %v5436_v31 = vcombine.high %v5428_v45, %v5428_v45  ;;  %v7151_v30 = vsel %vm6170_vm6, %v5428_v45, -inf }
 0x4fc   :  { %v7080_v19 = vmax.f32 %v7078_v44, %v7079_v40  ;;  %v7087_v25 = vmax.f32 %v7085_v22, %v7086_v47  ;;  %v7093_v42 = vrot.slane %v7092_v27, 1  ;;  %v8156_v4 = vsel %vm7963_vm7, %v7073_v32, -inf }
 0x4fd   :  { %v8158_v28 = vmax.f32 %v8156_v4, %v8157_v16  ;;  %v5437_v9 = vcombine.high %v5435_v8, %v5435_v8  ;;  %v7152_v14 = vrot.slane %v7151_v30, 4  ;;  %v7158_v39 = vsel %vm6170_vm6, %v5436_v31, -inf }
 0x4fe   :  { %v7094_v26 = vmax.f32 %v7092_v27, %v7093_v42  ;;  %v8159_v61 = vsel %vm7963_vm7, %v7080_v19, -inf  ;;  %v8162_v35 = vsel %vm7963_vm7, %v7087_v25, -inf  ;;  %v7159_v6 = vrot.slane %v7158_v39, 4 }
 0x4ff   :  { %v8161_v36 = vmax.f32 %v8159_v61, %v8160_v20  ;;  %v8164_v0 = vmax.f32 %v8162_v35, %v8163_v55  ;;  %v7153_v10 = vmax.f32 %v7151_v30, %v7152_v14  ;;  %v7165_v1 = vsel %vm6170_vm6, %v5435_v8, -inf }
 0x500   :  { %v8165_v21 = vsel %vm7963_vm7, %v7094_v26, -inf  ;;  %v7160_v52 = vmax.f32 %v7158_v39, %v7159_v6  ;;  %v7166_v62 = vrot.slane %v7165_v1, 4  ;;  %v7172_v54 = vsel %vm6170_vm6, %v5437_v9, -inf }
 0x501   :  { %v8167_v48 = vmax.f32 %v8165_v21, %v8166_v24  ;;  %v8655_v13 = vsel %vm8592_vm8, %v8161_v36, %v8158_v28  ;;  %v7154_v50 = vrot.slane %v7153_v10, 2  ;;  %v7173_v58 = vrot.slane %v7172_v54, 4 }
 0x502   :  { %v8656_v60 = vsel %vm8594_vm9, %v8164_v0, %v8655_v13  ;;  %v7161_v11 = vrot.slane %v7160_v52, 2  ;;  %v7167_v12 = vmax.f32 %v7165_v1, %v7166_v62  ;;  %v5387_v37 = vcombine.high %v18690_v18, %v18690_v18 }
 0x503   :  { %v7155_v46 = vmax.f32 %v7153_v10, %v7154_v50  ;;  %v7174_v7 = vmax.f32 %v7172_v54, %v7173_v58  ;;  %v5394_v56 = vrot.slane %v18690_v18, %v17935_v23  ;;  %v18732_v16 = vsel %vm8596_vm10, %v8167_v48, %v8656_v60  ;;  %v21835_v54 = vld [vmem:[#allocation45_spill] sm:$0xff]  ;;  %v21836_v60 = vld [vmem:[#allocation47_spill] sm:$0xff] }
 0x504   :  { %v7162_v44 = vmax.f32 %v7160_v52, %v7161_v11  ;;  %v7168_v22 = vrot.slane %v7167_v12, 2  ;;  %v5401_v33 = vrot.slane %v5387_v37, %v17935_v23  ;;  %v15113_v63 = vpack.i.bf16 %v18724_v34, %v18734_v5 }
 0x505   :  { %v7156_v20 = vrot.slane %v7155_v46, 1  ;;  %v7175_v55 = vrot.slane %v7174_v7, 2  ;;  %v5402_v45 = vcombine.high %v5394_v56, %v5394_v56  ;;  %v7095_v32 = vsel %vm6170_vm6, %v5394_v56, -inf  ;;  %v21837_v56 = vld [vmem:[#allocation51_spill] sm:$0xff] }
 0x506   :  { %v7163_v40 = vrot.slane %v7162_v44, 1  ;;  %v7169_v47 = vmax.f32 %v7167_v12, %v7168_v22  ;;  %v5403_v18 = vcombine.high %v5401_v33, %v5401_v33  ;;  %v7096_v27 = vrot.slane %v7095_v32, 4  ;;  %15114 = vrot.lane.b32.xlu1 %v15113_v63, %s15534_s12  ;;  %v21838_v63 = vld [vmem:[#allocation53_spill] sm:$0xff] }
 0x507   :  { %v7157_v24 = vmax.f32 %v7155_v46, %v7156_v20  ;;  %v7176_v8 = vmax.f32 %v7174_v7, %v7175_v55  ;;  %v7102_v31 = vsel %vm6170_vm6, %v5402_v45, -inf  ;;  %v7109_v30 = vsel %vm6170_vm6, %v5401_v33, -inf  ;;  %v18756_v46 = vld [vmem:[%s21289_s3] ss:$0 sm:$0xff] }
 0x508   :  { %v7164_v19 = vmax.f32 %v7162_v44, %v7163_v40  ;;  %v7170_v25 = vrot.slane %v7169_v47, 1  ;;  %v7097_v42 = vmax.f32 %v7095_v32, %v7096_v27  ;;  %v7103_v4 = vrot.slane %v7102_v31, 4  ;;  %v18767_v45 = vld [vmem:[%s21290_s4] ss:$0 sm:$0xff] }
 0x509   :  { %v7177_v28 = vrot.slane %v7176_v8, 1  ;;  %v7110_v9 = vrot.slane %v7109_v30, 4  ;;  %v7116_v14 = vsel %vm6170_vm6, %v5403_v18, -inf  ;;  %v8873_v39 = vrot.slane %v18734_v5, 2 }
 0x50a   :  { %v7171_v26 = vmax.f32 %v7169_v47, %v7170_v25  ;;  %v8169_v61 = vsel %vm7963_vm7, %v7157_v24, -inf  ;;  %v7098_v35 = vrot.slane %v7097_v42, 2  ;;  %v7104_v6 = vmax.f32 %v7102_v31, %v7103_v4 }
 0x50b   :  { %v7178_v36 = vmax.f32 %v7176_v8, %v7177_v28  ;;  %v8172_v0 = vsel %vm7963_vm7, %v7164_v19, -inf  ;;  %v7111_v10 = vmax.f32 %v7109_v30, %v7110_v9  ;;  %v7117_v1 = vrot.slane %v7116_v14, 4  ;;  %v18777_v30 = vpop.f32.mrb[48].mxu0 }
 0x50c   :  { %v8175_v21 = vsel %vm7963_vm7, %v7171_v26, -inf  ;;  %v7099_v52 = vmax.f32 %v7097_v42, %v7098_v35  ;;  %v7105_v62 = vrot.slane %v7104_v6, 2  ;;  %v14618_v48 = vadd.f32 %v18495_v15, %v21835_v54  ;;  %v18779_v28 = vpop.f32.mrb[49].mxu0 }
 0x50d   :  { %v8178_v13 = vsel %vm7963_vm7, %v7178_v36, -inf  ;;  %v7112_v50 = vrot.slane %v7111_v10, 2  ;;  %v7118_v58 = vmax.f32 %v7116_v14, %v7117_v1  ;;  %v14619_v11 = vadd.f32 %v18498_v41, %v21836_v60 }
 0x50e   :  { %v7100_v12 = vrot.slane %v7099_v52, 1  ;;  %v7106_v37 = vmax.f32 %v7104_v6, %v7105_v62  ;;  %v4602_v7 = vmul.f32 %v18756_v46, %v14618_v48  ;;  %v14620_v44 = vadd.f32 %v18508_v38, %v21837_v56 }
 0x50f   :  { %v7113_v15 = vmax.f32 %v7111_v10, %v7112_v50  ;;  %v7119_v22 = vrot.slane %v7118_v58, 2  ;;  %v4600_v33 = vmul.f32 %v18756_v46, %v14619_v11  ;;  %v14621_v20 = vadd.f32 %v18527_v29, %v21838_v63 }
 0x510   :  { %v7101_v41 = vmax.f32 %v7099_v52, %v7100_v12  ;;  %v7107_v55 = vrot.slane %v7106_v37, 1  ;;  %v4672_v32 = vadd.f32 %v18767_v45, %v4602_v7  ;;  %v4603_v40 = vmul.f32 %v18756_v46, %v14620_v44 }
 0x511   :  { %v7114_v47 = vrot.slane %v7113_v15, 1  ;;  %v7120_v38 = vmax.f32 %v7118_v58, %v7119_v22  ;;  %v4670_v18 = vadd.f32 %v18767_v45, %v4600_v33  ;;  %v18773_v27 = vmul.f32 %v18756_v46, %v14621_v20 }
 0x512   :  { %v7108_v24 = vmax.f32 %v7106_v37, %v7107_v55  ;;  %v8168_v29 = vsel %vm7963_vm7, %v7101_v41, -inf  ;;  %v4736_v8 = vmax.f32 %v4672_v32, 0.0  ;;  %v4673_v31 = vadd.f32 %v18767_v45, %v4603_v40 }
 0x513   :  { %v7115_v19 = vmax.f32 %v7113_v15, %v7114_v47  ;;  %v7121_v25 = vrot.slane %v7120_v38, 1  ;;  %v8170_v42 = vmax.f32 %v8168_v29, %v8169_v61  ;;  %v4734_v4 = vmax.f32 %v4670_v18, 0.0 }
 0x514   :  { %v8171_v9 = vsel %vm7963_vm7, %v7108_v24, -inf  ;;  %v5472_v14 = vcombine.high %v4736_v8, %v4736_v8  ;;  %v5479_v26 = vrot.slane %v4736_v8, %v17935_v23  ;;  %v18783_v35 = vmax.f32 %v4673_v31, 0.0 }
 0x515   :  { %v7122_v6 = vmax.f32 %v7120_v38, %v7121_v25  ;;  %v8173_v36 = vmax.f32 %v8171_v9, %v8172_v0  ;;  %v8174_v10 = vsel %vm7963_vm7, %v7115_v19, -inf  ;;  %v8658_v1 = vsel %vm8598_vm11, %v8170_v42, %v18732_v16 }
 0x516   :  { %v8176_v52 = vmax.f32 %v8174_v10, %v8175_v21  ;;  %v5486_v61 = vrot.slane %v5472_v14, %v17935_v23  ;;  %v5487_v62 = vcombine.high %v5479_v26, %v5479_v26  ;;  %v7235_v54 = vsel %vm6170_vm6, %v5479_v26, -inf }
 0x517   :  { %v8177_v48 = vsel %vm7963_vm7, %v7122_v6, -inf  ;;  %v8659_v50 = vsel %vm8600_vm12, %v8173_v36, %v8658_v1  ;;  %v7236_v58 = vrot.slane %v7235_v54, 4  ;;  %v5438_v60 = vcombine.high %v4734_v4, %v4734_v4 }
 0x518   :  { %v8179_v11 = vmax.f32 %v8177_v48, %v8178_v13  ;;  %v8660_v0 = vsel %vm8602_vm13, %v8176_v52, %v8659_v50  ;;  %v5488_v12 = vcombine.high %v5486_v61, %v5486_v61  ;;  %v7242_v37 = vsel %vm6170_vm6, %v5487_v62, -inf }
 0x519   :  { %v7237_v7 = vmax.f32 %v7235_v54, %v7236_v58  ;;  %v7243_v16 = vrot.slane %v7242_v37, 4  ;;  %v7249_v21 = vsel %vm6170_vm6, %v5486_v61, -inf  ;;  %v5445_v56 = vrot.slane %v4734_v4, %v17935_v23 }
 0x51a   :  { %v8661_v44 = vsel %vm8604_vm14, %v8179_v11, %v8660_v0  ;;  %v7250_v15 = vrot.slane %v7249_v21, 4  ;;  %v7256_v22 = vsel %vm6170_vm6, %v5488_v12, -inf  ;;  %v5452_v33 = vrot.slane %v5438_v60, %v17935_v23  ;;  %v18804_v60 = vpop.f32.mrb[50].mxu0 }
 0x51b   :  { %8736 = vst.msk [vmem:[#allocation3 + $0xb1] sm:$0xff] %vm7963_vm7, %v8661_v44  ;;  %v7238_v13 = vrot.slane %v7237_v7, 2  ;;  %v7244_v63 = vmax.f32 %v7242_v37, %v7243_v16  ;;  %v7257_v20 = vrot.slane %v7256_v22, 4  ;;  %v5453_v41 = vcombine.high %v5445_v56, %v5445_v56 }
 0x51c   :  { %v7251_v55 = vmax.f32 %v7249_v21, %v7250_v15  ;;  %v5454_v32 = vcombine.high %v5452_v33, %v5452_v33  ;;  %v7179_v40 = vsel %vm6170_vm6, %v5445_v56, -inf  ;;  %v7193_v47 = vsel %vm6170_vm6, %v5452_v33, -inf }
 0x51d   :  { %v7239_v38 = vmax.f32 %v7237_v7, %v7238_v13  ;;  %v7245_v18 = vrot.slane %v7244_v63, 2  ;;  %v7258_v24 = vmax.f32 %v7256_v22, %v7257_v20  ;;  %v7180_v29 = vrot.slane %v7179_v40, 4 }
 0x51e   :  { %v7252_v8 = vrot.slane %v7251_v55, 2  ;;  %v7186_v31 = vsel %vm6170_vm6, %v5453_v41, -inf  ;;  %v7194_v19 = vrot.slane %v7193_v47, 4  ;;  %v7200_v25 = vsel %vm6170_vm6, %v5454_v32, -inf }
 0x51f   :  { %v7240_v42 = vrot.slane %v7239_v38, 1  ;;  %v7246_v4 = vmax.f32 %v7244_v63, %v7245_v18  ;;  %v7259_v9 = vrot.slane %v7258_v24, 2  ;;  %v7181_v14 = vmax.f32 %v7179_v40, %v7180_v29 }
 0x520   :  { %v7253_v26 = vmax.f32 %v7251_v55, %v7252_v8  ;;  %v7187_v6 = vrot.slane %v7186_v31, 4  ;;  %v7195_v36 = vmax.f32 %v7193_v47, %v7194_v19  ;;  %v7201_v10 = vrot.slane %v7200_v25, 4 }
 0x521   :  { %v7241_v1 = vmax.f32 %v7239_v38, %v7240_v42  ;;  %v7247_v52 = vrot.slane %v7246_v4, 1  ;;  %v7260_v61 = vmax.f32 %v7258_v24, %v7259_v9  ;;  %v7182_v62 = vrot.slane %v7181_v14, 2 }
 0x522   :  { %v7254_v54 = vrot.slane %v7253_v26, 1  ;;  %v7188_v48 = vmax.f32 %v7186_v31, %v7187_v6  ;;  %v7196_v50 = vrot.slane %v7195_v36, 2  ;;  %v7202_v58 = vmax.f32 %v7200_v25, %v7201_v10 }
 0x523   :  { %v7248_v11 = vmax.f32 %v7246_v4, %v7247_v52  ;;  %v7261_v0 = vrot.slane %v7260_v61, 1  ;;  %v8181_v12 = vsel %vm7963_vm7, %v7241_v1, -inf  ;;  %v7183_v37 = vmax.f32 %v7181_v14, %v7182_v62 }
 0x524   :  { %v7255_v7 = vmax.f32 %v7253_v26, %v7254_v54  ;;  %v7189_v16 = vrot.slane %v7188_v48, 2  ;;  %v7197_v21 = vmax.f32 %v7195_v36, %v7196_v50  ;;  %v7203_v56 = vrot.slane %v7202_v58, 2 }
 0x525   :  { %v7262_v44 = vmax.f32 %v7260_v61, %v7261_v0  ;;  %v8184_v15 = vsel %vm7963_vm7, %v7248_v11, -inf  ;;  %v7184_v22 = vrot.slane %v7183_v37, 1  ;;  %v5489_v33 = vcombine.high %v18783_v35, %v18783_v35  ;;  %v8749_v61 = vld [vmem:[#allocation3 + $0x28] sm:$0x3] }
 0x526   :  { %v8187_v13 = vsel %vm7963_vm7, %v7255_v7, -inf  ;;  %v7190_v63 = vmax.f32 %v7188_v48, %v7189_v16  ;;  %v7198_v20 = vrot.slane %v7197_v21, 1  ;;  %v7204_v41 = vmax.f32 %v7202_v58, %v7203_v56  ;;  %v15479_v16 = vld [vmem:[#allocation3 + $0x20] sm:$0xff] }
 0x527   :  { %v8190_v55 = vsel %vm7963_vm7, %v7262_v44, -inf  ;;  %v7185_v32 = vmax.f32 %v7183_v37, %v7184_v22  ;;  %v5496_v40 = vrot.slane %v18783_v35, %v17935_v23  ;;  %v5503_v47 = vrot.slane %v5489_v33, %v17935_v23 }
 0x528   :  { %v7191_v38 = vrot.slane %v7190_v63, 1  ;;  %v7199_v18 = vmax.f32 %v7197_v21, %v7198_v20  ;;  %v7205_v24 = vrot.slane %v7204_v41, 1  ;;  %v4671_v29 = vadd.f32 %v18767_v45, %v18773_v27 }
 0x529   :  { %v8180_v8 = vsel %vm7963_vm7, %v7185_v32, -inf  ;;  %v5504_v31 = vcombine.high %v5496_v40, %v5496_v40  ;;  %v5505_v19 = vcombine.high %v5503_v47, %v5503_v47  ;;  %v7263_v25 = vsel %vm6170_vm6, %v5496_v40, -inf }
 0x52a   :  { %v7192_v42 = vmax.f32 %v7190_v63, %v7191_v38  ;;  %v7206_v4 = vmax.f32 %v7204_v41, %v7205_v24  ;;  %v8182_v9 = vmax.f32 %v8180_v8, %v8181_v12  ;;  %v8186_v14 = vsel %vm7963_vm7, %v7199_v18, -inf }
 0x52b   :  { %v8188_v35 = vmax.f32 %v8186_v14, %v8187_v13  ;;  %v7264_v26 = vrot.slane %v7263_v25, 4  ;;  %v7270_v6 = vsel %vm6170_vm6, %v5504_v31, -inf  ;;  %v7277_v36 = vsel %vm6170_vm6, %v5503_v47, -inf }
 0x52c   :  { %v8183_v10 = vsel %vm7963_vm7, %v7192_v42, -inf  ;;  %v8189_v27 = vsel %vm7963_vm7, %v7206_v4, -inf  ;;  %v7271_v1 = vrot.slane %v7270_v6, 4  ;;  %v7278_v52 = vrot.slane %v7277_v36, 4 }
 0x52d   :  { %v8185_v62 = vmax.f32 %v8183_v10, %v8184_v15  ;;  %v8191_v54 = vmax.f32 %v8189_v27, %v8190_v55  ;;  %v7265_v48 = vmax.f32 %v7263_v25, %v7264_v26  ;;  %v7284_v50 = vsel %vm6170_vm6, %v5505_v19, -inf  ;;  %v18831_v55 = vpop.f32.mrb[51].mxu0 }
 0x52e   :  { %v7272_v58 = vmax.f32 %v7270_v6, %v7271_v1  ;;  %v7279_v11 = vmax.f32 %v7277_v36, %v7278_v52  ;;  %v7285_v0 = vrot.slane %v7284_v50, 4  ;;  %v4735_v12 = vmax.f32 %v4671_v29, 0.0 }
 0x52f   :  { %v8662_v37 = vsel %vm8592_vm8, %v8185_v62, %v8182_v9  ;;  %v7266_v7 = vrot.slane %v7265_v48, 2  ;;  %v8822_v21 = vrot.slane %v15479_v16, 1  ;;  %v8823_v56 = vrot.slane %v8749_v61, 1  ;;  %v8751_v62 = vld [vmem:[#allocation3 + $0x38] sm:$0x3] }
 0x530   :  { %v8663_v44 = vsel %vm8594_vm9, %v8188_v35, %v8662_v37  ;;  %v7273_v22 = vrot.slane %v7272_v58, 2  ;;  %v7280_v33 = vrot.slane %v7279_v11, 2  ;;  %v7286_v13 = vmax.f32 %v7284_v50, %v7285_v0 }
 0x531   :  { %v7267_v15 = vmax.f32 %v7265_v48, %v7266_v7  ;;  %v5455_v63 = vcombine.high %v4735_v12, %v4735_v12  ;;  %v5462_v20 = vrot.slane %v4735_v12, %v17935_v23  ;;  %v18829_v41 = vsel %vm8596_vm10, %v8191_v54, %v8663_v44 }
 0x532   :  { %v7274_v32 = vmax.f32 %v7272_v58, %v7273_v22  ;;  %v7281_v40 = vmax.f32 %v7279_v11, %v7280_v33  ;;  %v7287_v47 = vrot.slane %v7286_v13, 2  ;;  %v18834_v38 = vsel %vm483_vm5, %v8822_v21, %v8823_v56  ;;  %v21839_v56 = vld [vmem:[#allocation56_spill] sm:$0xff]  ;;  %v18850_v22 = vpop.f32.mrb[52].mxu0 }
 0x533   :  { %v7268_v18 = vrot.slane %v7267_v15, 1  ;;  %v5469_v24 = vrot.slane %v5455_v63, %v17935_v23  ;;  %v5470_v29 = vcombine.high %v5462_v20, %v5462_v20  ;;  %v7207_v8 = vsel %vm6170_vm6, %v5462_v20, -inf  ;;  %v21840_v63 = vld [vmem:[#allocation63_spill] sm:$0xff] }
 0x534   :  { %v7275_v31 = vrot.slane %v7274_v32, 1  ;;  %v7282_v19 = vrot.slane %v7281_v40, 1  ;;  %v7288_v25 = vmax.f32 %v7286_v13, %v7287_v47  ;;  %v7208_v42 = vrot.slane %v7207_v8, 4 }
 0x535   :  { %v7269_v4 = vmax.f32 %v7267_v15, %v7268_v18  ;;  %v5471_v9 = vcombine.high %v5469_v24, %v5469_v24  ;;  %v7214_v14 = vsel %vm6170_vm6, %v5470_v29, -inf  ;;  %v7221_v35 = vsel %vm6170_vm6, %v5469_v24, -inf  ;;  %v21841_v18 = vld [vmem:[#allocation73_spill] sm:$0xff] }
 0x536   :  { %v7276_v26 = vmax.f32 %v7274_v32, %v7275_v31  ;;  %v7283_v6 = vmax.f32 %v7281_v40, %v7282_v19  ;;  %v7289_v36 = vrot.slane %v7288_v25, 1  ;;  %v7209_v10 = vmax.f32 %v7207_v8, %v7208_v42 }
 0x537   :  { %v8193_v27 = vsel %vm7963_vm7, %v7269_v4, -inf  ;;  %v7215_v1 = vrot.slane %v7214_v14, 4  ;;  %v7222_v52 = vrot.slane %v7221_v35, 4  ;;  %v7228_v61 = vsel %vm6170_vm6, %v5471_v9, -inf }
 0x538   :  { %v7290_v54 = vmax.f32 %v7288_v25, %v7289_v36  ;;  %v8196_v48 = vsel %vm7963_vm7, %v7276_v26, -inf  ;;  %v18844_v50 = vsel %vm7963_vm7, %v7283_v6, -inf  ;;  %v7210_v58 = vrot.slane %v7209_v10, 2 }
 0x539   :  { %v7216_v11 = vmax.f32 %v7214_v14, %v7215_v1  ;;  %v7223_v0 = vmax.f32 %v7221_v35, %v7222_v52  ;;  %v7229_v12 = vrot.slane %v7228_v61, 4  ;;  %v8825_v37 = vrot.slane %v18734_v5, 1 }
 0x53a   :  { %v8202_v7 = vsel %vm7963_vm7, %v7290_v54, -inf  ;;  %v7211_v16 = vmax.f32 %v7209_v10, %v7210_v58  ;;  %v8826_v21 = vrot.slane %v8751_v62, 1  ;;  %v14622_v44 = vadd.f32 %v18613_v49, %v21839_v56 }
 0x53b   :  { %v7217_v33 = vrot.slane %v7216_v11, 2  ;;  %v7224_v13 = vrot.slane %v7223_v0, 2  ;;  %v7230_v15 = vmax.f32 %v7228_v61, %v7229_v12  ;;  %v14623_v20 = vadd.f32 %v18625_v3, %v21840_v63 }
 0x53c   :  { %v7212_v32 = vrot.slane %v7211_v16, 1  ;;  %v18855_v40 = vsel %vm483_vm5, %v8825_v37, %v8826_v21  ;;  %v4606_v47 = vmul.f32 %v18756_v46, %v14622_v44  ;;  %v14624_v24 = vadd.f32 %v18629_v53, %v21841_v18 }
 0x53d   :  { %v7218_v29 = vmax.f32 %v7216_v11, %v7217_v33  ;;  %v7225_v8 = vmax.f32 %v7223_v0, %v7224_v13  ;;  %v7231_v49 = vrot.slane %v7230_v15, 2  ;;  %v15118_v31 = vpack.i.bf16 %v18855_v40, %v18834_v38 }
 0x53e   :  { %v7213_v19 = vmax.f32 %v7211_v16, %v7212_v32  ;;  %v4676_v25 = vadd.f32 %v18767_v45, %v4606_v47  ;;  %v4604_v3 = vmul.f32 %v18756_v46, %v14623_v20  ;;  %v4607_v42 = vmul.f32 %v18756_v46, %v14624_v24  ;;  %v18882_v20 = vpop.f32.mrb[53].mxu0 }
 0x53f   :  { %v7219_v4 = vrot.slane %v7218_v29, 1  ;;  %v7226_v9 = vrot.slane %v7225_v8, 1  ;;  %v7232_v14 = vmax.f32 %v7230_v15, %v7231_v49  ;;  %15119 = vrot.lane.b32.xlu1 %v15118_v31, %s15534_s12  ;;  %v8828_v53 = vrot.slane %v18724_v34, 1 }
 0x540   :  { %v8192_v35 = vsel %vm7963_vm7, %v7213_v19, -inf  ;;  %v4740_v26 = vmax.f32 %v4676_v25, 0.0  ;;  %v4674_v6 = vadd.f32 %v18767_v45, %v4604_v3  ;;  %v4677_v36 = vadd.f32 %v18767_v45, %v4607_v42 }
 0x541   :  { %v7220_v10 = vmax.f32 %v7218_v29, %v7219_v4  ;;  %v7227_v1 = vmax.f32 %v7225_v8, %v7226_v9  ;;  %v7233_v52 = vrot.slane %v7232_v14, 1  ;;  %v8194_v61 = vmax.f32 %v8192_v35, %v8193_v27 }
 0x542   :  { %v5540_v62 = vcombine.high %v4740_v26, %v4740_v26  ;;  %v5547_v54 = vrot.slane %v4740_v26, %v17935_v23  ;;  %v4738_v58 = vmax.f32 %v4674_v6, 0.0  ;;  %v18871_v11 = vmax.f32 %v4677_v36, 0.0 }
 0x543   :  { %v7234_v0 = vmax.f32 %v7232_v14, %v7233_v52  ;;  %v8195_v12 = vsel %vm7963_vm7, %v7220_v10, -inf  ;;  %v8198_v37 = vsel %vm7963_vm7, %v7227_v1, -inf  ;;  %v8665_v16 = vsel %vm8598_vm11, %v8194_v61, %v18829_v41 }
 0x544   :  { %v8197_v21 = vmax.f32 %v8195_v12, %v8196_v48  ;;  %v8200_v56 = vmax.f32 %v8198_v37, %v18844_v50  ;;  %v5554_v44 = vrot.slane %v5540_v62, %v17935_v23  ;;  %v5555_v27 = vcombine.high %v5547_v54, %v5547_v54 }
 0x545   :  { %v8201_v33 = vsel %vm7963_vm7, %v7234_v0, -inf  ;;  %v7347_v13 = vsel %vm6170_vm6, %v5547_v54, -inf  ;;  %v5506_v15 = vcombine.high %v4738_v58, %v4738_v58  ;;  %v5513_v63 = vrot.slane %v4738_v58, %v17935_v23  ;;  %v18896_v54 = vpop.f32.mrb[54].mxu0 }
 0x546   :  { %v8203_v32 = vmax.f32 %v8201_v33, %v8202_v7  ;;  %v8666_v47 = vsel %vm8600_vm12, %v8197_v21, %v8665_v16  ;;  %v5556_v18 = vcombine.high %v5554_v44, %v5554_v44  ;;  %v7348_v41 = vrot.slane %v7347_v13, 4 }
 0x547   :  { %v8667_v48 = vsel %vm8602_vm13, %v8200_v56, %v8666_v47  ;;  %v7354_v50 = vsel %vm6170_vm6, %v5555_v27, -inf  ;;  %v7361_v24 = vsel %vm6170_vm6, %v5554_v44, -inf  ;;  %v5520_v29 = vrot.slane %v5506_v15, %v17935_v23 }
 0x548   :  { %v8668_v8 = vsel %vm8604_vm14, %v8203_v32, %v8667_v48  ;;  %v7349_v49 = vmax.f32 %v7347_v13, %v7348_v41  ;;  %v7355_v31 = vrot.slane %v7354_v50, 4  ;;  %v7362_v19 = vrot.slane %v7361_v24, 4 }
 0x549   :  { %8737 = vst.msk [vmem:[#allocation3 + $0xc1] sm:$0xff] %vm7963_vm7, %v8668_v8  ;;  %v7368_v7 = vsel %vm6170_vm6, %v5556_v18, -inf  ;;  %v5521_v25 = vcombine.high %v5513_v63, %v5513_v63  ;;  %v5522_v3 = vcombine.high %v5520_v29, %v5520_v29  ;;  %v7291_v42 = vsel %vm6170_vm6, %v5513_v63, -inf }
 0x54a   :  { %v7350_v4 = vrot.slane %v7349_v49, 2  ;;  %v7356_v9 = vmax.f32 %v7354_v50, %v7355_v31  ;;  %v7363_v14 = vmax.f32 %v7361_v24, %v7362_v19  ;;  %v7369_v35 = vrot.slane %v7368_v7, 4 }
 0x54b   :  { %v7292_v26 = vrot.slane %v7291_v42, 4  ;;  %v7298_v6 = vsel %vm6170_vm6, %v5521_v25, -inf  ;;  %v7305_v36 = vsel %vm6170_vm6, %v5520_v29, -inf  ;;  %v7312_v10 = vsel %vm6170_vm6, %v5522_v3, -inf }
 0x54c   :  { %v7351_v1 = vmax.f32 %v7349_v49, %v7350_v4  ;;  %v7357_v52 = vrot.slane %v7356_v9, 2  ;;  %v7364_v61 = vrot.slane %v7363_v14, 2  ;;  %v7370_v62 = vmax.f32 %v7368_v7, %v7369_v35 }
 0x54d   :  { %v7293_v58 = vmax.f32 %v7291_v42, %v7292_v26  ;;  %v7299_v0 = vrot.slane %v7298_v6, 4  ;;  %v7306_v12 = vrot.slane %v7305_v36, 4  ;;  %v7313_v37 = vrot.slane %v7312_v10, 4  ;;  %v8753_v42 = vld [vmem:[#allocation3 + $0x48] sm:$0x3] }
 0x54e   :  { %v7352_v16 = vrot.slane %v7351_v1, 1  ;;  %v7358_v21 = vmax.f32 %v7356_v9, %v7357_v52  ;;  %v7365_v56 = vmax.f32 %v7363_v14, %v7364_v61  ;;  %v7371_v44 = vrot.slane %v7370_v62, 2 }
 0x54f   :  { %v7294_v27 = vrot.slane %v7293_v58, 2  ;;  %v7300_v33 = vmax.f32 %v7298_v6, %v7299_v0  ;;  %v7307_v13 = vmax.f32 %v7305_v36, %v7306_v12  ;;  %v7314_v15 = vmax.f32 %v7312_v10, %v7313_v37 }
 0x550   :  { %v7353_v63 = vmax.f32 %v7351_v1, %v7352_v16  ;;  %v7359_v32 = vrot.slane %v7358_v21, 1  ;;  %v7366_v47 = vrot.slane %v7365_v56, 1  ;;  %v7372_v18 = vmax.f32 %v7370_v62, %v7371_v44 }
 0x551   :  { %v7295_v41 = vmax.f32 %v7293_v58, %v7294_v27  ;;  %v7301_v48 = vrot.slane %v7300_v33, 2  ;;  %v7308_v50 = vrot.slane %v7307_v13, 2  ;;  %v7315_v24 = vrot.slane %v7314_v15, 2  ;;  %v18909_v27 = vpop.f32.mrb[55].mxu0 }
 0x552   :  { %v7360_v29 = vmax.f32 %v7358_v21, %v7359_v32  ;;  %v7367_v8 = vmax.f32 %v7365_v56, %v7366_v47  ;;  %v7373_v49 = vrot.slane %v7372_v18, 1  ;;  %v8205_v31 = vsel %vm7963_vm7, %v7353_v63, -inf }
 0x553   :  { %v7296_v19 = vrot.slane %v7295_v41, 1  ;;  %v7302_v7 = vmax.f32 %v7300_v33, %v7301_v48  ;;  %v7309_v25 = vmax.f32 %v7307_v13, %v7308_v50  ;;  %v7316_v3 = vmax.f32 %v7314_v15, %v7315_v24 }
 0x554   :  { %v7374_v4 = vmax.f32 %v7372_v18, %v7373_v49  ;;  %v8208_v9 = vsel %vm7963_vm7, %v7360_v29, -inf  ;;  %v8211_v14 = vsel %vm7963_vm7, %v7367_v8, -inf  ;;  %v5557_v35 = vcombine.high %v18871_v11, %v18871_v11  ;;  %v8755_v8 = vld [vmem:[#allocation3 + $0x58] sm:$0x3] }
 0x555   :  { %v7297_v26 = vmax.f32 %v7295_v41, %v7296_v19  ;;  %v7303_v6 = vrot.slane %v7302_v7, 1  ;;  %v7310_v36 = vrot.slane %v7309_v25, 1  ;;  %v7317_v10 = vrot.slane %v7316_v3, 1  ;;  %v8754_v41 = vld [vmem:[#allocation3 + $0x50] sm:$0xff] }
 0x556   :  { %v8214_v1 = vsel %vm7963_vm7, %v7374_v4, -inf  ;;  %v5564_v52 = vrot.slane %v18871_v11, %v17935_v23  ;;  %v5571_v61 = vrot.slane %v5557_v35, %v17935_v23  ;;  %v8829_v62 = vrot.slane %v8753_v42, 1 }
 0x557   :  { %v7304_v58 = vmax.f32 %v7302_v7, %v7303_v6  ;;  %v7311_v0 = vmax.f32 %v7309_v25, %v7310_v36  ;;  %v7318_v12 = vmax.f32 %v7316_v3, %v7317_v10  ;;  %v8204_v37 = vsel %vm7963_vm7, %v7297_v26, -inf  ;;  %v18923_v25 = vld [vmem:[#allocation3 + $0x60] sm:$0xff]  ;;  %v21842_v6 = vld [vmem:[#allocation74_spill] sm:$0xff] }
 0x558   :  { %v8206_v16 = vmax.f32 %v8204_v37, %v8205_v31  ;;  %v5572_v21 = vcombine.high %v5564_v52, %v5564_v52  ;;  %v5573_v56 = vcombine.high %v5571_v61, %v5571_v61  ;;  %v7375_v44 = vsel %vm6170_vm6, %v5564_v52, -inf }
 0x559   :  { %v8207_v33 = vsel %vm7963_vm7, %v7304_v58, -inf  ;;  %v8210_v13 = vsel %vm7963_vm7, %v7311_v0, -inf  ;;  %v8213_v11 = vsel %vm7963_vm7, %v7318_v12, -inf  ;;  %v7376_v15 = vrot.slane %v7375_v44, 4 }
 0x55a   :  { %v8209_v63 = vmax.f32 %v8207_v33, %v8208_v9  ;;  %v8212_v32 = vmax.f32 %v8210_v13, %v8211_v14  ;;  %v8215_v47 = vmax.f32 %v8213_v11, %v8214_v1  ;;  %v7382_v18 = vsel %vm6170_vm6, %v5572_v21, -inf  ;;  %v21844_v33 = vld [vmem:[#allocation23_spill] sm:$0xff] }
 0x55b   :  { %v7377_v48 = vmax.f32 %v7375_v44, %v7376_v15  ;;  %v7383_v50 = vrot.slane %v7382_v18, 4  ;;  %v7389_v24 = vsel %vm6170_vm6, %v5571_v61, -inf  ;;  %v7396_v29 = vsel %vm6170_vm6, %v5573_v56, -inf }
 0x55c   :  { %v8669_v49 = vsel %vm8592_vm8, %v8209_v63, %v8206_v16  ;;  %v7390_v31 = vrot.slane %v7389_v24, 4  ;;  %v7397_v19 = vrot.slane %v7396_v29, 4  ;;  %v18921_v7 = vsel %vm483_vm5, %v8828_v53, %v8829_v62 }
 0x55d   :  { %v8670_v3 = vsel %vm8594_vm9, %v8212_v32, %v8669_v49  ;;  %v7378_v42 = vrot.slane %v7377_v48, 2  ;;  %v7384_v4 = vmax.f32 %v7382_v18, %v7383_v50  ;;  %v8831_v9 = vrot.slane %v8754_v41, 1  ;;  %v21845_v32 = vld [vmem:[#allocation83_spill] sm:$0xff] }
 0x55e   :  { %v7391_v14 = vmax.f32 %v7389_v24, %v7390_v31  ;;  %v7398_v35 = vmax.f32 %v7396_v29, %v7397_v19  ;;  %v8832_v26 = vrot.slane %v8755_v8, 1  ;;  %v14625_v36 = vadd.f32 %v18676_v57, %v21842_v6  ;;  %v21843_v57 = vld [vmem:[#allocation75_spill] sm:$0xff] }
 0x55f   :  { %v7379_v10 = vmax.f32 %v7377_v48, %v7378_v42  ;;  %v7385_v1 = vrot.slane %v7384_v4, 2  ;;  %v18929_v34 = vsel %vm8596_vm10, %v8215_v47, %v8670_v3  ;;  %v15123_v53 = vpack.i.bf16 %v18923_v25, %v8754_v41 }
 0x560   :  { %v7392_v52 = vrot.slane %v7391_v14, 2  ;;  %v7399_v61 = vrot.slane %v7398_v35, 2  ;;  %v18933_v62 = vsel %vm483_vm5, %v8831_v9, %v8832_v26  ;;  %v4605_v58 = vmul.f32 %v18756_v46, %v14625_v36  ;;  %v18969_v26 = vpop.f32.mrb[56].mxu0 }
 0x561   :  { %v7380_v0 = vrot.slane %v7379_v10, 1  ;;  %v7386_v12 = vmax.f32 %v7384_v4, %v7385_v1  ;;  %v15128_v37 = vpack.i.bf16 %v18933_v62, %v18921_v7  ;;  %15124 = vrot.lane.b32.xlu0 %v15123_v53, %s15534_s12  ;;  %v14626_v16 = vadd.f32 %v18693_v43, %v21843_v57 }
 0x562   :  { %v7393_v21 = vmax.f32 %v7391_v14, %v7392_v52  ;;  %v7400_v56 = vmax.f32 %v7398_v35, %v7399_v61  ;;  %v4675_v44 = vadd.f32 %v18767_v45, %v4605_v58  ;;  %v14627_v13 = vadd.f32 %v18699_v2, %v21844_v33 }
 0x563   :  { %v7381_v11 = vmax.f32 %v7379_v10, %v7380_v0  ;;  %v7387_v15 = vrot.slane %v7386_v12, 1  ;;  %15129 = vrot.lane.b32.xlu1 %v15128_v37, %s15534_s12  ;;  %v4610_v63 = vmul.f32 %v18756_v46, %v14626_v16  ;;  %v14628_v47 = vadd.f32 %v18704_v59, %v21845_v32 }
 0x564   :  { %v7394_v18 = vrot.slane %v7393_v21, 1  ;;  %v7401_v41 = vrot.slane %v7400_v56, 1  ;;  %v4739_v48 = vmax.f32 %v4675_v44, 0.0  ;;  %v4608_v43 = vmul.f32 %v18756_v46, %v14627_v13 }
 0x565   :  { %v7388_v50 = vmax.f32 %v7386_v12, %v7387_v15  ;;  %v18950_v24 = vsel %vm7963_vm7, %v7381_v11, -inf  ;;  %v4680_v2 = vadd.f32 %v18767_v45, %v4610_v63  ;;  %v4611_v29 = vmul.f32 %v18756_v46, %v14628_v47 }
 0x566   :  { %v7395_v8 = vmax.f32 %v7393_v21, %v7394_v18  ;;  %v7402_v49 = vmax.f32 %v7400_v56, %v7401_v41  ;;  %v5523_v31 = vcombine.high %v4739_v48, %v4739_v48  ;;  %v5530_v19 = vrot.slane %v4739_v48, %v17935_v23 }
 0x567   :  { %v18956_v59 = vsel %vm7963_vm7, %v7388_v50, -inf  ;;  %v4744_v3 = vmax.f32 %v4680_v2, 0.0  ;;  %v4678_v42 = vadd.f32 %v18767_v45, %v4608_v43  ;;  %v18960_v4 = vadd.f32 %v18767_v45, %v4611_v29 }
 0x568   :  { %v18963_v9 = vsel %vm7963_vm7, %v7395_v8, -inf  ;;  %v18966_v14 = vsel %vm7963_vm7, %v7402_v49, -inf  ;;  %v5537_v46 = vrot.slane %v5523_v31, %v17935_v23  ;;  %v5538_v35 = vcombine.high %v5530_v19, %v5530_v19 }
 0x569   :  { %v7319_v6 = vsel %vm6170_vm6, %v5530_v19, -inf  ;;  %v5608_v36 = vcombine.high %v4744_v3, %v4744_v3  ;;  %v5615_v10 = vrot.slane %v4744_v3, %v17935_v23  ;;  %v18973_v1 = vmax.f32 %v4678_v42, 0.0  ;;  %v18985_v42 = vpop.f32.mrb[57].mxu0 }
 0x56a   :  { %v5539_v45 = vcombine.high %v5537_v46, %v5537_v46  ;;  %v7320_v53 = vrot.slane %v7319_v6, 4  ;;  %v7326_v52 = vsel %vm6170_vm6, %v5538_v35, -inf  ;;  %v7333_v61 = vsel %vm6170_vm6, %v5537_v46, -inf }
 0x56b   :  { %v7327_v58 = vrot.slane %v7326_v52, 4  ;;  %v7334_v0 = vrot.slane %v7333_v61, 4  ;;  %v5622_v12 = vrot.slane %v5608_v36, %v17935_v23  ;;  %v5623_v37 = vcombine.high %v5615_v10, %v5615_v10 }
 0x56c   :  { %v7321_v57 = vmax.f32 %v7319_v6, %v7320_v53  ;;  %v7340_v16 = vsel %vm6170_vm6, %v5539_v45, -inf  ;;  %v7459_v21 = vsel %vm6170_vm6, %v5615_v10, -inf  ;;  %v5574_v56 = vcombine.high %v18973_v1, %v18973_v1 }
 0x56d   :  { %v7328_v44 = vmax.f32 %v7326_v52, %v7327_v58  ;;  %v7335_v33 = vmax.f32 %v7333_v61, %v7334_v0  ;;  %v7341_v13 = vrot.slane %v7340_v16, 4  ;;  %v5624_v11 = vcombine.high %v5622_v12, %v5622_v12 }
 0x56e   :  { %v7322_v15 = vrot.slane %v7321_v57, 2  ;;  %v7460_v63 = vrot.slane %v7459_v21, 4  ;;  %v7466_v32 = vsel %vm6170_vm6, %v5623_v37, -inf  ;;  %v7473_v47 = vsel %vm6170_vm6, %v5622_v12, -inf }
 0x56f   :  { %v7329_v18 = vrot.slane %v7328_v44, 2  ;;  %v7336_v41 = vrot.slane %v7335_v33, 2  ;;  %v7342_v48 = vmax.f32 %v7340_v16, %v7341_v13  ;;  %v7467_v43 = vrot.slane %v7466_v32, 4 }
 0x570   :  { %v7323_v50 = vmax.f32 %v7321_v57, %v7322_v15  ;;  %v7461_v2 = vmax.f32 %v7459_v21, %v7460_v63  ;;  %v7474_v29 = vrot.slane %v7473_v47, 4  ;;  %v7480_v8 = vsel %vm6170_vm6, %v5624_v11, -inf }
 0x571   :  { %v7330_v49 = vmax.f32 %v7328_v44, %v7329_v18  ;;  %v7337_v31 = vmax.f32 %v7335_v33, %v7336_v41  ;;  %v7343_v19 = vrot.slane %v7342_v48, 2  ;;  %v7468_v3 = vmax.f32 %v7466_v32, %v7467_v43 }
 0x572   :  { %v7324_v46 = vrot.slane %v7323_v50, 1  ;;  %v7462_v35 = vrot.slane %v7461_v2, 2  ;;  %v7475_v6 = vmax.f32 %v7473_v47, %v7474_v29  ;;  %v7481_v36 = vrot.slane %v7480_v8, 4 }
 0x573   :  { %v7331_v10 = vrot.slane %v7330_v49, 1  ;;  %v7338_v45 = vrot.slane %v7337_v31, 1  ;;  %v7344_v53 = vmax.f32 %v7342_v48, %v7343_v19  ;;  %v7469_v52 = vrot.slane %v7468_v3, 2 }
 0x574   :  { %v7325_v61 = vmax.f32 %v7323_v50, %v7324_v46  ;;  %v7463_v58 = vmax.f32 %v7461_v2, %v7462_v35  ;;  %v7476_v0 = vrot.slane %v7475_v6, 2  ;;  %v7482_v12 = vmax.f32 %v7480_v8, %v7481_v36 }
 0x575   :  { %v7332_v37 = vmax.f32 %v7330_v49, %v7331_v10  ;;  %v7339_v57 = vmax.f32 %v7337_v31, %v7338_v45  ;;  %v7345_v16 = vrot.slane %v7344_v53, 1  ;;  %v7470_v21 = vmax.f32 %v7468_v3, %v7469_v52  ;;  %v18996_v49 = vpop.f32.mrb[58].mxu0 }
 0x576   :  { %v8216_v44 = vsel %vm7963_vm7, %v7325_v61, -inf  ;;  %v7464_v33 = vrot.slane %v7463_v58, 1  ;;  %v7477_v13 = vmax.f32 %v7475_v6, %v7476_v0  ;;  %v7483_v11 = vrot.slane %v7482_v12, 2 }
 0x577   :  { %v7346_v15 = vmax.f32 %v7344_v53, %v7345_v16  ;;  %v8218_v63 = vmax.f32 %v8216_v44, %v18950_v24  ;;  %v8219_v32 = vsel %vm7963_vm7, %v7332_v37, -inf  ;;  %v8222_v47 = vsel %vm7963_vm7, %v7339_v57, -inf }
 0x578   :  { %v8221_v18 = vmax.f32 %v8219_v32, %v18956_v59  ;;  %v8224_v41 = vmax.f32 %v8222_v47, %v18963_v9  ;;  %v7465_v48 = vmax.f32 %v7463_v58, %v7464_v33  ;;  %v7471_v43 = vrot.slane %v7470_v21, 1 }
 0x579   :  { %v8225_v50 = vsel %vm7963_vm7, %v7346_v15, -inf  ;;  %v8672_v2 = vsel %vm8598_vm11, %v8218_v63, %v18929_v34  ;;  %v7478_v29 = vrot.slane %v7477_v13, 1  ;;  %v7484_v8 = vmax.f32 %v7482_v12, %v7483_v11 }
 0x57a   :  { %v8227_v24 = vmax.f32 %v8225_v50, %v18966_v14  ;;  %v8673_v31 = vsel %vm8600_vm12, %v8221_v18, %v8672_v2  ;;  %v7472_v19 = vmax.f32 %v7470_v21, %v7471_v43  ;;  %v19001_v59 = vsel %vm7963_vm7, %v7465_v48, -inf }
 0x57b   :  { %v8674_v9 = vsel %vm8602_vm13, %v8224_v41, %v8673_v31  ;;  %v7479_v3 = vmax.f32 %v7477_v13, %v7478_v29  ;;  %v7485_v46 = vrot.slane %v7484_v8, 1  ;;  %v5581_v35 = vrot.slane %v18973_v1, %v17935_v23 }
 0x57c   :  { %v8675_v34 = vsel %vm8604_vm14, %v8227_v24, %v8674_v9  ;;  %v19008_v6 = vsel %vm7963_vm7, %v7472_v19, -inf  ;;  %v5588_v14 = vrot.slane %v5574_v56, %v17935_v23  ;;  %v4745_v36 = vmax.f32 %v18960_v4, 0.0 }
 0x57d   :  { %8738 = vst.msk [vmem:[#allocation3 + $0xd1] sm:$0xff] %vm7963_vm7, %v8675_v34  ;;  %v7486_v10 = vmax.f32 %v7484_v8, %v7485_v46  ;;  %v19017_v45 = vsel %vm7963_vm7, %v7479_v3, -inf  ;;  %v5589_v53 = vcombine.high %v5581_v35, %v5581_v35  ;;  %v7403_v52 = vsel %vm6170_vm6, %v5581_v35, -inf }
 0x57e   :  { %v5590_v61 = vcombine.high %v5588_v14, %v5588_v14  ;;  %v7404_v58 = vrot.slane %v7403_v52, 4  ;;  %v7417_v0 = vsel %vm6170_vm6, %v5588_v14, -inf  ;;  %v5625_v12 = vcombine.high %v4745_v36, %v4745_v36 }
 0x57f   :  { %v19022_v37 = vsel %vm7963_vm7, %v7486_v10, -inf  ;;  %v7410_v1 = vsel %vm6170_vm6, %v5589_v53, -inf  ;;  %v7418_v4 = vrot.slane %v7417_v0, 4  ;;  %v5632_v56 = vrot.slane %v4745_v36, %v17935_v23 }
 0x580   :  { %v7405_v57 = vmax.f32 %v7403_v52, %v7404_v58  ;;  %v7411_v16 = vrot.slane %v7410_v1, 4  ;;  %v7424_v21 = vsel %vm6170_vm6, %v5590_v61, -inf  ;;  %v5639_v44 = vrot.slane %v5625_v12, %v17935_v23 }
 0x581   :  { %v7419_v33 = vmax.f32 %v7417_v0, %v7418_v4  ;;  %v7425_v13 = vrot.slane %v7424_v21, 4  ;;  %v5640_v11 = vcombine.high %v5632_v56, %v5632_v56  ;;  %v7487_v15 = vsel %vm6170_vm6, %v5632_v56, -inf }
 0x582   :  { %v7406_v63 = vrot.slane %v7405_v57, 2  ;;  %v7412_v32 = vmax.f32 %v7410_v1, %v7411_v16  ;;  %v5641_v47 = vcombine.high %v5639_v44, %v5639_v44  ;;  %v7488_v18 = vrot.slane %v7487_v15, 4 }
 0x583   :  { %v7420_v41 = vrot.slane %v7419_v33, 2  ;;  %v7426_v48 = vmax.f32 %v7424_v21, %v7425_v13  ;;  %v7494_v43 = vsel %vm6170_vm6, %v5640_v11, -inf  ;;  %v7501_v50 = vsel %vm6170_vm6, %v5639_v44, -inf }
 0x584   :  { %v7407_v2 = vmax.f32 %v7405_v57, %v7406_v63  ;;  %v7413_v29 = vrot.slane %v7412_v32, 2  ;;  %v7489_v8 = vmax.f32 %v7487_v15, %v7488_v18  ;;  %v7495_v24 = vrot.slane %v7494_v43, 4 }
 0x585   :  { %v7421_v31 = vmax.f32 %v7419_v33, %v7420_v41  ;;  %v7427_v19 = vrot.slane %v7426_v48, 2  ;;  %v7502_v9 = vrot.slane %v7501_v50, 4  ;;  %v7508_v3 = vsel %vm6170_vm6, %v5641_v47, -inf }
 0x586   :  { %v7408_v46 = vrot.slane %v7407_v2, 1  ;;  %v7414_v35 = vmax.f32 %v7412_v32, %v7413_v29  ;;  %v7490_v34 = vrot.slane %v7489_v8, 2  ;;  %v7496_v14 = vmax.f32 %v7494_v43, %v7495_v24  ;;  %v21846_v24 = vld [vmem:[#allocation17_spill] sm:$0xff] }
 0x587   :  { %v7422_v36 = vrot.slane %v7421_v31, 1  ;;  %v7428_v10 = vmax.f32 %v7426_v48, %v7427_v19  ;;  %v7503_v53 = vmax.f32 %v7501_v50, %v7502_v9  ;;  %v7509_v52 = vrot.slane %v7508_v3, 4 }
 0x588   :  { %v7409_v61 = vmax.f32 %v7407_v2, %v7408_v46  ;;  %v7415_v58 = vrot.slane %v7414_v35, 1  ;;  %v7491_v0 = vmax.f32 %v7489_v8, %v7490_v34  ;;  %v7497_v12 = vrot.slane %v7496_v14, 2 }
 0x589   :  { %v7423_v1 = vmax.f32 %v7421_v31, %v7422_v36  ;;  %v7429_v4 = vrot.slane %v7428_v10, 1  ;;  %v7504_v56 = vrot.slane %v7503_v53, 2  ;;  %v7510_v57 = vmax.f32 %v7508_v3, %v7509_v52  ;;  %v21847_v3 = vld [vmem:[#allocation20_spill] sm:$0xff]  ;;  %v8757_v36 = vld [vmem:[#allocation3 + $0x68] sm:$0x3] }
 0x58a   :  { %v7416_v16 = vmax.f32 %v7414_v35, %v7415_v58  ;;  %v8228_v21 = vsel %vm7963_vm7, %v7409_v61, -inf  ;;  %v7492_v44 = vrot.slane %v7491_v0, 1  ;;  %v7498_v33 = vmax.f32 %v7496_v14, %v7497_v12  ;;  %v8759_v58 = vld [vmem:[#allocation3 + $0x78] sm:$0x3] }
 0x58b   :  { %v7430_v13 = vmax.f32 %v7428_v10, %v7429_v4  ;;  %v8230_v11 = vmax.f32 %v8228_v21, %v19001_v59  ;;  %v8234_v15 = vsel %vm7963_vm7, %v7423_v1, -inf  ;;  %v7505_v63 = vmax.f32 %v7503_v53, %v7504_v56  ;;  %v19060_v10 = vld [vmem:[#allocation3 + $0x70] sm:$0xff] }
 0x58c   :  { %v8231_v32 = vsel %vm7963_vm7, %v7416_v16, -inf  ;;  %v8236_v47 = vmax.f32 %v8234_v15, %v19017_v45  ;;  %v7493_v18 = vmax.f32 %v7491_v0, %v7492_v44  ;;  %v7499_v41 = vrot.slane %v7498_v33, 1  ;;  %v19072_v0 = vld [vmem:[%s21290_s4] ss:$0 sm:$0xff]  ;;  %v21849_v1 = vld [vmem:[#allocation14_spill] sm:$0xff] }
 0x58d   :  { %v8233_v48 = vmax.f32 %v8231_v32, %v19008_v6  ;;  %v8237_v43 = vsel %vm7963_vm7, %v7430_v13, -inf  ;;  %v7506_v50 = vrot.slane %v7505_v63, 1  ;;  %v7511_v2 = vrot.slane %v7510_v57, 2 }
 0x58e   :  { %v8239_v29 = vmax.f32 %v8237_v43, %v19022_v37  ;;  %v7500_v8 = vmax.f32 %v7498_v33, %v7499_v41  ;;  %v19041_v59 = vsel %vm7963_vm7, %v7493_v18, -inf  ;;  %v14629_v31 = vadd.f32 %v18711_v51, %v21846_v24  ;;  %v19055_v37 = vld [vmem:[%s21289_s3] ss:$0 sm:$0xff] }
 0x58f   :  { %v8676_v19 = vsel %vm8592_vm8, %v8233_v48, %v8230_v11  ;;  %v7507_v45 = vmax.f32 %v7505_v63, %v7506_v50  ;;  %v7512_v9 = vmax.f32 %v7510_v57, %v7511_v2  ;;  %v14630_v6 = vadd.f32 %v18777_v30, %v21847_v3  ;;  %v21848_v51 = vld [vmem:[#allocation80_spill] sm:$0xff] }
 0x590   :  { %v8677_v46 = vsel %vm8594_vm9, %v8236_v47, %v8676_v19  ;;  %v19050_v35 = vsel %vm7963_vm7, %v7500_v8, -inf  ;;  %v4609_v34 = vmul.f32 %v19055_v37, %v14629_v31  ;;  %v14631_v14 = vadd.f32 %v18779_v28, %v21848_v51 }
 0x591   :  { %v7513_v53 = vrot.slane %v7512_v9, 1  ;;  %v19063_v30 = vsel %vm7963_vm7, %v7507_v45, -inf  ;;  %v19066_v52 = vsel %vm8596_vm10, %v8239_v29, %v8677_v46  ;;  %v4614_v61 = vmul.f32 %v19055_v37, %v14630_v6 }
 0x592   :  { %v4679_v28 = vadd.f32 %v19072_v0, %v4609_v34  ;;  %v4612_v12 = vmul.f32 %v19055_v37, %v14631_v14  ;;  %v14632_v4 = vadd.f32 %v18804_v60, %v21849_v1  ;;  %v8834_v56 = vrot.slane %v18923_v25, 1  ;;  %v21850_v25 = vld [vmem:[#allocation25_spill] sm:$0xff] }
 0x593   :  { %v7514_v57 = vmax.f32 %v7512_v9, %v7513_v53  ;;  %v4684_v16 = vadd.f32 %v19072_v0, %v4614_v61  ;;  %v8835_v21 = vrot.slane %v8757_v36, 1  ;;  %v8837_v44 = vrot.slane %v19060_v10, 1 }
 0x594   :  { %v4743_v33 = vmax.f32 %v4679_v28, 0.0  ;;  %v4682_v13 = vadd.f32 %v19072_v0, %v4612_v12  ;;  %v4615_v11 = vmul.f32 %v19055_v37, %v14632_v4  ;;  %v8838_v15 = vrot.slane %v8759_v58, 1 }
 0x595   :  { %v19084_v63 = vsel %vm7963_vm7, %v7514_v57, -inf  ;;  %v4748_v32 = vmax.f32 %v4684_v16, 0.0  ;;  %v19087_v60 = vsel %vm483_vm5, %v8834_v56, %v8835_v21  ;;  %v14633_v47 = vadd.f32 %v18831_v55, %v21850_v25  ;;  %v19115_v56 = vpop.f32.mrb[59].mxu0 }
 0x596   :  { %v5591_v18 = vcombine.high %v4743_v33, %v4743_v33  ;;  %v5598_v41 = vrot.slane %v4743_v33, %v17935_v23  ;;  %v19092_v48 = vmax.f32 %v4682_v13, 0.0  ;;  %v19095_v43 = vadd.f32 %v19072_v0, %v4615_v11 }
 0x597   :  { %v5676_v50 = vcombine.high %v4748_v32, %v4748_v32  ;;  %v5683_v2 = vrot.slane %v4748_v32, %v17935_v23  ;;  %v19099_v29 = vsel %vm483_vm5, %v8837_v44, %v8838_v15  ;;  %v19102_v8 = vmul.f32 %v19055_v37, %v14633_v47 }
 0x598   :  { %v5605_v24 = vrot.slane %v5591_v18, %v17935_v23  ;;  %v5606_v55 = vcombine.high %v5598_v41, %v5598_v41  ;;  %v7431_v31 = vsel %vm6170_vm6, %v5598_v41, -inf  ;;  %v5642_v19 = vcombine.high %v19092_v48, %v19092_v48 }
 0x599   :  { %v7432_v45 = vrot.slane %v7431_v31, 4  ;;  %v5690_v9 = vrot.slane %v5676_v50, %v17935_v23  ;;  %v5691_v3 = vcombine.high %v5683_v2, %v5683_v2  ;;  %v7571_v6 = vsel %vm6170_vm6, %v5683_v2, -inf }
 0x59a   :  { %v5607_v46 = vcombine.high %v5605_v24, %v5605_v24  ;;  %v7438_v34 = vsel %vm6170_vm6, %v5606_v55, -inf  ;;  %v7445_v51 = vsel %vm6170_vm6, %v5605_v24, -inf  ;;  %v7572_v14 = vrot.slane %v7571_v6, 4 }
 0x59b   :  { %v7433_v36 = vmax.f32 %v7431_v31, %v7432_v45  ;;  %v7439_v53 = vrot.slane %v7438_v34, 4  ;;  %v7446_v61 = vrot.slane %v7445_v51, 4  ;;  %v5692_v58 = vcombine.high %v5690_v9, %v5690_v9 }
 0x59c   :  { %v7452_v28 = vsel %vm6170_vm6, %v5607_v46, -inf  ;;  %v7573_v12 = vmax.f32 %v7571_v6, %v7572_v14  ;;  %v7578_v1 = vsel %vm6170_vm6, %v5691_v3, -inf  ;;  %v7585_v4 = vsel %vm6170_vm6, %v5690_v9, -inf  ;;  %v19118_v3 = vpop.f32.mrb[60].mxu0 }
 0x59d   :  { %v7434_v57 = vrot.slane %v7433_v36, 2  ;;  %v7440_v16 = vmax.f32 %v7438_v34, %v7439_v53  ;;  %v7447_v21 = vmax.f32 %v7445_v51, %v7446_v61  ;;  %v7453_v44 = vrot.slane %v7452_v28, 4  ;;  %v19120_v14 = vpop.f32.mrb[61].mxu0 }
 0x59e   :  { %v7574_v33 = vrot.slane %v7573_v12, 2  ;;  %v7579_v13 = vrot.slane %v7578_v1, 4  ;;  %v7586_v11 = vrot.slane %v7585_v4, 4  ;;  %v7592_v15 = vsel %vm6170_vm6, %v5692_v58, -inf }
 0x59f   :  { %v7435_v32 = vmax.f32 %v7433_v36, %v7434_v57  ;;  %v7441_v25 = vrot.slane %v7440_v16, 2  ;;  %v7448_v47 = vrot.slane %v7447_v21, 2  ;;  %v7454_v18 = vmax.f32 %v7452_v28, %v7453_v44 }
 0x5a0   :  { %v7575_v41 = vmax.f32 %v7573_v12, %v7574_v33  ;;  %v7580_v50 = vmax.f32 %v7578_v1, %v7579_v13  ;;  %v7587_v2 = vmax.f32 %v7585_v4, %v7586_v11  ;;  %v7593_v24 = vrot.slane %v7592_v15, 4 }
 0x5a1   :  { %v7436_v55 = vrot.slane %v7435_v32, 1  ;;  %v7442_v31 = vmax.f32 %v7440_v16, %v7441_v25  ;;  %v7449_v45 = vmax.f32 %v7447_v21, %v7448_v47  ;;  %v7455_v9 = vrot.slane %v7454_v18, 2 }
 0x5a2   :  { %v7576_v6 = vrot.slane %v7575_v41, 1  ;;  %v7581_v46 = vrot.slane %v7580_v50, 2  ;;  %v7588_v34 = vrot.slane %v7587_v2, 2  ;;  %v7594_v51 = vmax.f32 %v7592_v15, %v7593_v24 }
 0x5a3   :  { %v7437_v36 = vmax.f32 %v7435_v32, %v7436_v55  ;;  %v7443_v53 = vrot.slane %v7442_v31, 1  ;;  %v7450_v61 = vrot.slane %v7449_v45, 1  ;;  %v7456_v58 = vmax.f32 %v7454_v18, %v7455_v9 }
 0x5a4   :  { %v7577_v28 = vmax.f32 %v7575_v41, %v7576_v6  ;;  %v7582_v12 = vmax.f32 %v7580_v50, %v7581_v46  ;;  %v7589_v1 = vmax.f32 %v7587_v2, %v7588_v34  ;;  %v7595_v4 = vrot.slane %v7594_v51, 2 }
 0x5a5   :  { %v7444_v57 = vmax.f32 %v7442_v31, %v7443_v53  ;;  %v7451_v16 = vmax.f32 %v7449_v45, %v7450_v61  ;;  %v7457_v21 = vrot.slane %v7456_v58, 1  ;;  %v8240_v44 = vsel %vm7963_vm7, %v7437_v36, -inf  ;;  %v19149_v36 = vpop.f32.mrb[62].mxu0 }
 0x5a6   :  { %v8242_v33 = vmax.f32 %v8240_v44, %v19041_v59  ;;  %v7583_v13 = vrot.slane %v7582_v12, 1  ;;  %v7590_v11 = vrot.slane %v7589_v1, 1  ;;  %v7596_v15 = vmax.f32 %v7594_v51, %v7595_v4 }
 0x5a7   :  { %v7458_v25 = vmax.f32 %v7456_v58, %v7457_v21  ;;  %v8243_v32 = vsel %vm7963_vm7, %v7444_v57, -inf  ;;  %v8246_v47 = vsel %vm7963_vm7, %v7451_v16, -inf  ;;  %v19127_v18 = vsel %vm7963_vm7, %v7577_v28, -inf }
 0x5a8   :  { %v8245_v41 = vmax.f32 %v8243_v32, %v19050_v35  ;;  %v8248_v50 = vmax.f32 %v8246_v47, %v19063_v30  ;;  %v8679_v2 = vsel %vm8598_vm11, %v8242_v33, %v19066_v52  ;;  %v7584_v24 = vmax.f32 %v7582_v12, %v7583_v13 }
 0x5a9   :  { %v8249_v59 = vsel %vm7963_vm7, %v7458_v25, -inf  ;;  %v7591_v55 = vmax.f32 %v7589_v1, %v7590_v11  ;;  %v7597_v31 = vrot.slane %v7596_v15, 1  ;;  %v5649_v45 = vrot.slane %v19092_v48, %v17935_v23  ;;  %v8760_v1 = vld [vmem:[#allocation3 + $0x80] sm:$0xff] }
 0x5aa   :  { %v8251_v9 = vmax.f32 %v8249_v59, %v19084_v63  ;;  %v8680_v6 = vsel %vm8600_vm12, %v8245_v41, %v8679_v2  ;;  %v19139_v46 = vsel %vm7963_vm7, %v7584_v24, -inf  ;;  %v5656_v35 = vrot.slane %v5642_v19, %v17935_v23 }
 0x5ab   :  { %v8681_v30 = vsel %vm8602_vm13, %v8248_v50, %v8680_v6  ;;  %v7598_v52 = vmax.f32 %v7596_v15, %v7597_v31  ;;  %v19147_v34 = vsel %vm7963_vm7, %v7591_v55, -inf  ;;  %v5657_v51 = vcombine.high %v5649_v45, %v5649_v45 }
 0x5ac   :  { %v8682_v63 = vsel %vm8604_vm14, %v8251_v9, %v8681_v30  ;;  %v5658_v53 = vcombine.high %v5656_v35, %v5656_v35  ;;  %v7515_v61 = vsel %vm6170_vm6, %v5649_v45, -inf  ;;  %v7529_v58 = vsel %vm6170_vm6, %v5656_v35, -inf  ;;  %v19171_v35 = vpop.f32.mrb[63].mxu0 }
 0x5ad   :  { %8739 = vst.msk [vmem:[#allocation3 + $0xe1] sm:$0xff] %vm7963_vm7, %v8682_v63  ;;  %v19156_v48 = vsel %vm7963_vm7, %v7598_v52, -inf  ;;  %v7516_v19 = vrot.slane %v7515_v61, 4  ;;  %v7522_v28 = vsel %vm6170_vm6, %v5657_v51, -inf  ;;  %v7530_v12 = vrot.slane %v7529_v58, 4 }
 0x5ae   :  { %v7523_v4 = vrot.slane %v7522_v28, 4  ;;  %v7536_v57 = vsel %vm6170_vm6, %v5658_v53, -inf  ;;  %v4749_v16 = vmax.f32 %v19095_v43, 0.0  ;;  %v15138_v21 = vpack.i.bf16 %v19099_v29, %v19087_v60 }
 0x5af   :  { %v7517_v44 = vmax.f32 %v7515_v61, %v7516_v19  ;;  %v7531_v33 = vmax.f32 %v7529_v58, %v7530_v12  ;;  %v7537_v13 = vrot.slane %v7536_v57, 4  ;;  %v4683_v11 = vadd.f32 %v19072_v0, %v19102_v8 }
 0x5b0   :  { %v7524_v15 = vmax.f32 %v7522_v28, %v7523_v4  ;;  %v5693_v25 = vcombine.high %v4749_v16, %v4749_v16  ;;  %v5700_v32 = vrot.slane %v4749_v16, %v17935_v23  ;;  %15139 = vrot.lane.b32.xlu1 %v15138_v21, %s15534_s12  ;;  %v15133_v47 = vpack.i.bf16 %v8760_v1, %v19060_v10 }
 0x5b1   :  { %v7518_v41 = vrot.slane %v7517_v44, 2  ;;  %v7532_v50 = vrot.slane %v7531_v33, 2  ;;  %v7538_v43 = vmax.f32 %v7536_v57, %v7537_v13  ;;  %v4747_v2 = vmax.f32 %v4683_v11, 0.0 }
 0x5b2   :  { %v7525_v24 = vrot.slane %v7524_v15, 2  ;;  %v5707_v59 = vrot.slane %v5693_v25, %v17935_v23  ;;  %v5708_v55 = vcombine.high %v5700_v32, %v5700_v32  ;;  %v7599_v31 = vsel %vm6170_vm6, %v5700_v32, -inf  ;;  %15134 = vrot.lane.b32.xlu0 %v15133_v47, %s15534_s12 }
 0x5b3   :  { %v7519_v8 = vmax.f32 %v7517_v44, %v7518_v41  ;;  %v7533_v45 = vmax.f32 %v7531_v33, %v7532_v50  ;;  %v7539_v9 = vrot.slane %v7538_v43, 2  ;;  %v7600_v6 = vrot.slane %v7599_v31, 4 }
 0x5b4   :  { %v7526_v30 = vmax.f32 %v7524_v15, %v7525_v24  ;;  %v5709_v10 = vcombine.high %v5707_v59, %v5707_v59  ;;  %v7606_v52 = vsel %vm6170_vm6, %v5708_v55, -inf  ;;  %v7613_v51 = vsel %vm6170_vm6, %v5707_v59, -inf }
 0x5b5   :  { %v7520_v63 = vrot.slane %v7519_v8, 1  ;;  %v7534_v53 = vrot.slane %v7533_v45, 1  ;;  %v7540_v61 = vmax.f32 %v7538_v43, %v7539_v9  ;;  %v7601_v58 = vmax.f32 %v7599_v31, %v7600_v6 }
 0x5b6   :  { %v7527_v19 = vrot.slane %v7526_v30, 1  ;;  %v7607_v28 = vrot.slane %v7606_v52, 4  ;;  %v7614_v12 = vrot.slane %v7613_v51, 4  ;;  %v7620_v1 = vsel %vm6170_vm6, %v5709_v10, -inf }
 0x5b7   :  { %v7521_v4 = vmax.f32 %v7519_v8, %v7520_v63  ;;  %v7535_v57 = vmax.f32 %v7533_v45, %v7534_v53  ;;  %v7541_v16 = vrot.slane %v7540_v61, 1  ;;  %v7602_v21 = vrot.slane %v7601_v58, 2 }
 0x5b8   :  { %v7528_v44 = vmax.f32 %v7526_v30, %v7527_v19  ;;  %v7608_v33 = vmax.f32 %v7606_v52, %v7607_v28  ;;  %v7615_v13 = vmax.f32 %v7613_v51, %v7614_v12  ;;  %v7621_v11 = vrot.slane %v7620_v1, 4 }
 0x5b9   :  { %v7542_v15 = vmax.f32 %v7540_v61, %v7541_v16  ;;  %v8252_v25 = vsel %vm7963_vm7, %v7521_v4, -inf  ;;  %v8258_v32 = vsel %vm7963_vm7, %v7535_v57, -inf  ;;  %v7603_v47 = vmax.f32 %v7601_v58, %v7602_v21 }
 0x5ba   :  { %v8254_v41 = vmax.f32 %v8252_v25, %v19127_v18  ;;  %v8255_v50 = vsel %vm7963_vm7, %v7528_v44, -inf  ;;  %v8260_v43 = vmax.f32 %v8258_v32, %v19147_v34  ;;  %v7609_v24 = vrot.slane %v7608_v33, 2 }
 0x5bb   :  { %v8257_v59 = vmax.f32 %v8255_v50, %v19139_v46  ;;  %v8261_v55 = vsel %vm7963_vm7, %v7542_v15, -inf  ;;  %v7604_v31 = vrot.slane %v7603_v47, 1  ;;  %v7616_v8 = vrot.slane %v7615_v13, 2 }
 0x5bc   :  { %v8263_v45 = vmax.f32 %v8261_v55, %v19156_v48  ;;  %v7610_v9 = vmax.f32 %v7608_v33, %v7609_v24  ;;  %v7622_v6 = vmax.f32 %v7620_v1, %v7621_v11  ;;  %v5659_v30 = vcombine.high %v4747_v2, %v4747_v2 }
 0x5bd   :  { %v8683_v10 = vsel %vm8592_vm8, %v8257_v59, %v8254_v41  ;;  %v7605_v52 = vmax.f32 %v7603_v47, %v7604_v31  ;;  %v7617_v18 = vmax.f32 %v7615_v13, %v7616_v8  ;;  %v5666_v51 = vrot.slane %v4747_v2, %v17935_v23  ;;  %v21851_v47 = vld [vmem:[#allocation12_spill] sm:$0xff]  ;;  %v21852_v8 = vld [vmem:[#allocation15_spill] sm:$0xff] }
 0x5be   :  { %v8684_v34 = vsel %vm8594_vm9, %v8260_v43, %v8683_v10  ;;  %v7611_v63 = vrot.slane %v7610_v9, 1  ;;  %v7623_v53 = vrot.slane %v7622_v6, 2  ;;  %v5673_v46 = vrot.slane %v5659_v30, %v17935_v23 }
 0x5bf   :  { %v7618_v61 = vrot.slane %v7617_v18, 1  ;;  %v19189_v58 = vsel %vm7963_vm7, %v7605_v52, -inf  ;;  %v5674_v48 = vcombine.high %v5666_v51, %v5666_v51  ;;  %v7543_v19 = vsel %vm6170_vm6, %v5666_v51, -inf }
 0x5c0   :  { %v7612_v28 = vmax.f32 %v7610_v9, %v7611_v63  ;;  %v7624_v12 = vmax.f32 %v7622_v6, %v7623_v53  ;;  %v5675_v1 = vcombine.high %v5673_v46, %v5673_v46  ;;  %v7544_v4 = vrot.slane %v7543_v19, 4  ;;  %v21853_v9 = vld [vmem:[#allocation16_spill] sm:$0xff] }
 0x5c1   :  { %v7619_v57 = vmax.f32 %v7617_v18, %v7618_v61  ;;  %v7550_v2 = vsel %vm6170_vm6, %v5674_v48, -inf  ;;  %v7557_v16 = vsel %vm6170_vm6, %v5673_v46, -inf  ;;  %v8685_v21 = vsel %vm8596_vm10, %v8263_v45, %v8684_v34  ;;  %v21854_v48 = vld [vmem:[#allocation21_spill] sm:$0xff] }
 0x5c2   :  { %v7625_v44 = vrot.slane %v7624_v12, 1  ;;  %v8268_v33 = vsel %vm7963_vm7, %v7612_v28, -inf  ;;  %v7545_v13 = vmax.f32 %v7543_v19, %v7544_v4  ;;  %v7551_v11 = vrot.slane %v7550_v2, 4 }
 0x5c3   :  { %v8271_v15 = vsel %vm7963_vm7, %v7619_v57, -inf  ;;  %v7558_v25 = vrot.slane %v7557_v16, 4  ;;  %v7564_v32 = vsel %vm6170_vm6, %v5675_v1, -inf  ;;  %v14634_v41 = vadd.f32 %v18850_v22, %v21851_v47 }
 0x5c4   :  { %v7626_v50 = vmax.f32 %v7624_v12, %v7625_v44  ;;  %v7546_v43 = vrot.slane %v7545_v13, 2  ;;  %v7552_v24 = vmax.f32 %v7550_v2, %v7551_v11  ;;  %v7565_v59 = vrot.slane %v7564_v32, 4 }
 0x5c5   :  { %v7559_v55 = vmax.f32 %v7557_v16, %v7558_v25  ;;  %v4618_v31 = vmul.f32 %v19055_v37, %v14634_v41  ;;  %v14635_v45 = vadd.f32 %v18882_v20, %v21852_v8  ;;  %v14636_v6 = vadd.f32 %v18896_v54, %v21853_v9 }
 0x5c6   :  { %v8274_v30 = vsel %vm7963_vm7, %v7626_v50, -inf  ;;  %v7547_v10 = vmax.f32 %v7545_v13, %v7546_v43  ;;  %v7553_v52 = vrot.slane %v7552_v24, 2  ;;  %v7566_v18 = vmax.f32 %v7564_v32, %v7565_v59 }
 0x5c7   :  { %v7560_v51 = vrot.slane %v7559_v55, 2  ;;  %v4688_v22 = vadd.f32 %v19072_v0, %v4618_v31  ;;  %v4616_v34 = vmul.f32 %v19055_v37, %v14635_v45  ;;  %v4619_v63 = vmul.f32 %v19055_v37, %v14636_v6 }
 0x5c8   :  { %v7548_v53 = vrot.slane %v7547_v10, 1  ;;  %v7554_v46 = vmax.f32 %v7552_v24, %v7553_v52  ;;  %v7567_v61 = vrot.slane %v7566_v18, 2  ;;  %v14637_v20 = vadd.f32 %v18909_v27, %v21854_v48 }
 0x5c9   :  { %v7561_v19 = vmax.f32 %v7559_v55, %v7560_v51  ;;  %v4752_v54 = vmax.f32 %v4688_v22, 0.0  ;;  %v4686_v28 = vadd.f32 %v19072_v0, %v4616_v34  ;;  %v4689_v12 = vadd.f32 %v19072_v0, %v4619_v63 }
 0x5ca   :  { %v7549_v1 = vmax.f32 %v7547_v10, %v7548_v53  ;;  %v7555_v4 = vrot.slane %v7554_v46, 1  ;;  %v7568_v57 = vmax.f32 %v7566_v18, %v7567_v61  ;;  %v19214_v2 = vmul.f32 %v19055_v37, %v14637_v20 }
 0x5cb   :  { %v7562_v16 = vrot.slane %v7561_v19, 1  ;;  %v5744_v44 = vcombine.high %v4752_v54, %v4752_v54  ;;  %v5751_v13 = vrot.slane %v4752_v54, %v17935_v23  ;;  %v4750_v11 = vmax.f32 %v4686_v28, 0.0 }
 0x5cc   :  { %v7556_v25 = vmax.f32 %v7554_v46, %v7555_v4  ;;  %v7569_v32 = vrot.slane %v7568_v57, 1  ;;  %v8264_v27 = vsel %vm7963_vm7, %v7549_v1, -inf  ;;  %v19218_v47 = vmax.f32 %v4689_v12, 0.0 }
 0x5cd   :  { %v7563_v41 = vmax.f32 %v7561_v19, %v7562_v16  ;;  %v8266_v50 = vmax.f32 %v8264_v27, %v19189_v58  ;;  %v5758_v43 = vrot.slane %v5744_v44, %v17935_v23  ;;  %v5759_v24 = vcombine.high %v5751_v13, %v5751_v13 }
 0x5ce   :  { %v7570_v59 = vmax.f32 %v7568_v57, %v7569_v32  ;;  %v8267_v55 = vsel %vm7963_vm7, %v7556_v25, -inf  ;;  %v7683_v31 = vsel %vm6170_vm6, %v5751_v13, -inf  ;;  %v5710_v8 = vcombine.high %v4750_v11, %v4750_v11 }
 0x5cf   :  { %v8269_v45 = vmax.f32 %v8267_v55, %v8268_v33  ;;  %v8270_v9 = vsel %vm7963_vm7, %v7563_v41, -inf  ;;  %v8686_v6 = vsel %vm8598_vm11, %v8266_v50, %v8685_v21  ;;  %v5760_v10 = vcombine.high %v5758_v43, %v5758_v43 }
 0x5d0   :  { %v8272_v52 = vmax.f32 %v8270_v9, %v8271_v15  ;;  %v8273_v18 = vsel %vm7963_vm7, %v7570_v59, -inf  ;;  %v7684_v51 = vrot.slane %v7683_v31, 4  ;;  %v7690_v58 = vsel %vm6170_vm6, %v5759_v24, -inf }
 0x5d1   :  { %v8275_v22 = vmax.f32 %v8273_v18, %v8274_v30  ;;  %v8687_v34 = vsel %vm8600_vm12, %v8269_v45, %v8686_v6  ;;  %v7691_v63 = vrot.slane %v7690_v58, 4  ;;  %v7697_v53 = vsel %vm6170_vm6, %v5758_v43, -inf }
 0x5d2   :  { %v8688_v46 = vsel %vm8602_vm13, %v8272_v52, %v8687_v34  ;;  %v7685_v33 = vmax.f32 %v7683_v31, %v7684_v51  ;;  %v7698_v61 = vrot.slane %v7697_v53, 4  ;;  %v7704_v48 = vsel %vm6170_vm6, %v5760_v10, -inf }
 0x5d3   :  { %v8689_v21 = vsel %vm8604_vm14, %v8275_v22, %v8688_v46  ;;  %v7692_v15 = vmax.f32 %v7690_v58, %v7691_v63  ;;  %v7705_v20 = vrot.slane %v7704_v48, 4  ;;  %v5717_v19 = vrot.slane %v4750_v11, %v17935_v23 }
 0x5d4   :  { %8740 = vst.msk [vmem:[#allocation3 + $0xf1] sm:$0xff] %vm7963_vm7, %v8689_v21  ;;  %v7686_v30 = vrot.slane %v7685_v33, 2  ;;  %v7699_v54 = vmax.f32 %v7697_v53, %v7698_v61  ;;  %v5724_v28 = vrot.slane %v5710_v8, %v17935_v23  ;;  %v5761_v12 = vcombine.high %v19218_v47, %v19218_v47 }
 0x5d5   :  { %v7693_v1 = vrot.slane %v7692_v15, 2  ;;  %v7706_v4 = vmax.f32 %v7704_v48, %v7705_v20  ;;  %v5725_v57 = vcombine.high %v5717_v19, %v5717_v19  ;;  %v7627_v16 = vsel %vm6170_vm6, %v5717_v19, -inf }
 0x5d6   :  { %v7687_v44 = vmax.f32 %v7685_v33, %v7686_v30  ;;  %v7700_v13 = vrot.slane %v7699_v54, 2  ;;  %v5726_v25 = vcombine.high %v5724_v28, %v5724_v28  ;;  %v7628_v32 = vrot.slane %v7627_v16, 4 }
 0x5d7   :  { %v7694_v27 = vmax.f32 %v7692_v15, %v7693_v1  ;;  %v7707_v11 = vrot.slane %v7706_v4, 2  ;;  %v7634_v41 = vsel %vm6170_vm6, %v5725_v57, -inf  ;;  %v7641_v50 = vsel %vm6170_vm6, %v5724_v28, -inf  ;;  %v15275_v28 = vld [vmem:[%s21288_s2 + $0x40] sm:$0xff]  }
 0x5d8   :  { %v7688_v43 = vrot.slane %v7687_v44, 1  ;;  %v7701_v24 = vmax.f32 %v7699_v54, %v7700_v13  ;;  %v7629_v59 = vmax.f32 %v7627_v16, %v7628_v32  ;;  %v7635_v55 = vrot.slane %v7634_v41, 4  ;;  %v15277_v13 = vld [vmem:[%s21288_s2 + $0x48] sm:$0xff]   ;;  %13662 = vmatprep.subr.bf16.mxu1 %v15275_v28 }
 0x5d9   :  { %v7695_v31 = vrot.slane %v7694_v27, 1  ;;  %v7708_v8 = vmax.f32 %v7706_v4, %v7707_v11  ;;  %v7642_v45 = vrot.slane %v7641_v50, 4  ;;  %v7648_v9 = vsel %vm6170_vm6, %v5726_v25, -inf }
 0x5da   :  { %v7689_v6 = vmax.f32 %v7687_v44, %v7688_v43  ;;  %v7702_v10 = vrot.slane %v7701_v24, 1  ;;  %v7630_v52 = vrot.slane %v7629_v59, 2  ;;  %v7636_v18 = vmax.f32 %v7634_v41, %v7635_v55  ;;  %v15276_v44 = vld [vmem:[%s21288_s2] sm:$0xff]  }
 0x5db   :  { %v7696_v51 = vmax.f32 %v7694_v27, %v7695_v31  ;;  %v7709_v58 = vrot.slane %v7708_v8, 1  ;;  %v7643_v22 = vmax.f32 %v7641_v50, %v7642_v45  ;;  %v7649_v34 = vrot.slane %v7648_v9, 4  ;;  %13663 = vmatpush3.bf16.msra.mxu1 %v15276_v44 }
 0x5dc   :  { %v7703_v63 = vmax.f32 %v7701_v24, %v7702_v10  ;;  %v8277_v53 = vsel %vm7963_vm7, %v7689_v6, -inf  ;;  %v7631_v46 = vmax.f32 %v7629_v59, %v7630_v52  ;;  %v7637_v33 = vrot.slane %v7636_v18, 2  ;;  %13664 = vmatprep.subr.bf16.mxu1 %v15277_v13 }
 0x5dd   :  { %v7710_v61 = vmax.f32 %v7708_v8, %v7709_v58  ;;  %v8280_v48 = vsel %vm7963_vm7, %v7696_v51, -inf  ;;  %v7644_v21 = vrot.slane %v7643_v22, 2  ;;  %v7650_v15 = vmax.f32 %v7648_v9, %v7649_v34  ;;  %v15279_v8 = vld [vmem:[%s21288_s2 + $0x50] sm:$0xff]  }
 0x5de   :  { %v8283_v20 = vsel %vm7963_vm7, %v7703_v63, -inf  ;;  %v7632_v19 = vrot.slane %v7631_v46, 1  ;;  %v7638_v30 = vmax.f32 %v7636_v18, %v7637_v33  ;;  %v5768_v54 = vrot.slane %v19218_v47, %v17935_v23  ;;  %v15280_v33 = vld [vmem:[%s21288_s2 + $0x10] sm:$0xff]  }
 0x5df   :  { %v8286_v1 = vsel %vm7963_vm7, %v7710_v61, -inf  ;;  %v7645_v4 = vmax.f32 %v7643_v22, %v7644_v21  ;;  %v7651_v57 = vrot.slane %v7650_v15, 2  ;;  %v5775_v16 = vrot.slane %v5761_v12, %v17935_v23  ;;  %v15278_v12 = vld [vmem:[%s21288_s2 + $0x8] sm:$0xff]  }
 0x5e0   :  { %v7633_v25 = vmax.f32 %v7631_v46, %v7632_v19  ;;  %v7639_v47 = vrot.slane %v7638_v30, 1  ;;  %v5776_v32 = vcombine.high %v5768_v54, %v5768_v54  ;;  %v7711_v27 = vsel %vm6170_vm6, %v5768_v54, -inf  ;;  %13665 = vmatpush3.bf16.msra.mxu1 %v15278_v12  ;;  %v15281_v19 = vld [vmem:[%s21288_s2 + $0x58] sm:$0xff]  }
 0x5e1   :  { %v7646_v11 = vrot.slane %v7645_v4, 1  ;;  %v7652_v41 = vmax.f32 %v7650_v15, %v7651_v57  ;;  %v5777_v50 = vcombine.high %v5775_v16, %v5775_v16  ;;  %v7712_v43 = vrot.slane %v7711_v27, 4  ;;  %13666 = vmatprep.subr.bf16.mxu1 %v15279_v8 }
 0x5e2   :  { %v7640_v24 = vmax.f32 %v7638_v30, %v7639_v47  ;;  %v8276_v59 = vsel %vm7963_vm7, %v7633_v25, -inf  ;;  %v7718_v55 = vsel %vm6170_vm6, %v5776_v32, -inf  ;;  %v7725_v31 = vsel %vm6170_vm6, %v5775_v16, -inf  ;;  %v21855_v47 = vld [vmem:[#allocation55_spill] sm:$0xff] }
 0x5e3   :  { %v7647_v45 = vmax.f32 %v7645_v4, %v7646_v11  ;;  %v7653_v9 = vrot.slane %v7652_v41, 1  ;;  %v8278_v6 = vmax.f32 %v8276_v59, %v8277_v53  ;;  %v7713_v10 = vmax.f32 %v7711_v27, %v7712_v43  ;;  %v15282_v27 = vld [vmem:[%s21288_s2 + $0x18] sm:$0xff]   ;;  %v15283_v43 = vld [vmem:[%s21288_s2 + $0x60] sm:$0xff]  }
 0x5e4   :  { %v8279_v52 = vsel %vm7963_vm7, %v7640_v24, -inf  ;;  %v7719_v18 = vrot.slane %v7718_v55, 4  ;;  %v7726_v51 = vrot.slane %v7725_v31, 4  ;;  %v7732_v58 = vsel %vm6170_vm6, %v5777_v50, -inf  ;;  %13667 = vmatpush3.bf16.msra.mxu1 %v15280_v33 }
 0x5e5   :  { %v7654_v22 = vmax.f32 %v7652_v41, %v7653_v9  ;;  %v8281_v34 = vmax.f32 %v8279_v52, %v8280_v48  ;;  %v8282_v63 = vsel %vm7963_vm7, %v7647_v45, -inf  ;;  %v7714_v46 = vrot.slane %v7713_v10, 2  ;;  %13668 = vmatprep.subr.bf16.mxu1 %v15281_v19  ;;  %v15284_v52 = vld [vmem:[%s21288_s2 + $0x20] sm:$0xff]  }
 0x5e6   :  { %v8284_v61 = vmax.f32 %v8282_v63, %v8283_v20  ;;  %v7720_v21 = vmax.f32 %v7718_v55, %v7719_v18  ;;  %v7727_v53 = vmax.f32 %v7725_v31, %v7726_v51  ;;  %v7733_v15 = vrot.slane %v7732_v58, 4 }
 0x5e7   :  { %v8285_v30 = vsel %vm7963_vm7, %v7654_v22, -inf  ;;  %v8690_v48 = vsel %vm8592_vm8, %v8281_v34, %v8278_v6  ;;  %v7715_v54 = vmax.f32 %v7713_v10, %v7714_v46  ;;  %v4687_v28 = vadd.f32 %v19072_v0, %v19214_v2  ;;  %v15285_v34 = vld [vmem:[%s21288_s2 + $0x68] sm:$0xff]  }
 0x5e8   :  { %v8287_v4 = vmax.f32 %v8285_v30, %v8286_v1  ;;  %v8691_v57 = vsel %vm8594_vm9, %v8284_v61, %v8690_v48  ;;  %v7721_v20 = vrot.slane %v7720_v21, 2  ;;  %v7728_v16 = vrot.slane %v7727_v53, 2  ;;  %v21856_v1 = vld [vmem:[#allocation66_spill] sm:$0xff]  ;;  %13669 = vmatpush3.bf16.msra.mxu1 %v15282_v27  ;;  %v21857_v27 = vld [vmem:[#allocation69_spill] sm:$0xff] }
 0x5e9   :  { %v7716_v44 = vrot.slane %v7715_v54, 1  ;;  %v7734_v13 = vmax.f32 %v7732_v58, %v7733_v15  ;;  %v4751_v25 = vmax.f32 %v4687_v28, 0.0  ;;  %v14638_v32 = vadd.f32 %v18969_v26, %v21855_v47  ;;  %13670 = vmatprep.subr.bf16.mxu1 %v15283_v43 }
 0x5ea   :  { %v7722_v11 = vmax.f32 %v7720_v21, %v7721_v20  ;;  %v7729_v41 = vmax.f32 %v7727_v53, %v7728_v16  ;;  %v19288_v2 = vsel %vm8596_vm10, %v8287_v4, %v8691_v57  ;;  %v14639_v50 = vadd.f32 %v18985_v42, %v21856_v1  ;;  %v15286_v4 = vld [vmem:[%s21288_s2 + $0x28] sm:$0xff]  }
 0x5eb   :  { %v7717_v12 = vmax.f32 %v7715_v54, %v7716_v44  ;;  %v7735_v26 = vrot.slane %v7734_v13, 2  ;;  %v5727_v24 = vcombine.high %v4751_v25, %v4751_v25  ;;  %v5734_v59 = vrot.slane %v4751_v25, %v17935_v23 }
 0x5ec   :  { %v7723_v55 = vrot.slane %v7722_v11, 1  ;;  %v7730_v31 = vrot.slane %v7729_v41, 1  ;;  %v4622_v8 = vmul.f32 %v19055_v37, %v14638_v32  ;;  %v4620_v45 = vmul.f32 %v19055_v37, %v14639_v50  ;;  %13671 = vmatpush3.bf16.msra.mxu1 %v15284_v52 }
 0x5ed   :  { %v7736_v9 = vmax.f32 %v7734_v13, %v7735_v26  ;;  %v19299_v6 = vsel %vm7963_vm7, %v7717_v12, -inf  ;;  %v5741_v42 = vrot.slane %v5727_v24, %v17935_v23  ;;  %v5742_v10 = vcombine.high %v5734_v59, %v5734_v59  ;;  %13672 = vmatprep.subr.bf16.mxu1 %v15285_v34  ;;  %v15287_v13 = vld [vmem:[%s21288_s2 + $0x70] sm:$0xff]  }
 0x5ee   :  { %v7724_v18 = vmax.f32 %v7722_v11, %v7723_v55  ;;  %v7731_v51 = vmax.f32 %v7729_v41, %v7730_v31  ;;  %v7655_v58 = vsel %vm6170_vm6, %v5734_v59, -inf  ;;  %v4692_v22 = vadd.f32 %v19072_v0, %v4622_v8  ;;  %v15288_v55 = vld [vmem:[%s21288_s2 + $0x30] sm:$0xff]  }
 0x5ef   :  { %v7737_v63 = vrot.slane %v7736_v9, 1  ;;  %v5743_v46 = vcombine.high %v5741_v42, %v5741_v42  ;;  %v7656_v33 = vrot.slane %v7655_v58, 4  ;;  %v7662_v61 = vsel %vm6170_vm6, %v5742_v10, -inf }
 0x5f0   :  { %v19312_v21 = vsel %vm7963_vm7, %v7724_v18, -inf  ;;  %v19315_v53 = vsel %vm7963_vm7, %v7731_v51, -inf  ;;  %v7663_v15 = vrot.slane %v7662_v61, 4  ;;  %v7669_v19 = vsel %vm6170_vm6, %v5741_v42, -inf  ;;  %13673 = vmatpush3.bf16.msra.mxu1 %v15286_v4 }
 0x5f1   :  { %v7738_v30 = vmax.f32 %v7736_v9, %v7737_v63  ;;  %v7657_v48 = vmax.f32 %v7655_v58, %v7656_v33  ;;  %v7670_v54 = vrot.slane %v7669_v19, 4  ;;  %v7676_v28 = vsel %vm6170_vm6, %v5743_v46, -inf  ;;  %13674 = vmatprep.subr.bf16.mxu1 %v15287_v13  ;;  %v15289_v9 = vld [vmem:[%s21288_s2 + $0x78] sm:$0xff]  }
 0x5f2   :  { %v7664_v57 = vmax.f32 %v7662_v61, %v7663_v15  ;;  %v7677_v20 = vrot.slane %v7676_v28, 4  ;;  %v4756_v16 = vmax.f32 %v4692_v22, 0.0  ;;  %v4690_v44 = vadd.f32 %v19072_v0, %v4620_v45  ;;  %v15290_v61 = vld [vmem:[%s21288_s2 + $0x38] sm:$0xff]  }
 0x5f3   :  { %v19327_v25 = vsel %vm7963_vm7, %v7738_v30, -inf  ;;  %v7658_v47 = vrot.slane %v7657_v48, 2  ;;  %v7671_v32 = vmax.f32 %v7669_v19, %v7670_v54  ;;  %v14640_v11 = vadd.f32 %v18996_v49, %v21857_v27 }
 0x5f4   :  { %v7665_v41 = vrot.slane %v7664_v57, 2  ;;  %v7678_v1 = vmax.f32 %v7676_v28, %v7677_v20  ;;  %v5812_v50 = vcombine.high %v4756_v16, %v4756_v16  ;;  %v5819_v43 = vrot.slane %v4756_v16, %v17935_v23  ;;  %13675 = vmatpush3.bf16.msra.mxu1 %v15288_v55 }
 0x5f5   :  { %v7659_v12 = vmax.f32 %v7657_v48, %v7658_v47  ;;  %v7672_v26 = vrot.slane %v7671_v32, 2  ;;  %v4754_v24 = vmax.f32 %v4690_v44, 0.0  ;;  %v19333_v59 = vmul.f32 %v19055_v37, %v14640_v11  ;;  %13676 = vmatprep.subr.bf16.mxu1 %v15289_v9 }
 0x5f6   :  { %v7666_v31 = vmax.f32 %v7664_v57, %v7665_v41  ;;  %v7679_v8 = vrot.slane %v7678_v1, 2  ;;  %v5826_v49 = vrot.slane %v5812_v50, %v17935_v23  ;;  %v5827_v45 = vcombine.high %v5819_v43, %v5819_v43 }
 0x5f7   :  { %v7660_v42 = vrot.slane %v7659_v12, 1  ;;  %v7673_v10 = vmax.f32 %v7671_v32, %v7672_v26  ;;  %v7795_v37 = vsel %vm6170_vm6, %v5819_v43, -inf  ;;  %v5778_v52 = vcombine.high %v4754_v24, %v4754_v24 }
 0x5f8   :  { %v7667_v18 = vrot.slane %v7666_v31, 1  ;;  %v7680_v51 = vmax.f32 %v7678_v1, %v7679_v8  ;;  %v5828_v58 = vcombine.high %v5826_v49, %v5826_v49  ;;  %v7796_v22 = vrot.slane %v7795_v37, 4  ;;  %13677 = vmatpush3.bf16.msra.mxu1 %v15290_v61 }
 0x5f9   :  { %v7661_v34 = vmax.f32 %v7659_v12, %v7660_v42  ;;  %v7674_v63 = vrot.slane %v7673_v10, 1  ;;  %v7802_v46 = vsel %vm6170_vm6, %v5827_v45, -inf  ;;  %v7809_v33 = vsel %vm6170_vm6, %v5826_v49, -inf }
 0x5fa   :  { %v7668_v15 = vmax.f32 %v7666_v31, %v7667_v18  ;;  %v7681_v19 = vrot.slane %v7680_v51, 1  ;;  %v7797_v30 = vmax.f32 %v7795_v37, %v7796_v22  ;;  %v7803_v48 = vrot.slane %v7802_v46, 4 }
 0x5fb   :  { %v7675_v54 = vmax.f32 %v7673_v10, %v7674_v63  ;;  %v8288_v28 = vsel %vm7963_vm7, %v7661_v34, -inf  ;;  %v7810_v4 = vrot.slane %v7809_v33, 4  ;;  %v7816_v57 = vsel %vm6170_vm6, %v5828_v58, -inf  ;;  %v19366_v34 = vld [vmem:[#allocation3 + $0x40] sm:$0xff] }
 0x5fc   :  { %v7682_v20 = vmax.f32 %v7680_v51, %v7681_v19  ;;  %v8290_v16 = vmax.f32 %v8288_v28, %v19299_v6  ;;  %v8291_v44 = vsel %vm7963_vm7, %v7668_v15, -inf  ;;  %v7798_v13 = vrot.slane %v7797_v30, 2 }
 0x5fd   :  { %v8293_v47 = vmax.f32 %v8291_v44, %v19312_v21  ;;  %v8294_v32 = vsel %vm7963_vm7, %v7675_v54, -inf  ;;  %v7804_v27 = vmax.f32 %v7802_v46, %v7803_v48  ;;  %v7811_v11 = vmax.f32 %v7809_v33, %v7810_v4  ;;  %v19374_v4 = vld [vmem:[#allocation3 + $0xa0] sm:$0xff] }
 0x5fe   :  { %v8296_v41 = vmax.f32 %v8294_v32, %v19315_v53  ;;  %v8297_v1 = vsel %vm7963_vm7, %v7682_v20, -inf  ;;  %v8693_v50 = vsel %vm8598_vm11, %v8290_v16, %v19288_v2  ;;  %v7799_v43 = vmax.f32 %v7797_v30, %v7798_v13 }
 0x5ff   :  { %v8299_v6 = vmax.f32 %v8297_v1, %v19327_v25  ;;  %v8694_v12 = vsel %vm8600_vm12, %v8293_v47, %v8693_v50  ;;  %v7805_v26 = vrot.slane %v7804_v27, 2  ;;  %v7812_v55 = vrot.slane %v7811_v11, 2 }
 0x600   :  { %v8695_v21 = vsel %vm8602_vm13, %v8296_v41, %v8694_v12  ;;  %v7800_v31 = vrot.slane %v7799_v43, 1  ;;  %v7817_v8 = vrot.slane %v7816_v57, 4  ;;  %v5785_v49 = vrot.slane %v4754_v24, %v17935_v23 }
 0x601   :  { %v8696_v53 = vsel %vm8604_vm14, %v8299_v6, %v8695_v21  ;;  %v7806_v45 = vmax.f32 %v7804_v27, %v7805_v26  ;;  %v7813_v9 = vmax.f32 %v7811_v11, %v7812_v55  ;;  %v5792_v42 = vrot.slane %v5778_v52, %v17935_v23  ;;  %v8765_v11 = vld [vmem:[#allocation3 + $0xa8] sm:$0x3] }
 0x602   :  { %8741 = vst.msk [vmem:[#allocation3 + $0x101] sm:$0xff] %vm7963_vm7, %v8696_v53  ;;  %v7801_v2 = vmax.f32 %v7799_v43, %v7800_v31  ;;  %v7818_v25 = vmax.f32 %v7816_v57, %v7817_v8  ;;  %v5793_v10 = vcombine.high %v5785_v49, %v5785_v49  ;;  %v7739_v37 = vsel %vm6170_vm6, %v5785_v49, -inf }
 0x603   :  { %v7807_v18 = vrot.slane %v7806_v45, 1  ;;  %v7814_v51 = vrot.slane %v7813_v9, 1  ;;  %v5794_v58 = vcombine.high %v5792_v42, %v5792_v42  ;;  %v7740_v22 = vrot.slane %v7739_v37, 4 }
 0x604   :  { %v8876_v24 = vrot.slane %v19366_v34, 2  ;;  %v7819_v63 = vrot.slane %v7818_v25, 2  ;;  %v7746_v46 = vsel %vm6170_vm6, %v5793_v10, -inf  ;;  %v7753_v52 = vsel %vm6170_vm6, %v5792_v42, -inf }
 0x605   :  { %v7808_v33 = vmax.f32 %v7806_v45, %v7807_v18  ;;  %v7815_v61 = vmax.f32 %v7813_v9, %v7814_v51  ;;  %v7741_v15 = vmax.f32 %v7739_v37, %v7740_v22  ;;  %v7747_v19 = vrot.slane %v7746_v46, 4 }
 0x606   :  { %v7820_v30 = vmax.f32 %v7818_v25, %v7819_v63  ;;  %v7754_v48 = vrot.slane %v7753_v52, 4  ;;  %v7760_v54 = vsel %vm6170_vm6, %v5794_v58, -inf  ;;  %v4693_v28 = vadd.f32 %v19072_v0, %v19333_v59  ;;  %v15291_v58 = vld [vmem:[%s21288_s2 + $0xc0] sm:$0xff]  }
 0x607   :  { %v8301_v57 = vsel %vm7963_vm7, %v7801_v2, -inf  ;;  %v8304_v20 = vsel %vm7963_vm7, %v7808_v33, -inf  ;;  %v7742_v16 = vrot.slane %v7741_v15, 2  ;;  %v7748_v44 = vmax.f32 %v7746_v46, %v7747_v19  ;;  %13726 = vmatprep.subr.bf16.mxu1 %v15291_v58 }
 0x608   :  { %v7821_v13 = vrot.slane %v7820_v30, 1  ;;  %v7755_v47 = vmax.f32 %v7753_v52, %v7754_v48  ;;  %v7761_v32 = vrot.slane %v7760_v54, 4  ;;  %v4757_v27 = vmax.f32 %v4693_v28, 0.0 }
 0x609   :  { %v8307_v41 = vsel %vm7963_vm7, %v7815_v61, -inf  ;;  %v7743_v1 = vmax.f32 %v7741_v15, %v7742_v16  ;;  %v7749_v50 = vrot.slane %v7748_v44, 2  ;;  %v8840_v43 = vrot.slane %v19374_v4, 1  ;;  %v19392_v4 = vld [vmem:[#allocation3 + $0xb0] sm:$0xff] }
 0x60a   :  { %v7822_v0 = vmax.f32 %v7820_v30, %v7821_v13  ;;  %v7756_v59 = vrot.slane %v7755_v47, 2  ;;  %v7762_v6 = vmax.f32 %v7760_v54, %v7761_v32  ;;  %v5829_v12 = vcombine.high %v4757_v27, %v4757_v27 }
 0x60b   :  { %v7744_v26 = vrot.slane %v7743_v1, 1  ;;  %v7750_v55 = vmax.f32 %v7748_v44, %v7749_v50  ;;  %v5836_v21 = vrot.slane %v4757_v27, %v17935_v23  ;;  %v8841_v31 = vrot.slane %v8765_v11, 1 }
 0x60c   :  { %v8310_v8 = vsel %vm7963_vm7, %v7822_v0, -inf  ;;  %v7757_v49 = vmax.f32 %v7755_v47, %v7756_v59  ;;  %v7763_v53 = vrot.slane %v7762_v6, 2  ;;  %v5843_v45 = vrot.slane %v5829_v12, %v17935_v23 }
 0x60d   :  { %v7745_v9 = vmax.f32 %v7743_v1, %v7744_v26  ;;  %v7751_v42 = vrot.slane %v7750_v55, 1  ;;  %v5844_v2 = vcombine.high %v5836_v21, %v5836_v21  ;;  %v7823_v25 = vsel %vm6170_vm6, %v5836_v21, -inf  ;;  %v19401_v21 = vld [vmem:[#allocation3 + $0xc0] sm:$0xff] }
 0x60e   :  { %v7758_v10 = vrot.slane %v7757_v49, 1  ;;  %v7764_v37 = vmax.f32 %v7762_v6, %v7763_v53  ;;  %v5845_v18 = vcombine.high %v5843_v45, %v5843_v45  ;;  %v7824_v51 = vrot.slane %v7823_v25, 4 }
 0x60f   :  { %v7752_v22 = vmax.f32 %v7750_v55, %v7751_v42  ;;  %v8300_v63 = vsel %vm7963_vm7, %v7745_v9, -inf  ;;  %v7830_v46 = vsel %vm6170_vm6, %v5844_v2, -inf  ;;  %v7837_v52 = vsel %vm6170_vm6, %v5843_v45, -inf  ;;  %v21858_v2 = vld [vmem:[#allocation70_spill] sm:$0xff] }
 0x610   :  { %v7759_v33 = vmax.f32 %v7757_v49, %v7758_v10  ;;  %v7765_v61 = vrot.slane %v7764_v37, 1  ;;  %v8302_v15 = vmax.f32 %v8300_v63, %v8301_v57  ;;  %v7825_v19 = vmax.f32 %v7823_v25, %v7824_v51  ;;  %v19395_v57 = vld [vmem:[#allocation3 + $0xb8] sm:$0x3] }
 0x611   :  { %v8303_v30 = vsel %vm7963_vm7, %v7752_v22, -inf  ;;  %v7831_v48 = vrot.slane %v7830_v46, 4  ;;  %v7838_v54 = vrot.slane %v7837_v52, 4  ;;  %v7844_v28 = vsel %vm6170_vm6, %v5845_v18, -inf  ;;  %v15483_v22 = vld [vmem:[%s21289_s3] ss:$0 sm:$0xff] }
 0x612   :  { %v7766_v16 = vmax.f32 %v7764_v37, %v7765_v61  ;;  %v8305_v44 = vmax.f32 %v8303_v30, %v8304_v20  ;;  %v8306_v13 = vsel %vm7963_vm7, %v7759_v33, -inf  ;;  %v7826_v47 = vrot.slane %v7825_v19, 2  ;;  %v21860_v61 = vld [vmem:[#allocation76_spill] sm:$0xff] }
 0x613   :  { %v8308_v32 = vmax.f32 %v8306_v13, %v8307_v41  ;;  %v7832_v27 = vmax.f32 %v7830_v46, %v7831_v48  ;;  %v7839_v11 = vmax.f32 %v7837_v52, %v7838_v54  ;;  %v7845_v1 = vrot.slane %v7844_v28, 4  ;;  %v21859_v52 = vld [vmem:[#allocation71_spill] sm:$0xff]  ;;  %v15484_v48 = vld [vmem:[%s21290_s4] ss:$0 sm:$0xff] }
 0x614   :  { %v8309_v50 = vsel %vm7963_vm7, %v7766_v16, -inf  ;;  %v8697_v0 = vsel %vm8592_vm8, %v8305_v44, %v8302_v15  ;;  %v7827_v59 = vmax.f32 %v7825_v19, %v7826_v47  ;;  %v8843_v6 = vrot.slane %v19392_v4, 1 }
 0x615   :  { %v8311_v12 = vmax.f32 %v8309_v50, %v8310_v8  ;;  %v8698_v26 = vsel %vm8594_vm9, %v8308_v32, %v8697_v0  ;;  %v7833_v20 = vrot.slane %v7832_v27, 2  ;;  %v7840_v55 = vrot.slane %v7839_v11, 2  ;;  %v21862_v32 = vld [vmem:[#allocation30_spill] sm:$0xff] }
 0x616   :  { %v7828_v41 = vrot.slane %v7827_v59, 1  ;;  %v7846_v49 = vmax.f32 %v7844_v28, %v7845_v1  ;;  %v8842_v53 = vsel %vm483_vm5, %v8840_v43, %v8841_v31  ;;  %v8844_v45 = vrot.slane %v19395_v57, 1  ;;  %v21861_v28 = vld [vmem:[#allocation24_spill] sm:$0xff] }
 0x617   :  { %v7834_v9 = vmax.f32 %v7832_v27, %v7833_v20  ;;  %v7841_v42 = vmax.f32 %v7839_v11, %v7840_v55  ;;  %v14641_v25 = vadd.f32 %v19115_v56, %v21858_v2  ;;  %v19408_v10 = vsel %vm8596_vm10, %v8311_v12, %v8698_v26 }
 0x618   :  { %v7829_v8 = vmax.f32 %v7827_v59, %v7828_v41  ;;  %v7847_v37 = vrot.slane %v7846_v49, 2  ;;  %v19411_v18 = vsel %vm483_vm5, %v8843_v6, %v8844_v45  ;;  %v15143_v51 = vpack.i.bf16 %v19401_v21, %v19392_v4 }
 0x619   :  { %v7835_v58 = vrot.slane %v7834_v9, 1  ;;  %v7842_v43 = vrot.slane %v7841_v42, 1  ;;  %v15148_v31 = vpack.i.bf16 %v19411_v18, %v8842_v53  ;;  %v4621_v56 = vmul.f32 %v15483_v22, %v14641_v25 }
 0x61a   :  { %v7848_v63 = vmax.f32 %v7846_v49, %v7847_v37  ;;  %v19420_v46 = vsel %vm7963_vm7, %v7829_v8, -inf  ;;  %15144 = vrot.lane.b32.xlu0 %v15143_v51, %s15534_s12  ;;  %v14642_v33 = vadd.f32 %v19118_v3, %v21859_v52  ;;  %v14643_v15 = vadd.f32 %v19120_v14, %v21860_v61 }
 0x61b   :  { %v7836_v19 = vmax.f32 %v7834_v9, %v7835_v58  ;;  %v7843_v30 = vmax.f32 %v7841_v42, %v7842_v43  ;;  %15149 = vrot.lane.b32.xlu1 %v15148_v31, %s15534_s12  ;;  %v4691_v54 = vadd.f32 %v15484_v48, %v4621_v56  ;;  %v14644_v16 = vadd.f32 %v19149_v36, %v21861_v28 }
 0x61c   :  { %v7849_v44 = vrot.slane %v7848_v63, 1  ;;  %v4626_v13 = vmul.f32 %v15483_v22, %v14642_v33  ;;  %v4624_v47 = vmul.f32 %v15483_v22, %v14643_v15  ;;  %v14645_v3 = vadd.f32 %v19171_v35, %v21862_v32 }
 0x61d   :  { %v19436_v14 = vsel %vm7963_vm7, %v7836_v19, -inf  ;;  %v19439_v27 = vsel %vm7963_vm7, %v7843_v30, -inf  ;;  %v4755_v11 = vmax.f32 %v4691_v54, 0.0  ;;  %v4627_v1 = vmul.f32 %v15483_v22, %v14644_v16 }
 0x61e   :  { %v7850_v50 = vmax.f32 %v7848_v63, %v7849_v44  ;;  %v4696_v0 = vadd.f32 %v15484_v48, %v4626_v13  ;;  %v4694_v59 = vadd.f32 %v15484_v48, %v4624_v47  ;;  %v4625_v6 = vmul.f32 %v15483_v22, %v14645_v3 }
 0x61f   :  { %v5795_v12 = vcombine.high %v4755_v11, %v4755_v11  ;;  %v5802_v36 = vrot.slane %v4755_v11, %v17935_v23  ;;  %v4697_v26 = vadd.f32 %v15484_v48, %v4627_v1  ;;  %v8846_v20 = vrot.slane %v19401_v21, 1 }
 0x620   :  { %v19444_v35 = vsel %vm7963_vm7, %v7850_v50, -inf  ;;  %v4760_v55 = vmax.f32 %v4696_v0, 0.0  ;;  %v4758_v41 = vmax.f32 %v4694_v59, 0.0  ;;  %v19446_v49 = vadd.f32 %v15484_v48, %v4625_v6 }
 0x621   :  { %v5809_v53 = vrot.slane %v5795_v12, %v17935_v23  ;;  %v5810_v45 = vcombine.high %v5802_v36, %v5802_v36  ;;  %v7767_v9 = vsel %vm6170_vm6, %v5802_v36, -inf  ;;  %v19450_v42 = vmax.f32 %v4697_v26, 0.0 }
 0x622   :  { %v7768_v2 = vrot.slane %v7767_v9, 4  ;;  %v5880_v25 = vcombine.high %v4760_v55, %v4760_v55  ;;  %v5887_v8 = vrot.slane %v4760_v55, %v17935_v23  ;;  %v5846_v37 = vcombine.high %v4758_v41, %v4758_v41 }
 0x623   :  { %v5811_v51 = vcombine.high %v5809_v53, %v5809_v53  ;;  %v7774_v58 = vsel %vm6170_vm6, %v5810_v45, -inf  ;;  %v7781_v43 = vsel %vm6170_vm6, %v5809_v53, -inf  ;;  %v19456_v31 = vrot.slane %v4758_v41, %v17935_v23 }
 0x624   :  { %v7769_v22 = vmax.f32 %v7767_v9, %v7768_v2  ;;  %v7775_v56 = vrot.slane %v7774_v58, 4  ;;  %v7782_v63 = vrot.slane %v7781_v43, 4  ;;  %v5894_v52 = vrot.slane %v5880_v25, %v17935_v23 }
 0x625   :  { %v7788_v33 = vsel %vm6170_vm6, %v5811_v51, -inf  ;;  %v5895_v61 = vcombine.high %v5887_v8, %v5887_v8  ;;  %v7907_v15 = vsel %vm6170_vm6, %v5887_v8, -inf  ;;  %v19462_v19 = vrot.slane %v5846_v37, %v17935_v23 }
 0x626   :  { %v7770_v30 = vrot.slane %v7769_v22, 2  ;;  %v7776_v48 = vmax.f32 %v7774_v58, %v7775_v56  ;;  %v7783_v54 = vmax.f32 %v7781_v43, %v7782_v63  ;;  %v7789_v28 = vrot.slane %v7788_v33, 4 }
 0x627   :  { %v5896_v16 = vcombine.high %v5894_v52, %v5894_v52  ;;  %v7908_v44 = vrot.slane %v7907_v15, 4  ;;  %v7914_v13 = vsel %vm6170_vm6, %v5895_v61, -inf  ;;  %v7921_v47 = vsel %vm6170_vm6, %v5894_v52, -inf }
 0x628   :  { %v7771_v32 = vmax.f32 %v7769_v22, %v7770_v30  ;;  %v7777_v3 = vrot.slane %v7776_v48, 2  ;;  %v7784_v11 = vrot.slane %v7783_v54, 2  ;;  %v7790_v1 = vmax.f32 %v7788_v33, %v7789_v28 }
 0x629   :  { %v7909_v50 = vmax.f32 %v7907_v15, %v7908_v44  ;;  %v7915_v0 = vrot.slane %v7914_v13, 4  ;;  %v7922_v59 = vrot.slane %v7921_v47, 4  ;;  %v7928_v6 = vsel %vm6170_vm6, %v5896_v16, -inf }
 0x62a   :  { %v7772_v12 = vrot.slane %v7771_v32, 1  ;;  %v7778_v36 = vmax.f32 %v7776_v48, %v7777_v3  ;;  %v7785_v26 = vmax.f32 %v7783_v54, %v7784_v11  ;;  %v7791_v55 = vrot.slane %v7790_v1, 2 }
 0x62b   :  { %v7910_v41 = vrot.slane %v7909_v50, 2  ;;  %v7916_v53 = vmax.f32 %v7914_v13, %v7915_v0  ;;  %v7923_v45 = vmax.f32 %v7921_v47, %v7922_v59  ;;  %v7929_v9 = vrot.slane %v7928_v6, 4 }
 0x62c   :  { %v7773_v2 = vmax.f32 %v7771_v32, %v7772_v12  ;;  %v7779_v25 = vrot.slane %v7778_v36, 1  ;;  %v7786_v8 = vrot.slane %v7785_v26, 1  ;;  %v7792_v37 = vmax.f32 %v7790_v1, %v7791_v55 }
 0x62d   :  { %v7911_v51 = vmax.f32 %v7909_v50, %v7910_v41  ;;  %v7917_v58 = vrot.slane %v7916_v53, 2  ;;  %v7924_v43 = vrot.slane %v7923_v45, 2  ;;  %v7930_v22 = vmax.f32 %v7928_v6, %v7929_v9 }
 0x62e   :  { %v7780_v56 = vmax.f32 %v7778_v36, %v7779_v25  ;;  %v7787_v63 = vmax.f32 %v7785_v26, %v7786_v8  ;;  %v7793_v52 = vrot.slane %v7792_v37, 1  ;;  %v8312_v33 = vsel %vm7963_vm7, %v7773_v2, -inf }
 0x62f   :  { %v8314_v61 = vmax.f32 %v8312_v33, %v19420_v46  ;;  %v7912_v15 = vrot.slane %v7911_v51, 1  ;;  %v7918_v30 = vmax.f32 %v7916_v53, %v7917_v58  ;;  %v7925_v48 = vmax.f32 %v7923_v45, %v7924_v43 }
 0x630   :  { %v7794_v54 = vmax.f32 %v7792_v37, %v7793_v52  ;;  %v8315_v28 = vsel %vm7963_vm7, %v7780_v56, -inf  ;;  %v8318_v16 = vsel %vm7963_vm7, %v7787_v63, -inf  ;;  %v7931_v44 = vrot.slane %v7930_v22, 2 }
 0x631   :  { %v8317_v13 = vmax.f32 %v8315_v28, %v19436_v14  ;;  %v8320_v47 = vmax.f32 %v8318_v16, %v19439_v27  ;;  %v8700_v32 = vsel %vm8598_vm11, %v8314_v61, %v19408_v10  ;;  %v7913_v3 = vmax.f32 %v7911_v51, %v7912_v15  ;;  %v19502_v51 = vld [vmem:[#allocation3 + $0xc8] sm:$0x3] }
 0x632   :  { %v8321_v11 = vsel %vm7963_vm7, %v7794_v54, -inf  ;;  %v7919_v46 = vrot.slane %v7918_v30, 1  ;;  %v7926_v1 = vrot.slane %v7925_v48, 1  ;;  %v7932_v50 = vmax.f32 %v7930_v22, %v7931_v44 }
 0x633   :  { %v8323_v0 = vmax.f32 %v8321_v11, %v19444_v35  ;;  %v8701_v59 = vsel %vm8600_vm12, %v8317_v13, %v8700_v32  ;;  %v19479_v6 = vsel %vm7963_vm7, %v7913_v3, -inf  ;;  %v5861_v14 = vcombine.high %v19456_v31, %v19456_v31 }
 0x634   :  { %v8702_v27 = vsel %vm8602_vm13, %v8320_v47, %v8701_v59  ;;  %v7920_v12 = vmax.f32 %v7918_v30, %v7919_v46  ;;  %v7927_v10 = vmax.f32 %v7925_v48, %v7926_v1  ;;  %v7933_v36 = vrot.slane %v7932_v50, 1 }
 0x635   :  { %v8703_v26 = vsel %vm8604_vm14, %v8323_v0, %v8702_v27  ;;  %v5862_v55 = vcombine.high %v19462_v19, %v19462_v19  ;;  %v7851_v35 = vsel %vm6170_vm6, %v19456_v31, -inf  ;;  %v7858_v41 = vsel %vm6170_vm6, %v5861_v14, -inf }
 0x636   :  { %8742 = vst.msk [vmem:[#allocation3 + $0x111] sm:$0xff] %vm7963_vm7, %v8703_v26  ;;  %v7934_v53 = vmax.f32 %v7932_v50, %v7933_v36  ;;  %v19492_v45 = vsel %vm7963_vm7, %v7920_v12, -inf  ;;  %v19495_v9 = vsel %vm7963_vm7, %v7927_v10, -inf  ;;  %v7852_v2 = vrot.slane %v7851_v35, 4 }
 0x637   :  { %v7859_v25 = vrot.slane %v7858_v41, 4  ;;  %v7865_v8 = vsel %vm6170_vm6, %v19462_v19, -inf  ;;  %v7872_v37 = vsel %vm6170_vm6, %v5862_v55, -inf  ;;  %v5897_v31 = vcombine.high %v19450_v42, %v19450_v42 }
 0x638   :  { %v19505_v58 = vsel %vm7963_vm7, %v7934_v53, -inf  ;;  %v7853_v43 = vmax.f32 %v7851_v35, %v7852_v2  ;;  %v7866_v22 = vrot.slane %v7865_v8, 4  ;;  %v7873_v56 = vrot.slane %v7872_v37, 4 }
 0x639   :  { %v7860_v63 = vmax.f32 %v7858_v41, %v7859_v25  ;;  %v5904_v52 = vrot.slane %v19450_v42, %v17935_v23  ;;  %v5911_v33 = vrot.slane %v5897_v31, %v17935_v23  ;;  %v4759_v19 = vmax.f32 %v19446_v49, 0.0 }
 0x63a   :  { %v7854_v61 = vrot.slane %v7853_v43, 2  ;;  %v7867_v15 = vmax.f32 %v7865_v8, %v7866_v22  ;;  %v7874_v30 = vmax.f32 %v7872_v37, %v7873_v56  ;;  %v8847_v48 = vrot.slane %v19502_v51, 1 }
 0x63b   :  { %v7861_v54 = vrot.slane %v7860_v63, 2  ;;  %v5912_v28 = vcombine.high %v5904_v52, %v5904_v52  ;;  %v5913_v16 = vcombine.high %v5911_v33, %v5911_v33  ;;  %v7935_v44 = vsel %vm6170_vm6, %v5904_v52, -inf }
 0x63c   :  { %v7855_v13 = vmax.f32 %v7853_v43, %v7854_v61  ;;  %v7868_v47 = vrot.slane %v7867_v15, 2  ;;  %v7875_v32 = vrot.slane %v7874_v30, 2  ;;  %v7936_v3 = vrot.slane %v7935_v44, 4 }
 0x63d   :  { %v7862_v11 = vmax.f32 %v7860_v63, %v7861_v54  ;;  %v7942_v42 = vsel %vm6170_vm6, %v5912_v28, -inf  ;;  %v7949_v46 = vsel %vm6170_vm6, %v5911_v33, -inf  ;;  %v7956_v49 = vsel %vm6170_vm6, %v5913_v16, -inf }
 0x63e   :  { %v7856_v1 = vrot.slane %v7855_v13, 1  ;;  %v7869_v50 = vmax.f32 %v7867_v15, %v7868_v47  ;;  %v7876_v0 = vmax.f32 %v7874_v30, %v7875_v32  ;;  %v7937_v59 = vmax.f32 %v7935_v44, %v7936_v3 }
 0x63f   :  { %v7863_v14 = vrot.slane %v7862_v11, 1  ;;  %v7943_v27 = vrot.slane %v7942_v42, 4  ;;  %v7950_v12 = vrot.slane %v7949_v46, 4  ;;  %v7957_v10 = vrot.slane %v7956_v49, 4 }
 0x640   :  { %v7857_v36 = vmax.f32 %v7855_v13, %v7856_v1  ;;  %v7870_v26 = vrot.slane %v7869_v50, 1  ;;  %v7877_v55 = vrot.slane %v7876_v0, 1  ;;  %v7938_v35 = vrot.slane %v7937_v59, 2 }
 0x641   :  { %v7864_v41 = vmax.f32 %v7862_v11, %v7863_v14  ;;  %v7944_v53 = vmax.f32 %v7942_v42, %v7943_v27  ;;  %v7951_v2 = vmax.f32 %v7949_v46, %v7950_v12  ;;  %v7958_v25 = vmax.f32 %v7956_v49, %v7957_v10 }
 0x642   :  { %v7871_v8 = vmax.f32 %v7869_v50, %v7870_v26  ;;  %v7878_v37 = vmax.f32 %v7876_v0, %v7877_v55  ;;  %v8324_v31 = vsel %vm7963_vm7, %v7857_v36, -inf  ;;  %v7939_v43 = vmax.f32 %v7937_v59, %v7938_v35 }
 0x643   :  { %v8326_v22 = vmax.f32 %v8324_v31, %v19479_v6  ;;  %v8327_v56 = vsel %vm7963_vm7, %v7864_v41, -inf  ;;  %v7945_v63 = vrot.slane %v7944_v53, 2  ;;  %v7952_v52 = vrot.slane %v7951_v2, 2  ;;  %v19545_v41 = vld [vmem:[#allocation3 + $0xd8] sm:$0x3] }
 0x644   :  { %v8329_v33 = vmax.f32 %v8327_v56, %v19492_v45  ;;  %v8330_v61 = vsel %vm7963_vm7, %v7871_v8, -inf  ;;  %v8333_v15 = vsel %vm7963_vm7, %v7878_v37, -inf  ;;  %v7940_v30 = vrot.slane %v7939_v43, 1  ;;  %v19548_v37 = vld [vmem:[#allocation3 + $0xe0] sm:$0xff] }
 0x645   :  { %v8332_v54 = vmax.f32 %v8330_v61, %v19495_v9  ;;  %v8335_v28 = vmax.f32 %v8333_v15, %v19505_v58  ;;  %v7946_v16 = vmax.f32 %v7944_v53, %v7945_v63  ;;  %v7953_v44 = vmax.f32 %v7951_v2, %v7952_v52  ;;  %v19558_v63 = vld [vmem:[#allocation3 + $0xe8] sm:$0x3] }
 0x646   :  { %v8704_v13 = vsel %vm8592_vm8, %v8329_v33, %v8326_v22  ;;  %v7941_v6 = vmax.f32 %v7939_v43, %v7940_v30  ;;  %v7959_v47 = vrot.slane %v7958_v25, 2  ;;  %v5863_v32 = vcombine.high %v4759_v19, %v4759_v19  ;;  %v19564_v30 = vld [vmem:[#allocation3 + $0xf0] sm:$0xff] }
 0x647   :  { %v8705_v3 = vsel %vm8594_vm9, %v8332_v54, %v8704_v13  ;;  %v7947_v11 = vrot.slane %v7946_v16, 1  ;;  %v7954_v45 = vrot.slane %v7953_v44, 1  ;;  %v5870_v42 = vrot.slane %v4759_v19, %v17935_v23  ;;  %v19536_v19 = vld [vmem:[#allocation3 + $0xd0] sm:$0xff] }
 0x648   :  { %v7960_v46 = vmax.f32 %v7958_v25, %v7959_v47  ;;  %v19528_v49 = vsel %vm7963_vm7, %v7941_v6, -inf  ;;  %v5877_v9 = vrot.slane %v5863_v32, %v17935_v23  ;;  %v19532_v58 = vsel %vm8596_vm10, %v8335_v28, %v8705_v3  ;;  %v19575_v32 = vld [vmem:[#allocation3 + $0x100] sm:$0xff] }
 0x649   :  { %v7948_v1 = vmax.f32 %v7946_v16, %v7947_v11  ;;  %v7955_v50 = vmax.f32 %v7953_v44, %v7954_v45  ;;  %v5878_v0 = vcombine.high %v5870_v42, %v5870_v42  ;;  %v7879_v59 = vsel %vm6170_vm6, %v5870_v42, -inf }
 0x64a   :  { %v7961_v14 = vrot.slane %v7960_v46, 1  ;;  %v5879_v27 = vcombine.high %v5877_v9, %v5877_v9  ;;  %v7880_v12 = vrot.slane %v7879_v59, 4  ;;  %v7893_v10 = vsel %vm6170_vm6, %v5877_v9, -inf }
 0x64b   :  { %v19539_v36 = vsel %vm7963_vm7, %v7948_v1, -inf  ;;  %v19542_v26 = vsel %vm7963_vm7, %v7955_v50, -inf  ;;  %v7886_v55 = vsel %vm6170_vm6, %v5878_v0, -inf  ;;  %v7894_v35 = vrot.slane %v7893_v10, 4 }
 0x64c   :  { %v7962_v53 = vmax.f32 %v7960_v46, %v7961_v14  ;;  %v7881_v2 = vmax.f32 %v7879_v59, %v7880_v12  ;;  %v7887_v25 = vrot.slane %v7886_v55, 4  ;;  %v7900_v8 = vsel %vm6170_vm6, %v5879_v27, -inf  ;;  %v19581_v46 = vld [vmem:[#allocation3 + $0x108] sm:$0x3]  ;;  %v19587_v59 = vld [vmem:[#allocation3 + $0x110] sm:$0xff] }
 0x64d   :  { %v7895_v31 = vmax.f32 %v7893_v10, %v7894_v35  ;;  %v7901_v43 = vrot.slane %v7900_v8, 4  ;;  %v19555_v22 = vsel %vm483_vm5, %v8846_v20, %v8847_v48  ;;  %v8849_v56 = vrot.slane %v19536_v19, 1  ;;  %v19568_v20 = vld [vmem:[#allocation3 + $0xf8] sm:$0x3] }
 0x64e   :  { %v19561_v52 = vsel %vm7963_vm7, %v7962_v53, -inf  ;;  %v7882_v33 = vrot.slane %v7881_v2, 2  ;;  %v7888_v61 = vmax.f32 %v7886_v55, %v7887_v25  ;;  %v8850_v15 = vrot.slane %v19545_v41, 1  ;;  %v19592_v10 = vld [vmem:[#allocation3 + $0x118] sm:$0x3] }
 0x64f   :  { %v7896_v54 = vrot.slane %v7895_v31, 2  ;;  %v7902_v28 = vmax.f32 %v7900_v8, %v7901_v43  ;;  %v15153_v16 = vpack.i.bf16 %v19548_v37, %v19536_v19  ;;  %v8852_v48 = vrot.slane %v19548_v37, 1 }
 0x650   :  { %v7883_v44 = vmax.f32 %v7881_v2, %v7882_v33  ;;  %v7889_v13 = vrot.slane %v7888_v61, 2  ;;  %v19572_v6 = vsel %vm483_vm5, %v8849_v56, %v8850_v15  ;;  %v8853_v47 = vrot.slane %v19558_v63, 1  ;;  %v19603_v33 = vpop.permute.xlu0 %15104 }
 0x651   :  { %v7897_v3 = vmax.f32 %v7895_v31, %v7896_v54  ;;  %v7903_v11 = vrot.slane %v7902_v28, 2  ;;  %v15158_v45 = vpack.i.bf16 %v19572_v6, %v19555_v22  ;;  %15154 = vrot.lane.b32.xlu0 %v15153_v16, %s15534_s12  ;;  %v8855_v42 = vrot.slane %v19564_v30, 1 }
 0x652   :  { %v7884_v9 = vrot.slane %v7883_v44, 1  ;;  %v7890_v1 = vmax.f32 %v7888_v61, %v7889_v13  ;;  %v19584_v50 = vsel %vm483_vm5, %v8852_v48, %v8853_v47  ;;  %v8856_v0 = vrot.slane %v19568_v20, 1  ;;  %v15485_v13 = vld [vmem:[#allocation3 + $0x38] sm:$0x3] }
 0x653   :  { %v7898_v14 = vrot.slane %v7897_v3, 1  ;;  %v7904_v27 = vmax.f32 %v7902_v28, %v7903_v11  ;;  %15159 = vrot.lane.b32.xlu1 %v15158_v45, %s15534_s12  ;;  %v15163_v12 = vpack.i.bf16 %v19575_v32, %v19564_v30  ;;  %v8858_v55 = vrot.slane %v19575_v32, 1 }
 0x654   :  { %v7885_v35 = vmax.f32 %v7883_v44, %v7884_v9  ;;  %v7891_v53 = vrot.slane %v7890_v1, 1  ;;  %v19596_v2 = vsel %vm483_vm5, %v8855_v42, %v8856_v0  ;;  %v8859_v25 = vrot.slane %v19581_v46, 1  ;;  %v15486_v42 = vld [vmem:[#allocation3 + $0x48] sm:$0x3] }
 0x655   :  { %v7899_v8 = vmax.f32 %v7897_v3, %v7898_v14  ;;  %v7905_v31 = vrot.slane %v7904_v27, 1  ;;  %v15168_v43 = vpack.i.bf16 %v19596_v2, %v19584_v50  ;;  %15164 = vrot.lane.b32.xlu0 %v15163_v12, %s15534_s12  ;;  %v8861_v56 = vrot.slane %v19587_v59, 1  ;;  %v19626_v12 = vld [vmem:[#allocation3 + $0x90] sm:$0xff] }
 0x656   :  { %v7892_v61 = vmax.f32 %v7890_v1, %v7891_v53  ;;  %v8336_v15 = vsel %vm7963_vm7, %v7885_v35, -inf  ;;  %v19607_v54 = vsel %vm483_vm5, %v8858_v55, %v8859_v25  ;;  %v8862_v28 = vrot.slane %v19592_v10, 1  ;;  %v19630_v55 = vld [vmem:[#allocation3 + $0x20] sm:$0xff] }
 0x657   :  { %v7906_v16 = vmax.f32 %v7904_v27, %v7905_v31  ;;  %v8338_v48 = vmax.f32 %v8336_v15, %v19528_v49  ;;  %v8342_v44 = vsel %vm7963_vm7, %v7899_v8, -inf  ;;  %15169 = vrot.lane.b32.xlu1 %v15168_v43, %s15534_s12  ;;  %v8874_v47 = vrot.slane %v15485_v13, 2  ;;  %v19624_v27 = vld [vmem:[#allocation3 + $0x88] sm:$0x3]  ;;  %v15489_v15 = vld [vmem:[#allocation3 + $0x10] sm:$0xff] }
 0x658   :  { %v8339_v3 = vsel %vm7963_vm7, %v7892_v61, -inf  ;;  %v8344_v11 = vmax.f32 %v8342_v44, %v19542_v26  ;;  %v19616_v45 = vsel %vm483_vm5, %v8861_v56, %v8862_v28  ;;  %v8877_v9 = vrot.slane %v15486_v42, 2  ;;  %v19628_v26 = vld [vmem:[#allocation3 + $0x98] sm:$0x3]  ;;  %v15491_v44 = vld [vmem:[#allocation3 + $0x28] sm:$0x3] }
 0x659   :  { %v8341_v1 = vmax.f32 %v8339_v3, %v19539_v36  ;;  %v8345_v0 = vsel %vm7963_vm7, %v7906_v16, -inf  ;;  %v8707_v49 = vsel %vm8598_vm11, %v8338_v48, %v19532_v58  ;;  %v15178_v14 = vpack.i.bf16 %v19616_v45, %v19607_v54  ;;  %v15490_v16 = vld [vmem:[#allocation3 + $0x18] sm:$0x3] }
 0x65a   :  { %v8870_v35 = vrot.slane %v19630_v55, 2  ;;  %v8347_v36 = vmax.f32 %v8345_v0, %v19561_v52  ;;  %v19637_v53 = vsel %vm708_vm4, %v8873_v39, %v8874_v47  ;;  %v19642_v58 = vsel %vm708_vm4, %v8876_v24, %v8877_v9  ;;  %v19649_v52 = vld [vmem:[#allocation3 + $0x80] sm:$0xff]  ;;  %v15110_v39 = vpop.permute.xlu0 %15109  ;;  %v15492_v9 = vld [vmem:[#allocation3 + $0x8] sm:$0x3] }
 0x65b   :  { %v8708_v25 = vsel %vm8600_vm12, %v8341_v1, %v8707_v49  ;;  %15179 = vrot.lane.b32.xlu1 %v15178_v14, %s15534_s12  ;;  %v15188_v8 = vpack.i.bf16 %v19642_v58, %v19637_v53  ;;  %v15107_v31 = vunpack.i.h.bf16 %v19603_v33  ;;  %v8932_v5 = vrot.slane %v19649_v52, 1 }
 0x65c   :  { %v8709_v43 = vsel %vm8602_vm13, %v8344_v11, %v8708_v25  ;;  %v8933_v34 = vrot.slane %v19624_v27, 1  ;;  %v8964_v24 = vrot.slane %v19626_v12, 1  ;;  %v8965_v56 = vrot.slane %v19628_v26, 1  ;;  %v15493_v25 = vld [vmem:[#allocation3] sm:$0xff] }
 0x65d   :  { %v8710_v61 = vsel %vm8604_vm14, %v8347_v36, %v8709_v43  ;;  %v8867_v28 = vrot.slane %v15489_v15, 2  ;;  %v8868_v48 = vrot.slane %v15490_v16, 2  ;;  %v8871_v13 = vrot.slane %v15491_v44, 2  ;;  %vm20622_vm14 = vmor %vm1173_vm2, %vm10936_vm3 }
 0x65e   :  { %8743 = vst.msk [vmem:[#allocation3 + $0x121] sm:$0xff] %vm7963_vm7, %v8710_v61  ;;  %v19659_v47 = vsel %vm483_vm5, %v8932_v5, %v8933_v34  ;;  %v8966_v3 = vsel %vm483_vm5, %v8964_v24, %v8965_v56  ;;  %v15112_v11 = vunpack.i.h.bf16 %v15110_v39  ;;  %v15111_v42 = vunpack.i.l.bf16 %v15110_v39  ;;  %v19679_v56 = vld [vmem:[#allocation3 + $0x50] sm:$0xff]  ;;  %v15125_v23 = vpop.permute.xlu0 %15124 }
 0x65f   :  { %v8865_v1 = vrot.slane %v15492_v9, 2  ;;  %15189 = vrot.lane.b32.xlu1 %v15188_v8, %s15534_s12  ;;  %v15106_v0 = vunpack.i.l.bf16 %v19603_v33  ;;  %v15198_v49 = vpack.i.bf16 %v8966_v3, %v19659_v47  ;;  %v19666_v14 = vsel %vm708_vm4, %v8870_v35, %v8871_v13 }
 0x660   :  { %v9137_v36 = vsel %vm7963_vm7, %v15489_v15, %v15112_v11  ;;  %v9136_v5 = vsel %vm7963_vm7, %v15493_v25, %v15111_v42  ;;  %v8891_v43 = vrot.slane %v19392_v4, 2  ;;  %v8892_v39 = vrot.slane %v19395_v57, 2  ;;  %v15495_v15 = vld [vmem:[#allocation3 + $0x58] sm:$0x3] }
 0x661   :  { %v19673_v34 = vsel %vm708_vm4, %v8867_v28, %v8868_v48  ;;  %v8894_v8 = vrot.slane %v19401_v21, 2  ;;  %v8895_v33 = vrot.slane %v19502_v51, 2  ;;  %v8864_v24 = vrot.slane %v15493_v25, 2 }
 0x662   :  { %v9153_v35 = vsel %vm7963_vm7, %v19673_v34, %v15107_v31  ;;  %v8879_v61 = vrot.slane %v19679_v56, 2  ;;  %v8880_v16 = vrot.slane %v15495_v15, 2  ;;  %v15183_v4 = vpack.i.bf16 %v19666_v14, %v19673_v34 }
 0x663   :  { %15199 = vrot.lane.b32.xlu1 %v15198_v49, %s15534_s12  ;;  %v9188_v57 = vpack.c.bf16 %v9137_v36, %v9136_v5  ;;  %v19686_v28 = vsel %vm708_vm4, %v8894_v8, %v8895_v33  ;;  %v8866_v51 = vsel %vm708_vm4, %v8864_v24, %v8865_v1  ;;  %v19690_v48 = vsel %vm708_vm4, %v8891_v43, %v8892_v39  ;;  %v19709_v36 = vld [vmem:[#allocation3 + $0x60] sm:$0xff]  ;;  %v15293_v39 = vld [vmem:[%s21288_s2 + $0xc8] sm:$0xff]   ;;  %v19721_v33 = vld [vmem:[#allocation3 + $0x70] sm:$0xff] }
 0x664   :  { %v9152_v31 = vsel %vm7963_vm7, %v8866_v51, %v15106_v0  ;;  %v19694_v44 = vsel %vm708_vm4, %v8879_v61, %v8880_v16  ;;  %v8903_v13 = vrot.slane %v19564_v30, 2  ;;  %v15208_v11 = vpack.i.bf16 %v19686_v28, %v19690_v48  ;;  %v15292_v0 = vld [vmem:[%s21288_s2 + $0x80] sm:$0xff]  }
 0x665   :  { %v19697_v3 = vld [vmem:[#allocation3 + $0x120] sm:$0xff]  ;;  %v9189_v42 = vpack.c.bf16 %v9153_v35, %v9152_v31  ;;  %v8904_v1 = vrot.slane %v19568_v20, 2  ;;  %v8882_v25 = vrot.slane %v19709_v36, 2  ;;  %v8906_v5 = vrot.slane %v19575_v32, 2  ;;  %v15497_v20 = vld [vmem:[#allocation3 + $0x68] sm:$0x3] }
 0x666   :  { %v15173_v49 = vpack.i.bf16 %v19697_v3, %v19587_v59  ;;  %v8907_v43 = vrot.slane %v19581_v46, 2  ;;  %v8883_v34 = vrot.slane %v15497_v20, 2  ;;  %v8885_v24 = vrot.slane %v19721_v33, 2  ;;  %v19725_v61 = vld [vmem:[#allocation3 + $0x128] sm:$0x3]  ;;  %v15115_v46 = vpop.permute.xlu1 %15114 }
 0x667   :  { %15209 = vrot.lane.b32.xlu1 %v15208_v11, %s15534_s12  ;;  %9494 = vmatprep.mubr.bf16.mxu1 %v9189_v42  ;;  %v19719_v8 = vsel %vm708_vm4, %v8903_v13, %v8904_v1  ;;  %v8954_v35 = vrot.slane %v19649_v52, 2  ;;  %v8955_v16 = vrot.slane %v19624_v27, 2  ;;  %v8970_v51 = vrot.slane %v19626_v12, 2  ;;  %v19734_v13 = vld [vmem:[#allocation3 + $0x130] sm:$0xff]  ;;  %v15499_v42 = vld [vmem:[#allocation3 + $0x78] sm:$0x3] }
 0x668   :  { %15174 = vrot.lane.b32.xlu0 %v15173_v49, %s15534_s12  ;;  %v19729_v15 = vsel %vm708_vm4, %v8906_v5, %v8907_v43  ;;  %9495 = vmatmul.mubr.bf16.vlgmr.msra.gmra.mrb[64].mxu1 %v9188_v57  ;;  %v8971_v31 = vrot.slane %v19628_v26, 2  ;;  %v8886_v1 = vrot.slane %v15499_v42, 2  ;;  %v19738_v20 = vld [vmem:[#allocation3 + $0x138] sm:$0x3]  ;;  %v8909_v49 = vrot.slane %v19587_v59, 2  ;;  %v15294_v27 = vld [vmem:[%s21288_s2 + $0x88] sm:$0xff]  }
 0x669   :  { %v15218_v11 = vpack.i.bf16 %v19729_v15, %v19719_v8  ;;  %v8910_v5 = vrot.slane %v19592_v10, 2  ;;  %13727 = vmatpush3.bf16.msra.mxu1 %v15292_v0  ;;  %v19746_v26 = vsel %vm708_vm4, %v8954_v35, %v8955_v16  ;;  %v8957_v43 = vrot.slane %v19697_v3, 2  ;;  %v15295_v10 = vld [vmem:[%s21288_s2 + $0xd0] sm:$0xff]  }
 0x66a   :  { %21863 = vst [vmem:[#allocation40_spill] sm:$0xff] %v19746_v26  ;;  %v19749_v57 = vsel %vm708_vm4, %v8970_v51, %v8971_v31  ;;  %v8958_v42 = vrot.slane %v19725_v61, 2  ;;  %13728 = vmatprep.subr.bf16.mxu1 %v15293_v39  ;;  %v19757_v0 = vsel %vm708_vm4, %v8882_v25, %v8883_v34  ;;  %v8973_v16 = vrot.slane %v19734_v13, 2  ;;  %v15120_v9 = vpop.permute.xlu1 %15119 }
 0x66b   :  { %21864 = vst [vmem:[#allocation46_spill] sm:$0xff] %v19749_v57  ;;  %15219 = vrot.lane.b32.xlu1 %v15218_v11, %s15534_s12  ;;  %v19765_v51 = vsel %vm708_vm4, %v8909_v49, %v8910_v5  ;;  %v8974_v31 = vrot.slane %v19738_v20, 2  ;;  %v8900_v34 = vrot.slane %v19548_v37, 2  ;;  %v8901_v11 = vrot.slane %v19558_v63, 2  ;;  %v15297_v63 = vld [vmem:[%s21288_s2 + $0xd8] sm:$0xff]  }
 0x66c   :  { %15184 = vrot.lane.b32.xlu0 %v15183_v4, %s15534_s12  ;;  %v19768_v39 = vsel %vm708_vm4, %v8957_v43, %v8958_v42  ;;  %v15117_v35 = vunpack.i.h.bf16 %v15115_v46  ;;  %v15296_v4 = vld [vmem:[%s21288_s2 + $0x90] sm:$0xff]   ;;  %v15193_v49 = vpack.i.bf16 %v19757_v0, %v19694_v44  ;;  %v19781_v5 = vsel %vm708_vm4, %v8885_v24, %v8886_v1 }
 0x66d   :  { %21865 = vst [vmem:[#allocation48_spill] sm:$0xff] %v19768_v39  ;;  %v15228_v25 = vpack.i.bf16 %v19768_v39, %v19765_v51  ;;  %13729 = vmatpush3.bf16.msra.mxu1 %v15294_v27  ;;  %v19784_v43 = vsel %vm708_vm4, %v8973_v16, %v8974_v31  ;;  %v15116_v42 = vunpack.i.l.bf16 %v15115_v46  ;;  %v15203_v27 = vpack.i.bf16 %v19746_v26, %v19781_v5 }
 0x66e   :  { %21866 = vst [vmem:[#allocation52_spill] sm:$0xff] %v19784_v43  ;;  %13730 = vmatprep.subr.bf16.mxu1 %v15295_v10  ;;  %v8897_v24 = vrot.slane %v19536_v19, 2  ;;  %v8898_v46 = vrot.slane %v19545_v41, 2  ;;  %v15122_v1 = vunpack.i.h.bf16 %v15120_v9  ;;  %v15121_v10 = vunpack.i.l.bf16 %v15120_v9  ;;  %v15130_v57 = vpop.permute.xlu1 %15129  ;;  %v15500_v9 = vld [vmem:[#allocation3 + $0x30] sm:$0xff] }
 0x66f   :  { %15229 = vrot.lane.b32.xlu1 %v15228_v25, %s15534_s12  ;;  %v19798_v16 = vsel %vm708_vm4, %v8900_v34, %v8901_v11  ;;  %v8935_v31 = vrot.slane %v19697_v3, 1  ;;  %v9154_v26 = vsel %vm7963_vm7, %v19666_v14, %v15116_v42  ;;  %v9155_v25 = vsel %vm7963_vm7, %v19637_v53, %v15117_v35  ;;  %v15135_v11 = vpop.permute.xlu0 %15134  ;;  %v15298_v42 = vld [vmem:[%s21288_s2 + $0x98] sm:$0xff]  }
 0x670   :  { %15194 = vrot.lane.b32.xlu0 %v15193_v49, %s15534_s12  ;;  %v8936_v49 = vrot.slane %v19725_v61, 1  ;;  %v9193_v39 = vpack.c.bf16 %v9155_v25, %v9154_v26  ;;  %v9138_v41 = vsel %vm7963_vm7, %v19630_v55, %v15121_v10  ;;  %v9139_v34 = vsel %vm7963_vm7, %v15500_v9, %v15122_v1  ;;  %v15299_v55 = vld [vmem:[%s21288_s2 + $0xe0] sm:$0xff]  }
 0x671   :  { %13731 = vmatpush3.bf16.msra.mxu1 %v15296_v4  ;;  %v8967_v43 = vrot.slane %v19734_v13, 1  ;;  %v8968_v35 = vrot.slane %v19738_v20, 1  ;;  %v19814_v4 = vpack.c.bf16 %v9139_v34, %v9138_v41  ;;  %v15127_v61 = vunpack.i.h.bf16 %v15125_v23 }
 0x672   :  { %13732 = vmatprep.subr.bf16.mxu1 %v15297_v63  ;;  %9502 = vmatprep.mubr.bf16.mxu1 %v9193_v39  ;;  %v15132_v26 = vunpack.i.h.bf16 %v15130_v57  ;;  %v15131_v63 = vunpack.i.l.bf16 %v15130_v57  ;;  %v15126_v1 = vunpack.i.l.bf16 %v15125_v23  ;;  %v19821_v10 = vsel %vm708_vm4, %v8897_v24, %v8898_v46  ;;  %v15300_v23 = vld [vmem:[%s21288_s2 + $0xa0] sm:$0xff]  }
 0x673   :  { %9503 = vmatmul.mubr.bf16.gmra.mrb[68].mxu1 %v19814_v4  ;;  %v9157_v20 = vsel %vm7963_vm7, %v19694_v44, %v15127_v61  ;;  %v15137_v25 = vunpack.i.h.bf16 %v15135_v11  ;;  %v15136_v41 = vunpack.i.l.bf16 %v15135_v11  ;;  %v15213_v9 = vpack.i.bf16 %v19798_v16, %v19821_v10  ;;  %v15140_v61 = vpop.permute.xlu1 %15139 }
 0x674   :  { %15204 = vrot.lane.b32.xlu0 %v15203_v27, %s15534_s12  ;;  %v19829_v34 = vsel %vm483_vm5, %v8935_v31, %v8936_v49  ;;  %v9156_v57 = vsel %vm7963_vm7, %v19642_v58, %v15126_v1  ;;  %v8969_v39 = vsel %vm483_vm5, %v8967_v43, %v8968_v35  ;;  %v15301_v31 = vld [vmem:[%s21288_s2 + $0xe8] sm:$0xff]   ;;  %v15501_v49 = vld [vmem:[#allocation3 + $0x40] sm:$0xff]  ;;  %v9141_v43 = vsel %vm7963_vm7, %v19679_v56, %v15132_v26  ;;  %v15303_v56 = vld [vmem:[%s21288_s2 + $0xf0] sm:$0xff]  }
 0x675   :  { %13733 = vmatpush3.bf16.msra.mxu1 %v15298_v42  ;;  %v9197_v27 = vpack.c.bf16 %v9157_v20, %v9156_v57  ;;  %v9158_v24 = vsel %vm7963_vm7, %v19757_v0, %v15136_v41  ;;  %v9159_v46 = vsel %vm7963_vm7, %v19781_v5, %v15137_v25  ;;  %v9140_v11 = vsel %vm7963_vm7, %v15501_v49, %v15131_v63  ;;  %v15302_v20 = vld [vmem:[%s21288_s2 + $0xa8] sm:$0xff]   ;;  %v15304_v41 = vld [vmem:[%s21288_s2 + $0xb0] sm:$0xff]  }
 0x676   :  { %13734 = vmatprep.subr.bf16.mxu1 %v15299_v55  ;;  %v9192_v42 = vpack.c.bf16 %v19637_v53, %v19666_v14  ;;  %v9200_v35 = vpack.c.bf16 %v19781_v5, %v19757_v0  ;;  %v15223_v55 = vpack.i.bf16 %v8969_v39, %v19829_v34  ;;  %v9201_v1 = vpack.c.bf16 %v9159_v46, %v9158_v24  ;;  %v15306_v39 = vld [vmem:[%s21288_s2 + $0xb8] sm:$0xff]   ;;  %v19881_v24 = vld [vmem:[%s21288_s2 + $0x100] sm:$0xff]  }
 0x677   :  { %9510 = vmatprep.mubr.bf16.mxu1 %v9197_v27  ;;  %v19856_v63 = vpack.c.bf16 %v9141_v43, %v9140_v11  ;;  %v15142_v26 = vunpack.i.h.bf16 %v15140_v61  ;;  %v15141_v25 = vunpack.i.l.bf16 %v15140_v61  ;;  %v15503_v46 = vld [vmem:[#allocation3 + $0xa0] sm:$0xff]  ;;  %v9213_v53 = vpack.c.bf16 %v19719_v8, %v19798_v16 }
 0x678   :  { %15214 = vrot.lane.b32.xlu0 %v15213_v9, %s15534_s12  ;;  %v15305_v9 = vld [vmem:[%s21288_s2 + $0xf8] sm:$0xff]   ;;  %vm10902_vm5 = vcmask 1046532  }
 0x679   :  { %13735 = vmatpush3.bf16.msra.mxu1 %v15300_v23  ;;  %v9142_v57 = vsel %vm7963_vm7, %v19709_v36, %v15141_v25  ;;  %v9143_v23 = vsel %vm7963_vm7, %v19721_v33, %v15142_v26  ;;  %v15502_v36 = vld [vmem:[#allocation3 + $0xa8] sm:$0x3] }
 0x67a   :  { %13736 = vmatprep.subr.bf16.mxu1 %v15301_v31  ;;  %v19876_v27 = vpack.c.bf16 %v9143_v23, %v9142_v57  ;;  %v8889_v33 = vrot.slane %v15502_v36, 2  ;;  %v8888_v31 = vrot.slane %v15503_v46, 2 }
 0x67b   :  { %9511 = vmatmul.mubr.bf16.gmra.mrb[72].mxu1 %v19856_v63 }
 0x67c   :  { %15224 = vrot.lane.b32.xlu0 %v15223_v55, %s15534_s12  ;;  %9518 = vmatprep.mubr.bf16.mxu1 %v9201_v1  ;;  %v8890_v11 = vsel %vm708_vm4, %v8888_v31, %v8889_v33  ;;  %vm10901_vm4 = vcmask 1042432  }
 0x67d   :  { %13737 = vmatpush3.bf16.msra.mxu1 %v15302_v20  ;;  %vm20586_vm12 = vmor %vm10901_vm4, %vm10902_vm5 }
 0x67e   :  { %13738 = vmatprep.subr.bf16.mxu1 %v15303_v56 }
 0x681   :  { %13739 = vmatpush3.bf16.msra.mxu1 %v15304_v41 }
 0x682   :  { %13740 = vmatprep.subr.bf16.mxu1 %v15305_v9  ;;  %v15504_v9 = vld [vmem:[#allocation3 + $0xb0] sm:$0xff] }
 0x683   :  { %9519 = vmatmul.mubr.bf16.gmra.mrb[76].mxu1 %v19876_v27 }
 0x685   :  { %13741 = vmatpush3.bf16.msra.mxu1 %v15306_v39 }
 0x686   :  { %14514 = vmatprep.subr.bf16.mxu1 %v19881_v24 }
 0x68c   :  { %v15145_v49 = vpop.permute.xlu0 %15144 }
 0x68d   :  { %v15150_v43 = vpop.permute.xlu1 %15149  ;;  %v15147_v61 = vunpack.i.h.bf16 %v15145_v49  ;;  %v15146_v55 = vunpack.i.l.bf16 %v15145_v49 }
 0x68e   :  { %v15152_v1 = vunpack.i.h.bf16 %v15150_v43  ;;  %v15151_v20 = vunpack.i.l.bf16 %v15150_v43 }
 0x68f   :  { %v9160_v56 = vsel %vm7963_vm7, %v8890_v11, %v15146_v55  ;;  %v9161_v26 = vsel %vm7963_vm7, %v19690_v48, %v15147_v61 }
 0x690   :  { %v9206_v25 = vpack.c.bf16 %v9161_v26, %v9160_v56  ;;  %v9144_v41 = vsel %vm7963_vm7, %v15503_v46, %v15151_v20  ;;  %v9145_v57 = vsel %vm7963_vm7, %v15504_v9, %v15152_v1 }
 0x691   :  { %v9205_v23 = vpack.c.bf16 %v9145_v57, %v9144_v41 }
 0x692   :  { %9526 = vmatprep.mubr.bf16.mxu1 %v9206_v25 }
 0x693   :  { %9527 = vmatmul.mubr.bf16.gmra.mrb[80].mxu1 %v9205_v23 }
 0x6c3   :  { %v15155_v39 = vpop.permute.xlu0 %15154 }
 0x6c4   :  { %v15157_v36 = vunpack.i.h.bf16 %v15155_v39  ;;  %v15156_v33 = vunpack.i.l.bf16 %v15155_v39 }
 0x6c5   :  { %v15160_v31 = vpop.permute.xlu1 %15159 }
 0x6c6   :  { %v15162_v49 = vunpack.i.h.bf16 %v15160_v31  ;;  %v15161_v43 = vunpack.i.l.bf16 %v15160_v31  ;;  %v9162_v11 = vsel %vm7963_vm7, %v19686_v28, %v15156_v33  ;;  %v9163_v48 = vsel %vm7963_vm7, %v19821_v10, %v15157_v36 }
 0x6c7   :  { %v9210_v61 = vpack.c.bf16 %v9163_v48, %v9162_v11  ;;  %v15165_v46 = vpop.permute.xlu0 %15164 }
 0x6c8   :  { %v9146_v55 = vsel %vm7963_vm7, %v19401_v21, %v15161_v43  ;;  %v9147_v1 = vsel %vm7963_vm7, %v19536_v19, %v15162_v49  ;;  %v15167_v20 = vunpack.i.h.bf16 %v15165_v46  ;;  %v15166_v56 = vunpack.i.l.bf16 %v15165_v46 }
 0x6c9   :  { %9534 = vmatprep.mubr.bf16.mxu1 %v9210_v61  ;;  %v19899_v26 = vpack.c.bf16 %v9147_v1, %v9146_v55  ;;  %v15170_v25 = vpop.permute.xlu1 %15169 }
 0x6ca   :  { %v15172_v41 = vunpack.i.h.bf16 %v15170_v25  ;;  %v15171_v9 = vunpack.i.l.bf16 %v15170_v25  ;;  %v9164_v57 = vsel %vm7963_vm7, %v19798_v16, %v15166_v56  ;;  %v9165_v23 = vsel %vm7963_vm7, %v19719_v8, %v15167_v20 }
 0x6cb   :  { %9535 = vmatmul.mubr.bf16.gmra.mrb[84].mxu1 %v19899_v26  ;;  %v9214_v21 = vpack.c.bf16 %v9165_v23, %v9164_v57  ;;  %v15308_v57 = vld [vmem:[%s21288_s2 + $0x108] sm:$0xff]  }
 0x6cc   :  { %v9148_v19 = vsel %vm7963_vm7, %v19548_v37, %v15171_v9  ;;  %v9149_v39 = vsel %vm7963_vm7, %v19564_v30, %v15172_v41 }
 0x6cd   :  { %9542 = vmatprep.mubr.bf16.mxu1 %v9214_v21  ;;  %v19910_v36 = vpack.c.bf16 %v9149_v39, %v9148_v19  ;;  %v15180_v33 = vpop.permute.xlu1 %15179 }
 0x6ce   :  { %v15182_v31 = vunpack.i.h.bf16 %v15180_v33  ;;  %v15181_v49 = vunpack.i.l.bf16 %v15180_v33 }
 0x6d0   :  { %v9150_v61 = vsel %vm7963_vm7, %v19575_v32, %v15181_v49  ;;  %v9151_v46 = vsel %vm7963_vm7, %v19587_v59, %v15182_v31 }
 0x6d1   :  { %v19921_v20 = vpack.c.bf16 %v9151_v46, %v9150_v61  ;;  %v15190_v41 = vpop.permute.xlu1 %15189 }
 0x6d2   :  { %v15192_v23 = vunpack.i.h.bf16 %v15190_v41  ;;  %v15191_v21 = vunpack.i.l.bf16 %v15190_v41 }
 0x6d3   :  { %9543 = vmatmul.mubr.bf16.gmra.mrb[88].mxu1 %v19910_v36 }
 0x6d5   :  { %v15200_v39 = vpop.permute.xlu1 %15199 }
 0x6d6   :  { %v15202_v49 = vunpack.i.h.bf16 %v15200_v39 }
 0x6d8   :  { %v9185_v61 = vsel %vm7963_vm7, %v19626_v12, %v15202_v49 }
 0x6da   :  { %v15175_v43 = vpop.permute.xlu0 %15174 }
 0x6db   :  { %v15177_v11 = vunpack.i.h.bf16 %v15175_v43  ;;  %v15176_v48 = vunpack.i.l.bf16 %v15175_v43  ;;  %v15201_v43 = vunpack.i.l.bf16 %v15200_v39 }
 0x6dd   :  { %v9166_v37 = vsel %vm7963_vm7, %v19729_v15, %v15176_v48  ;;  %v9167_v30 = vsel %vm7963_vm7, %v19765_v51, %v15177_v11  ;;  %v9184_v48 = vsel %vm7963_vm7, %v19649_v52, %v15201_v43 }
 0x6de   :  { %v15185_v55 = vpop.permute.xlu0 %15184  ;;  %v9218_v1 = vpack.c.bf16 %v9167_v30, %v9166_v37 }
 0x6df   :  { %v15187_v56 = vunpack.i.h.bf16 %v15185_v55  ;;  %v15186_v25 = vunpack.i.l.bf16 %v15185_v55  ;;  %v15210_v55 = vpop.permute.xlu1 %15209 }
 0x6e0   :  { %9550 = vmatprep.mubr.bf16.mxu1 %v9218_v1  ;;  %v15211_v52 = vunpack.i.l.bf16 %v15210_v55 }
 0x6e1   :  { %9551 = vmatmul.mubr.bf16.gmra.mrb[92].mxu1 %v19921_v20  ;;  %v9169_v32 = vsel %vm7963_vm7, %v18834_v38, %v15187_v56  ;;  %v9168_v59 = vsel %vm7963_vm7, %v18653_v17, %v15186_v25  ;;  %v15309_v38 = vld [vmem:[%s21288_s2 + $0x110] sm:$0xff]   ;;  %v9170_v17 = vsel %vm7963_vm7, %v18855_v40, %v15191_v21  ;;  %v15212_v56 = vunpack.i.h.bf16 %v15210_v55 }
 0x6e2   :  { %9591 = vmatprep.mubr.bf16.mxu1 %v19814_v4  ;;  %v9190_v9 = vpack.c.bf16 %v9169_v32, %v9168_v59  ;;  %v9171_v4 = vsel %vm7963_vm7, %v18921_v7, %v15192_v23  ;;  %v15195_v19 = vpop.permute.xlu0 %15194  ;;  %v9176_v12 = vsel %vm7963_vm7, %v19411_v18, %v15211_v52 }
 0x6e3   :  { %v9194_v33 = vpack.c.bf16 %v9171_v4, %v9170_v17  ;;  %v15196_v31 = vunpack.i.l.bf16 %v15195_v19  ;;  %v9177_v25 = vsel %vm7963_vm7, %v19555_v22, %v15212_v56 }
 0x6e4   :  { %v9207_v59 = vpack.c.bf16 %v9177_v25, %v9176_v12 }
 0x6e5   :  { %v9172_v40 = vsel %vm7963_vm7, %v18933_v62, %v15196_v31 }
 0x6e6   :  { %v15205_v11 = vpop.permute.xlu0 %15204 }
 0x6e7   :  { %v15207_v37 = vunpack.i.h.bf16 %v15205_v11  ;;  %v15206_v30 = vunpack.i.l.bf16 %v15205_v11 }
 0x6e9   :  { %9592 = vmatmul.mubr.bf16.vlgmr.msra.gmra.mrb[96].mxu1 %v9190_v9  ;;  %v9174_v62 = vsel %vm7963_vm7, %v19099_v29, %v15206_v30 }
 0x6ea   :  { %9599 = vmatprep.mubr.bf16.mxu1 %v19856_v63  ;;  %14515 = vmatpush3.bf16.msra.mxu1 %v19881_v24  ;;  %v15310_v63 = vld [vmem:[%s21288_s2 + $0x118] sm:$0xff]   ;;  %v15197_v24 = vunpack.i.h.bf16 %v15195_v19  ;;  %v15215_v32 = vpop.permute.xlu0 %15214 }
 0x6eb   :  { %14516 = vmatprep.subr.bf16.mxu1 %v15308_v57  ;;  %v15217_v41 = vunpack.i.h.bf16 %v15215_v32  ;;  %v15216_v29 = vunpack.i.l.bf16 %v15215_v32 }
 0x6ec   :  { %v9173_v7 = vsel %vm7963_vm7, %v19087_v60, %v15197_v24  ;;  %v9175_v60 = vsel %vm7963_vm7, %v19659_v47, %v15207_v37 }
 0x6ed   :  { %v9198_v46 = vpack.c.bf16 %v9173_v7, %v9172_v40  ;;  %v9202_v1 = vpack.c.bf16 %v9175_v60, %v9174_v62  ;;  %v9178_v47 = vsel %vm7963_vm7, %v19572_v6, %v15216_v29  ;;  %v9179_v9 = vsel %vm7963_vm7, %v19584_v50, %v15217_v41 }
 0x6ee   :  { %14517 = vmatpush3.bf16.msra.mxu1 %v15308_v57  ;;  %v15225_v57 = vpop.permute.xlu0 %15224  ;;  %v9211_v23 = vpack.c.bf16 %v9179_v9, %v9178_v47 }
 0x6ef   :  { %14518 = vmatprep.subr.bf16.mxu1 %v15309_v38  ;;  %v15226_v22 = vunpack.i.l.bf16 %v15225_v57 }
 0x6f1   :  { %9600 = vmatmul.mubr.bf16.gmra.mrb[100].mxu1 %v9194_v33  ;;  %v9186_v50 = vsel %vm7963_vm7, %v19697_v3, %v15226_v22  ;;  %v21867_v3 = vpack.c.bf16 %v19694_v44, %v19642_v58  ;;  %v9217_v58 = vpack.c.bf16 %v19765_v51, %v19729_v15 }
 0x6f2   :  { %9607 = vmatprep.mubr.bf16.mxu1 %v19876_v27  ;;  %14519 = vmatpush3.bf16.msra.mxu1 %v15309_v38  ;;  %v9203_v27 = vpack.c.bf16 %v9185_v61, %v9184_v48  ;;  %v15227_v38 = vunpack.i.h.bf16 %v15225_v57 }
 0x6f3   :  { %14520 = vmatprep.subr.bf16.mxu1 %v15310_v63 }
 0x6f4   :  { %v9187_v4 = vsel %vm7963_vm7, %v19734_v13, %v15227_v38  ;;  %v21868_v13 = vld [vmem:[#allocation46_spill] sm:$0xff] }
 0x6f6   :  { %14521 = vmatpush3.bf16.msra.mxu1 %v15310_v63  ;;  %v9220_v63 = vpack.c.bf16 %v9187_v4, %v9186_v50 }
 0x6f9   :  { %9608 = vmatmul.mubr.bf16.gmra.mrb[104].mxu1 %v9198_v46 }
 0x6fa   :  { %9615 = vmatprep.mubr.bf16.mxu1 %v9203_v27 }
 0x701   :  { %9616 = vmatmul.mubr.bf16.gmra.mrb[108].mxu1 %v9202_v1 }
 0x702   :  { %9623 = vmatprep.mubr.bf16.mxu1 %v19899_v26  ;;  %v15220_v26 = vpop.permute.xlu1 %15219 }
 0x703   :  { %v15222_v18 = vunpack.i.h.bf16 %v15220_v26  ;;  %v15221_v21 = vunpack.i.l.bf16 %v15220_v26 }
 0x705   :  { %v9180_v17 = vsel %vm7963_vm7, %v19596_v2, %v15221_v21 }
 0x706   :  { %v15230_v6 = vpop.permute.xlu1 %15229 }
 0x707   :  { %v15232_v39 = vunpack.i.h.bf16 %v15230_v6  ;;  %v15231_v33 = vunpack.i.l.bf16 %v15230_v6 }
 0x709   :  { %9624 = vmatmul.mubr.bf16.gmra.mrb[112].mxu1 %v9207_v59  ;;  %v9183_v2 = vsel %vm7963_vm7, %v19829_v34, %v15232_v39  ;;  %v21869_v34 = vld [vmem:[#allocation40_spill] sm:$0xff] }
 0x70a   :  { %9631 = vmatprep.mubr.bf16.mxu1 %v19910_v36  ;;  %v9181_v36 = vsel %vm7963_vm7, %v19607_v54, %v15222_v18  ;;  %v21870_v24 = vpack.c.bf16 %v21868_v13, %v21869_v34 }
 0x70b   :  { %v9215_v19 = vpack.c.bf16 %v9181_v36, %v9180_v17  ;;  %v21874_v17 = vmov 0.0  }
 0x70c   :  { %10789 = vst.msk [vmem:[#allocation4 + $0x10] sm:$0x3f] %vm10786_vm15, %v21874_v17  ;;  %10787 = vst.msk [vmem:[#allocation4] sm:$0x3f] %vm10786_vm15, %v21874_v17 }
 0x70d   :  { %10788 = vst.msk [vmem:[#allocation4 + $0x8] sm:$0x3f] %vm10786_vm15, %v21874_v17  ;;  %10790 = vst.msk [vmem:[#allocation4 + $0x18] sm:$0x3f] %vm10786_vm15, %v21874_v17 }
 0x70e   :  { %10791 = vst.msk [vmem:[#allocation4 + $0x20] sm:$0x3f] %vm10786_vm15, %v21874_v17  ;;  %10792 = vst.msk [vmem:[#allocation4 + $0x28] sm:$0x3f] %vm10786_vm15, %v21874_v17 }
 0x70f   :  { %10793 = vst.msk [vmem:[#allocation4 + $0x30] sm:$0x3f] %vm10786_vm15, %v21874_v17  ;;  %10794 = vst.msk [vmem:[#allocation4 + $0x38] sm:$0x3f] %vm10786_vm15, %v21874_v17 }
 0x710   :  { %10795 = vst.msk [vmem:[#allocation4 + $0x40] sm:$0x3f] %vm10786_vm15, %v21874_v17  ;;  %10796 = vst.msk [vmem:[#allocation4 + $0x48] sm:$0x3f] %vm10786_vm15, %v21874_v17 }
 0x711   :  { %9632 = vmatmul.mubr.bf16.gmra.mrb[116].mxu1 %v9211_v23  ;;  %10797 = vst.msk [vmem:[#allocation4 + $0x50] sm:$0x3f] %vm10786_vm15, %v21874_v17  ;;  %10798 = vst.msk [vmem:[#allocation4 + $0x58] sm:$0x3f] %vm10786_vm15, %v21874_v17 }
 0x712   :  { %9639 = vmatprep.mubr.bf16.mxu1 %v19921_v20  ;;  %v9182_v20 = vsel %vm7963_vm7, %v19616_v45, %v15231_v33  ;;  %v9209_v45 = vpack.c.bf16 %v19821_v10, %v19686_v28  ;;  %11816 = vst.msk [vmem:[#allocation5] sm:$0xf] %vm10864_vm1, %v21874_v17  ;;  %11817 = vst.msk [vmem:[#allocation5 + $0x4] sm:$0xf] %vm10864_vm1, %v21874_v17 }
 0x713   :  { %v9219_v54 = vpack.c.bf16 %v9183_v2, %v9182_v20  ;;  %11818 = vst.msk [vmem:[#allocation5 + $0x8] sm:$0xf] %vm10864_vm1, %v21874_v17  ;;  %11819 = vst.msk [vmem:[#allocation5 + $0xc] sm:$0xf] %vm10864_vm1, %v21874_v17 }
 0x714   :  { %11820 = vst.msk [vmem:[#allocation5 + $0x10] sm:$0xf] %vm10864_vm1, %v21874_v17  ;;  %11821 = vst.msk [vmem:[#allocation5 + $0x14] sm:$0xf] %vm10864_vm1, %v21874_v17 }
 0x715   :  { %11822 = vst.msk [vmem:[#allocation5 + $0x18] sm:$0xf] %vm10864_vm1, %v21874_v17  ;;  %11823 = vst.msk [vmem:[#allocation5 + $0x1c] sm:$0xf] %vm10864_vm1, %v21874_v17 }
 0x719   :  { %9640 = vmatmul.mubr.bf16.gmra.mrb[120].mxu1 %v9215_v19 }
 0x71a   :  { %9647 = vmatprep.mubr.bf16.mxu1 %v9220_v63 }
 0x721   :  { %9648 = vmatmul.mubr.bf16.gmra.mrb[124].mxu1 %v9219_v54 }
 0x722   :  { %14522 = vmatprep.mubr.msk.bf16.mxu1 %vm7963_vm7, %v9192_v42  ;;  %v21871_v42 = vld [vmem:[#allocation52_spill] sm:$0xff] }
 0x729   :  { %14523 = vmatmul.mubr.msk.bf16.vlgmr.msra.gmra.mrb[128].mxu1 %vm7963_vm7, %v21867_v3 }
 0x72a   :  { %14526 = vmatprep.mubr.msk.bf16.mxu1 %vm7963_vm7, %v9200_v35  ;;  %v21872_v35 = vld [vmem:[#allocation48_spill] sm:$0xff] }
 0x72b   :  { %v21873_v31 = vpack.c.bf16 %v21871_v42, %v21872_v35 }
 0x731   :  { %14527 = vmatmul.mubr.msk.bf16.gmra.mrb[132].mxu1 %vm7963_vm7, %v21870_v24 }
 0x732   :  { %14530 = vmatprep.mubr.msk.bf16.mxu1 %vm7963_vm7, %v9209_v45 }
 0x739   :  { %14531 = vmatmul.mubr.msk.bf16.gmra.mrb[136].mxu1 %vm7963_vm7, %v9213_v53 }
 0x73a   :  { %14534 = vmatprep.mubr.msk.bf16.mxu1 %vm7963_vm7, %v9217_v58 }
 0x73b   :  { %v13678_v14 = vpop.f32.mrb[64].mxu1 }
 0x73c   :  { %v13679_v44 = vpop.f32.mrb[65].mxu1 }
 0x73d   :  { %v20005_v28 = vadd.f32 %v13679_v44, %v13678_v14  ;;  %v13681_v0 = vpop.f32.mrb[66].mxu1 }
 0x73e   :  { %v13682_v5 = vpop.f32.mrb[67].mxu1 }
 0x73f   :  { %v20007_v10 = vadd.f32 %v13682_v5, %v13681_v0 }
 0x741   :  { %14535 = vmatmul.mubr.msk.bf16.gmra.mrb[140].mxu1 %vm7963_vm7, %v21873_v31 }
 0x746   :  { %v13684_v8 = vpop.f32.mrb[68].mxu1 }
 0x747   :  { %v13685_v16 = vpop.f32.mrb[69].mxu1 }
 0x748   :  { %v20013_v15 = vadd.f32 %v13685_v16, %v13684_v8  ;;  %v13687_v51 = vpop.f32.mrb[70].mxu1 }
 0x749   :  { %v13688_v49 = vpop.f32.mrb[71].mxu1 }
 0x74a   :  { %v20015_v43 = vadd.f32 %v13688_v49, %v13687_v51 }
 0x74e   :  { %v13690_v40 = vpop.f32.mrb[72].mxu1 }
 0x74f   :  { %v13691_v7 = vpop.f32.mrb[73].mxu1 }
 0x750   :  { %v20017_v11 = vadd.f32 %v13691_v7, %v13690_v40  ;;  %v13693_v48 = vpop.f32.mrb[74].mxu1 }
 0x751   :  { %v13694_v61 = vpop.f32.mrb[75].mxu1 }
 0x752   :  { %v20019_v46 = vadd.f32 %v13694_v61, %v13693_v48 }
 0x756   :  { %v13696_v37 = vpop.f32.mrb[76].mxu1 }
 0x757   :  { %v13697_v30 = vpop.f32.mrb[77].mxu1 }
 0x758   :  { %v20021_v27 = vadd.f32 %v13697_v30, %v13696_v37  ;;  %v13699_v62 = vpop.f32.mrb[78].mxu1 }
 0x759   :  { %v13700_v60 = vpop.f32.mrb[79].mxu1 }
 0x75a   :  { %v20023_v55 = vadd.f32 %v13700_v60, %v13699_v62 }
 0x766   :  { %v13702_v1 = vpop.f32.mrb[80].mxu1 }
 0x767   :  { %v13703_v56 = vpop.f32.mrb[81].mxu1 }
 0x768   :  { %v20025_v52 = vadd.f32 %v13703_v56, %v13702_v1  ;;  %v13705_v12 = vpop.f32.mrb[82].mxu1 }
 0x769   :  { %v13706_v25 = vpop.f32.mrb[83].mxu1 }
 0x76a   :  { %v20027_v32 = vadd.f32 %v13706_v25, %v13705_v12 }
 0x79e   :  { %v13708_v59 = vpop.f32.mrb[84].mxu1 }
 0x79f   :  { %v13709_v41 = vpop.f32.mrb[85].mxu1 }
 0x7a0   :  { %v20029_v29 = vadd.f32 %v13709_v41, %v13708_v59  ;;  %v13711_v47 = vpop.f32.mrb[86].mxu1 }
 0x7a1   :  { %v13712_v9 = vpop.f32.mrb[87].mxu1 }
 0x7a2   :  { %v20031_v26 = vadd.f32 %v13712_v9, %v13711_v47 }
 0x7a6   :  { %v13714_v57 = vpop.f32.mrb[88].mxu1 }
 0x7a7   :  { %v13715_v23 = vpop.f32.mrb[89].mxu1 }
 0x7a8   :  { %v20033_v18 = vadd.f32 %v13715_v23, %v13714_v57  ;;  %v13717_v21 = vpop.f32.mrb[90].mxu1 }
 0x7a9   :  { %v13718_v38 = vpop.f32.mrb[91].mxu1 }
 0x7aa   :  { %v20035_v22 = vadd.f32 %v13718_v38, %v13717_v21 }
 0x7b4   :  { %v13720_v36 = vpop.f32.mrb[92].mxu1 }
 0x7b5   :  { %v13721_v6 = vpop.f32.mrb[93].mxu1 }
 0x7b6   :  { %v20065_v50 = vadd.f32 %v13721_v6, %v13720_v36  ;;  %v13723_v4 = vpop.f32.mrb[94].mxu1 }
 0x7b7   :  { %v13724_v19 = vpop.f32.mrb[95].mxu1 }
 0x7b8   :  { %v20067_v39 = vadd.f32 %v13724_v19, %v13723_v4 }
 0x7bc   :  { %v13742_v33 = vpop.f32.mrb[96].mxu1 }
 0x7bd   :  { %v13743_v63 = vpop.f32.mrb[97].mxu1 }
 0x7be   :  { %v13744_v20 = vadd.f32 %v13743_v63, %v13742_v33  ;;  %v13745_v2 = vpop.f32.mrb[98].mxu1 }
 0x7bf   :  { %v13746_v54 = vpop.f32.mrb[99].mxu1 }
 0x7c0   :  { %v13747_v3 = vadd.f32 %v13746_v54, %v13745_v2  ;;  %v20070_v45 = vadd.f32 %v13744_v20, %v20005_v28 }
 0x7c2   :  { %v20073_v13 = vadd.f32 %v13747_v3, %v20007_v10 }
 0x7c4   :  { %v13748_v34 = vpop.f32.mrb[100].mxu1 }
 0x7c5   :  { %v13749_v24 = vpop.f32.mrb[101].mxu1 }
 0x7c6   :  { %v13750_v53 = vadd.f32 %v13749_v24, %v13748_v34  ;;  %v13751_v58 = vpop.f32.mrb[102].mxu1  ;;  %v20119_v24 = vld [vmem:[%s21290_s4 + $0x1] ss:$0 sm:$0xff] }
 0x7c7   :  { %v13752_v14 = vpop.f32.mrb[103].mxu1 }
 0x7c8   :  { %v13753_v44 = vadd.f32 %v13752_v14, %v13751_v58  ;;  %v9602_v0 = vadd.f32 %v13750_v53, %v20013_v15 }
 0x7ca   :  { %v9605_v5 = vadd.f32 %v13753_v44, %v20015_v43 }
 0x7cc   :  { %v13754_v42 = vpop.f32.mrb[104].mxu1 }
 0x7cd   :  { %v13755_v35 = vpop.f32.mrb[105].mxu1 }
 0x7ce   :  { %v13756_v31 = vadd.f32 %v13755_v35, %v13754_v42  ;;  %v13757_v8 = vpop.f32.mrb[106].mxu1 }
 0x7cf   :  { %v13758_v16 = vpop.f32.mrb[107].mxu1 }
 0x7d0   :  { %v13759_v28 = vadd.f32 %v13758_v16, %v13757_v8  ;;  %v20078_v51 = vadd.f32 %v13756_v31, %v20017_v11 }
 0x7d2   :  { %v20081_v10 = vadd.f32 %v13759_v28, %v20019_v46 }
 0x7d4   :  { %v13760_v49 = vpop.f32.mrb[108].mxu1 }
 0x7d5   :  { %v13761_v40 = vpop.f32.mrb[109].mxu1 }
 0x7d6   :  { %v13762_v7 = vadd.f32 %v13761_v40, %v13760_v49  ;;  %v13763_v48 = vpop.f32.mrb[110].mxu1 }
 0x7d7   :  { %v13764_v61 = vpop.f32.mrb[111].mxu1 }
 0x7d8   :  { %v13765_v15 = vadd.f32 %v13764_v61, %v13763_v48  ;;  %v9618_v43 = vadd.f32 %v13762_v7, %v20021_v27  ;;  %v21875_v7 = vld [vmem:[#allocation38_spill] sm:$0xff] }
 0x7da   :  { %v20085_v37 = vadd.f32 %v13765_v15, %v20023_v55 }
 0x7dc   :  { %v13766_v30 = vpop.f32.mrb[112].mxu1 }
 0x7dd   :  { %v13767_v62 = vpop.f32.mrb[113].mxu1 }
 0x7de   :  { %v13768_v60 = vadd.f32 %v13767_v62, %v13766_v30  ;;  %v13769_v1 = vpop.f32.mrb[114].mxu1 }
 0x7df   :  { %v13770_v11 = vpop.f32.mrb[115].mxu1 }
 0x7e0   :  { %v13771_v56 = vadd.f32 %v13770_v11, %v13769_v1  ;;  %v20088_v46 = vadd.f32 %v13768_v60, %v20025_v52 }
 0x7e2   :  { %v20091_v12 = vadd.f32 %v13771_v56, %v20027_v32 }
 0x7e4   :  { %v13772_v25 = vpop.f32.mrb[116].mxu1 }
 0x7e5   :  { %v13773_v59 = vpop.f32.mrb[117].mxu1 }
 0x7e6   :  { %v13774_v41 = vadd.f32 %v13773_v59, %v13772_v25  ;;  %v13775_v47 = vpop.f32.mrb[118].mxu1 }
 0x7e7   :  { %v13776_v27 = vpop.f32.mrb[119].mxu1 }
 0x7e8   :  { %v13777_v9 = vadd.f32 %v13776_v27, %v13775_v47  ;;  %v20094_v55 = vadd.f32 %v13774_v41, %v20029_v29 }
 0x7ea   :  { %v20097_v57 = vadd.f32 %v13777_v9, %v20031_v26 }
 0x7ec   :  { %v13778_v23 = vpop.f32.mrb[120].mxu1 }
 0x7ed   :  { %v13779_v21 = vpop.f32.mrb[121].mxu1 }
 0x7ee   :  { %v13780_v38 = vadd.f32 %v13779_v21, %v13778_v23  ;;  %v13781_v52 = vpop.f32.mrb[122].mxu1 }
 0x7ef   :  { %v13782_v36 = vpop.f32.mrb[123].mxu1 }
 0x7f0   :  { %v13783_v6 = vadd.f32 %v13782_v36, %v13781_v52  ;;  %v20100_v32 = vadd.f32 %v13780_v38, %v20033_v18  ;;  %v20114_v18 = vld [vmem:[%s21289_s3 + $0x1] ss:$0 sm:$0xff] }
 0x7f2   :  { %v20103_v4 = vadd.f32 %v13783_v6, %v20035_v22 }
 0x7f4   :  { %v13784_v19 = vpop.f32.mrb[124].mxu1 }
 0x7f5   :  { %v13785_v33 = vpop.f32.mrb[125].mxu1 }
 0x7f6   :  { %v13786_v63 = vadd.f32 %v13785_v33, %v13784_v19  ;;  %v13787_v29 = vpop.f32.mrb[126].mxu1 }
 0x7f7   :  { %v13788_v20 = vpop.f32.mrb[127].mxu1 }
 0x7f8   :  { %v13789_v2 = vadd.f32 %v13788_v20, %v13787_v29  ;;  %v20106_v26 = vadd.f32 %v13786_v63, %v20065_v50 }
 0x7fa   :  { %v20109_v54 = vadd.f32 %v13789_v2, %v20067_v39 }
 0x7fc   :  { %v14524_v3 = vpop.f32.mrb[128].mxu1 }
 0x7fd   :  { %v9699_v22 = vadd.f32 %v14524_v3, %v9602_v0  ;;  %v9690_v34 = vpop.f32.mrb[129].mxu1 }
 0x7fe   :  { %v9691_v53 = vadd.f32 %v9690_v34, %v20070_v45  ;;  %v14525_v50 = vpop.f32.mrb[130].mxu1 }
 0x7ff   :  { %v9761_v58 = vmul.f32 %v20114_v18, %v9699_v22  ;;  %v9702_v39 = vadd.f32 %v14525_v50, %v9605_v5  ;;  %v9693_v14 = vpop.f32.mrb[131].mxu1 }
 0x800   :  { %v9759_v44 = vmul.f32 %v20114_v18, %v9691_v53  ;;  %v9694_v42 = vadd.f32 %v9693_v14, %v20073_v13 }
 0x801   :  { %v9783_v35 = vadd.f32 %v20119_v24, %v9761_v58  ;;  %v9762_v0 = vmul.f32 %v20114_v18, %v9702_v39 }
 0x802   :  { %v9781_v31 = vadd.f32 %v20119_v24, %v9759_v44  ;;  %v9760_v8 = vmul.f32 %v20114_v18, %v9694_v42 }
 0x803   :  { %v9799_v16 = vmax.f32 %v9783_v35, 0.0  ;;  %v9784_v45 = vadd.f32 %v20119_v24, %v9762_v0 }
 0x804   :  { %v9797_v28 = vmax.f32 %v9781_v31, 0.0  ;;  %v9782_v49 = vadd.f32 %v20119_v24, %v9760_v8  ;;  %v14528_v5 = vpop.f32.mrb[132].mxu1 }
 0x805   :  { %v9863_v40 = vcombine.high %v9799_v16, %v9799_v16  ;;  %v9870_v48 = vrot.slane %v9799_v16, %v21875_v7  ;;  %v20132_v61 = vmax.f32 %v9784_v45, 0.0  ;;  %v20134_v13 = vadd.f32 %v14528_v5, %v9618_v43  ;;  %v9706_v15 = vpop.f32.mrb[133].mxu1 }
 0x806   :  { %v9829_v30 = vcombine.high %v9797_v28, %v9797_v28  ;;  %v9836_v62 = vrot.slane %v9797_v28, %v21875_v7  ;;  %v20137_v60 = vmax.f32 %v9782_v49, 0.0  ;;  %v20140_v1 = vadd.f32 %v9706_v15, %v20078_v51  ;;  %v20142_v11 = vpop.f32.mrb[134].mxu1 }
 0x807   :  { %v9877_v56 = vrot.slane %v9863_v40, %v21875_v7  ;;  %v9878_v25 = vcombine.high %v9870_v48, %v9870_v48  ;;  %v10221_v59 = vsel %vm6170_vm6, %v9870_v48, -inf  ;;  %v9880_v43 = vcombine.high %v20132_v61, %v20132_v61  ;;  %v20148_v41 = vpop.f32.mrb[135].mxu1 }
 0x808   :  { %v10222_v47 = vrot.slane %v10221_v59, 4  ;;  %v9843_v27 = vrot.slane %v9829_v30, %v21875_v7  ;;  %v9844_v9 = vcombine.high %v9836_v62, %v9836_v62  ;;  %v10165_v23 = vsel %vm6170_vm6, %v9836_v62, -inf }
 0x809   :  { %v9879_v51 = vcombine.high %v9877_v56, %v9877_v56  ;;  %v10228_v21 = vsel %vm6170_vm6, %v9878_v25, -inf  ;;  %v10235_v38 = vsel %vm6170_vm6, %v9877_v56, -inf  ;;  %v10166_v52 = vrot.slane %v10165_v23, 4 }
 0x80a   :  { %v10223_v36 = vmax.f32 %v10221_v59, %v10222_v47  ;;  %v10229_v6 = vrot.slane %v10228_v21, 4  ;;  %v10236_v19 = vrot.slane %v10235_v38, 4  ;;  %v9845_v33 = vcombine.high %v9843_v27, %v9843_v27 }
 0x80b   :  { %v10242_v63 = vsel %vm6170_vm6, %v9879_v51, -inf  ;;  %v10167_v29 = vmax.f32 %v10165_v23, %v10166_v52  ;;  %v10172_v20 = vsel %vm6170_vm6, %v9844_v9, -inf  ;;  %v10179_v2 = vsel %vm6170_vm6, %v9843_v27, -inf }
 0x80c   :  { %v10224_v3 = vrot.slane %v10223_v36, 2  ;;  %v10230_v22 = vmax.f32 %v10228_v21, %v10229_v6  ;;  %v10237_v34 = vmax.f32 %v10235_v38, %v10236_v19  ;;  %v10243_v53 = vrot.slane %v10242_v63, 4  ;;  %v20157_v50 = vpop.f32.mrb[136].mxu1 }
 0x80d   :  { %v10168_v58 = vrot.slane %v10167_v29, 2  ;;  %v10173_v39 = vrot.slane %v10172_v20, 4  ;;  %v10180_v14 = vrot.slane %v10179_v2, 4  ;;  %v10186_v44 = vsel %vm6170_vm6, %v9845_v33, -inf  ;;  %v20160_v42 = vpop.f32.mrb[137].mxu1 }
 0x80e   :  { %v10225_v35 = vmax.f32 %v10223_v36, %v10224_v3  ;;  %v10231_v0 = vrot.slane %v10230_v22, 2  ;;  %v10238_v31 = vrot.slane %v10237_v34, 2  ;;  %v10244_v8 = vmax.f32 %v10242_v63, %v10243_v53  ;;  %v20162_v16 = vpop.f32.mrb[138].mxu1 }
 0x80f   :  { %v10169_v45 = vmax.f32 %v10167_v29, %v10168_v58  ;;  %v10174_v28 = vmax.f32 %v10172_v20, %v10173_v39  ;;  %v10181_v49 = vmax.f32 %v10179_v2, %v10180_v14  ;;  %v10187_v5 = vrot.slane %v10186_v44, 4  ;;  %v20164_v40 = vpop.f32.mrb[139].mxu1 }
 0x810   :  { %v10226_v48 = vrot.slane %v10225_v35, 1  ;;  %v10232_v15 = vmax.f32 %v10230_v22, %v10231_v0  ;;  %v10239_v30 = vmax.f32 %v10237_v34, %v10238_v31  ;;  %v10245_v62 = vrot.slane %v10244_v8, 2 }
 0x811   :  { %v10170_v56 = vrot.slane %v10169_v45, 1  ;;  %v10175_v25 = vrot.slane %v10174_v28, 2  ;;  %v10182_v59 = vrot.slane %v10181_v49, 2  ;;  %v10188_v47 = vmax.f32 %v10186_v44, %v10187_v5 }
 0x812   :  { %v10227_v27 = vmax.f32 %v10225_v35, %v10226_v48  ;;  %v10233_v9 = vrot.slane %v10232_v15, 1  ;;  %v10240_v23 = vrot.slane %v10239_v30, 1  ;;  %v10246_v51 = vmax.f32 %v10244_v8, %v10245_v62 }
 0x813   :  { %v10171_v21 = vmax.f32 %v10169_v45, %v10170_v56  ;;  %v10176_v38 = vmax.f32 %v10174_v28, %v10175_v25  ;;  %v10183_v52 = vmax.f32 %v10181_v49, %v10182_v59  ;;  %v10189_v36 = vrot.slane %v10188_v47, 2 }
 0x814   :  { %v10234_v6 = vmax.f32 %v10232_v15, %v10233_v9  ;;  %v10241_v19 = vmax.f32 %v10239_v30, %v10240_v23  ;;  %v10247_v33 = vrot.slane %v10246_v51, 1  ;;  %v20167_v63 = vsel %vm7963_vm7, %v10227_v27, -inf  ;;  %v20169_v29 = vpop.f32.mrb[140].mxu1 }
 0x815   :  { %v10177_v20 = vrot.slane %v10176_v38, 1  ;;  %v10184_v2 = vrot.slane %v10183_v52, 1  ;;  %v10190_v3 = vmax.f32 %v10188_v47, %v10189_v36  ;;  %v20172_v22 = vsel %vm7963_vm7, %v10171_v21, -inf  ;;  %v20174_v34 = vpop.f32.mrb[141].mxu1 }
 0x816   :  { %v10248_v53 = vmax.f32 %v10246_v51, %v10247_v33  ;;  %v20177_v58 = vsel %vm7963_vm7, %v10234_v6, -inf  ;;  %v20180_v39 = vsel %vm7963_vm7, %v10241_v19, -inf  ;;  %v9887_v14 = vrot.slane %v20132_v61, %v21875_v7  ;;  %v20184_v44 = vpop.f32.mrb[142].mxu1 }
 0x817   :  { %v10178_v35 = vmax.f32 %v10176_v38, %v10177_v20  ;;  %v10185_v0 = vmax.f32 %v10183_v52, %v10184_v2  ;;  %v10191_v31 = vrot.slane %v10190_v3, 1  ;;  %v9894_v8 = vrot.slane %v9880_v43, %v21875_v7  ;;  %v20190_v45 = vpop.f32.mrb[143].mxu1 }
 0x818   :  { %v20193_v28 = vsel %vm7963_vm7, %v10248_v53, -inf  ;;  %v9895_v49 = vcombine.high %v9887_v14, %v9887_v14  ;;  %v10249_v5 = vsel %vm6170_vm6, %v9887_v14, -inf  ;;  %v9846_v48 = vcombine.high %v20137_v60, %v20137_v60 }
 0x819   :  { %v10192_v15 = vmax.f32 %v10190_v3, %v10191_v31  ;;  %v20199_v30 = vsel %vm7963_vm7, %v10178_v35, -inf  ;;  %v20202_v62 = vsel %vm7963_vm7, %v10185_v0, -inf  ;;  %v9896_v61 = vcombine.high %v9894_v8, %v9894_v8 }
 0x81a   :  { %v10250_v43 = vrot.slane %v10249_v5, 4  ;;  %v10256_v56 = vsel %vm6170_vm6, %v9895_v49, -inf  ;;  %v10263_v25 = vsel %vm6170_vm6, %v9894_v8, -inf  ;;  %v9853_v59 = vrot.slane %v20137_v60, %v21875_v7 }
 0x81b   :  { %v20209_v47 = vsel %vm7963_vm7, %v10192_v15, -inf  ;;  %v10257_v27 = vrot.slane %v10256_v56, 4  ;;  %v10264_v9 = vrot.slane %v10263_v25, 4  ;;  %v10270_v23 = vsel %vm6170_vm6, %v9896_v61, -inf }
 0x81c   :  { %v10251_v51 = vmax.f32 %v10249_v5, %v10250_v43  ;;  %v10271_v21 = vrot.slane %v10270_v23, 4  ;;  %v9860_v38 = vrot.slane %v9846_v48, %v21875_v7  ;;  %v9861_v52 = vcombine.high %v9853_v59, %v9853_v59 }
 0x81d   :  { %v10258_v36 = vmax.f32 %v10256_v56, %v10257_v27  ;;  %v10265_v6 = vmax.f32 %v10263_v25, %v10264_v9  ;;  %v10193_v19 = vsel %vm6170_vm6, %v9853_v59, -inf  ;;  %v9765_v33 = vmul.f32 %v20114_v18, %v20134_v13 }
 0x81e   :  { %v10252_v60 = vrot.slane %v10251_v51, 2  ;;  %v10272_v20 = vmax.f32 %v10270_v23, %v10271_v21  ;;  %v9862_v2 = vcombine.high %v9860_v38, %v9860_v38  ;;  %v10194_v3 = vrot.slane %v10193_v19, 4 }
 0x81f   :  { %v10259_v53 = vrot.slane %v10258_v36, 2  ;;  %v10266_v14 = vrot.slane %v10265_v6, 2  ;;  %v10200_v35 = vsel %vm6170_vm6, %v9861_v52, -inf  ;;  %v10207_v0 = vsel %vm6170_vm6, %v9860_v38, -inf }
 0x820   :  { %v10253_v31 = vmax.f32 %v10251_v51, %v10252_v60  ;;  %v10273_v8 = vrot.slane %v10272_v20, 2  ;;  %v10195_v49 = vmax.f32 %v10193_v19, %v10194_v3  ;;  %v10201_v5 = vrot.slane %v10200_v35, 4 }
 0x821   :  { %v10260_v48 = vmax.f32 %v10258_v36, %v10259_v53  ;;  %v10267_v15 = vmax.f32 %v10265_v6, %v10266_v14  ;;  %v10208_v61 = vrot.slane %v10207_v0, 4  ;;  %v10214_v43 = vsel %vm6170_vm6, %v9862_v2, -inf }
 0x822   :  { %v10254_v13 = vrot.slane %v10253_v31, 1  ;;  %v10274_v56 = vmax.f32 %v10272_v20, %v10273_v8  ;;  %v10196_v25 = vrot.slane %v10195_v49, 2  ;;  %v10202_v59 = vmax.f32 %v10200_v35, %v10201_v5 }
 0x823   :  { %v10261_v27 = vrot.slane %v10260_v48, 1  ;;  %v10268_v9 = vrot.slane %v10267_v15, 1  ;;  %v10209_v23 = vmax.f32 %v10207_v0, %v10208_v61  ;;  %v10215_v21 = vrot.slane %v10214_v43, 4 }
 0x824   :  { %v10255_v52 = vmax.f32 %v10253_v31, %v10254_v13  ;;  %v10275_v17 = vrot.slane %v10274_v56, 1  ;;  %v10197_v38 = vmax.f32 %v10195_v49, %v10196_v25  ;;  %v10203_v51 = vrot.slane %v10202_v59, 2 }
 0x825   :  { %v10262_v60 = vmax.f32 %v10260_v48, %v10261_v27  ;;  %v10269_v19 = vmax.f32 %v10267_v15, %v10268_v9  ;;  %v10210_v3 = vrot.slane %v10209_v23, 2  ;;  %v10216_v36 = vmax.f32 %v10214_v43, %v10215_v21 }
 0x826   :  { %v10276_v6 = vmax.f32 %v10274_v56, %v10275_v17  ;;  %v10626_v53 = vsel %vm7963_vm7, %v10255_v52, -inf  ;;  %v10198_v2 = vrot.slane %v10197_v38, 1  ;;  %v10204_v14 = vmax.f32 %v10202_v59, %v10203_v51 }
 0x827   :  { %v10627_v20 = vmax.f32 %v20167_v63, %v10626_v53  ;;  %v10629_v35 = vsel %vm7963_vm7, %v10262_v60, -inf  ;;  %v10632_v0 = vsel %vm7963_vm7, %v10269_v19, -inf  ;;  %v10211_v8 = vmax.f32 %v10209_v23, %v10210_v3 }
 0x828   :  { %v10630_v31 = vmax.f32 %v20177_v58, %v10629_v35  ;;  %v10633_v49 = vmax.f32 %v20180_v39, %v10632_v0  ;;  %v10635_v5 = vsel %vm7963_vm7, %v10276_v6, -inf  ;;  %v10199_v48 = vmax.f32 %v10197_v38, %v10198_v2 }
 0x829   :  { %v10636_v17 = vmax.f32 %v20193_v28, %v10635_v5  ;;  %v10205_v15 = vrot.slane %v10204_v14, 1  ;;  %v10212_v61 = vrot.slane %v10211_v8, 1  ;;  %v10217_v43 = vrot.slane %v10216_v36, 2 }
 0x82a   :  { %v10834_v13 = vsel %vm8592_vm8, %v10630_v31, %v10627_v20  ;;  %v10614_v63 = vsel %vm7963_vm7, %v10199_v48, -inf  ;;  %v9787_v56 = vadd.f32 %v20119_v24, %v9765_v33  ;;  %v9763_v25 = vmul.f32 %v20114_v18, %v20140_v1 }
 0x82b   :  { %v10835_v58 = vsel %vm8594_vm9, %v10633_v49, %v10834_v13  ;;  %v10206_v39 = vmax.f32 %v10204_v14, %v10205_v15  ;;  %v10213_v59 = vmax.f32 %v10211_v8, %v10212_v61  ;;  %v10218_v27 = vmax.f32 %v10216_v36, %v10217_v43 }
 0x82c   :  { %v10836_v9 = vsel %vm8596_vm10, %v10636_v17, %v10835_v58  ;;  %v10615_v28 = vmax.f32 %v20172_v22, %v10614_v63  ;;  %v9803_v23 = vmax.f32 %v9787_v56, 0.0  ;;  %v9785_v21 = vadd.f32 %v20119_v24, %v9763_v25 }
 0x82d   :  { %10866 = vst.msk [vmem:[#allocation4 + $0x11] sm:$0xf] %vm10864_vm1, %v10836_v9  ;;  %v10219_v52 = vrot.slane %v10218_v27, 1  ;;  %v10617_v33 = vsel %vm7963_vm7, %v10206_v39, -inf  ;;  %v10620_v38 = vsel %vm7963_vm7, %v10213_v59, -inf  ;;  %v9718_v1 = vadd.f32 %v20142_v11, %v20085_v37 }
 0x82e   :  { %v10618_v51 = vmax.f32 %v20199_v30, %v10617_v33  ;;  %v10621_v60 = vmax.f32 %v20202_v62, %v10620_v38  ;;  %v9931_v19 = vcombine.high %v9803_v23, %v9803_v23  ;;  %v9938_v22 = vrot.slane %v9803_v23, %v21875_v7 }
 0x82f   :  { %v10220_v3 = vmax.f32 %v10218_v27, %v10219_v52  ;;  %v9801_v36 = vmax.f32 %v9785_v21, 0.0  ;;  %v9766_v6 = vmul.f32 %v20114_v18, %v9718_v1  ;;  %v20247_v53 = vadd.f32 %v20148_v41, %v20081_v10 }
 0x830   :  { %v10831_v2 = vsel %vm8592_vm8, %v10618_v51, %v10615_v28  ;;  %v9945_v14 = vrot.slane %v9931_v19, %v21875_v7  ;;  %v9946_v37 = vcombine.high %v9938_v22, %v9938_v22  ;;  %v10333_v11 = vsel %vm6170_vm6, %v9938_v22, -inf }
 0x831   :  { %v10623_v30 = vsel %vm7963_vm7, %v10220_v3, -inf  ;;  %v10832_v62 = vsel %vm8594_vm9, %v10621_v60, %v10831_v2  ;;  %v10334_v20 = vrot.slane %v10333_v11, 4  ;;  %v9897_v35 = vcombine.high %v9801_v36, %v9801_v36 }
 0x832   :  { %v10624_v0 = vmax.f32 %v20209_v47, %v10623_v30  ;;  %v9947_v8 = vcombine.high %v9945_v14, %v9945_v14  ;;  %v10340_v31 = vsel %vm6170_vm6, %v9946_v37, -inf  ;;  %v10347_v10 = vsel %vm6170_vm6, %v9945_v14, -inf }
 0x833   :  { %v10335_v41 = vmax.f32 %v10333_v11, %v10334_v20  ;;  %v10341_v49 = vrot.slane %v10340_v31, 4  ;;  %v10348_v5 = vrot.slane %v10347_v10, 4  ;;  %v9904_v48 = vrot.slane %v9801_v36, %v21875_v7 }
 0x834   :  { %v10833_v17 = vsel %vm8596_vm10, %v10624_v0, %v10832_v62  ;;  %v10354_v15 = vsel %vm6170_vm6, %v9947_v8, -inf  ;;  %v9911_v61 = vrot.slane %v9897_v35, %v21875_v7  ;;  %v9788_v43 = vadd.f32 %v20119_v24, %v9766_v6 }
 0x835   :  { %10865 = vst.msk [vmem:[#allocation4 + $0x9] sm:$0xf] %vm10864_vm1, %v10833_v17  ;;  %v10336_v47 = vrot.slane %v10335_v41, 2  ;;  %v10342_v13 = vmax.f32 %v10340_v31, %v10341_v49  ;;  %v10349_v63 = vmax.f32 %v10347_v10, %v10348_v5  ;;  %v10355_v56 = vrot.slane %v10354_v15, 4 }
 0x836   :  { %v9912_v25 = vcombine.high %v9904_v48, %v9904_v48  ;;  %v9913_v58 = vcombine.high %v9911_v61, %v9911_v61  ;;  %v10277_v39 = vsel %vm6170_vm6, %v9904_v48, -inf  ;;  %v10291_v59 = vsel %vm6170_vm6, %v9911_v61, -inf }
 0x837   :  { %v10337_v27 = vmax.f32 %v10335_v41, %v10336_v47  ;;  %v10343_v9 = vrot.slane %v10342_v13, 2  ;;  %v10350_v28 = vrot.slane %v10349_v63, 2  ;;  %v10356_v23 = vmax.f32 %v10354_v15, %v10355_v56 }
 0x838   :  { %v10278_v21 = vrot.slane %v10277_v39, 4  ;;  %v10284_v52 = vsel %vm6170_vm6, %v9912_v25, -inf  ;;  %v10292_v33 = vrot.slane %v10291_v59, 4  ;;  %v10298_v38 = vsel %vm6170_vm6, %v9913_v58, -inf }
 0x839   :  { %v10338_v1 = vrot.slane %v10337_v27, 1  ;;  %v10344_v51 = vmax.f32 %v10342_v13, %v10343_v9  ;;  %v10351_v60 = vmax.f32 %v10349_v63, %v10350_v28  ;;  %v10357_v19 = vrot.slane %v10356_v23, 2 }
 0x83a   :  { %v10279_v22 = vmax.f32 %v10277_v39, %v10278_v21  ;;  %v10285_v3 = vrot.slane %v10284_v52, 4  ;;  %v10293_v36 = vmax.f32 %v10291_v59, %v10292_v33  ;;  %v10299_v6 = vrot.slane %v10298_v38, 4 }
 0x83b   :  { %v10339_v2 = vmax.f32 %v10337_v27, %v10338_v1  ;;  %v10345_v14 = vrot.slane %v10344_v51, 1  ;;  %v10352_v37 = vrot.slane %v10351_v60, 1  ;;  %v10358_v11 = vmax.f32 %v10356_v23, %v10357_v19 }
 0x83c   :  { %v10280_v30 = vrot.slane %v10279_v22, 2  ;;  %v10286_v62 = vmax.f32 %v10284_v52, %v10285_v3  ;;  %v10294_v20 = vrot.slane %v10293_v36, 2  ;;  %v10300_v35 = vmax.f32 %v10298_v38, %v10299_v6 }
 0x83d   :  { %v10346_v0 = vmax.f32 %v10344_v51, %v10345_v14  ;;  %v10353_v8 = vmax.f32 %v10351_v60, %v10352_v37  ;;  %v10359_v31 = vrot.slane %v10358_v11, 1  ;;  %v20268_v10 = vsel %vm7963_vm7, %v10339_v2, -inf }
 0x83e   :  { %v10281_v41 = vmax.f32 %v10279_v22, %v10280_v30  ;;  %v10287_v49 = vrot.slane %v10286_v62, 2  ;;  %v10295_v5 = vmax.f32 %v10293_v36, %v10294_v20  ;;  %v10301_v48 = vrot.slane %v10300_v35, 2 }
 0x83f   :  { %v10360_v17 = vmax.f32 %v10358_v11, %v10359_v31  ;;  %v20271_v15 = vsel %vm7963_vm7, %v10346_v0, -inf  ;;  %v20274_v61 = vsel %vm7963_vm7, %v10353_v8, -inf  ;;  %v9804_v47 = vmax.f32 %v9788_v43, 0.0 }
 0x840   :  { %v10282_v13 = vrot.slane %v10281_v41, 1  ;;  %v10288_v63 = vmax.f32 %v10286_v62, %v10287_v49  ;;  %v10296_v56 = vrot.slane %v10295_v5, 1  ;;  %v10302_v25 = vmax.f32 %v10300_v35, %v10301_v48 }
 0x841   :  { %v20277_v58 = vsel %vm7963_vm7, %v10360_v17, -inf  ;;  %v9948_v39 = vcombine.high %v9804_v47, %v9804_v47  ;;  %v9955_v59 = vrot.slane %v9804_v47, %v21875_v7  ;;  %v9764_v27 = vmul.f32 %v20114_v18, %v20247_v53 }
 0x842   :  { %v10283_v9 = vmax.f32 %v10281_v41, %v10282_v13  ;;  %v10289_v28 = vrot.slane %v10288_v63, 1  ;;  %v10297_v23 = vmax.f32 %v10295_v5, %v10296_v56  ;;  %v10303_v21 = vrot.slane %v10302_v25, 1 }
 0x843   :  { %v9962_v52 = vrot.slane %v9948_v39, %v21875_v7  ;;  %v9963_v43 = vcombine.high %v9955_v59, %v9955_v59  ;;  %v10361_v33 = vsel %vm6170_vm6, %v9955_v59, -inf  ;;  %v9786_v38 = vadd.f32 %v20119_v24, %v9764_v27 }
 0x844   :  { %v10290_v1 = vmax.f32 %v10288_v63, %v10289_v28  ;;  %v10304_v51 = vmax.f32 %v10302_v25, %v10303_v21  ;;  %v20286_v60 = vsel %vm7963_vm7, %v10283_v9, -inf  ;;  %v20289_v19 = vsel %vm7963_vm7, %v10297_v23, -inf }
 0x845   :  { %v9964_v53 = vcombine.high %v9962_v52, %v9962_v52  ;;  %v10362_v22 = vrot.slane %v10361_v33, 4  ;;  %v10368_v3 = vsel %vm6170_vm6, %v9963_v43, -inf  ;;  %v10375_v36 = vsel %vm6170_vm6, %v9962_v52, -inf }
 0x846   :  { %v20294_v6 = vsel %vm7963_vm7, %v10290_v1, -inf  ;;  %v20297_v2 = vsel %vm7963_vm7, %v10304_v51, -inf  ;;  %v10369_v14 = vrot.slane %v10368_v3, 4  ;;  %v10376_v37 = vrot.slane %v10375_v36, 4 }
 0x847   :  { %v10363_v11 = vmax.f32 %v10361_v33, %v10362_v22  ;;  %v10382_v30 = vsel %vm6170_vm6, %v9964_v53, -inf  ;;  %v9802_v62 = vmax.f32 %v9786_v38, 0.0  ;;  %v9731_v20 = vadd.f32 %v20157_v50, %v20094_v55 }
 0x848   :  { %v10370_v35 = vmax.f32 %v10368_v3, %v10369_v14  ;;  %v10377_v0 = vmax.f32 %v10375_v36, %v10376_v37  ;;  %v10383_v8 = vrot.slane %v10382_v30, 4  ;;  %v9723_v31 = vadd.f32 %v20160_v42, %v20088_v46 }
 0x849   :  { %v10364_v41 = vrot.slane %v10363_v11, 2  ;;  %v9914_v49 = vcombine.high %v9802_v62, %v9802_v62  ;;  %v9921_v5 = vrot.slane %v9802_v62, %v21875_v7  ;;  %v9769_v48 = vmul.f32 %v20114_v18, %v9731_v20 }
 0x84a   :  { %v10371_v17 = vrot.slane %v10370_v35, 2  ;;  %v10378_v47 = vrot.slane %v10377_v0, 2  ;;  %v10384_v13 = vmax.f32 %v10382_v30, %v10383_v8  ;;  %v9767_v63 = vmul.f32 %v20114_v18, %v9723_v31 }
 0x84b   :  { %v10365_v56 = vmax.f32 %v10363_v11, %v10364_v41  ;;  %v9928_v55 = vrot.slane %v9914_v49, %v21875_v7  ;;  %v9929_v50 = vcombine.high %v9921_v5, %v9921_v5  ;;  %v10305_v25 = vsel %vm6170_vm6, %v9921_v5, -inf }
 0x84c   :  { %v10372_v39 = vmax.f32 %v10370_v35, %v10371_v17  ;;  %v10379_v59 = vmax.f32 %v10377_v0, %v10378_v47  ;;  %v10385_v46 = vrot.slane %v10384_v13, 2  ;;  %v10306_v42 = vrot.slane %v10305_v25, 4 }
 0x84d   :  { %v10366_v27 = vrot.slane %v10365_v56, 1  ;;  %v9930_v9 = vcombine.high %v9928_v55, %v9928_v55  ;;  %v10312_v28 = vsel %vm6170_vm6, %v9929_v50, -inf  ;;  %v10319_v23 = vsel %vm6170_vm6, %v9928_v55, -inf }
 0x84e   :  { %v10373_v21 = vrot.slane %v10372_v39, 1  ;;  %v10380_v52 = vrot.slane %v10379_v59, 1  ;;  %v10386_v43 = vmax.f32 %v10384_v13, %v10385_v46  ;;  %v10307_v33 = vmax.f32 %v10305_v25, %v10306_v42 }
 0x84f   :  { %v10367_v38 = vmax.f32 %v10365_v56, %v10366_v27  ;;  %v10313_v1 = vrot.slane %v10312_v28, 4  ;;  %v10320_v51 = vrot.slane %v10319_v23, 4  ;;  %v10326_v53 = vsel %vm6170_vm6, %v9930_v9, -inf }
 0x850   :  { %v10374_v22 = vmax.f32 %v10372_v39, %v10373_v21  ;;  %v10381_v3 = vmax.f32 %v10379_v59, %v10380_v52  ;;  %v10387_v36 = vrot.slane %v10386_v43, 1  ;;  %v10308_v14 = vrot.slane %v10307_v33, 2  ;;  %v15329_v39 = vld [vmem:[%s21288_s2 + $0x168] sm:$0xff]  }
 0x851   :  { %v10650_v37 = vsel %vm7963_vm7, %v10367_v38, -inf  ;;  %v10314_v11 = vmax.f32 %v10312_v28, %v10313_v1  ;;  %v10321_v30 = vmax.f32 %v10319_v23, %v10320_v51  ;;  %v10327_v62 = vrot.slane %v10326_v53, 4 }
 0x852   :  { %v10388_v20 = vmax.f32 %v10386_v43, %v10387_v36  ;;  %v10651_v35 = vmax.f32 %v20268_v10, %v10650_v37  ;;  %v10653_v0 = vsel %vm7963_vm7, %v10374_v22, -inf  ;;  %v10656_v8 = vsel %vm7963_vm7, %v10381_v3, -inf }
 0x853   :  { %v10654_v31 = vmax.f32 %v20271_v15, %v10653_v0  ;;  %v10657_v41 = vmax.f32 %v20274_v61, %v10656_v8  ;;  %v10309_v49 = vmax.f32 %v10307_v33, %v10308_v14  ;;  %v10315_v5 = vrot.slane %v10314_v11, 2  ;;  %v15327_v15 = vld [vmem:[%s21288_s2 + $0x160] sm:$0xff]   ;;  %v15330_v33 = vld [vmem:[%s21288_s2 + $0x128] sm:$0xff]   ;;  %v15332_v0 = vld [vmem:[%s21288_s2 + $0x130] sm:$0xff]  }
 0x854   :  { %v10659_v17 = vsel %vm7963_vm7, %v10388_v20, -inf  ;;  %v10322_v47 = vrot.slane %v10321_v30, 2  ;;  %v10328_v13 = vmax.f32 %v10326_v53, %v10327_v62  ;;  %v9791_v56 = vadd.f32 %v20119_v24, %v9769_v48  ;;  %v15328_v61 = vld [vmem:[%s21288_s2 + $0x120] sm:$0xff]   ;;  %13802 = vmatprep.subr.bf16.mxu1 %v15327_v15  ;;  %v15331_v53 = vld [vmem:[%s21288_s2 + $0x170] sm:$0xff]  }
 0x855   :  { %v10660_v55 = vmax.f32 %v20277_v58, %v10659_v17  ;;  %v10840_v10 = vsel %vm8592_vm8, %v10654_v31, %v10651_v35  ;;  %v10310_v50 = vrot.slane %v10309_v49, 1  ;;  %v10316_v25 = vmax.f32 %v10314_v11, %v10315_v5  ;;  %13803 = vmatpush3.bf16.msra.mxu1 %v15328_v61  ;;  %v15334_v61 = vld [vmem:[%s21288_s2 + $0x138] sm:$0xff]  }
 0x856   :  { %v10841_v48 = vsel %vm8594_vm9, %v10657_v41, %v10840_v10  ;;  %v10323_v59 = vmax.f32 %v10321_v30, %v10322_v47  ;;  %v10329_v58 = vrot.slane %v10328_v13, 2  ;;  %v9807_v46 = vmax.f32 %v9791_v56, 0.0  ;;  %13804 = vmatprep.subr.bf16.mxu1 %v15329_v39 }
 0x857   :  { %v10842_v42 = vsel %vm8596_vm10, %v10660_v55, %v10841_v48  ;;  %v10311_v27 = vmax.f32 %v10309_v49, %v10310_v50  ;;  %v10317_v9 = vrot.slane %v10316_v25, 1  ;;  %v9789_v28 = vadd.f32 %v20119_v24, %v9767_v63 }
 0x858   :  { %10868 = vst.msk [vmem:[#allocation4 + $0x21] sm:$0xf] %vm10864_vm1, %v10842_v42  ;;  %v10324_v23 = vrot.slane %v10323_v59, 1  ;;  %v10330_v21 = vmax.f32 %v10328_v13, %v10329_v58  ;;  %v9999_v52 = vcombine.high %v9807_v46, %v9807_v46  ;;  %v10006_v43 = vrot.slane %v9807_v46, %v21875_v7  ;;  %v15335_v58 = vld [vmem:[%s21288_s2 + $0x180] sm:$0xff]  }
 0x859   :  { %v10318_v38 = vmax.f32 %v10316_v25, %v10317_v9  ;;  %v10638_v1 = vsel %vm7963_vm7, %v10311_v27, -inf  ;;  %v9805_v51 = vmax.f32 %v9789_v28, 0.0  ;;  %v9734_v63 = vadd.f32 %v20162_v16, %v20097_v57  ;;  %13805 = vmatpush3.bf16.msra.mxu1 %v15330_v33 }
 0x85a   :  { %v10325_v22 = vmax.f32 %v10323_v59, %v10324_v23  ;;  %v10331_v3 = vrot.slane %v10330_v21, 1  ;;  %v10639_v36 = vmax.f32 %v20286_v60, %v10638_v1  ;;  %v10013_v14 = vrot.slane %v9999_v52, %v21875_v7  ;;  %13806 = vmatprep.subr.bf16.mxu1 %v15331_v53 }
 0x85b   :  { %v10641_v37 = vsel %vm7963_vm7, %v10318_v38, -inf  ;;  %v10014_v11 = vcombine.high %v10006_v43, %v10006_v43  ;;  %v10445_v30 = vsel %vm6170_vm6, %v10006_v43, -inf  ;;  %v9965_v62 = vcombine.high %v9805_v51, %v9805_v51 }
 0x85c   :  { %v10332_v20 = vmax.f32 %v10330_v21, %v10331_v3  ;;  %v10642_v57 = vmax.f32 %v20294_v6, %v10641_v37  ;;  %v10644_v16 = vsel %vm7963_vm7, %v10325_v22, -inf  ;;  %v10015_v35 = vcombine.high %v10013_v14, %v10013_v14  ;;  %v15333_v6 = vld [vmem:[%s21288_s2 + $0x178] sm:$0xff]  }
 0x85d   :  { %v10645_v60 = vmax.f32 %v20289_v19, %v10644_v16  ;;  %v10446_v8 = vrot.slane %v10445_v30, 4  ;;  %v10452_v31 = vsel %vm6170_vm6, %v10014_v11, -inf  ;;  %v10459_v41 = vsel %vm6170_vm6, %v10013_v14, -inf  ;;  %13807 = vmatpush3.bf16.msra.mxu1 %v15332_v0 }
 0x85e   :  { %v10647_v49 = vsel %vm7963_vm7, %v10332_v20, -inf  ;;  %v10837_v5 = vsel %vm8592_vm8, %v10642_v57, %v10639_v36  ;;  %v10453_v17 = vrot.slane %v10452_v31, 4  ;;  %v10460_v47 = vrot.slane %v10459_v41, 4  ;;  %13808 = vmatprep.subr.bf16.mxu1 %v15333_v6  ;;  %v15337_v36 = vld [vmem:[%s21288_s2 + $0x188] sm:$0xff]  }
 0x85f   :  { %v10648_v13 = vmax.f32 %v20297_v2, %v10647_v49  ;;  %v10838_v19 = vsel %vm8594_vm9, %v10645_v60, %v10837_v5  ;;  %v10447_v56 = vmax.f32 %v10445_v30, %v10446_v8  ;;  %v10466_v55 = vsel %vm6170_vm6, %v10015_v35, -inf }
 0x860   :  { %v10454_v10 = vmax.f32 %v10452_v31, %v10453_v17  ;;  %v10461_v50 = vmax.f32 %v10459_v41, %v10460_v47  ;;  %v10467_v25 = vrot.slane %v10466_v55, 4  ;;  %v9972_v15 = vrot.slane %v9805_v51, %v21875_v7  ;;  %v15336_v51 = vld [vmem:[%s21288_s2 + $0x140] sm:$0xff]   ;;  %v15338_v31 = vld [vmem:[%s21288_s2 + $0x148] sm:$0xff]  }
 0x861   :  { %v10839_v39 = vsel %vm8596_vm10, %v10648_v13, %v10838_v19  ;;  %v10448_v48 = vrot.slane %v10447_v56, 2  ;;  %v9979_v2 = vrot.slane %v9965_v62, %v21875_v7  ;;  %v9770_v59 = vmul.f32 %v20114_v18, %v9734_v63  ;;  %13809 = vmatpush3.bf16.msra.mxu1 %v15334_v61 }
 0x862   :  { %10867 = vst.msk [vmem:[#allocation4 + $0x19] sm:$0xf] %vm10864_vm1, %v10839_v39  ;;  %v10455_v46 = vrot.slane %v10454_v10, 2  ;;  %v10462_v42 = vrot.slane %v10461_v50, 2  ;;  %v10468_v27 = vmax.f32 %v10466_v55, %v10467_v25  ;;  %v9980_v9 = vcombine.high %v9972_v15, %v9972_v15  ;;  %13810 = vmatprep.subr.bf16.mxu1 %v15335_v58 }
 0x863   :  { %v10449_v28 = vmax.f32 %v10447_v56, %v10448_v48  ;;  %v9981_v23 = vcombine.high %v9979_v2, %v9979_v2  ;;  %v10389_v21 = vsel %vm6170_vm6, %v9972_v15, -inf  ;;  %v10403_v52 = vsel %vm6170_vm6, %v9979_v2, -inf }
 0x864   :  { %v10456_v43 = vmax.f32 %v10454_v10, %v10455_v46  ;;  %v10463_v33 = vmax.f32 %v10461_v50, %v10462_v42  ;;  %v10469_v38 = vrot.slane %v10468_v27, 2  ;;  %v10390_v1 = vrot.slane %v10389_v21, 4 }
 0x865   :  { %v10450_v63 = vrot.slane %v10449_v28, 1  ;;  %v10396_v53 = vsel %vm6170_vm6, %v9980_v9, -inf  ;;  %v10404_v22 = vrot.slane %v10403_v52, 4  ;;  %v10410_v3 = vsel %vm6170_vm6, %v9981_v23, -inf  ;;  %13811 = vmatpush3.bf16.msra.mxu1 %v15336_v51 }
 0x866   :  { %v10457_v14 = vrot.slane %v10456_v43, 1  ;;  %v10464_v37 = vrot.slane %v10463_v33, 1  ;;  %v10470_v11 = vmax.f32 %v10468_v27, %v10469_v38  ;;  %v10391_v30 = vmax.f32 %v10389_v21, %v10390_v1  ;;  %13812 = vmatprep.subr.bf16.mxu1 %v15337_v36 }
 0x867   :  { %v10451_v62 = vmax.f32 %v10449_v28, %v10450_v63  ;;  %v10397_v20 = vrot.slane %v10396_v53, 4  ;;  %v10405_v57 = vmax.f32 %v10403_v52, %v10404_v22  ;;  %v10411_v16 = vrot.slane %v10410_v3, 4 }
 0x868   :  { %v10458_v35 = vmax.f32 %v10456_v43, %v10457_v14  ;;  %v10465_v0 = vmax.f32 %v10463_v33, %v10464_v37  ;;  %v10471_v60 = vrot.slane %v10470_v11, 1  ;;  %v10392_v8 = vrot.slane %v10391_v30, 2 }
 0x869   :  { %v20390_v41 = vsel %vm7963_vm7, %v10451_v62, -inf  ;;  %v10398_v6 = vmax.f32 %v10396_v53, %v10397_v20  ;;  %v10406_v49 = vrot.slane %v10405_v57, 2  ;;  %v10412_v5 = vmax.f32 %v10410_v3, %v10411_v16  ;;  %13813 = vmatpush3.bf16.msra.mxu1 %v15338_v31 }
 0x86a   :  { %v10472_v17 = vmax.f32 %v10470_v11, %v10471_v60  ;;  %v20393_v47 = vsel %vm7963_vm7, %v10458_v35, -inf  ;;  %v20396_v13 = vsel %vm7963_vm7, %v10465_v0, -inf  ;;  %v10393_v19 = vmax.f32 %v10391_v30, %v10392_v8 }
 0x86b   :  { %v10399_v56 = vrot.slane %v10398_v6, 2  ;;  %v10407_v55 = vmax.f32 %v10405_v57, %v10406_v49  ;;  %v10413_v10 = vrot.slane %v10412_v5, 2  ;;  %v9792_v50 = vadd.f32 %v20119_v24, %v9770_v59 }
 0x86c   :  { %v20400_v25 = vsel %vm7963_vm7, %v10472_v17, -inf  ;;  %v10394_v15 = vrot.slane %v10393_v19, 1  ;;  %v9726_v61 = vadd.f32 %v20164_v40, %v20091_v12  ;;  %v9747_v39 = vadd.f32 %v20169_v29, %v20106_v26 }
 0x86d   :  { %v10400_v48 = vmax.f32 %v10398_v6, %v10399_v56  ;;  %v10408_v2 = vrot.slane %v10407_v55, 1  ;;  %v10414_v58 = vmax.f32 %v10412_v5, %v10413_v10  ;;  %v9808_v46 = vmax.f32 %v9792_v50, 0.0 }
 0x86e   :  { %v10395_v42 = vmax.f32 %v10393_v19, %v10394_v15  ;;  %v9768_v27 = vmul.f32 %v20114_v18, %v9726_v61  ;;  %v9773_v59 = vmul.f32 %v20114_v18, %v9747_v39  ;;  %v20410_v9 = vadd.f32 %v20174_v34, %v20100_v32 }
 0x86f   :  { %v10401_v28 = vrot.slane %v10400_v48, 1  ;;  %v10409_v23 = vmax.f32 %v10407_v55, %v10408_v2  ;;  %v10415_v12 = vrot.slane %v10414_v58, 1  ;;  %v10016_v40 = vcombine.high %v9808_v46, %v9808_v46 }
 0x870   :  { %v20413_v26 = vsel %vm7963_vm7, %v10395_v42, -inf  ;;  %v10023_v29 = vrot.slane %v9808_v46, %v21875_v7  ;;  %v9790_v21 = vadd.f32 %v20119_v24, %v9768_v27  ;;  %v9795_v52 = vadd.f32 %v20119_v24, %v9773_v59 }
 0x871   :  { %v10402_v43 = vmax.f32 %v10400_v48, %v10401_v28  ;;  %v10416_v33 = vmax.f32 %v10414_v58, %v10415_v12  ;;  %v20419_v18 = vsel %vm7963_vm7, %v10409_v23, -inf  ;;  %v10030_v32 = vrot.slane %v10016_v40, %v21875_v7 }
 0x872   :  { %v10031_v34 = vcombine.high %v10023_v29, %v10023_v29  ;;  %v10473_v38 = vsel %vm6170_vm6, %v10023_v29, -inf  ;;  %v9806_v1 = vmax.f32 %v9790_v21, 0.0  ;;  %v20423_v51 = vmax.f32 %v9795_v52, 0.0 }
 0x873   :  { %v20426_v63 = vsel %vm7963_vm7, %v10402_v43, -inf  ;;  %v20429_v53 = vsel %vm7963_vm7, %v10416_v33, -inf  ;;  %v10032_v24 = vcombine.high %v10030_v32, %v10030_v32  ;;  %v10474_v22 = vrot.slane %v10473_v38, 4 }
 0x874   :  { %v10480_v3 = vsel %vm6170_vm6, %v10031_v34, -inf  ;;  %v10487_v36 = vsel %vm6170_vm6, %v10030_v32, -inf  ;;  %v9982_v14 = vcombine.high %v9806_v1, %v9806_v1  ;;  %v9989_v37 = vrot.slane %v9806_v1, %v21875_v7 }
 0x875   :  { %v10475_v11 = vmax.f32 %v10473_v38, %v10474_v22  ;;  %v10481_v30 = vrot.slane %v10480_v3, 4  ;;  %v10488_v62 = vrot.slane %v10487_v36, 4  ;;  %v10494_v20 = vsel %vm6170_vm6, %v10032_v24, -inf }
 0x876   :  { %v10495_v57 = vrot.slane %v10494_v20, 4  ;;  %v9996_v16 = vrot.slane %v9982_v14, %v21875_v7  ;;  %v9997_v35 = vcombine.high %v9989_v37, %v9989_v37  ;;  %v10417_v0 = vsel %vm6170_vm6, %v9989_v37, -inf }
 0x877   :  { %v10476_v60 = vrot.slane %v10475_v11, 2  ;;  %v10482_v8 = vmax.f32 %v10480_v3, %v10481_v30  ;;  %v10489_v31 = vmax.f32 %v10487_v36, %v10488_v62  ;;  %v10418_v6 = vrot.slane %v10417_v0, 4 }
 0x878   :  { %v10496_v49 = vmax.f32 %v10494_v20, %v10495_v57  ;;  %v9998_v5 = vcombine.high %v9996_v16, %v9996_v16  ;;  %v10424_v17 = vsel %vm6170_vm6, %v9997_v35, -inf  ;;  %v10431_v19 = vsel %vm6170_vm6, %v9996_v16, -inf }
 0x879   :  { %v10477_v56 = vmax.f32 %v10475_v11, %v10476_v60  ;;  %v10483_v55 = vrot.slane %v10482_v8, 2  ;;  %v10490_v10 = vrot.slane %v10489_v31, 2  ;;  %v10419_v50 = vmax.f32 %v10417_v0, %v10418_v6 }
 0x87a   :  { %v10497_v15 = vrot.slane %v10496_v49, 2  ;;  %v10425_v61 = vrot.slane %v10424_v17, 4  ;;  %v10432_v39 = vrot.slane %v10431_v19, 4  ;;  %v10438_v48 = vsel %vm6170_vm6, %v9998_v5, -inf }
 0x87b   :  { %v10478_v2 = vrot.slane %v10477_v56, 1  ;;  %v10484_v58 = vmax.f32 %v10482_v8, %v10483_v55  ;;  %v10491_v46 = vmax.f32 %v10489_v31, %v10490_v10  ;;  %v10420_v42 = vrot.slane %v10419_v50, 2 }
 0x87c   :  { %v10498_v27 = vmax.f32 %v10496_v49, %v10497_v15  ;;  %v10426_v59 = vmax.f32 %v10424_v17, %v10425_v61  ;;  %v10433_v28 = vmax.f32 %v10431_v19, %v10432_v39  ;;  %v10439_v23 = vrot.slane %v10438_v48, 4 }
 0x87d   :  { %v10479_v12 = vmax.f32 %v10477_v56, %v10478_v2  ;;  %v10485_v40 = vrot.slane %v10484_v58, 1  ;;  %v10492_v29 = vrot.slane %v10491_v46, 1  ;;  %v10421_v21 = vmax.f32 %v10419_v50, %v10420_v42 }
 0x87e   :  { %v10499_v52 = vrot.slane %v10498_v27, 1  ;;  %v10427_v43 = vrot.slane %v10426_v59, 2  ;;  %v10434_v33 = vrot.slane %v10433_v28, 2  ;;  %v10440_v32 = vmax.f32 %v10438_v48, %v10439_v23 }
 0x87f   :  { %v10486_v34 = vmax.f32 %v10484_v58, %v10485_v40  ;;  %v10493_v38 = vmax.f32 %v10491_v46, %v10492_v29  ;;  %v10674_v1 = vsel %vm7963_vm7, %v10479_v12, -inf  ;;  %v10422_v24 = vrot.slane %v10421_v21, 1  ;;  %v15506_v40 = vld [vmem:[%s21290_s4 + $0x1] ss:$0 sm:$0xff] }
 0x880   :  { %v10500_v22 = vmax.f32 %v10498_v27, %v10499_v52  ;;  %v10675_v3 = vmax.f32 %v20390_v41, %v10674_v1  ;;  %v10428_v36 = vmax.f32 %v10426_v59, %v10427_v43  ;;  %v10435_v14 = vmax.f32 %v10433_v28, %v10434_v33  ;;  %v20480_v52 = vld [vmem:[#allocation4 + $0x8] sm:$0x3f]  ;;  %v20482_v43 = vld [vmem:[#allocation4 + $0x10] sm:$0x3f] }
 0x881   :  { %v10677_v37 = vsel %vm7963_vm7, %v10486_v34, -inf  ;;  %v10680_v11 = vsel %vm7963_vm7, %v10493_v38, -inf  ;;  %v10423_v30 = vmax.f32 %v10421_v21, %v10422_v24  ;;  %v10441_v62 = vrot.slane %v10440_v32, 2 }
 0x882   :  { %v10678_v20 = vmax.f32 %v20393_v47, %v10677_v37  ;;  %v10681_v57 = vmax.f32 %v20396_v13, %v10680_v11  ;;  %v10683_v16 = vsel %vm7963_vm7, %v10500_v22, -inf  ;;  %v10429_v35 = vrot.slane %v10428_v36, 1 }
 0x883   :  { %v10684_v0 = vmax.f32 %v20400_v25, %v10683_v16  ;;  %v10436_v60 = vrot.slane %v10435_v14, 1  ;;  %v10442_v8 = vmax.f32 %v10440_v32, %v10441_v62  ;;  %v10662_v41 = vsel %vm7963_vm7, %v10423_v30, -inf  ;;  %v15339_v62 = vld [vmem:[%s21288_s2 + $0x190] sm:$0xff]  }
 0x884   :  { %v10846_v31 = vsel %vm8592_vm8, %v10678_v20, %v10675_v3  ;;  %v10430_v6 = vmax.f32 %v10428_v36, %v10429_v35  ;;  %v10663_v49 = vmax.f32 %v20413_v26, %v10662_v41  ;;  %v10067_v5 = vcombine.high %v20423_v51, %v20423_v51  ;;  %v15505_v26 = vld [vmem:[%s21289_s3 + $0x1] ss:$0 sm:$0xff]  ;;  %v15340_v20 = vld [vmem:[%s21288_s2 + $0x150] sm:$0xff]   ;;  %13814 = vmatprep.subr.bf16.mxu1 %v15339_v62 }
 0x885   :  { %v10847_v47 = vsel %vm8594_vm9, %v10681_v57, %v10846_v31  ;;  %v10437_v13 = vmax.f32 %v10435_v14, %v10436_v60  ;;  %v10443_v17 = vrot.slane %v10442_v8, 1  ;;  %v10074_v19 = vrot.slane %v20423_v51, %v21875_v7  ;;  %13815 = vmatpush3.bf16.msra.mxu1 %v15340_v20 }
 0x886   :  { %v10848_v25 = vsel %vm8596_vm10, %v10684_v0, %v10847_v47  ;;  %v10665_v56 = vsel %vm7963_vm7, %v10430_v6, -inf  ;;  %v10081_v55 = vrot.slane %v10067_v5, %v21875_v7  ;;  %v9771_v10 = vmul.f32 %v15505_v26, %v20410_v9 }
 0x887   :  { %10870 = vst.msk [vmem:[#allocation4 + $0x41] sm:$0xf] %vm10864_vm1, %v10848_v25  ;;  %v10444_v50 = vmax.f32 %v10442_v8, %v10443_v17  ;;  %v10666_v15 = vmax.f32 %v20426_v63, %v10665_v56  ;;  %v10668_v61 = vsel %vm7963_vm7, %v10437_v13, -inf  ;;  %v10082_v51 = vcombine.high %v10074_v19, %v10074_v19 }
 0x888   :  { %v10669_v39 = vmax.f32 %v20419_v18, %v10668_v61  ;;  %v10083_v48 = vcombine.high %v10081_v55, %v10081_v55  ;;  %v10557_v2 = vsel %vm6170_vm6, %v10074_v19, -inf  ;;  %v10571_v58 = vsel %vm6170_vm6, %v10081_v55, -inf }
 0x889   :  { %v10671_v46 = vsel %vm7963_vm7, %v10444_v50, -inf  ;;  %v10843_v42 = vsel %vm8592_vm8, %v10666_v15, %v10663_v49  ;;  %v10558_v9 = vrot.slane %v10557_v2, 4  ;;  %v10564_v27 = vsel %vm6170_vm6, %v10082_v51, -inf  ;;  %v20507_v51 = vld [vmem:[#allocation4 + $0x18] sm:$0x3f] }
 0x88a   :  { %v10672_v59 = vmax.f32 %v20429_v53, %v10671_v46  ;;  %v10844_v63 = vsel %vm8594_vm9, %v10669_v39, %v10843_v42  ;;  %v10565_v28 = vrot.slane %v10564_v27, 4  ;;  %v10572_v23 = vrot.slane %v10571_v58, 4 }
 0x88b   :  { %v10559_v12 = vmax.f32 %v10557_v2, %v10558_v9  ;;  %v10578_v18 = vsel %vm6170_vm6, %v10083_v48, -inf  ;;  %v9793_v29 = vadd.f32 %v15506_v40, %v9771_v10  ;;  %v9750_v21 = vadd.f32 %v20184_v44, %v20109_v54 }
 0x88c   :  { %v10845_v53 = vsel %vm8596_vm10, %v10672_v59, %v10844_v63  ;;  %v10566_v33 = vmax.f32 %v10564_v27, %v10565_v28  ;;  %v10573_v32 = vmax.f32 %v10571_v58, %v10572_v23  ;;  %v10579_v34 = vrot.slane %v10578_v18, 4 }
 0x88d   :  { %10869 = vst.msk [vmem:[#allocation4 + $0x39] sm:$0xf] %vm10864_vm1, %v10845_v53  ;;  %v10560_v38 = vrot.slane %v10559_v12, 2  ;;  %v9809_v1 = vmax.f32 %v9793_v29, 0.0  ;;  %v9774_v24 = vmul.f32 %v15505_v26, %v9750_v21  ;;  %v9742_v22 = vadd.f32 %v20190_v45, %v20103_v4 }
 0x88e   :  { %v10567_v3 = vrot.slane %v10566_v33, 2  ;;  %v10574_v36 = vrot.slane %v10573_v32, 2  ;;  %v10580_v54 = vmax.f32 %v10578_v18, %v10579_v34  ;;  %v11042_v44 = vcombine.low %v20480_v52, %v20482_v43 }
 0x88f   :  { %v10561_v14 = vmax.f32 %v10559_v12, %v10560_v38  ;;  %v10033_v37 = vcombine.high %v9809_v1, %v9809_v1  ;;  %v10040_v11 = vrot.slane %v9809_v1, %v21875_v7  ;;  %v9796_v30 = vadd.f32 %v15506_v40, %v9774_v24 }
 0x890   :  { %v10568_v4 = vmax.f32 %v10566_v33, %v10567_v3  ;;  %v10575_v45 = vmax.f32 %v10573_v32, %v10574_v36  ;;  %v10581_v57 = vrot.slane %v10580_v54, 2  ;;  %v9772_v16 = vmul.f32 %v15505_v26, %v9742_v22  ;;  %v20501_v26 = vld [vmem:[#allocation4 + $0x20] sm:$0x3f] }
 0x891   :  { %v10562_v35 = vrot.slane %v10561_v14, 1  ;;  %v10047_v0 = vrot.slane %v10033_v37, %v21875_v7  ;;  %v10048_v60 = vcombine.high %v10040_v11, %v10040_v11  ;;  %v10501_v8 = vsel %vm6170_vm6, %v10040_v11, -inf }
 0x892   :  { %v10569_v41 = vrot.slane %v10568_v4, 1  ;;  %v10576_v31 = vrot.slane %v10575_v45, 1  ;;  %v10582_v6 = vmax.f32 %v10580_v54, %v10581_v57  ;;  %v10502_v49 = vrot.slane %v10501_v8, 4 }
 0x893   :  { %v10563_v5 = vmax.f32 %v10561_v14, %v10562_v35  ;;  %v10049_v47 = vcombine.high %v10047_v0, %v10047_v0  ;;  %v10508_v13 = vsel %vm6170_vm6, %v10048_v60, -inf  ;;  %v10515_v17 = vsel %vm6170_vm6, %v10047_v0, -inf }
 0x894   :  { %v10570_v19 = vmax.f32 %v10568_v4, %v10569_v41  ;;  %v10577_v25 = vmax.f32 %v10575_v45, %v10576_v31  ;;  %v10583_v56 = vrot.slane %v10582_v6, 1  ;;  %v10503_v55 = vmax.f32 %v10501_v8, %v10502_v49 }
 0x895   :  { %v20504_v10 = vsel %vm7963_vm7, %v10563_v5, -inf  ;;  %v10509_v50 = vrot.slane %v10508_v13, 4  ;;  %v10516_v15 = vrot.slane %v10515_v17, 4  ;;  %v10522_v61 = vsel %vm6170_vm6, %v10049_v47, -inf }
 0x896   :  { %v10584_v39 = vmax.f32 %v10582_v6, %v10583_v56  ;;  %v20510_v48 = vsel %vm7963_vm7, %v10570_v19, -inf  ;;  %v20513_v2 = vsel %vm7963_vm7, %v10577_v25, -inf  ;;  %v10504_v58 = vrot.slane %v10503_v55, 2 }
 0x897   :  { %v10510_v46 = vmax.f32 %v10508_v13, %v10509_v50  ;;  %v10517_v42 = vmax.f32 %v10515_v17, %v10516_v15  ;;  %v10523_v9 = vrot.slane %v10522_v61, 4  ;;  %v9812_v27 = vmax.f32 %v9796_v30, 0.0 }
 0x898   :  { %v20516_v59 = vsel %vm7963_vm7, %v10584_v39, -inf  ;;  %v10505_v63 = vmax.f32 %v10503_v55, %v10504_v58  ;;  %v9794_v28 = vadd.f32 %v15506_v40, %v9772_v16  ;;  %v11043_v23 = vcombine.low %v20507_v51, %v20501_v26 }
 0x899   :  { %v10511_v12 = vrot.slane %v10510_v46, 2  ;;  %v10518_v18 = vrot.slane %v10517_v42, 2  ;;  %v10524_v29 = vmax.f32 %v10522_v61, %v10523_v9  ;;  %v10084_v21 = vcombine.high %v9812_v27, %v9812_v27 }
 0x89a   :  { %v10506_v53 = vrot.slane %v10505_v63, 1  ;;  %v10091_v33 = vrot.slane %v9812_v27, %v21875_v7  ;;  %v9810_v32 = vmax.f32 %v9794_v28, 0.0  ;;  %v15233_v34 = vpack.i.bf16 %v11043_v23, %v11042_v44 }
 0x89b   :  { %v10512_v38 = vmax.f32 %v10510_v46, %v10511_v12  ;;  %v10519_v1 = vmax.f32 %v10517_v42, %v10518_v18  ;;  %v10525_v24 = vrot.slane %v10524_v29, 2  ;;  %v10098_v22 = vrot.slane %v10084_v21, %v21875_v7 }
 0x89c   :  { %v10507_v3 = vmax.f32 %v10505_v63, %v10506_v53  ;;  %v10099_v36 = vcombine.high %v10091_v33, %v10091_v33  ;;  %v10585_v40 = vsel %vm6170_vm6, %v10091_v33, -inf  ;;  %v10050_v54 = vcombine.high %v9810_v32, %v9810_v32  ;;  %15234 = vrot.lane.b32.xlu0 %v15233_v34, %s15534_s12 }
 0x89d   :  { %v10513_v14 = vrot.slane %v10512_v38, 1  ;;  %v10520_v37 = vrot.slane %v10519_v1, 1  ;;  %v10526_v11 = vmax.f32 %v10524_v29, %v10525_v24  ;;  %v10100_v30 = vcombine.high %v10098_v22, %v10098_v22 }
 0x89e   :  { %v20525_v62 = vsel %vm7963_vm7, %v10507_v3, -inf  ;;  %v10586_v44 = vrot.slane %v10585_v40, 4  ;;  %v10592_v20 = vsel %vm6170_vm6, %v10099_v36, -inf  ;;  %v10599_v4 = vsel %vm6170_vm6, %v10098_v22, -inf }
 0x89f   :  { %v10514_v45 = vmax.f32 %v10512_v38, %v10513_v14  ;;  %v10521_v57 = vmax.f32 %v10519_v1, %v10520_v37  ;;  %v10527_v16 = vrot.slane %v10526_v11, 1  ;;  %v10593_v35 = vrot.slane %v10592_v20, 4 }
 0x8a0   :  { %v10587_v0 = vmax.f32 %v10585_v40, %v10586_v44  ;;  %v10600_v60 = vrot.slane %v10599_v4, 4  ;;  %v10606_v8 = vsel %vm6170_vm6, %v10100_v30, -inf  ;;  %v10057_v41 = vrot.slane %v9810_v32, %v21875_v7 }
 0x8a1   :  { %v10528_v31 = vmax.f32 %v10526_v11, %v10527_v16  ;;  %v20532_v6 = vsel %vm7963_vm7, %v10514_v45, -inf  ;;  %v20535_v49 = vsel %vm7963_vm7, %v10521_v57, -inf  ;;  %v10594_v5 = vmax.f32 %v10592_v20, %v10593_v35  ;;  %v20548_v20 = vld [vmem:[#allocation4] sm:$0x3f] }
 0x8a2   :  { %v10588_v47 = vrot.slane %v10587_v0, 2  ;;  %v10601_v13 = vmax.f32 %v10599_v4, %v10600_v60  ;;  %v10607_v17 = vrot.slane %v10606_v8, 4  ;;  %v10064_v19 = vrot.slane %v10050_v54, %v21875_v7 }
 0x8a3   :  { %v20539_v25 = vsel %vm7963_vm7, %v10528_v31, -inf  ;;  %v10595_v56 = vrot.slane %v10594_v5, 2  ;;  %v10065_v55 = vcombine.high %v10057_v41, %v10057_v41  ;;  %v10529_v50 = vsel %vm6170_vm6, %v10057_v41, -inf }
 0x8a4   :  { %v10589_v15 = vmax.f32 %v10587_v0, %v10588_v47  ;;  %v10602_v61 = vrot.slane %v10601_v13, 2  ;;  %v10608_v39 = vmax.f32 %v10606_v8, %v10607_v17  ;;  %v10066_v58 = vcombine.high %v10064_v19, %v10064_v19 }
 0x8a5   :  { %v10596_v46 = vmax.f32 %v10594_v5, %v10595_v56  ;;  %v10530_v42 = vrot.slane %v10529_v50, 4  ;;  %v10536_v9 = vsel %vm6170_vm6, %v10065_v55, -inf  ;;  %v10543_v27 = vsel %vm6170_vm6, %v10064_v19, -inf }
 0x8a6   :  { %v10590_v63 = vrot.slane %v10589_v15, 1  ;;  %v10603_v28 = vmax.f32 %v10601_v13, %v10602_v61  ;;  %v10609_v23 = vrot.slane %v10608_v39, 2  ;;  %v10537_v12 = vrot.slane %v10536_v9, 4 }
 0x8a7   :  { %v10597_v18 = vrot.slane %v10596_v46, 1  ;;  %v10531_v29 = vmax.f32 %v10529_v50, %v10530_v42  ;;  %v10544_v21 = vrot.slane %v10543_v27, 4  ;;  %v10550_v53 = vsel %vm6170_vm6, %v10066_v58, -inf  ;;  %v20578_v42 = vld [vmem:[#allocation4 + $0x40] sm:$0x3f] }
 0x8a8   :  { %v10591_v33 = vmax.f32 %v10589_v15, %v10590_v63  ;;  %v10604_v32 = vrot.slane %v10603_v28, 1  ;;  %v10610_v34 = vmax.f32 %v10608_v39, %v10609_v23  ;;  %v10538_v38 = vmax.f32 %v10536_v9, %v10537_v12 }
 0x8a9   :  { %v10598_v1 = vmax.f32 %v10596_v46, %v10597_v18  ;;  %v10532_v24 = vrot.slane %v10531_v29, 2  ;;  %v10545_v22 = vmax.f32 %v10543_v27, %v10544_v21  ;;  %v10551_v3 = vrot.slane %v10550_v53, 4  ;;  %v15344_v21 = vld [vmem:[%s21288_s2 + $0x158] sm:$0xff]  }
 0x8aa   :  { %v10605_v36 = vmax.f32 %v10603_v28, %v10604_v32  ;;  %v10611_v40 = vrot.slane %v10610_v34, 1  ;;  %v10698_v54 = vsel %vm7963_vm7, %v10591_v33, -inf  ;;  %v10539_v14 = vrot.slane %v10538_v38, 2  ;;  %v20583_v28 = vld [vmem:[#allocation4 + $0x38] sm:$0x3f] }
 0x8ab   :  { %v10699_v37 = vmax.f32 %v20504_v10, %v10698_v54  ;;  %v10701_v11 = vsel %vm7963_vm7, %v10598_v1, -inf  ;;  %v10533_v30 = vmax.f32 %v10531_v29, %v10532_v24  ;;  %v10546_v44 = vrot.slane %v10545_v22, 2 }
 0x8ac   :  { %v10612_v4 = vmax.f32 %v10610_v34, %v10611_v40  ;;  %v10702_v45 = vmax.f32 %v20510_v48, %v10701_v11  ;;  %v10704_v57 = vsel %vm7963_vm7, %v10605_v36, -inf  ;;  %v10540_v16 = vmax.f32 %v10538_v38, %v10539_v14  ;;  %v15345_v34 = vld [vmem:[%s21288_s2 + $0x1e0] sm:$0xff]  }
 0x8ad   :  { %v10705_v35 = vmax.f32 %v20513_v2, %v10704_v57  ;;  %v10534_v0 = vrot.slane %v10533_v30, 1  ;;  %v10547_v60 = vmax.f32 %v10545_v22, %v10546_v44  ;;  %v10552_v8 = vmax.f32 %v10550_v53, %v10551_v3  ;;  %v20636_v57 = vld [vmem:[#allocation4 + $0x28] sm:$0x3f] }
 0x8ae   :  { %v10707_v10 = vsel %vm7963_vm7, %v10612_v4, -inf  ;;  %v10852_v41 = vsel %vm8592_vm8, %v10702_v45, %v10699_v37  ;;  %v10541_v31 = vrot.slane %v10540_v16, 1  ;;  %v20557_v5 = vcombine.high %v20548_v20, %v20548_v20 }
 0x8af   :  { %v10708_v48 = vmax.f32 %v20516_v59, %v10707_v10  ;;  %v10853_v47 = vsel %vm8594_vm9, %v10705_v35, %v10852_v41  ;;  %v10535_v13 = vmax.f32 %v10533_v30, %v10534_v0  ;;  %v10548_v17 = vrot.slane %v10547_v60, 1 }
 0x8b0   :  { %v10542_v19 = vmax.f32 %v10540_v16, %v10541_v31  ;;  %v10553_v2 = vrot.slane %v10552_v8, 2  ;;  %v20563_v56 = vcombine.high %v20480_v52, %v20480_v52  ;;  %v20567_v55 = vcombine.high %v20482_v43, %v20482_v43 }
 0x8b1   :  { %v10854_v50 = vsel %vm8596_vm10, %v10708_v48, %v10853_v47  ;;  %v10549_v15 = vmax.f32 %v10547_v60, %v10548_v17  ;;  %v10686_v61 = vsel %vm7963_vm7, %v10535_v13, -inf  ;;  %v20573_v59 = vcombine.high %v20507_v51, %v20507_v51  ;;  %v20655_v48 = vld [vmem:[#allocation4 + $0x30] sm:$0x3f] }
 0x8b2   :  { %10872 = vst.msk [vmem:[#allocation4 + $0x51] sm:$0xf] %vm10864_vm1, %v10854_v50  ;;  %v10554_v39 = vmax.f32 %v10552_v8, %v10553_v2  ;;  %v10687_v58 = vmax.f32 %v20525_v62, %v10686_v61  ;;  %v10689_v46 = vsel %vm7963_vm7, %v10542_v19, -inf  ;;  %v13166_v63 = vrot.slane %v20548_v20, 9 }
 0x8b3   :  { %v10690_v9 = vmax.f32 %v20532_v6, %v10689_v46  ;;  %v10692_v27 = vsel %vm7963_vm7, %v10549_v15, -inf  ;;  %v10906_v62 = vrot.slane %v20557_v5, 5  ;;  %v13167_v29 = vrot.slane %v20480_v52, 9  ;;  %v15343_v6 = vld [vmem:[%s21288_s2 + $0x198] sm:$0xff]  }
 0x8b4   :  { %v10555_v23 = vrot.slane %v10554_v39, 1  ;;  %v10693_v12 = vmax.f32 %v20535_v49, %v10692_v27  ;;  %v10910_v49 = vrot.slane %v20563_v56, 5  ;;  %v13168_v33 = vrot.slane %v20482_v43, 9  ;;  %13816 = vmatprep.subr.bf16.mxu1 %v15343_v6 }
 0x8b5   :  { %v10849_v53 = vsel %vm8592_vm8, %v10690_v9, %v10687_v58  ;;  %v10914_v32 = vrot.slane %v20567_v55, 5  ;;  %v10907_v24 = vsel %vm20586_vm12, %v13166_v63, %v10906_v62  ;;  %v13169_v22 = vrot.slane %v20507_v51, 9  ;;  %13817 = vmatpush3.bf16.msra.mxu1 %v15344_v21 }
 0x8b6   :  { %v10556_v38 = vmax.f32 %v10554_v39, %v10555_v23  ;;  %v10850_v1 = vsel %vm8594_vm9, %v10693_v12, %v10849_v53  ;;  %v20611_v3 = vsel %vm20586_vm12, %v13167_v29, %v10910_v49  ;;  %v10918_v40 = vrot.slane %v20573_v59, 5  ;;  %13830 = vmatprep.subr.bf16.mxu1 %v15345_v34 }
 0x8b7   :  { %v20615_v36 = vsel %vm20586_vm12, %v13168_v33, %v10914_v32  ;;  %v11044_v54 = vcombine.low %v20583_v28, %v20578_v42  ;;  %v11018_v11 = vcombine.low %v10907_v24, %v20611_v3  ;;  %v13174_v44 = vrot.slane %v20548_v20, 10 }
 0x8b8   :  { %v10695_v37 = vsel %vm7963_vm7, %v10556_v38, -inf  ;;  %v11058_v30 = vcombine.low %v20611_v3, %v20615_v36  ;;  %v20634_v45 = vsel %vm20586_vm12, %v13169_v22, %v10918_v40  ;;  %v10940_v16 = vrot.slane %v20557_v5, 6 }
 0x8b9   :  { %v10696_v4 = vmax.f32 %v20539_v25, %v10695_v37  ;;  %v13175_v35 = vrot.slane %v20480_v52, 10  ;;  %v11019_v0 = vcombine.low %v20615_v36, %v20634_v45  ;;  %v10944_v60 = vrot.slane %v20563_v56, 6  ;;  %v20693_v6 = vld [vmem:[#allocation4 + $0x50] sm:$0x3f] }
 0x8ba   :  { %v13176_v8 = vrot.slane %v20482_v43, 10  ;;  %v10948_v10 = vrot.slane %v20567_v55, 6  ;;  %v20648_v41 = vsel %vm20622_vm14, %v13174_v44, %v10940_v16  ;;  %v20652_v31 = vcombine.high %v20501_v26, %v20501_v26 }
 0x8bb   :  { %v10851_v25 = vsel %vm8596_vm10, %v10696_v4, %v10850_v1  ;;  %v13182_v5 = vrot.slane %v20501_v26, 9  ;;  %v15238_v47 = vpack.i.bf16 %v11019_v0, %v11018_v11  ;;  %v20660_v13 = vsel %vm20622_vm14, %v13175_v35, %v10944_v60  ;;  %v20713_v11 = vld [vmem:[#allocation4 + $0x58] sm:$0x3f]  ;;  %vm21031_vm10 = vmor %vm1172_vm0, %vm8594_vm9 }
 0x8bc   :  { %10871 = vst.msk [vmem:[#allocation4 + $0x49] sm:$0xf] %vm10864_vm1, %v10851_v25  ;;  %v20664_v17 = vsel %vm20622_vm14, %v13176_v8, %v10948_v10  ;;  %v20668_v19 = vcombine.high %v20636_v57, %v20636_v57  ;;  %v10976_v2 = vrot.slane %v20652_v31, 5  ;;  %v13186_v56 = vrot.slane %v20636_v57, 9  ;;  %vm11890_vm0 = vmor %vm21031_vm10, %vm8598_vm11 }
 0x8bd   :  { %v11066_v55 = vcombine.low %v20660_v13, %v20664_v17  ;;  %v11034_v50 = vcombine.low %v20648_v41, %v20660_v13  ;;  %15239 = vrot.lane.b32.xlu1 %v15238_v47, %s15534_s12  ;;  %v10897_v61 = vcombine.high %v20655_v48, %v20655_v48  ;;  %v10898_v39 = vcombine.high %v20583_v28, %v20583_v28  ;;  %v15346_v41 = vld [vmem:[%s21288_s2 + $0x1a0] sm:$0xff]   ;;  %vm21065_vm9 = vmor %vm11890_vm0, %vm8602_vm13 }
 0x8be   :  { %v10996_v15 = vrot.slane %v20668_v19, 5  ;;  %v10899_v58 = vcombine.high %v20578_v42, %v20578_v42  ;;  %v20686_v46 = vsel %vm20586_vm12, %v13182_v5, %v10976_v2  ;;  %v13170_v9 = vrot.slane %v20655_v48, 9 }
 0x8bf   :  { %v13171_v27 = vrot.slane %v20583_v28, 9  ;;  %v13172_v63 = vrot.slane %v20578_v42, 9  ;;  %v10922_v12 = vrot.slane %v10897_v61, 5  ;;  %v10926_v62 = vrot.slane %v10898_v39, 5 }
 0x8c0   :  { %v10997_v23 = vsel %vm20586_vm12, %v13186_v56, %v10996_v15  ;;  %v10930_v29 = vrot.slane %v10899_v58, 5  ;;  %v13178_v53 = vrot.slane %v20655_v48, 10  ;;  %v10956_v49 = vrot.slane %v10897_v61, 6 }
 0x8c1   :  { %v11086_v21 = vcombine.low %v20686_v46, %v10997_v23  ;;  %v13179_v33 = vrot.slane %v20583_v28, 10  ;;  %v10923_v32 = vsel %vm20586_vm12, %v13170_v9, %v10922_v12  ;;  %v20702_v34 = vsel %vm20586_vm12, %v13171_v27, %v10926_v62 }
 0x8c2   :  { %v20706_v38 = vsel %vm20586_vm12, %v13172_v63, %v10930_v29  ;;  %v10960_v1 = vrot.slane %v10898_v39, 6  ;;  %v11020_v40 = vcombine.low %v10923_v32, %v20702_v34  ;;  %v20717_v44 = vsel %vm20622_vm14, %v13178_v53, %v10956_v49 }
 0x8c3   :  { %v20708_v24 = vld [vmem:[#allocation4 + $0x48] sm:$0x3f]  ;;  %v15253_v22 = vpack.i.bf16 %v11066_v55, %v11086_v21  ;;  %v11060_v37 = vcombine.low %v20702_v34, %v20706_v38  ;;  %v13180_v60 = vrot.slane %v20578_v42, 10  ;;  %v10964_v8 = vrot.slane %v10899_v58, 6  ;;  %v15362_v34 = vld [vmem:[%s21288_s2 + $0x218] sm:$0xff]  }
 0x8c4   :  { %v11045_v4 = vcombine.low %v20708_v24, %v20693_v6  ;;  %v10900_v16 = vcombine.high %v20708_v24, %v20708_v24  ;;  %v13173_v35 = vrot.slane %v20708_v24, 9  ;;  %v20726_v0 = vsel %vm20622_vm14, %v13179_v33, %v10960_v1 }
 0x8c5   :  { %v10973_v10 = vcombine.high %v20693_v6, %v20693_v6  ;;  %v13183_v25 = vrot.slane %v20693_v6, 9  ;;  %v10993_v2 = vcombine.high %v20713_v11, %v20713_v11  ;;  %v13187_v56 = vrot.slane %v20713_v11, 9 }
 0x8c6   :  { %v15243_v5 = vpack.i.bf16 %v11045_v4, %v11044_v54  ;;  %v10934_v47 = vrot.slane %v10900_v16, 5  ;;  %v10965_v55 = vsel %vm20622_vm14, %v13180_v60, %v10964_v8  ;;  %v11036_v61 = vcombine.low %v20717_v44, %v20726_v0  ;;  %v15353_v44 = vld [vmem:[%s21288_s2 + $0x200] sm:$0xff]  }
 0x8c7   :  { %v10980_v15 = vrot.slane %v10973_v10, 5  ;;  %v13177_v39 = vrot.slane %v20507_v51, 10  ;;  %v11000_v58 = vrot.slane %v10993_v2, 5  ;;  %v11068_v9 = vcombine.low %v20726_v0, %v10965_v55 }
 0x8c8   :  { %15244 = vrot.lane.b32.xlu0 %v15243_v5, %s15534_s12  ;;  %v20746_v54 = vsel %vm20586_vm12, %v13173_v35, %v10934_v47  ;;  %v10952_v27 = vrot.slane %v20573_v59, 6  ;;  %v13184_v12 = vrot.slane %v20501_v26, 10  ;;  %v10984_v62 = vrot.slane %v20652_v31, 6 }
 0x8c9   :  { %v11021_v63 = vcombine.low %v20706_v38, %v20746_v54  ;;  %v20754_v23 = vsel %vm20586_vm12, %v13183_v25, %v10980_v15  ;;  %v11001_v29 = vsel %vm20586_vm12, %v13187_v56, %v11000_v58  ;;  %v13188_v53 = vrot.slane %v20636_v57, 10  ;;  %v15363_v38 = vld [vmem:[%s21288_s2 + $0x1d8] sm:$0xff]  }
 0x8ca   :  { %v10953_v21 = vsel %vm20622_vm14, %v13177_v39, %v10952_v27  ;;  %v11004_v59 = vrot.slane %v20668_v19, 6  ;;  %v11087_v33 = vcombine.low %v20754_v23, %v11001_v29  ;;  %v10985_v32 = vsel %vm20622_vm14, %v13184_v12, %v10984_v62 }
 0x8cb   :  { %v15248_v49 = vpack.i.bf16 %v11021_v63, %v11020_v40  ;;  %v11035_v1 = vcombine.low %v20664_v17, %v10953_v21  ;;  %v13181_v31 = vrot.slane %v20708_v24, 10  ;;  %v10968_v4 = vrot.slane %v10900_v16, 6 }
 0x8cc   :  { %15254 = vrot.lane.b32.xlu0 %v15253_v22, %s15534_s12  ;;  %v11005_v18 = vsel %vm20622_vm14, %v13188_v53, %v11004_v59  ;;  %v15258_v35 = vpack.i.bf16 %v11068_v9, %v11087_v33  ;;  %v13185_v40 = vrot.slane %v20693_v6, 10  ;;  %v10988_v60 = vrot.slane %v10973_v10, 6  ;;  %v15350_v33 = vld [vmem:[%s21288_s2 + $0x1b0] sm:$0xff]  }
 0x8cd   :  { %15249 = vrot.lane.b32.xlu1 %v15248_v49, %s15534_s12  ;;  %v11094_v19 = vcombine.low %v10985_v32, %v11005_v18  ;;  %v10969_v8 = vsel %vm20622_vm14, %v13181_v31, %v10968_v4  ;;  %v13189_v17 = vrot.slane %v20713_v11, 10  ;;  %v11008_v25 = vrot.slane %v10993_v2, 6 }
 0x8ce   :  { %v11010_v22 = vcombine.low %v20548_v20, %v20480_v52  ;;  %v11067_v5 = vcombine.low %v10953_v21, %v10985_v32  ;;  %v10989_v16 = vsel %vm20622_vm14, %v13185_v40, %v10988_v60  ;;  %v11037_v47 = vcombine.low %v10965_v55, %v10969_v8  ;;  %v15351_v32 = vld [vmem:[%s21288_s2 + $0x1f8] sm:$0xff]  }
 0x8cf   :  { %v11059_v56 = vcombine.low %v20634_v45, %v20686_v46  ;;  %v11009_v10 = vsel %vm20622_vm14, %v13189_v17, %v11008_v25  ;;  %v11012_v15 = vcombine.low %v20655_v48, %v20583_v28  ;;  %v11013_v2 = vcombine.low %v20578_v42, %v20708_v24  ;;  %v15352_v40 = vld [vmem:[%s21288_s2 + $0x1b8] sm:$0xff]  }
 0x8d0   :  { %15259 = vrot.lane.b32.xlu0 %v15258_v35, %s15534_s12  ;;  %v11095_v52 = vcombine.low %v10989_v16, %v11009_v10  ;;  %v11082_v20 = vcombine.low %v20501_v26, %v20636_v57  ;;  %v11061_v55 = vcombine.low %v20746_v54, %v20754_v23  ;;  %v11083_v39 = vcombine.low %v20693_v6, %v20713_v11  ;;  %v15360_v6 = vld [vmem:[%s21288_s2 + $0x210] sm:$0xff]   ;;  %v15366_v54 = vld [vmem:[%s21288_s2 + $0x228] sm:$0xff]  }
 0x8d1   :  { %11072 = vrot.lane.b32.xlu1 %v11067_v5, %s15534_s12  ;;  %v20797_v14 = vpack.c.bf16 %v11094_v19, %v11035_v1  ;;  %v11069_v58 = vcombine.low %v10969_v8, %v10989_v16  ;;  %v11011_v63 = vcombine.low %v20482_v43, %v20507_v51  ;;  %v15348_v43 = vld [vmem:[%s21288_s2 + $0x1a8] sm:$0xff]   ;;  %v15349_v51 = vld [vmem:[%s21288_s2 + $0x1f0] sm:$0xff]   ;;  %vm15535_vm11 = vmmov 0  }
 0x8d2   :  { %v20799_v9 = vpack.c.bf16 %v11095_v52, %v11037_v47  ;;  %v15356_v52 = vld [vmem:[%s21288_s2 + $0x1c0] sm:$0xff]   ;;  %v15367_v23 = vld [vmem:[%s21288_s2 + $0x230] sm:$0xff]  }
 0x8d5   :  { %11076 = vrot.lane.b32.xlu1 %v11069_v58, %s15534_s12 }
 0x90e   :  { %v15235_v42 = vpop.permute.xlu0 %15234 }
 0x90f   :  { %v15237_v28 = vunpack.i.h.bf16 %v15235_v42  ;;  %v15236_v48 = vunpack.i.l.bf16 %v15235_v42 }
 0x911   :  { %v11102_v26 = vsel %vm7963_vm7, %v11034_v50, %v15236_v48  ;;  %v11103_v57 = vsel %vm7963_vm7, %v11035_v1, %v15237_v28  ;;  %v15347_v50 = vld [vmem:[%s21288_s2 + $0x1e8] sm:$0xff]  }
 0x912   :  { %v11113_v24 = vpack.c.bf16 %v11103_v57, %v11102_v26  ;;  %v15371_v26 = vld [vmem:[%s21288_s2 + $0x280] sm:$0xff]  }
 0x913   :  { %v15372_v57 = vld [vmem:[%s21288_s2 + $0x240] sm:$0xff]  }
 0x914   :  { %11376 = vmatprep.mubr.bf16.mxu1 %v11113_v24  ;;  %v15373_v24 = vld [vmem:[%s21288_s2 + $0x288] sm:$0xff]  }
 0x92f   :  { %v15240_v27 = vpop.permute.xlu1 %15239 }
 0x930   :  { %v15242_v12 = vunpack.i.h.bf16 %v15240_v27  ;;  %v15241_v62 = vunpack.i.l.bf16 %v15240_v27 }
 0x932   :  { %v11099_v29 = vsel %vm7963_vm7, %v11011_v63, %v15242_v12  ;;  %v11098_v21 = vsel %vm7963_vm7, %v11010_v22, %v15241_v62  ;;  %v15375_v62 = vld [vmem:[%s21288_s2 + $0x290] sm:$0xff]  }
 0x933   :  { %v11112_v13 = vpack.c.bf16 %v11099_v29, %v11098_v21  ;;  %v15377_v21 = vld [vmem:[%s21288_s2 + $0x298] sm:$0xff]  }
 0x935   :  { %11377 = vmatmul.mubr.bf16.vlgmr.msra.gmra.mrb[144].mxu1 %v11112_v13  ;;  %v15379_v13 = vld [vmem:[%s21288_s2 + $0x2a0] sm:$0xff]  }
 0x936   :  { %13831 = vmatpush3.bf16.msra.mxu1 %v15346_v41  ;;  %v15378_v41 = vld [vmem:[%s21288_s2 + $0x258] sm:$0xff]  }
 0x937   :  { %13832 = vmatprep.subr.bf16.mxu1 %v15347_v50 }
 0x93a   :  { %v15245_v53 = vpop.permute.xlu0 %15244  ;;  %13833 = vmatpush3.bf16.msra.mxu1 %v15348_v43 }
 0x93b   :  { %v15247_v59 = vunpack.i.h.bf16 %v15245_v53  ;;  %v15246_v49 = vunpack.i.l.bf16 %v15245_v53  ;;  %13834 = vmatprep.subr.bf16.mxu1 %v15349_v51  ;;  %v15380_v51 = vld [vmem:[%s21288_s2 + $0x260] sm:$0xff]  }
 0x93d   :  { %v11104_v1 = vsel %vm7963_vm7, %v11036_v61, %v15246_v49  ;;  %v11105_v18 = vsel %vm7963_vm7, %v11037_v47, %v15247_v59  ;;  %v15381_v49 = vld [vmem:[%s21288_s2 + $0x2a8] sm:$0xff]  }
 0x93e   :  { %v15255_v31 = vpop.permute.xlu0 %15254  ;;  %v11118_v4 = vpack.c.bf16 %v11105_v18, %v11104_v1  ;;  %13835 = vmatpush3.bf16.msra.mxu1 %v15350_v33  ;;  %v15382_v1 = vld [vmem:[%s21288_s2 + $0x268] sm:$0xff]   ;;  %v15383_v18 = vld [vmem:[%s21288_s2 + $0x2b0] sm:$0xff]  }
 0x93f   :  { %v15256_v35 = vunpack.i.l.bf16 %v15255_v31  ;;  %v15250_v19 = vpop.permute.xlu1 %15249  ;;  %v15257_v60 = vunpack.i.h.bf16 %v15255_v31  ;;  %13836 = vmatprep.subr.bf16.mxu1 %v15351_v32  ;;  %v15384_v31 = vld [vmem:[%s21288_s2 + $0x270] sm:$0xff]  }
 0x940   :  { %v15252_v8 = vunpack.i.h.bf16 %v15250_v19  ;;  %v15251_v17 = vunpack.i.l.bf16 %v15250_v19  ;;  %11384 = vmatprep.mubr.bf16.mxu1 %v11118_v4 }
 0x941   :  { %v11110_v0 = vsel %vm7963_vm7, %v11082_v20, %v15256_v35  ;;  %v11106_v20 = vsel %vm7963_vm7, %v11058_v30, %v15257_v60  ;;  %v15359_v30 = vld [vmem:[%s21288_s2 + $0x1c8] sm:$0xff]  }
 0x942   :  { %v15260_v61 = vpop.permute.xlu0 %15259  ;;  %v11100_v25 = vsel %vm7963_vm7, %v11012_v15, %v15251_v17  ;;  %v11101_v22 = vsel %vm7963_vm7, %v11013_v2, %v15252_v8  ;;  %v11115_v5 = vpack.c.bf16 %v11110_v0, %v11099_v29  ;;  %13837 = vmatpush3.bf16.msra.mxu1 %v15352_v40  ;;  %v15358_v2 = vld [vmem:[%s21288_s2 + $0x208] sm:$0xff]   ;;  %v15376_v29 = vld [vmem:[%s21288_s2 + $0x250] sm:$0xff]  }
 0x943   :  { %v15261_v16 = vunpack.i.l.bf16 %v15260_v61  ;;  %v11073_v47 = vpop.permute.xlu1 %11072  ;;  %v11117_v10 = vpack.c.bf16 %v11101_v22, %v11100_v25  ;;  %v15262_v58 = vunpack.i.h.bf16 %v15260_v61  ;;  %13838 = vmatprep.subr.bf16.mxu1 %v15353_v44 }
 0x944   :  { %v11107_v15 = vsel %vm7963_vm7, %v11059_v56, %v11073_v47  ;;  %v15361_v56 = vld [vmem:[%s21288_s2 + $0x1d0] sm:$0xff]  }
 0x945   :  { %v11114_v42 = vpack.c.bf16 %v11107_v15, %v11106_v20  ;;  %11385 = vmatmul.mubr.bf16.gmra.mrb[148].mxu1 %v11117_v10  ;;  %v11111_v28 = vsel %vm7963_vm7, %v11083_v39, %v15261_v16  ;;  %v11108_v45 = vsel %vm7963_vm7, %v11060_v37, %v15262_v58  ;;  %v15364_v37 = vld [vmem:[%s21288_s2 + $0x220] sm:$0xff]  }
 0x946   :  { %11425 = vmatprep.mubr.bf16.mxu1 %v11115_v5  ;;  %v11120_v3 = vpack.c.bf16 %v11111_v28, %v11101_v22  ;;  %13839 = vmatpush3.bf16.msra.mxu1 %v15356_v52  ;;  %v13228_v52 = vld [vmem:[%s21289_s3 + $0x2] ss:$0 sm:$0xff] }
 0x947   :  { %v11077_v36 = vpop.permute.xlu1 %11076  ;;  %13840 = vmatprep.subr.bf16.mxu1 %v15358_v2  ;;  %v13229_v2 = vld [vmem:[%s21290_s4 + $0x2] ss:$0 sm:$0xff] }
 0x948   :  { %v11109_v46 = vsel %vm7963_vm7, %v11061_v55, %v11077_v36  ;;  %v15368_v55 = vld [vmem:[%s21288_s2 + $0x238] sm:$0xff]  }
 0x949   :  { %v11119_v11 = vpack.c.bf16 %v11109_v46, %v11108_v45 }
 0x94a   :  { %13841 = vmatpush3.bf16.msra.mxu1 %v15359_v30 }
 0x94b   :  { %13842 = vmatprep.subr.bf16.mxu1 %v15360_v6 }
 0x94e   :  { %13843 = vmatpush3.bf16.msra.mxu1 %v15361_v56 }
 0x94f   :  { %13844 = vmatprep.subr.bf16.mxu1 %v15362_v34 }
 0x952   :  { %13845 = vmatpush3.bf16.msra.mxu1 %v15363_v38 }
 0x953   :  { %14538 = vmatprep.subr.bf16.mxu1 %v15364_v37 }
 0x955   :  { %11426 = vmatmul.mubr.bf16.vlgmr.msra.gmra.mrb[152].mxu1 %v11114_v42 }
 0x956   :  { %11433 = vmatprep.mubr.bf16.mxu1 %v11120_v3  ;;  %14539 = vmatpush3.bf16.msra.mxu1 %v15364_v37 }
 0x957   :  { %14540 = vmatprep.subr.bf16.mxu1 %v15366_v54 }
 0x95a   :  { %14541 = vmatpush3.bf16.msra.mxu1 %v15366_v54 }
 0x95b   :  { %14542 = vmatprep.subr.bf16.mxu1 %v15367_v23 }
 0x95d   :  { %11434 = vmatmul.mubr.bf16.gmra.mrb[156].mxu1 %v11119_v11 }
 0x95e   :  { %14543 = vmatpush3.bf16.msra.mxu1 %v15367_v23  ;;  %14546 = vmatprep.mubr.msk.bf16.mxu1 %vm7963_vm7, %v20797_v14 }
 0x95f   :  { %14544 = vmatprep.subr.bf16.mxu1 %v15368_v55 }
 0x962   :  { %14545 = vmatpush3.bf16.msra.mxu1 %v15368_v55 }
 0x963   :  { %13864 = vmatprep.subr.bf16.mxu1 %v15371_v26 }
 0x965   :  { %14547 = vmatmul.mubr.msk.bf16.vlgmr.msra.gmra.mrb[160].mxu1 %vm7963_vm7, %v20799_v9  ;;  %v15374_v9 = vld [vmem:[%s21288_s2 + $0x248] sm:$0xff]  }
 0x966   :  { %13865 = vmatpush3.bf16.msra.mxu1 %v15372_v57 }
 0x967   :  { %13866 = vmatprep.subr.bf16.mxu1 %v15373_v24 }
 0x96a   :  { %13867 = vmatpush3.bf16.msra.mxu1 %v15374_v9 }
 0x96b   :  { %13868 = vmatprep.subr.bf16.mxu1 %v15375_v62 }
 0x96e   :  { %13869 = vmatpush3.bf16.msra.mxu1 %v15376_v29 }
 0x96f   :  { %13870 = vmatprep.subr.bf16.mxu1 %v15377_v21 }
 0x972   :  { %13871 = vmatpush3.bf16.msra.mxu1 %v15378_v41 }
 0x973   :  { %13872 = vmatprep.subr.bf16.mxu1 %v15379_v13 }
 0x976   :  { %13873 = vmatpush3.bf16.msra.mxu1 %v15380_v51 }
 0x977   :  { %13874 = vmatprep.subr.bf16.mxu1 %v15381_v49 }
 0x97a   :  { %13875 = vmatpush3.bf16.msra.mxu1 %v15382_v1 }
 0x97b   :  { %13876 = vmatprep.subr.bf16.mxu1 %v15383_v18 }
 0x97e   :  { %13877 = vmatpush3.bf16.msra.mxu1 %v15384_v31 }
 0xa08   :  { %v13818_v39 = vpop.f32.mrb[144].mxu1 }
 0xa09   :  { %v13819_v48 = vpop.f32.mrb[145].mxu1 }
 0xa0a   :  { %v13820_v14 = vadd.f32 %v13819_v48, %v13818_v39  ;;  %v13821_v27 = vpop.f32.mrb[146].mxu1 }
 0xa0b   :  { %v13822_v63 = vpop.f32.mrb[147].mxu1 }
 0xa0c   :  { %v13823_v12 = vadd.f32 %v13822_v63, %v13821_v27 }
 0xa18   :  { %v13824_v50 = vpop.f32.mrb[148].mxu1 }
 0xa19   :  { %v13825_v43 = vpop.f32.mrb[149].mxu1 }
 0xa1a   :  { %v13826_v53 = vadd.f32 %v13825_v43, %v13824_v50  ;;  %v13827_v59 = vpop.f32.mrb[150].mxu1 }
 0xa1b   :  { %v13828_v33 = vpop.f32.mrb[151].mxu1 }
 0xa1c   :  { %v13829_v32 = vadd.f32 %v13828_v33, %v13827_v59 }
 0xa28   :  { %v13846_v4 = vpop.f32.mrb[152].mxu1 }
 0xa29   :  { %v13847_v35 = vpop.f32.mrb[153].mxu1 }
 0xa2a   :  { %v13848_v19 = vadd.f32 %v13847_v35, %v13846_v4  ;;  %v13849_v40 = vpop.f32.mrb[154].mxu1 }
 0xa2b   :  { %v13850_v60 = vpop.f32.mrb[155].mxu1 }
 0xa2c   :  { %v13851_v8 = vadd.f32 %v13850_v60, %v13849_v40  ;;  %v11428_v17 = vadd.f32 %v13848_v19, %v13820_v14 }
 0xa2e   :  { %v11431_v44 = vadd.f32 %v13851_v8, %v13823_v12 }
 0xa30   :  { %v13852_v0 = vpop.f32.mrb[156].mxu1 }
 0xa31   :  { %v13853_v61 = vpop.f32.mrb[157].mxu1 }
 0xa32   :  { %v13854_v25 = vadd.f32 %v13853_v61, %v13852_v0  ;;  %v13855_v22 = vpop.f32.mrb[158].mxu1 }
 0xa33   :  { %v13856_v5 = vpop.f32.mrb[159].mxu1 }
 0xa34   :  { %v13857_v16 = vadd.f32 %v13856_v5, %v13855_v22  ;;  %v11436_v47 = vadd.f32 %v13854_v25, %v13826_v53 }
 0xa36   :  { %v11439_v10 = vadd.f32 %v13857_v16, %v13829_v32 }
 0xa38   :  { %v14548_v58 = vpop.f32.mrb[160].mxu1 }
 0xa39   :  { %v11485_v20 = vadd.f32 %v14548_v58, %v11436_v47  ;;  %v11476_v15 = vpop.f32.mrb[161].mxu1 }
 0xa3a   :  { %v11477_v42 = vadd.f32 %v11476_v15, %v11428_v17  ;;  %v14549_v28 = vpop.f32.mrb[162].mxu1 }
 0xa3b   :  { %v11499_v3 = vmul.f32 %v13228_v52, %v11485_v20  ;;  %v11488_v36 = vadd.f32 %v14549_v28, %v11439_v10  ;;  %v11479_v30 = vpop.f32.mrb[163].mxu1 }
 0xa3c   :  { %v11497_v45 = vmul.f32 %v13228_v52, %v11477_v42  ;;  %v11480_v46 = vadd.f32 %v11479_v30, %v11431_v44 }
 0xa3d   :  { %v11509_v6 = vadd.f32 %v13229_v2, %v11499_v3  ;;  %v11500_v11 = vmul.f32 %v13228_v52, %v11488_v36 }
 0xa3e   :  { %v11507_v56 = vadd.f32 %v13229_v2, %v11497_v45  ;;  %v11498_v34 = vmul.f32 %v13228_v52, %v11480_v46 }
 0xa3f   :  { %v11513_v38 = vmax.f32 %v11509_v6, 0.0  ;;  %v11510_v37 = vadd.f32 %v13229_v2, %v11500_v11 }
 0xa40   :  { %v11511_v54 = vmax.f32 %v11507_v56, 0.0  ;;  %v11508_v23 = vadd.f32 %v13229_v2, %v11498_v34 }
 0xa41   :  { %v11553_v55 = vcombine.high %v11513_v38, %v11513_v38  ;;  %v11560_v39 = vrot.slane %v11513_v38, %v21875_v7  ;;  %v20949_v48 = vmax.f32 %v11510_v37, 0.0 }
 0xa42   :  { %v11519_v26 = vcombine.high %v11511_v54, %v11511_v54  ;;  %v11526_v57 = vrot.slane %v11511_v54, %v21875_v7  ;;  %v20952_v24 = vmax.f32 %v11508_v23, 0.0 }
 0xa43   :  { %v11567_v14 = vrot.slane %v11553_v55, %v21875_v7  ;;  %v11568_v27 = vcombine.high %v11560_v39, %v11560_v39  ;;  %v11659_v63 = vsel %vm6170_vm6, %v11560_v39, -inf  ;;  %v11570_v12 = vcombine.high %v20949_v48, %v20949_v48 }
 0xa44   :  { %v11660_v9 = vrot.slane %v11659_v63, 4  ;;  %v11533_v62 = vrot.slane %v11519_v26, %v21875_v7  ;;  %v11534_v29 = vcombine.high %v11526_v57, %v11526_v57  ;;  %v11603_v21 = vsel %vm6170_vm6, %v11526_v57, -inf }
 0xa45   :  { %v11569_v41 = vcombine.high %v11567_v14, %v11567_v14  ;;  %v11666_v13 = vsel %vm6170_vm6, %v11568_v27, -inf  ;;  %v11673_v50 = vsel %vm6170_vm6, %v11567_v14, -inf  ;;  %v11604_v43 = vrot.slane %v11603_v21, 4 }
 0xa46   :  { %v11661_v51 = vmax.f32 %v11659_v63, %v11660_v9  ;;  %v11667_v53 = vrot.slane %v11666_v13, 4  ;;  %v11674_v59 = vrot.slane %v11673_v50, 4  ;;  %v11535_v49 = vcombine.high %v11533_v62, %v11533_v62 }
 0xa47   :  { %v11680_v33 = vsel %vm6170_vm6, %v11569_v41, -inf  ;;  %v11605_v32 = vmax.f32 %v11603_v21, %v11604_v43  ;;  %v11610_v1 = vsel %vm6170_vm6, %v11534_v29, -inf  ;;  %v11617_v18 = vsel %vm6170_vm6, %v11533_v62, -inf }
 0xa48   :  { %v11662_v31 = vrot.slane %v11661_v51, 2  ;;  %v11668_v4 = vmax.f32 %v11666_v13, %v11667_v53  ;;  %v11675_v35 = vmax.f32 %v11673_v50, %v11674_v59  ;;  %v11681_v19 = vrot.slane %v11680_v33, 4 }
 0xa49   :  { %v11606_v40 = vrot.slane %v11605_v32, 2  ;;  %v11611_v60 = vrot.slane %v11610_v1, 4  ;;  %v11618_v8 = vrot.slane %v11617_v18, 4  ;;  %v11624_v17 = vsel %vm6170_vm6, %v11535_v49, -inf }
 0xa4a   :  { %v11663_v44 = vmax.f32 %v11661_v51, %v11662_v31  ;;  %v11669_v0 = vrot.slane %v11668_v4, 2  ;;  %v11676_v61 = vrot.slane %v11675_v35, 2  ;;  %v11682_v25 = vmax.f32 %v11680_v33, %v11681_v19 }
 0xa4b   :  { %v11607_v22 = vmax.f32 %v11605_v32, %v11606_v40  ;;  %v11612_v5 = vmax.f32 %v11610_v1, %v11611_v60  ;;  %v11619_v16 = vmax.f32 %v11617_v18, %v11618_v8  ;;  %v11625_v47 = vrot.slane %v11624_v17, 4 }
 0xa4c   :  { %v11664_v10 = vrot.slane %v11663_v44, 1  ;;  %v11670_v52 = vmax.f32 %v11668_v4, %v11669_v0  ;;  %v11677_v58 = vmax.f32 %v11675_v35, %v11676_v61  ;;  %v11683_v20 = vrot.slane %v11682_v25, 2  ;;  %v20984_v35 = vld [vmem:[#allocation5] sm:$0xf] }
 0xa4d   :  { %v11608_v15 = vrot.slane %v11607_v22, 1  ;;  %v11613_v2 = vrot.slane %v11612_v5, 2  ;;  %v11620_v42 = vrot.slane %v11619_v16, 2  ;;  %v11626_v28 = vmax.f32 %v11624_v17, %v11625_v47 }
 0xa4e   :  { %v11665_v3 = vmax.f32 %v11663_v44, %v11664_v10  ;;  %v11671_v36 = vrot.slane %v11670_v52, 1  ;;  %v11678_v30 = vrot.slane %v11677_v58, 1  ;;  %v11684_v45 = vmax.f32 %v11682_v25, %v11683_v20  ;;  %v20992_v25 = vld [vmem:[#allocation5 + $0x10] sm:$0xf] }
 0xa4f   :  { %v11609_v46 = vmax.f32 %v11607_v22, %v11608_v15  ;;  %v11614_v6 = vmax.f32 %v11612_v5, %v11613_v2  ;;  %v11621_v11 = vmax.f32 %v11619_v16, %v11620_v42  ;;  %v11627_v56 = vrot.slane %v11626_v28, 2 }
 0xa50   :  { %v11672_v34 = vmax.f32 %v11670_v52, %v11671_v36  ;;  %v11679_v38 = vmax.f32 %v11677_v58, %v11678_v30  ;;  %v11685_v37 = vrot.slane %v11684_v45, 1  ;;  %v11727_v54 = vsel %vm7963_vm7, %v11665_v3, -inf }
 0xa51   :  { %v11615_v23 = vrot.slane %v11614_v6, 1  ;;  %v11622_v55 = vrot.slane %v11621_v11, 1  ;;  %v11628_v39 = vmax.f32 %v11626_v28, %v11627_v56  ;;  %v11715_v26 = vsel %vm7963_vm7, %v11609_v46, -inf }
 0xa52   :  { %v11686_v57 = vmax.f32 %v11684_v45, %v11685_v37  ;;  %v11728_v14 = vsel %vm7963_vm7, %v11679_v38, -inf  ;;  %v11730_v27 = vsel %vm7963_vm7, %v11672_v34, -inf  ;;  %v11577_v63 = vrot.slane %v20949_v48, %v21875_v7 }
 0xa53   :  { %v11729_v9 = vmax.f32 %v11727_v54, %v11728_v14  ;;  %v11616_v62 = vmax.f32 %v11614_v6, %v11615_v23  ;;  %v11623_v29 = vmax.f32 %v11621_v11, %v11622_v55  ;;  %v11629_v21 = vrot.slane %v11628_v39, 1 }
 0xa54   :  { %v11731_v41 = vsel %vm7963_vm7, %v11686_v57, -inf  ;;  %v11584_v13 = vrot.slane %v11570_v12, %v21875_v7  ;;  %v11585_v50 = vcombine.high %v11577_v63, %v11577_v63  ;;  %v11687_v43 = vsel %vm6170_vm6, %v11577_v63, -inf }
 0xa55   :  { %v11732_v51 = vmax.f32 %v11730_v27, %v11731_v41  ;;  %v11630_v53 = vmax.f32 %v11628_v39, %v11629_v21  ;;  %v11716_v59 = vsel %vm7963_vm7, %v11623_v29, -inf  ;;  %v11718_v49 = vsel %vm7963_vm7, %v11616_v62, -inf }
 0xa56   :  { %v11717_v33 = vmax.f32 %v11715_v26, %v11716_v59  ;;  %v11586_v32 = vcombine.high %v11584_v13, %v11584_v13  ;;  %v11688_v1 = vrot.slane %v11687_v43, 4  ;;  %v11694_v18 = vsel %vm6170_vm6, %v11585_v50, -inf }
 0xa57   :  { %v11834_v31 = vsel %vm8592_vm8, %v11732_v51, %v11729_v9  ;;  %v11719_v4 = vsel %vm7963_vm7, %v11630_v53, -inf  ;;  %v11695_v48 = vrot.slane %v11694_v18, 4  ;;  %v11701_v12 = vsel %vm6170_vm6, %v11584_v13, -inf }
 0xa58   :  { %11843 = vst.msk [vmem:[#allocation5 + $0x15] sm:$0x3] %vm6170_vm6, %v11834_v31  ;;  %v11720_v19 = vmax.f32 %v11718_v49, %v11719_v4  ;;  %v11689_v40 = vmax.f32 %v11687_v43, %v11688_v1  ;;  %v11702_v60 = vrot.slane %v11701_v12, 4  ;;  %v11708_v8 = vsel %vm6170_vm6, %v11586_v32, -inf }
 0xa59   :  { %v11696_v17 = vmax.f32 %v11694_v18, %v11695_v48  ;;  %v11709_v44 = vrot.slane %v11708_v8, 4  ;;  %v11536_v0 = vcombine.high %v20952_v24, %v20952_v24  ;;  %v11543_v61 = vrot.slane %v20952_v24, %v21875_v7 }
 0xa5a   :  { %v11832_v22 = vsel %vm8592_vm8, %v11720_v19, %v11717_v33  ;;  %v11690_v5 = vrot.slane %v11689_v40, 2  ;;  %v11703_v16 = vmax.f32 %v11701_v12, %v11702_v60  ;;  %v20997_v47 = vrot.slane %v20984_v35, %v21875_v7 }
 0xa5b   :  { %11841 = vst.msk [vmem:[#allocation5 + $0x5] sm:$0x3] %vm6170_vm6, %v11832_v22  ;;  %v11697_v10 = vrot.slane %v11696_v17, 2  ;;  %v11710_v52 = vmax.f32 %v11708_v8, %v11709_v44  ;;  %v11550_v58 = vrot.slane %v11536_v0, %v21875_v7  ;;  %v11551_v20 = vcombine.high %v11543_v61, %v11543_v61 }
 0xa5c   :  { %v11691_v15 = vmax.f32 %v11689_v40, %v11690_v5  ;;  %v11704_v2 = vrot.slane %v11703_v16, 2  ;;  %v11631_v24 = vsel %vm6170_vm6, %v11543_v61, -inf  ;;  %v21004_v42 = vrot.slane %v20992_v25, %v21875_v7 }
 0xa5d   :  { %v11698_v28 = vmax.f32 %v11696_v17, %v11697_v10  ;;  %v11711_v3 = vrot.slane %v11710_v52, 2  ;;  %v11552_v36 = vcombine.high %v11550_v58, %v11550_v58  ;;  %v11632_v30 = vrot.slane %v11631_v24, 4 }
 0xa5e   :  { %v11692_v45 = vrot.slane %v11691_v15, 1  ;;  %v11705_v46 = vmax.f32 %v11703_v16, %v11704_v2  ;;  %v11638_v6 = vsel %vm6170_vm6, %v11551_v20, -inf  ;;  %v11645_v11 = vsel %vm6170_vm6, %v11550_v58, -inf  ;;  %v21038_v16 = vld [vmem:[#allocation5 + $0x1c] sm:$0xf] }
 0xa5f   :  { %v11699_v56 = vrot.slane %v11698_v28, 1  ;;  %v11712_v34 = vmax.f32 %v11710_v52, %v11711_v3  ;;  %v11633_v38 = vmax.f32 %v11631_v24, %v11632_v30  ;;  %v11639_v37 = vrot.slane %v11638_v6, 4  ;;  %v21016_v33 = vld [vmem:[#allocation5 + $0x14] sm:$0xf] }
 0xa60   :  { %v11693_v54 = vmax.f32 %v11691_v15, %v11692_v45  ;;  %v11706_v23 = vrot.slane %v11705_v46, 1  ;;  %v11646_v55 = vrot.slane %v11645_v11, 4  ;;  %v11652_v39 = vsel %vm6170_vm6, %v11552_v36, -inf }
 0xa61   :  { %v11700_v26 = vmax.f32 %v11698_v28, %v11699_v56  ;;  %v11713_v57 = vrot.slane %v11712_v34, 1  ;;  %v11634_v14 = vrot.slane %v11633_v38, 2  ;;  %v11640_v27 = vmax.f32 %v11638_v6, %v11639_v37 }
 0xa62   :  { %v11707_v63 = vmax.f32 %v11705_v46, %v11706_v23  ;;  %v11647_v9 = vmax.f32 %v11645_v11, %v11646_v55  ;;  %v11653_v62 = vrot.slane %v11652_v39, 4  ;;  %v21009_v29 = vld [vmem:[#allocation5 + $0x4] sm:$0xf]  ;;  %v11864_v21 = vcombine.high %v20997_v47, %v20997_v47 }
 0xa63   :  { %v11714_v41 = vmax.f32 %v11712_v34, %v11713_v57  ;;  %v11733_v13 = vsel %vm7963_vm7, %v11693_v54, -inf  ;;  %v11635_v50 = vmax.f32 %v11633_v38, %v11634_v14  ;;  %v11641_v43 = vrot.slane %v11640_v27, 2  ;;  %v11848_v14 = vld [vmem:[#allocation5 + $0xc] sm:$0xf] }
 0xa64   :  { %v11734_v51 = vsel %vm7963_vm7, %v11707_v63, -inf  ;;  %v11736_v53 = vsel %vm7963_vm7, %v11700_v26, -inf  ;;  %v11648_v59 = vrot.slane %v11647_v9, 2  ;;  %v11654_v49 = vmax.f32 %v11652_v39, %v11653_v62 }
 0xa65   :  { %v11737_v32 = vsel %vm7963_vm7, %v11714_v41, -inf  ;;  %v11636_v1 = vrot.slane %v11635_v50, 1  ;;  %v11642_v18 = vmax.f32 %v11640_v27, %v11641_v43  ;;  %v21021_v31 = vrot.slane %v21009_v29, %v21875_v7 }
 0xa66   :  { %v11735_v4 = vmax.f32 %v11733_v13, %v11734_v51  ;;  %v11738_v48 = vmax.f32 %v11736_v53, %v11737_v32  ;;  %v11649_v12 = vmax.f32 %v11647_v9, %v11648_v59  ;;  %v11655_v19 = vrot.slane %v11654_v49, 2 }
 0xa67   :  { %v11643_v40 = vrot.slane %v11642_v18, 1  ;;  %v11880_v60 = vcombine.high %v21004_v42, %v21004_v42  ;;  %v21027_v8 = vrot.slane %v21016_v33, %v21875_v7  ;;  %v13304_v44 = vrot.slane %v20997_v47, 9 }
 0xa68   :  { %v11835_v0 = vsel %vm8592_vm8, %v11738_v48, %v11735_v4  ;;  %v11650_v61 = vrot.slane %v11649_v12, 1  ;;  %v11656_v22 = vmax.f32 %v11654_v49, %v11655_v19  ;;  %v13306_v5 = vrot.slane %v21004_v42, 9 }
 0xa69   :  { %11844 = vst.msk [vmem:[#allocation5 + $0x19] sm:$0x3] %vm6170_vm6, %v11835_v0  ;;  %v11637_v10 = vmax.f32 %v11635_v50, %v11636_v1  ;;  %v11872_v52 = vcombine.high %v21021_v31, %v21021_v31  ;;  %v11888_v58 = vcombine.high %v21027_v8, %v21027_v8  ;;  %v11894_v20 = vrot.slane %v11864_v21, 7 }
 0xa6a   :  { %v11644_v15 = vmax.f32 %v11642_v18, %v11643_v40  ;;  %v11651_v2 = vmax.f32 %v11649_v12, %v11650_v61  ;;  %v11657_v24 = vrot.slane %v11656_v22, 1  ;;  %v11960_v28 = vcombine.low %v20984_v35, %v21009_v29  ;;  %v15387_v61 = vld [vmem:[%s21288_s2 + $0x2b8] sm:$0xff]  }
 0xa6b   :  { %v13305_v3 = vrot.slane %v21021_v31, 9  ;;  %v11902_v36 = vrot.slane %v11880_v60, 7  ;;  %v21053_v30 = vrot.slane %v21038_v16, %v21875_v7  ;;  %v11961_v45 = vcombine.low %v20992_v25, %v21016_v33  ;;  %13878 = vmatprep.subr.bf16.mxu1 %v15387_v61  ;;  %v15401_v61 = vld [vmem:[%s21288_s2 + $0x328] sm:$0xff]  }
 0xa6c   :  { %v11658_v46 = vmax.f32 %v11656_v22, %v11657_v24  ;;  %v11722_v6 = vsel %vm7963_vm7, %v11651_v2, -inf  ;;  %v21059_v11 = vrot.slane %v11960_v28, %v21875_v7  ;;  %v13312_v56 = vcombine.high %v20997_v47, %v21021_v31 }
 0xa6d   :  { %v11721_v35 = vsel %vm7963_vm7, %v11637_v10, -inf  ;;  %v11898_v38 = vrot.slane %v11872_v52, 7  ;;  %v11906_v37 = vrot.slane %v11888_v58, 7  ;;  %v21070_v25 = vrot.slane %v11961_v45, %v21875_v7 }
 0xa6e   :  { %v11724_v54 = vsel %vm7963_vm7, %v11644_v15, -inf  ;;  %v11725_v23 = vsel %vm7963_vm7, %v11658_v46, -inf  ;;  %v13313_v55 = vcombine.high %v21004_v42, %v21027_v8  ;;  %v21077_v47 = vrot.slane %v13312_v56, %v21875_v7 }
 0xa6f   :  { %v11723_v39 = vmax.f32 %v11721_v35, %v11722_v6  ;;  %v11726_v26 = vmax.f32 %v11724_v54, %v11725_v23  ;;  %v13307_v57 = vrot.slane %v21027_v8, 9  ;;  %v11976_v27 = vcombine.low %v21059_v11, %v21070_v25  ;;  %v15388_v54 = vld [vmem:[%s21288_s2 + $0x278] sm:$0xff]   ;;  %v15394_v25 = vld [vmem:[%s21288_s2 + $0x2c8] sm:$0xff]  }
 0xa70   :  { %v11851_v63 = vld [vmem:[#allocation5 + $0x18] sm:$0xf]  ;;  %v11895_v9 = vsel %vm21065_vm9, %v13304_v44, %v11894_v20  ;;  %v11903_v62 = vsel %vm21065_vm9, %v13306_v5, %v11902_v36  ;;  %v11951_v42 = vcombine.high %v21053_v30, %v21053_v30  ;;  %v21089_v21 = vrot.slane %v13313_v55, %v21875_v7  ;;  %13879 = vmatpush3.bf16.msra.mxu1 %v15388_v54 }
 0xa71   :  { %v11833_v41 = vsel %vm8592_vm8, %v11726_v26, %v11723_v39  ;;  %v21094_v13 = vsel %vm21065_vm9, %v13305_v3, %v11898_v38  ;;  %v11907_v50 = vsel %vm21065_vm9, %v13307_v57, %v11906_v37  ;;  %v11924_v43 = vrot.slane %v11851_v63, %v21875_v7 }
 0xa72   :  { %11842 = vst.msk [vmem:[#allocation5 + $0x9] sm:$0x3] %vm6170_vm6, %v11833_v41  ;;  %v11942_v51 = vrot.slane %v11848_v14, %v21875_v7  ;;  %v12014_v53 = vcombine.low %v21077_v47, %v21089_v21  ;;  %v11978_v49 = vcombine.low %v11895_v9, %v21094_v13  ;;  %v11979_v32 = vcombine.low %v11903_v62, %v11907_v50  ;;  %v15395_v47 = vld [vmem:[%s21288_s2 + $0x310] sm:$0xff]  }
 0xa73   :  { %v11925_v59 = vcombine.high %v11924_v43, %v11924_v43  ;;  %v13309_v1 = vrot.slane %v11924_v43, 9  ;;  %v13311_v4 = vrot.slane %v21053_v30, 9  ;;  %v11958_v48 = vrot.slane %v11951_v42, 7 }
 0xa74   :  { %v12017_v12 = vcombine.low %v21016_v33, %v11851_v63  ;;  %v11943_v19 = vcombine.high %v11942_v51, %v11942_v51  ;;  %v12075_v60 = vcombine.low %v11851_v63, %v21038_v16  ;;  %v11986_v17 = vrot.slane %v11978_v49, %v21875_v7 }
 0xa75   :  { %v11932_v18 = vrot.slane %v11925_v59, 7  ;;  %v11993_v44 = vrot.slane %v11979_v32, %v21875_v7  ;;  %v13310_v5 = vrot.slane %v11942_v51, 9  ;;  %v11959_v33 = vsel %vm21065_vm9, %v13311_v4, %v11958_v48 }
 0xa76   :  { %v13317_v10 = vcombine.high %v11924_v43, %v21053_v30  ;;  %v12031_v58 = vrot.slane %v12017_v12, %v21875_v7  ;;  %v11954_v20 = vrot.slane %v11943_v19, 7  ;;  %v13315_v15 = vcombine.high %v21027_v8, %v11924_v43  ;;  %v15390_v12 = vld [vmem:[%s21288_s2 + $0x2c0] sm:$0xff]   ;;  %v15393_v19 = vld [vmem:[%s21288_s2 + $0x308] sm:$0xff]  }
 0xa77   :  { %v11933_v40 = vsel %vm21065_vm9, %v13309_v1, %v11932_v18  ;;  %v12089_v24 = vrot.slane %v12075_v60, %v21875_v7  ;;  %v11994_v28 = vcombine.low %v11986_v17, %v11993_v44  ;;  %v15397_v60 = vld [vmem:[%s21288_s2 + $0x318] sm:$0xff]   ;;  %v15399_v44 = vld [vmem:[%s21288_s2 + $0x320] sm:$0xff]  }
 0xa78   :  { %v12037_v0 = vcombine.low %v11907_v50, %v11933_v40  ;;  %v12093_v45 = vcombine.low %v11933_v40, %v11959_v33  ;;  %v11955_v8 = vsel %vm21065_vm9, %v13310_v5, %v11954_v20  ;;  %v12069_v37 = vrot.slane %v13315_v15, %v21875_v7  ;;  %v15398_v17 = vld [vmem:[%s21288_s2 + $0x2d8] sm:$0xff]   ;;  %v15403_v5 = vld [vmem:[%s21288_s2 + $0x330] sm:$0xff]   ;;  %v15407_v20 = vld [vmem:[%s21288_s2 + $0x340] sm:$0xff]  }
 0xa79   :  { %v11847_v22 = vld [vmem:[#allocation5 + $0x8] sm:$0xf]  ;;  %v15404_v33 = vld [vmem:[%s21288_s2 + $0x2f0] sm:$0xff]  }
 0xa7a   :  { %v11916_v52 = vrot.slane %v11847_v22, %v21875_v7  ;;  %v12016_v16 = vcombine.low %v21009_v29, %v11847_v22  ;;  %v12074_v2 = vcombine.low %v11847_v22, %v11848_v14  ;;  %v12127_v29 = vrot.slane %v13317_v10, %v21875_v7  ;;  %v15402_v22 = vld [vmem:[%s21288_s2 + $0x2e8] sm:$0xff]   ;;  %v15405_v10 = vld [vmem:[%s21288_s2 + $0x338] sm:$0xff]  }
 0xa7b   :  { %v12107_v57 = vrot.slane %v12093_v45, %v21875_v7  ;;  %v12051_v14 = vrot.slane %v12037_v0, %v21875_v7  ;;  %v15400_v0 = vld [vmem:[%s21288_s2 + $0x2e0] sm:$0xff]  }
 0xa7c   :  { %v12024_v3 = vrot.slane %v12016_v16, %v21875_v7  ;;  %v11917_v36 = vcombine.high %v11916_v52, %v11916_v52  ;;  %v13314_v30 = vcombine.high %v21021_v31, %v11916_v52  ;;  %v12082_v46 = vrot.slane %v12074_v2, %v21875_v7  ;;  %v15389_v31 = vld [vmem:[%s21288_s2 + $0x300] sm:$0xff]   ;;  %v15406_v16 = vld [vmem:[%s21288_s2 + $0x2f8] sm:$0xff]  }
 0xa7d   :  { %v13316_v6 = vcombine.high %v11916_v52, %v11942_v51  ;;  %v13308_v35 = vrot.slane %v11916_v52, 9  ;;  %13886 = vmatprep.subr.bf16.mxu1 %v15389_v31  ;;  %v21884_v2 = vmov 0.0   ;;  %v15411_v45 = vld [vmem:[%s21291_s5] sm:$0xff]  }
 0xa7e   :  { %v12032_v56 = vcombine.low %v12024_v3, %v12031_v58  ;;  %v11928_v38 = vrot.slane %v11917_v36, 7  ;;  %v12090_v23 = vcombine.low %v12082_v46, %v12089_v24  ;;  %v12062_v9 = vrot.slane %v13314_v30, %v21875_v7  ;;  %v15408_v24 = vld [vmem:[%s21288_s2 + $0x348] sm:$0xff]   ;;  %v15410_v3 = vld [vmem:[%s21288_s2 + $0x358] sm:$0xff]   ;;  %v15413_v46 = vld [vmem:[%s21291_s5 + $0x10] sm:$0xff]  }
 0xa7f   :  { %v12120_v55 = vrot.slane %v13316_v6, %v21875_v7  ;;  %v15412_v30 = vld [vmem:[%s21291_s5 + $0x8] sm:$0xff]   ;;  %v15414_v6 = vld [vmem:[%s21291_s5 + $0x18] sm:$0xff]  }
 0xa80   :  { %v15263_v39 = vpack.i.bf16 %v11994_v28, %v12032_v56  ;;  %v11929_v26 = vsel %vm21065_vm9, %v13308_v35, %v11928_v38  ;;  %v12070_v50 = vcombine.low %v12062_v9, %v12069_v37  ;;  %v15409_v28 = vld [vmem:[%s21288_s2 + $0x350] sm:$0xff]   ;;  %v13356_v9 = vld [vmem:[%s21290_s4 + $0x3] ss:$0 sm:$0xff] }
 0xa81   :  { %v12036_v63 = vcombine.low %v21094_v13, %v11929_v26  ;;  %v12092_v62 = vcombine.low %v11929_v26, %v11955_v8  ;;  %v21142_v42 = vcombine.low %v12120_v55, %v12127_v29  ;;  %v13355_v26 = vld [vmem:[%s21289_s3 + $0x3] ss:$0 sm:$0xff] }
 0xa82   :  { %15264 = vrot.lane.b32.xlu0 %v15263_v39, %s15534_s12 }
 0xa83   :  { %v12100_v41 = vrot.slane %v12092_v62, %v21875_v7  ;;  %v12044_v34 = vrot.slane %v12036_v63, %v21875_v7  ;;  %v12138_v36 = vpack.c.bf16 %v21142_v42, %v21142_v42 }
 0xa85   :  { %v12108_v43 = vcombine.low %v12100_v41, %v12107_v57  ;;  %v12052_v51 = vcombine.low %v12044_v34, %v12051_v14 }
 0xa87   :  { %v15268_v59 = vpack.i.bf16 %v12070_v50, %v12108_v43 }
 0xa89   :  { %15269 = vrot.lane.b32.xlu1 %v15268_v59, %s15534_s12 }
 0xaf4   :  { %v15265_v13 = vpop.permute.xlu0 %15264 }
 0xaf5   :  { %v15267_v49 = vunpack.i.h.bf16 %v15265_v13  ;;  %v15266_v32 = vunpack.i.l.bf16 %v15265_v13 }
 0xaf7   :  { %v12130_v1 = vsel %vm7963_vm7, %v11976_v27, %v15267_v49  ;;  %v12131_v18 = vsel %vm7963_vm7, %v12014_v53, %v15266_v32  ;;  %v15396_v53 = vld [vmem:[%s21288_s2 + $0x2d0] sm:$0xff]  }
 0xaf8   :  { %v12134_v4 = vpack.c.bf16 %v12130_v1, %v12130_v1  ;;  %v12135_v48 = vpack.c.bf16 %v12131_v18, %v12131_v18 }
 0xafa   :  { %12390 = vmatprep.mubr.bf16.mxu1 %v12135_v48 }
 0xafb   :  { %v15270_v40 = vpop.permute.xlu1 %15269  ;;  %12391 = vmatmul.mubr.bf16.vlgmr.msra.gmra.mrb[164].mxu1 %v12134_v4 }
 0xafc   :  { %v15271_v11 = vunpack.i.l.bf16 %v15270_v40  ;;  %13887 = vmatpush3.bf16.msra.mxu1 %v15390_v12  ;;  %v15272_v52 = vunpack.i.h.bf16 %v15270_v40 }
 0xafd   :  { %13888 = vmatprep.subr.bf16.mxu1 %v15393_v19 }
 0xafe   :  { %v12133_v27 = vsel %vm7963_vm7, %v12090_v23, %v15271_v11  ;;  %v12132_v58 = vsel %vm7963_vm7, %v12052_v51, %v15272_v52 }
 0xaff   :  { %v12137_v21 = vpack.c.bf16 %v12133_v27, %v12133_v27  ;;  %v12136_v15 = vpack.c.bf16 %v12132_v58, %v12132_v58 }
 0xb00   :  { %13889 = vmatpush3.bf16.msra.mxu1 %v15394_v25 }
 0xb01   :  { %12430 = vmatprep.mubr.bf16.mxu1 %v12137_v21  ;;  %13890 = vmatprep.subr.bf16.mxu1 %v15395_v47 }
 0xb04   :  { %13891 = vmatpush3.bf16.msra.mxu1 %v15396_v53 }
 0xb05   :  { %13892 = vmatprep.subr.bf16.mxu1 %v15397_v60 }
 0xb08   :  { %13893 = vmatpush3.bf16.msra.mxu1 %v15398_v17 }
 0xb09   :  { %13894 = vmatprep.subr.bf16.mxu1 %v15399_v44 }
 0xb0c   :  { %13895 = vmatpush3.bf16.msra.mxu1 %v15400_v0 }
 0xb0d   :  { %13896 = vmatprep.subr.bf16.mxu1 %v15401_v61 }
 0xb10   :  { %13897 = vmatpush3.bf16.msra.mxu1 %v15402_v22 }
 0xb11   :  { %13898 = vmatprep.subr.bf16.mxu1 %v15403_v5 }
 0xb14   :  { %13899 = vmatpush3.bf16.msra.mxu1 %v15404_v33 }
 0xb15   :  { %13900 = vmatprep.subr.bf16.mxu1 %v15405_v10 }
 0xb18   :  { %13901 = vmatpush3.bf16.msra.mxu1 %v15406_v16 }
 0xb19   :  { %14550 = vmatprep.subr.bf16.mxu1 %v21884_v2 }
 0xb1b   :  { %12431 = vmatmul.mubr.bf16.vlgmr.msra.gmra.mrb[168].mxu1 %v12136_v15 }
 0xb1c   :  { %14551 = vmatpush3.bf16.msra.mxu1 %v15407_v20  ;;  %14558 = vmatprep.mubr.msk.bf16.mxu1 %vm15535_vm11, %v21884_v2 }
 0xb1d   :  { %14552 = vmatprep.subr.bf16.mxu1 %v21884_v2 }
 0xb20   :  { %14553 = vmatpush3.bf16.msra.mxu1 %v15408_v24 }
 0xb21   :  { %14554 = vmatprep.subr.bf16.mxu1 %v21884_v2 }
 0xb24   :  { %14555 = vmatpush3.bf16.msra.mxu1 %v15409_v28 }
 0xb25   :  { %14556 = vmatprep.subr.bf16.mxu1 %v21884_v2 }
 0xb28   :  { %14557 = vmatpush3.bf16.msra.mxu1 %v15410_v3 }
 0xb29   :  { %14562 = vmatprep.subr.bf16.mxu1 %v21884_v2 }
 0xb2b   :  { %14559 = vmatmul.mubr.msk.bf16.vlgmr.msra.gmra.mrb[172].mxu1 %vm7963_vm7, %v12138_v36 }
 0xb2c   :  { %14570 = vmatprep.mubr.msk.bf16.mxu1 %vm15535_vm11, %v21884_v2  ;;  %14563 = vmatpush3.bf16.msra.mxu1 %v15411_v45 }
 0xb2d   :  { %14564 = vmatprep.subr.bf16.mxu1 %v21884_v2 }
 0xb30   :  { %14565 = vmatpush3.bf16.msra.mxu1 %v15412_v30 }
 0xb31   :  { %14566 = vmatprep.subr.bf16.mxu1 %v21884_v2 }
 0xb34   :  { %14567 = vmatpush3.bf16.msra.mxu1 %v15413_v46 }
 0xb35   :  { %14568 = vmatprep.subr.bf16.mxu1 %v21884_v2 }
 0xb38   :  { %14569 = vmatpush3.bf16.msra.mxu1 %v15414_v6 }
 0xb39   :  { %14574 = vmatprep.subr.bf16.mxu1 %v21884_v2 }
 0xbce   :  { %v13880_v29 = vpop.f32.mrb[164].mxu1 }
 0xbcf   :  { %v13881_v56 = vpop.f32.mrb[165].mxu1 }
 0xbd0   :  { %v13882_v35 = vadd.f32 %v13881_v56, %v13880_v29  ;;  %v13883_v38 = vpop.f32.mrb[166].mxu1 }
 0xbd1   :  { %v13884_v8 = vpop.f32.mrb[167].mxu1  ;;  %v12643_v38 = vld [vmem:[%s21293_s7] sm:$0x3] }
 0xbd2   :  { %v12656_v8 = vsel %vm1173_vm2, %v12643_v38, 0  ;;  %vm12730_vm2 = vcmask 516096  }
 0xbee   :  { %v13902_v37 = vpop.f32.mrb[168].mxu1 }
 0xbef   :  { %v13903_v54 = vpop.f32.mrb[169].mxu1 }
 0xbf0   :  { %v13904_v31 = vadd.f32 %v13903_v54, %v13902_v37  ;;  %v13905_v23 = vpop.f32.mrb[170].mxu1  ;;  %v13357_v37 = vld [vmem:[%s21292_s6] ss:$0 sm:$0xff]  ;;  %s15537_s6 = smov [#allocation6]  }
 0xbf1   :  { %v13906_v55 = vpop.f32.mrb[171].mxu1  ;;  %s12738_s7 = sshll.u32 %s15537_s6, 4  ;;  %s12739_s7 = int_to_ptr.vmem [resolvable:$true] %s12738_s7 }
 0xbf2   :  { %v12433_v39 = vadd.f32 %v13904_v31, %v13882_v35  ;;  %p15512_p1 = scmp.lt.s32.totalorder %s12739_s7, %s12739_s7 }
 0xbfe   :  { %v12472_v57 = vpop.f32.mrb[172].mxu1 }
 0xbff   :  { %v12473_v14 = vadd.f32 %v12472_v57, %v12433_v39  ;;  %v14560_v63 = vpop.f32.mrb[173].mxu1 }
 0xc00   :  { %v12475_v62 = vpop.f32.mrb[174].mxu1 }
 0xc01   :  { %v12484_v42 = vmul.f32 %v13355_v26, %v12473_v14  ;;  %v14561_v41 = vpop.f32.mrb[175].mxu1 }
 0xc03   :  { %v12491_v34 = vadd.f32 %v13356_v9, %v12484_v42 }
 0xc05   :  { %v12492_v50 = vmax.f32 %v12491_v34, 0.0 }
 0xc07   :  { %v12494_v43 = vcombine.high %v12492_v50, %v12492_v50  ;;  %v12501_v51 = vrot.slane %v12492_v50, %v21875_v7 }
 0xc09   :  { %v12508_v59 = vrot.slane %v12494_v43, %v21875_v7  ;;  %v12509_v13 = vcombine.high %v12501_v51, %v12501_v51  ;;  %v12515_v49 = vsel %vm6170_vm6, %v12501_v51, -inf  ;;  %v15536_v51 = vmov 1966171168  }
 0xc0a   :  { %v12516_v32 = vrot.slane %v12515_v49, 4 }
 0xc0b   :  { %v12510_v1 = vcombine.high %v12508_v59, %v12508_v59  ;;  %v12522_v18 = vsel %vm6170_vm6, %v12509_v13, -inf  ;;  %v12529_v4 = vsel %vm6170_vm6, %v12508_v59, -inf  ;;  %v12705_v59 = vunpack.c.l.s4 %v15536_v51 }
 0xc0c   :  { %v12517_v48 = vmax.f32 %v12515_v49, %v12516_v32  ;;  %v12523_v12 = vrot.slane %v12522_v18, 4  ;;  %v12530_v19 = vrot.slane %v12529_v4, 4  ;;  %v21885_v49 = vld [vmem:[#allocation32_spill] sm:$0xff] }
 0xc0d   :  { %v12536_v40 = vsel %vm6170_vm6, %v12510_v1, -inf  ;;  %vm12651_vm6 = vcmask 31744   ;;  %v12706_v13 = vunpack.c.0.s8 %v12705_v59 }
 0xc0e   :  { %v12518_v11 = vrot.slane %v12517_v48, 2  ;;  %v12524_v25 = vmax.f32 %v12522_v18, %v12523_v12  ;;  %v12531_v47 = vmax.f32 %v12529_v4, %v12530_v19  ;;  %v12537_v27 = vrot.slane %v12536_v40, 4 }
 0xc0f   :  { %v12709_v32 = vsub.s32 %v12706_v13, %v21885_v49 }
 0xc10   :  { %v12519_v21 = vmax.f32 %v12517_v48, %v12518_v11  ;;  %v12525_v7 = vrot.slane %v12524_v25, 2  ;;  %v12532_v53 = vrot.slane %v12531_v47, 2  ;;  %v12538_v60 = vmax.f32 %v12536_v40, %v12537_v27 }
 0xc12   :  { %v12520_v17 = vrot.slane %v12519_v21, 1  ;;  %v12526_v44 = vmax.f32 %v12524_v25, %v12525_v7  ;;  %v12533_v0 = vmax.f32 %v12531_v47, %v12532_v53  ;;  %v12539_v61 = vrot.slane %v12538_v60, 2 }
 0xc14   :  { %v12521_v22 = vmax.f32 %v12519_v21, %v12520_v17  ;;  %v12527_v5 = vrot.slane %v12526_v44, 1  ;;  %v12534_v33 = vrot.slane %v12533_v0, 1  ;;  %v12540_v10 = vmax.f32 %v12538_v60, %v12539_v61 }
 0xc16   :  { %v12528_v52 = vmax.f32 %v12526_v44, %v12527_v5  ;;  %v12535_v16 = vmax.f32 %v12533_v0, %v12534_v33  ;;  %v12541_v58 = vrot.slane %v12540_v10, 1  ;;  %v12543_v15 = vsel %vm7963_vm7, %v12521_v22, -inf }
 0xc18   :  { %v12542_v20 = vmax.f32 %v12540_v10, %v12541_v58  ;;  %v12544_v24 = vsel %vm7963_vm7, %v12528_v52, -inf  ;;  %v12546_v3 = vsel %vm7963_vm7, %v12535_v16, -inf }
 0xc19   :  { %v12545_v28 = vmax.f32 %v12543_v15, %v12544_v24 }
 0xc1a   :  { %v12547_v36 = vsel %vm7963_vm7, %v12542_v20, -inf }
 0xc1b   :  { %v12548_v45 = vmax.f32 %v12546_v3, %v12547_v36  ;;  %v12551_v30 = vpack.c.bf16 %v12545_v28, %v12545_v28 }
 0xc1d   :  { %v12552_v46 = vpack.c.bf16 %v12548_v45, %v12548_v45  ;;  %v12570_v6 = vunpack.c.l.b16 %v12551_v30 }
 0xc1f   :  { %v12571_v29 = vunpack.c.l.b16 %v12552_v46 }
 0xc21   :  { %v12572_v56 = vsel %vm8592_vm8, %v12571_v29, %v12570_v6 }
 0xc22   :  { %v12573_v35 = vpack.c.b16 %v12572_v56, %v12572_v56 }
 0xc24   :  { %14571 = vmatmul.mubr.msk.bf16.vlgmr.msra.gmra.mrb[176].mxu1 %vm7963_vm7, %v12573_v35 }
 0xc25   :  { %14576 = vmatprep.mubr.msk.bf16.mxu1 %vm15535_vm11, %v21884_v2  ;;  %14575 = vmatpush3.bf16.msra.mxu1 %v12656_v8  ;;  %v13363_v2 = vld [vmem:[%s21294_s8] ss:$0 sm:$0xff]  ;;  %s15507_s8 = scalar_lea.vmem %s12739_s7, 32 }
 0xc26   :  { %p15508_p0 = scmp.ne.s32.totalorder %s12739_s7, %s15507_s8  ;;  %p15513_p2 = scmp.lt.s32.totalorder %s15507_s8, %s15507_s8 }
 0xc28   :  { %p15514_p3 = por %p15513_p2, %p15512_p1 }
 0xc2a   :  { %p15515_p4 = pnand %p15514_p3, %p15508_p0 }
 0xcf7   :  { %v12635_v54 = vpop.f32.mrb[176].mxu1 }
 0xcf8   :  { %v12636_v31 = vadd.f32 %v13357_v37, %v12635_v54  ;;  %v14572_v23 = vpop.f32.mrb[177].mxu1 }
 0xcf9   :  { %v12638_v55 = vpop.f32.mrb[178].mxu1 }
 0xcfa   :  { %v12641_v39 = vmax.f32 %v12636_v31, 0.0  ;;  %v14573_v26 = vpop.f32.mrb[179].mxu1 }
 0xcfc   :  { %v12642_v57 = vpack.c.bf16 %v12641_v39, %v12641_v39 }
 0xcfe   :  { %14577 = vmatmul.mubr.msk.bf16.vlgmr.msra.gmra.mrb[180].mxu1 %vm12651_vm6, %v12642_v57 }
 0xdd1   :  { %v12692_v14 = vpop.f32.mrb[180].mxu1 }
 0xdd2   :  { %v12693_v63 = vadd.f32 %v13363_v2, %v12692_v14  ;;  %v14578_v9 = vpop.f32.mrb[181].mxu1 }
 0xdd3   :  { %v12695_v62 = vpop.f32.mrb[182].mxu1 }
 0xdd4   :  { %v12698_v42 = vsub.f32 0.0, %v12693_v63  ;;  %v14579_v41 = vpop.f32.mrb[183].mxu1 }
 0xdd6   :  { %v12699_v34 = vmul.f32 1.442695, %v12698_v42 }
 0xdd8   :  { %15415 = vpow2.f32 %v12699_v34 }
 0xde2   :  { %v15416_v50 = vpop.eup %15415 }
 0xde3   :  { %v12701_v43 = vadd.f32 1.0, %v15416_v50 }
 0xde5   :  { %15417 = vrcp.f32 %v12701_v43 }
 0xdef   :  { %v15418_v1 = vpop.eup %15417 }
 0xdf0   :  { %v12710_v18 = vrot.slane %v15418_v1, %v12709_v32 }
 0xdf2   :  { %v12711_v4 = vcombine.high %v12710_v18, %v12710_v18  ;;  %v12718_v48 = vrot.slane %v12710_v18, %v12709_v32 }
 0xdf4   :  { %v12725_v12 = vrot.slane %v12711_v4, %v12709_v32  ;;  %v12728_v19 = vmul.f32 %v12718_v48, %v12545_v28 }
 0xdf6   :  { %v12729_v40 = vmul.f32 %v12725_v12, %v12548_v45  ;;  %12731 = vst.msk [vmem:[#allocation6] sm:$0x1] %vm12730_vm2, %v12728_v19 }
 0xdf8   :  { %12732 = vst.msk [vmem:[#allocation6 + $0x1] sm:$0x1] %vm12730_vm2, %v12729_v40 }
 0xdf9   :  { %15518 = shalt.err (!%p15515_p4)
}
 0xdfa   :  { %s15519_s22 = scalar_lea.hbm %s21295_s9, 32 }
 0xdfb   :  { %p15520_p5 = scmp.ne.s32.totalorder %s21295_s9, %s15519_s22  ;;  %p15523_p6 = scmp.lt.u32.totalorder %s15519_s22, %s21295_s9 }
 0xdfd   :  { %p15525_p7 = pnand %p15523_p6, %p15520_p5 }
 0xdff   :  { %15528 = shalt.err (!%p15525_p7)
}
 0xe00   :  { %s15538_s27 = smov 16   ;;  %s15539_s28 = smov 1  }
 0xe01   :  { %12744 = dma.vmem_to_hbm [thread:$0]  %s12739_s7, 32, %s21295_s9, [#allocation7], %s15538_s27, %s15538_s27, %s15539_s28  }
 0xe02   :  { %15529 = dma.done.wait [#allocation7], 32  }
 0xe03   :  { %15530 = vsyncadd [#allocation7], 4294967264 }
 0xe04   :  { %12748 = vsyncpa [#allocation7], 1 }

</bundles_post_ra>
